<compile_context>
chip_gen: v5e
topology: v5e:2x2
jax: 0.10.0
libtpu: 0.0.40
codegen_flags: <defaults>
</compile_context>

<pallas_src>
import functools

import jax
import jax.numpy as jnp
from jax.experimental import pallas as pl
from jax.experimental.pallas import tpu as pltpu

_LANE_TILE = 128  # lane-dense output tile width (one full lane group)


# ----------------------------------------------------------------------------
# Pallas kernels
# ----------------------------------------------------------------------------
def _make_conv_bn_lrelu_kernel(m_real, leaky, eps):
    """Fused (im2col-matmul) conv + BatchNorm(train mode) + LeakyReLU.

    a_ref : [Mp, K]  bf16 patch matrix (padded rows are exactly zero)
    w_ref : [K, TN]  bf16 weight tile for this Cout block
    o_ref : [Mp, TN] bf16 output tile
    """
    inv_m = 1.0 / float(m_real)

    def kernel(a_ref, w_ref, o_ref):
        # MXU matmul, f32 accumulation.
        y = jnp.dot(a_ref[...], w_ref[...], preferred_element_type=jnp.float32)
        # BatchNorm2d training-mode batch stats per channel over (N, H, W).
        # Padded rows of A are zero -> zero rows of y -> no masking needed.
        mean = jnp.sum(y, axis=0, keepdims=True) * inv_m
        var = jnp.sum(y * y, axis=0, keepdims=True) * inv_m - mean * mean
        var = jnp.maximum(var, 0.0)  # guard E[y^2]-mean^2 against tiny negatives
        y_hat = (y - mean) * jax.lax.rsqrt(var + eps)  # gamma=1, beta=0
        o_ref[...] = jnp.where(y_hat >= 0.0, y_hat, leaky * y_hat).astype(o_ref.dtype)

    return kernel


def _linear_bias_kernel(a_ref, w_ref, b_ref, o_ref):
    """Final Linear layer: matmul + bias (no BN, no activation), f32 out."""
    y = jnp.dot(a_ref[...], w_ref[...], preferred_element_type=jnp.float32)
    o_ref[...] = y + b_ref[...]


def _pallas_conv_bn_lrelu(a_pad, wt_pad, m_real, leaky, eps=1e-5):
    mp, kk = a_pad.shape
    _, cp = wt_pad.shape
    tn = min(_LANE_TILE, cp)
    kern = _make_conv_bn_lrelu_kernel(m_real, leaky, eps)
    return pl.pallas_call(
        kern,
        out_shape=jax.ShapeDtypeStruct((mp, cp), jnp.bfloat16),
        grid=(cp // tn,),
        in_specs=[
            pl.BlockSpec((mp, kk), lambda j: (0, 0)),   # patches resident across Cout tiles
            pl.BlockSpec((kk, tn), lambda j: (0, j)),   # per-tile weight slab
        ],
        out_specs=pl.BlockSpec((mp, tn), lambda j: (0, j)),
        compiler_params=pltpu.CompilerParams(
            dimension_semantics=("parallel",)),
    )(a_pad, wt_pad)


def _pallas_linear_bias(a_pad, wt_pad, b_pad):
    mp, kk = a_pad.shape
    _, cp = wt_pad.shape
    tn = min(_LANE_TILE, cp)
    return pl.pallas_call(
        _linear_bias_kernel,
        out_shape=jax.ShapeDtypeStruct((mp, cp), jnp.float32),
        grid=(cp // tn,),
        in_specs=[
            pl.BlockSpec((mp, kk), lambda j: (0, 0)),
            pl.BlockSpec((kk, tn), lambda j: (0, j)),
            pl.BlockSpec((1, tn), lambda j: (0, j)),
        ],
        out_specs=pl.BlockSpec((mp, tn), lambda j: (0, j)),
        compiler_params=pltpu.CompilerParams(
            dimension_semantics=("parallel",)),
    )(a_pad, wt_pad, b_pad)


# ----------------------------------------------------------------------------
# JAX glue: spectral norm, im2col patch extraction (layout plumbing)
# ----------------------------------------------------------------------------
def _round_up(v, m):
    return ((v + m - 1) // m) * m


def spectral_normalize(w, key):
    """One power iteration (as in ALAD's SpectralNorm, power_iterations=1),
    applied once at init with a deterministic u."""
    c_out = w.shape[0]
    wm = w.reshape(c_out, -1)
    u = jax.random.normal(key, (c_out,), dtype=jnp.float32)
    u = u / (jnp.linalg.norm(u) + 1e-12)
    v = wm.T @ u
    v = v / (jnp.linalg.norm(v) + 1e-12)
    u = wm @ v
    u = u / (jnp.linalg.norm(u) + 1e-12)
    sigma = u @ (wm @ v)
    return w / sigma


def extract_patches_nhwc(x, k, stride):
    """im2col on NHWC input.  x: [N, H, W, C] -> (A[N*OH*OW, k*k*C], (N,OH,OW)).

    Patch feature order is (kh, kw, C); the weights are pre-permuted to the
    same order in prep_params, so no per-forward transpose is needed."""
    n, h, w, c = x.shape
    oh = (h - k) // stride + 1
    ow = (w - k) // stride + 1
    cols = []
    for kh in range(k):
        for kw in range(k):
            cols.append(x[:, kh:kh + stride * (oh - 1) + 1:stride,
                             kw:kw + stride * (ow - 1) + 1:stride, :])
    p = jnp.stack(cols, axis=3)                  # [N, OH, OW, k*k, C]
    return p.reshape(n * oh * ow, k * k * c), (n, oh, ow)


def _conv_bn_lrelu_layer(x, wt_pad, c_out, k, stride, leaky=0.01):
    """One encoder conv layer. x: [N, H, W, C] (bf16), wt_pad: [K, Cp] bf16."""
    a, (n, oh, ow) = extract_patches_nhwc(x, k, stride)
    m = a.shape[0]
    mp = _round_up(max(m, 16), 16)               # bf16-friendly sublane padding
    a_pad = jnp.pad(a, ((0, mp - m), (0, 0))).astype(jnp.bfloat16)
    y = _pallas_conv_bn_lrelu(a_pad, wt_pad, m_real=m, leaky=leaky)
    return y[:m, :c_out].reshape(n, oh, ow, c_out)


# ----------------------------------------------------------------------------
# Parameters (PyTorch layout) + one-time prep (hoisted out of the forward)
# ----------------------------------------------------------------------------
def init_params(key, latent_size):
    ks = jax.random.split(key, 8)
    std = 0.02
    w1 = std * jax.random.normal(ks[0], (32, 1, 3, 3), jnp.float32)
    w2 = std * jax.random.normal(ks[1], (64, 32, 3, 3), jnp.float32)
    w3 = std * jax.random.normal(ks[2], (128, 64, 3, 3), jnp.float32)
    w4 = std * jax.random.normal(ks[3], (latent_size, 3200), jnp.float32)
    b4 = jnp.zeros((latent_size,), jnp.float32)
    w1 = spectral_normalize(w1, ks[4])
    w2 = spectral_normalize(w2, ks[5])
    w3 = spectral_normalize(w3, ks[6])
    w4 = spectral_normalize(w4, ks[7])
    return dict(w1=w1, w2=w2, w3=w3, w4=w4, b4=b4)


def _prep_conv_weight(w):
    c_out, c_in, k, _ = w.shape
    # [Cout, Cin, kh, kw] -> [kh, kw, Cin, Cout] -> [K, Cout]
    wt = jnp.transpose(w, (2, 3, 1, 0)).reshape(k * k * c_in, c_out)
    cp = _round_up(c_out, _LANE_TILE)
    return jnp.pad(wt, ((0, 0), (0, cp - c_out))).astype(jnp.bfloat16)


def _prep_linear_weight(w, c, h, wd):
    # PyTorch flattens x3 as NCHW (c, h, w); our activations are NHWC, so
    # permute the weight columns once here instead of transposing x3 per step.
    latent = w.shape[0]
    w_nhwc = (w.reshape(latent, c, h, wd)
               .transpose(0, 2, 3, 1)
               .reshape(latent, h * wd * c))
    cp = _round_up(latent, _LANE_TILE)
    return jnp.pad(w_nhwc.T, ((0, 0), (0, cp - latent))).astype(jnp.bfloat16)


def prep_params(params, latent_size):
    cp4 = _round_up(latent_size, _LANE_TILE)
    return dict(
        wt1=_prep_conv_weight(params["w1"]),
        wt2=_prep_conv_weight(params["w2"]),
        wt3=_prep_conv_weight(params["w3"]),
        # x3 is [N, 5, 5, 128] for 28x28 MNIST input -> 3200 features
        wt4=_prep_linear_weight(params["w4"], c=128, h=5, wd=5),
        b4=jnp.pad(params["b4"], (0, cp4 - latent_size))
              .reshape(1, cp4).astype(jnp.float32),
    )


# ----------------------------------------------------------------------------
# Encoder_MNIST forward
# ----------------------------------------------------------------------------
@functools.partial(jax.jit, static_argnames=("latent_size",))
def encoder_mnist_forward(prepped, x, latent_size):
    """x: [N, 1, 28, 28] NCHW f32 -> [N, latent_size, 1, 1] f32."""
    xh = jnp.transpose(x, (0, 2, 3, 1)).astype(jnp.bfloat16)   # NHWC once
    # main1: SN-Conv(1->32, k3, s1) + BN + LeakyReLU(0.01)
    x1 = _conv_bn_lrelu_layer(xh, prepped["wt1"], c_out=32, k=3, stride=1)
    # main2: SN-Conv(32->64, k3, s2) + BN + LeakyReLU(0.01)
    x2 = _conv_bn_lrelu_layer(x1, prepped["wt2"], c_out=64, k=3, stride=2)
    # main3: SN-Conv(64->128, k3, s2) + BN + LeakyReLU(0.01)
    x3 = _conv_bn_lrelu_layer(x2, prepped["wt3"], c_out=128, k=3, stride=2)
    # main4: SN-Linear(3200 -> latent) with bias
    n = x3.shape[0]
    flat = x3.reshape(n, -1)                     # (h, w, c) order; weight matches
    m = flat.shape[0]
    mp = _round_up(max(m, 16), 16)
    a_pad = jnp.pad(flat, ((0, mp - m), (0, 0)))
    out = _pallas_linear_bias(a_pad, prepped["wt4"], prepped["b4"])
    out = out[:m, :latent_size]
    return out[:, :, None, None]                 # [N, latent, 1, 1]


if __name__ == "__main__":
    latent_size = 64
    key = jax.random.PRNGKey(0)
    k_param, k_x = jax.random.split(key)

    params = init_params(k_param, latent_size)
    prepped = prep_params(params, latent_size)

    # MNIST-sized input (NCHW), small batch.
    x = jax.random.normal(k_x, (2, 1, 28, 28), dtype=jnp.float32)

    out = encoder_mnist_forward(prepped, x, latent_size)
    out = jax.block_until_ready(out)

    assert out.shape == (2, latent_size, 1, 1), out.shape
    assert out.dtype == jnp.float32
    assert bool(jnp.all(jnp.isfinite(out)))
    print("KERNEL_OK")
</pallas_src>

<mosaic_0001>
module attributes {stable_mosaic.version = 11 : i64} {
  func.func @kernel(%arg0: i32, %arg1: memref<1360x9xbf16, #tpu.memory_space<vmem>>, %arg2: memref<9x128xbf16, #tpu.memory_space<vmem>>, %arg3: memref<1360x128xbf16, #tpu.memory_space<vmem>>) attributes {dimension_semantics = [#tpu.dimension_semantics<parallel>], iteration_bounds = array<i64: 1>, scalar_prefetch = 0 : i64, scratch_operands = 0 : i64, tpu.core_type = #tpu.core_type<tc>, window_params = [{pipeline_mode = #tpu.pipeline_mode<synchronous>, transform_indices = @transform_0, window_bounds = array<i64: 1360, 9>}, {transform_indices = @transform_1, window_bounds = array<i64: 9, 128>}, {transform_indices = @transform_2, window_bounds = array<i64: 1360, 128>}]} {
    %c0 = arith.constant 0 : index
    %c0_0 = arith.constant 0 : index
    %0 = vector.load %arg1[%c0, %c0_0] : memref<1360x9xbf16, #tpu.memory_space<vmem>>, vector<1360x9xbf16>
    %c0_1 = arith.constant 0 : index
    %c0_2 = arith.constant 0 : index
    %1 = vector.load %arg2[%c0_1, %c0_2] : memref<9x128xbf16, #tpu.memory_space<vmem>>, vector<9x128xbf16>
    %cst = arith.constant dense<0.000000e+00> : vector<1360x128xf32>
    %2 = tpu.matmul %0, %1, %cst {dimension_numbers = #tpu.dot_dimension_numbers<[1], [0], [0], [1], [0, 0, 1, 1], [], []>} : vector<1360x9xbf16>, vector<9x128xbf16>, vector<1360x128xf32> -> vector<1360x128xf32>
    %cst_3 = arith.constant dense<0.000000e+00> : vector<128xf32>
    %3 = vector.multi_reduction <add>, %2, %cst_3 [0] : vector<1360x128xf32> to vector<128xf32>
    %4 = vector.shape_cast %3 : vector<128xf32> to vector<1x128xf32>
    %cst_4 = arith.constant 7.396450e-04 : f32
    %5 = vector.broadcast %cst_4 : f32 to vector<1x128xf32>
    %6 = arith.mulf %4, %5 : vector<1x128xf32>
    %7 = arith.mulf %2, %2 : vector<1360x128xf32>
    %cst_5 = arith.constant dense<0.000000e+00> : vector<128xf32>
    %8 = vector.multi_reduction <add>, %7, %cst_5 [0] : vector<1360x128xf32> to vector<128xf32>
    %9 = vector.shape_cast %8 : vector<128xf32> to vector<1x128xf32>
    %cst_6 = arith.constant 7.396450e-04 : f32
    %10 = vector.broadcast %cst_6 : f32 to vector<1x128xf32>
    %11 = arith.mulf %9, %10 : vector<1x128xf32>
    %12 = arith.mulf %6, %6 : vector<1x128xf32>
    %13 = arith.subf %11, %12 : vector<1x128xf32>
    %cst_7 = arith.constant 0.000000e+00 : f32
    %14 = vector.broadcast %cst_7 : f32 to vector<1x128xf32>
    %15 = arith.maximumf %13, %14 : vector<1x128xf32>
    %16 = vector.broadcast %6 : vector<1x128xf32> to vector<1360x128xf32>
    %17 = arith.subf %2, %16 : vector<1360x128xf32>
    %cst_8 = arith.constant 9.99999974E-6 : f32
    %18 = vector.broadcast %cst_8 : f32 to vector<1x128xf32>
    %19 = arith.addf %15, %18 : vector<1x128xf32>
    %20 = math.rsqrt %19 : vector<1x128xf32>
    %21 = vector.broadcast %20 : vector<1x128xf32> to vector<1360x128xf32>
    %22 = arith.mulf %17, %21 : vector<1360x128xf32>
    %cst_9 = arith.constant 0.000000e+00 : f32
    %23 = vector.broadcast %cst_9 : f32 to vector<1360x128xf32>
    %24 = arith.cmpf oge, %22, %23 : vector<1360x128xf32>
    %cst_10 = arith.constant 0.00999999977 : f32
    %25 = vector.broadcast %cst_10 : f32 to vector<1360x128xf32>
    %26 = arith.mulf %25, %22 : vector<1360x128xf32>
    %27 = arith.select %24, %22, %26 : vector<1360x128xi1>, vector<1360x128xf32>
    %28 = arith.truncf %27 : vector<1360x128xf32> to vector<1360x128xbf16>
    %c0_11 = arith.constant 0 : index
    %c0_12 = arith.constant 0 : index
    %29 = vector.load %arg3[%c0_11, %c0_12] : memref<1360x128xbf16, #tpu.memory_space<vmem>>, vector<1360x128xbf16>
    tpu.vector_store %arg3[%c0_11, %c0_12], %28 {strides = array<i32>} : memref<1360x128xbf16, #tpu.memory_space<vmem>>, vector<1360x128xbf16>,
    return
  }
  func.func @transform_0(%arg0: i32) -> (i32, i32) {
    %c0_i32 = arith.constant 0 : i32
    %c0_i32_0 = arith.constant 0 : i32
    %c0_i32_1 = arith.constant 0 : i32
    return %c0_i32, %c0_i32_0 : i32, i32
  }
  func.func @transform_1(%arg0: i32) -> (i32, i32) {
    %c0_i32 = arith.constant 0 : i32
    %c0_i32_0 = arith.constant 0 : i32
    return %c0_i32, %arg0 : i32, i32
  }
  func.func @transform_2(%arg0: i32) -> (i32, i32) {
    %c0_i32 = arith.constant 0 : i32
    %c0_i32_0 = arith.constant 0 : i32
    return %c0_i32, %arg0 : i32, i32
  }
}

module attributes {stable_mosaic.version = 11 : i64} {
  func.func @kernel(%arg0: i32, %arg1: memref<288x288xbf16, #tpu.memory_space<vmem>>, %arg2: memref<288x128xbf16, #tpu.memory_space<vmem>>, %arg3: memref<288x128xbf16, #tpu.memory_space<vmem>>) attributes {dimension_semantics = [#tpu.dimension_semantics<parallel>], iteration_bounds = array<i64: 1>, scalar_prefetch = 0 : i64, scratch_operands = 0 : i64, tpu.core_type = #tpu.core_type<tc>, window_params = [{pipeline_mode = #tpu.pipeline_mode<synchronous>, transform_indices = @transform_0, window_bounds = array<i64: 288, 288>}, {transform_indices = @transform_1, window_bounds = array<i64: 288, 128>}, {transform_indices = @transform_2, window_bounds = array<i64: 288, 128>}]} {
    %c0 = arith.constant 0 : index
    %c0_0 = arith.constant 0 : index
    %0 = vector.load %arg1[%c0, %c0_0] : memref<288x288xbf16, #tpu.memory_space<vmem>>, vector<288x288xbf16>
    %c0_1 = arith.constant 0 : index
    %c0_2 = arith.constant 0 : index
    %1 = vector.load %arg2[%c0_1, %c0_2] : memref<288x128xbf16, #tpu.memory_space<vmem>>, vector<288x128xbf16>
    %cst = arith.constant dense<0.000000e+00> : vector<288x128xf32>
    %2 = tpu.matmul %0, %1, %cst {dimension_numbers = #tpu.dot_dimension_numbers<[1], [0], [0], [1], [0, 0, 1, 1], [], []>} : vector<288x288xbf16>, vector<288x128xbf16>, vector<288x128xf32> -> vector<288x128xf32>
    %cst_3 = arith.constant dense<0.000000e+00> : vector<128xf32>
    %3 = vector.multi_reduction <add>, %2, %cst_3 [0] : vector<288x128xf32> to vector<128xf32>
    %4 = vector.shape_cast %3 : vector<128xf32> to vector<1x128xf32>
    %cst_4 = arith.constant 0.00347222225 : f32
    %5 = vector.broadcast %cst_4 : f32 to vector<1x128xf32>
    %6 = arith.mulf %4, %5 : vector<1x128xf32>
    %7 = arith.mulf %2, %2 : vector<288x128xf32>
    %cst_5 = arith.constant dense<0.000000e+00> : vector<128xf32>
    %8 = vector.multi_reduction <add>, %7, %cst_5 [0] : vector<288x128xf32> to vector<128xf32>
    %9 = vector.shape_cast %8 : vector<128xf32> to vector<1x128xf32>
    %cst_6 = arith.constant 0.00347222225 : f32
    %10 = vector.broadcast %cst_6 : f32 to vector<1x128xf32>
    %11 = arith.mulf %9, %10 : vector<1x128xf32>
    %12 = arith.mulf %6, %6 : vector<1x128xf32>
    %13 = arith.subf %11, %12 : vector<1x128xf32>
    %cst_7 = arith.constant 0.000000e+00 : f32
    %14 = vector.broadcast %cst_7 : f32 to vector<1x128xf32>
    %15 = arith.maximumf %13, %14 : vector<1x128xf32>
    %16 = vector.broadcast %6 : vector<1x128xf32> to vector<288x128xf32>
    %17 = arith.subf %2, %16 : vector<288x128xf32>
    %cst_8 = arith.constant 9.99999974E-6 : f32
    %18 = vector.broadcast %cst_8 : f32 to vector<1x128xf32>
    %19 = arith.addf %15, %18 : vector<1x128xf32>
    %20 = math.rsqrt %19 : vector<1x128xf32>
    %21 = vector.broadcast %20 : vector<1x128xf32> to vector<288x128xf32>
    %22 = arith.mulf %17, %21 : vector<288x128xf32>
    %cst_9 = arith.constant 0.000000e+00 : f32
    %23 = vector.broadcast %cst_9 : f32 to vector<288x128xf32>
    %24 = arith.cmpf oge, %22, %23 : vector<288x128xf32>
    %cst_10 = arith.constant 0.00999999977 : f32
    %25 = vector.broadcast %cst_10 : f32 to vector<288x128xf32>
    %26 = arith.mulf %25, %22 : vector<288x128xf32>
    %27 = arith.select %24, %22, %26 : vector<288x128xi1>, vector<288x128xf32>
    %28 = arith.truncf %27 : vector<288x128xf32> to vector<288x128xbf16>
    %c0_11 = arith.constant 0 : index
    %c0_12 = arith.constant 0 : index
    %29 = vector.load %arg3[%c0_11, %c0_12] : memref<288x128xbf16, #tpu.memory_space<vmem>>, vector<288x128xbf16>
    tpu.vector_store %arg3[%c0_11, %c0_12], %28 {strides = array<i32>} : memref<288x128xbf16, #tpu.memory_space<vmem>>, vector<288x128xbf16>,
    return
  }
  func.func @transform_0(%arg0: i32) -> (i32, i32) {
    %c0_i32 = arith.constant 0 : i32
    %c0_i32_0 = arith.constant 0 : i32
    %c0_i32_1 = arith.constant 0 : i32
    return %c0_i32, %c0_i32_0 : i32, i32
  }
  func.func @transform_1(%arg0: i32) -> (i32, i32) {
    %c0_i32 = arith.constant 0 : i32
    %c0_i32_0 = arith.constant 0 : i32
    return %c0_i32, %arg0 : i32, i32
  }
  func.func @transform_2(%arg0: i32) -> (i32, i32) {
    %c0_i32 = arith.constant 0 : i32
    %c0_i32_0 = arith.constant 0 : i32
    return %c0_i32, %arg0 : i32, i32
  }
}

module attributes {stable_mosaic.version = 11 : i64} {
  func.func @kernel(%arg0: i32, %arg1: memref<64x576xbf16, #tpu.memory_space<vmem>>, %arg2: memref<576x128xbf16, #tpu.memory_space<vmem>>, %arg3: memref<64x128xbf16, #tpu.memory_space<vmem>>) attributes {dimension_semantics = [#tpu.dimension_semantics<parallel>], iteration_bounds = array<i64: 1>, scalar_prefetch = 0 : i64, scratch_operands = 0 : i64, tpu.core_type = #tpu.core_type<tc>, window_params = [{pipeline_mode = #tpu.pipeline_mode<synchronous>, transform_indices = @transform_0, window_bounds = array<i64: 64, 576>}, {transform_indices = @transform_1, window_bounds = array<i64: 576, 128>}, {transform_indices = @transform_2, window_bounds = array<i64: 64, 128>}]} {
    %c0 = arith.constant 0 : index
    %c0_0 = arith.constant 0 : index
    %0 = vector.load %arg1[%c0, %c0_0] : memref<64x576xbf16, #tpu.memory_space<vmem>>, vector<64x576xbf16>
    %c0_1 = arith.constant 0 : index
    %c0_2 = arith.constant 0 : index
    %1 = vector.load %arg2[%c0_1, %c0_2] : memref<576x128xbf16, #tpu.memory_space<vmem>>, vector<576x128xbf16>
    %cst = arith.constant dense<0.000000e+00> : vector<64x128xf32>
    %2 = tpu.matmul %0, %1, %cst {dimension_numbers = #tpu.dot_dimension_numbers<[1], [0], [0], [1], [0, 0, 1, 1], [], []>} : vector<64x576xbf16>, vector<576x128xbf16>, vector<64x128xf32> -> vector<64x128xf32>
    %cst_3 = arith.constant dense<0.000000e+00> : vector<128xf32>
    %3 = vector.multi_reduction <add>, %2, %cst_3 [0] : vector<64x128xf32> to vector<128xf32>
    %4 = vector.shape_cast %3 : vector<128xf32> to vector<1x128xf32>
    %cst_4 = arith.constant 2.000000e-02 : f32
    %5 = vector.broadcast %cst_4 : f32 to vector<1x128xf32>
    %6 = arith.mulf %4, %5 : vector<1x128xf32>
    %7 = arith.mulf %2, %2 : vector<64x128xf32>
    %cst_5 = arith.constant dense<0.000000e+00> : vector<128xf32>
    %8 = vector.multi_reduction <add>, %7, %cst_5 [0] : vector<64x128xf32> to vector<128xf32>
    %9 = vector.shape_cast %8 : vector<128xf32> to vector<1x128xf32>
    %cst_6 = arith.constant 2.000000e-02 : f32
    %10 = vector.broadcast %cst_6 : f32 to vector<1x128xf32>
    %11 = arith.mulf %9, %10 : vector<1x128xf32>
    %12 = arith.mulf %6, %6 : vector<1x128xf32>
    %13 = arith.subf %11, %12 : vector<1x128xf32>
    %cst_7 = arith.constant 0.000000e+00 : f32
    %14 = vector.broadcast %cst_7 : f32 to vector<1x128xf32>
    %15 = arith.maximumf %13, %14 : vector<1x128xf32>
    %16 = vector.broadcast %6 : vector<1x128xf32> to vector<64x128xf32>
    %17 = arith.subf %2, %16 : vector<64x128xf32>
    %cst_8 = arith.constant 9.99999974E-6 : f32
    %18 = vector.broadcast %cst_8 : f32 to vector<1x128xf32>
    %19 = arith.addf %15, %18 : vector<1x128xf32>
    %20 = math.rsqrt %19 : vector<1x128xf32>
    %21 = vector.broadcast %20 : vector<1x128xf32> to vector<64x128xf32>
    %22 = arith.mulf %17, %21 : vector<64x128xf32>
    %cst_9 = arith.constant 0.000000e+00 : f32
    %23 = vector.broadcast %cst_9 : f32 to vector<64x128xf32>
    %24 = arith.cmpf oge, %22, %23 : vector<64x128xf32>
    %cst_10 = arith.constant 0.00999999977 : f32
    %25 = vector.broadcast %cst_10 : f32 to vector<64x128xf32>
    %26 = arith.mulf %25, %22 : vector<64x128xf32>
    %27 = arith.select %24, %22, %26 : vector<64x128xi1>, vector<64x128xf32>
    %28 = arith.truncf %27 : vector<64x128xf32> to vector<64x128xbf16>
    %c0_11 = arith.constant 0 : index
    %c0_12 = arith.constant 0 : index
    %29 = vector.load %arg3[%c0_11, %c0_12] : memref<64x128xbf16, #tpu.memory_space<vmem>>, vector<64x128xbf16>
    tpu.vector_store %arg3[%c0_11, %c0_12], %28 {strides = array<i32>} : memref<64x128xbf16, #tpu.memory_space<vmem>>, vector<64x128xbf16>,
    return
  }
  func.func @transform_0(%arg0: i32) -> (i32, i32) {
    %c0_i32 = arith.constant 0 : i32
    %c0_i32_0 = arith.constant 0 : i32
    %c0_i32_1 = arith.constant 0 : i32
    return %c0_i32, %c0_i32_0 : i32, i32
  }
  func.func @transform_1(%arg0: i32) -> (i32, i32) {
    %c0_i32 = arith.constant 0 : i32
    %c0_i32_0 = arith.constant 0 : i32
    return %c0_i32, %arg0 : i32, i32
  }
  func.func @transform_2(%arg0: i32) -> (i32, i32) {
    %c0_i32 = arith.constant 0 : i32
    %c0_i32_0 = arith.constant 0 : i32
    return %c0_i32, %arg0 : i32, i32
  }
}

module attributes {stable_mosaic.version = 11 : i64} {
  func.func @_linear_bias_kernel(%arg0: i32, %arg1: memref<16x3200xbf16, #tpu.memory_space<vmem>>, %arg2: memref<3200x128xbf16, #tpu.memory_space<vmem>>, %arg3: memref<1x128xf32, #tpu.memory_space<vmem>>, %arg4: memref<16x128xf32, #tpu.memory_space<vmem>>) attributes {dimension_semantics = [#tpu.dimension_semantics<parallel>], iteration_bounds = array<i64: 1>, scalar_prefetch = 0 : i64, scratch_operands = 0 : i64, tpu.core_type = #tpu.core_type<tc>, window_params = [{pipeline_mode = #tpu.pipeline_mode<synchronous>, transform_indices = @transform_0, window_bounds = array<i64: 16, 3200>}, {transform_indices = @transform_1, window_bounds = array<i64: 3200, 128>}, {transform_indices = @transform_2, window_bounds = array<i64: 1, 128>}, {transform_indices = @transform_3, window_bounds = array<i64: 16, 128>}]} {
    %c0 = arith.constant 0 : index
    %c0_0 = arith.constant 0 : index
    %0 = vector.load %arg1[%c0, %c0_0] : memref<16x3200xbf16, #tpu.memory_space<vmem>>, vector<16x3200xbf16>
    %c0_1 = arith.constant 0 : index
    %c0_2 = arith.constant 0 : index
    %1 = vector.load %arg2[%c0_1, %c0_2] : memref<3200x128xbf16, #tpu.memory_space<vmem>>, vector<3200x128xbf16>
    %cst = arith.constant dense<0.000000e+00> : vector<16x128xf32>
    %2 = tpu.matmul %0, %1, %cst {dimension_numbers = #tpu.dot_dimension_numbers<[1], [0], [0], [1], [0, 0, 1, 1], [], []>} : vector<16x3200xbf16>, vector<3200x128xbf16>, vector<16x128xf32> -> vector<16x128xf32>
    %c0_3 = arith.constant 0 : index
    %c0_4 = arith.constant 0 : index
    %3 = vector.load %arg3[%c0_3, %c0_4] : memref<1x128xf32, #tpu.memory_space<vmem>>, vector<1x128xf32>
    %4 = vector.broadcast %3 : vector<1x128xf32> to vector<16x128xf32>
    %5 = arith.addf %2, %4 : vector<16x128xf32>
    %c0_5 = arith.constant 0 : index
    %c0_6 = arith.constant 0 : index
    %6 = vector.load %arg4[%c0_5, %c0_6] : memref<16x128xf32, #tpu.memory_space<vmem>>, vector<16x128xf32>
    tpu.vector_store %arg4[%c0_5, %c0_6], %5 {strides = array<i32>} : memref<16x128xf32, #tpu.memory_space<vmem>>, vector<16x128xf32>,
    return
  }
  func.func @transform_0(%arg0: i32) -> (i32, i32) {
    %c0_i32 = arith.constant 0 : i32
    %c0_i32_0 = arith.constant 0 : i32
    %c0_i32_1 = arith.constant 0 : i32
    return %c0_i32, %c0_i32_0 : i32, i32
  }
  func.func @transform_1(%arg0: i32) -> (i32, i32) {
    %c0_i32 = arith.constant 0 : i32
    %c0_i32_0 = arith.constant 0 : i32
    return %c0_i32, %arg0 : i32, i32
  }
  func.func @transform_2(%arg0: i32) -> (i32, i32) {
    %c0_i32 = arith.constant 0 : i32
    %c0_i32_0 = arith.constant 0 : i32
    return %c0_i32, %arg0 : i32, i32
  }
  func.func @transform_3(%arg0: i32) -> (i32, i32) {
    %c0_i32 = arith.constant 0 : i32
    %c0_i32_0 = arith.constant 0 : i32
    return %c0_i32, %arg0 : i32, i32
  }
}

</mosaic_0001>

<bundles_post_ra>
// kernel: encoder_mnist_forward.4
= control target key start
LH: loop header
LB: loop body
LE: loop exit
PB: predicated region body
PF: predicated region fallthrough
CT: control target
= control target key end

     0   :  { %7 = vsyncpa [#allocation3], 0  ;;  %s4117_s12 = smov [#allocation2]   ;;  %s4118_s14 = smov 64   ;;  %s8683_s0 = inlined_call_operand.vmem [shape: bf16[1360,9], index: 0, kind: input, shape index: {}]   ;;  %s8684_s1 = inlined_call_operand.hbm [shape: bf16[9,128], index: 1, kind: input, shape index: {}]   ;;  %s8685_s2 = inlined_call_operand.vmem [shape: bf16[1360,128], index: 2, kind: output, shape index: {}]  }
   0x1   :  { %s14_s11 = sshll.u32 %s8684_s1, 4  ;;  %s16_s13 = sshll.u32 %s4117_s12, 4  ;;  %s15_s11 = int_to_ptr.hbm [resolvable:$true] %s14_s11  ;;  %s17_s13 = int_to_ptr.vmem [resolvable:$true] %s16_s13 }
   0x2   :  { %s4119_s15 = smov 4  }
   0x3   :  { %22 = dma.hbm_to_vmem [thread:$0]  %s15_s11, 128, %s17_s13, [#allocation3], %s4118_s14, %s4118_s14, %s4119_s15  }
   0x4   :  { %4115 = dma.done.wait [#allocation3], 128  }
   0x5   :  { %4116 = vsyncadd [#allocation3], 4294967168  ;;  %vm886_vm0 = vcmask 1043456   ;;  %vm887_vm1 = vcmask 1044480   ;;  %v4120_v0 = vmov 65535   ;;  %v3487_v7 = vld [vmem:[%s8683_s0] sm:$0xff] }
   0x6   :  { %v888_v1 = vsel %vm886_vm0, 4294967295, %v4120_v0  ;;  %v3400_v2 = vld [vmem:[#allocation2] sm:$0xf]  ;;  %v3572_v3 = vld [vmem:[#allocation2] sm:$0x10]  ;;  %vm630_vm2 = vcmask 72704  }
   0x7   :  { %v889_v4 = vsel %vm887_vm1, %v888_v1, 0  ;;  %v3401_v5 = vor.u32 %v3572_v3, %v3400_v2  ;;  %v3488_v8 = vld [vmem:[%s8683_s0 + $0x8] sm:$0xff]  ;;  %v3489_v9 = vld [vmem:[%s8683_s0 + $0x10] sm:$0xff]  ;;  %v3490_v10 = vld [vmem:[%s8683_s0 + $0x18] sm:$0xff] }
   0x8   :  { %v3509_v11 = vld [vmem:[%s8683_s0 + $0xb0] sm:$0xff]  ;;  %v3491_v12 = vld [vmem:[%s8683_s0 + $0x20] sm:$0xff]  ;;  %v3510_v13 = vld [vmem:[%s8683_s0 + $0xb8] sm:$0xff] }
   0x9   :  { %v891_v6 = vand.u32 %v3401_v5, %v889_v4  ;;  %v3492_v14 = vld [vmem:[%s8683_s0 + $0x28] sm:$0xff]  ;;  %v3511_v15 = vld [vmem:[%s8683_s0 + $0xc0] sm:$0xff]  ;;  %v3493_v16 = vld [vmem:[%s8683_s0 + $0x30] sm:$0xff] }
   0xa   :  { %v3512_v17 = vld [vmem:[%s8683_s0 + $0xc8] sm:$0xff]  ;;  %v3494_v18 = vld [vmem:[%s8683_s0 + $0x38] sm:$0xff]  ;;  %v3513_v19 = vld [vmem:[%s8683_s0 + $0xd0] sm:$0xff] }
   0xb   :  { %900 = vmatpush.bf16.msra.mxu0 %v891_v6  ;;  %4082 = vmatpush.bf16.msra.mxu1 %v891_v6  ;;  %v3495_v20 = vld [vmem:[%s8683_s0 + $0x40] sm:$0xff]  ;;  %v3514_v22 = vld [vmem:[%s8683_s0 + $0xd8] sm:$0xff]  ;;  %v3496_v25 = vld [vmem:[%s8683_s0 + $0x48] sm:$0xff] }
   0xc   :  { %4083 = vmatpush.bf16.msra.mxu2 %v891_v6  ;;  %4084 = vmatpush.bf16.msra.mxu3 %v891_v6  ;;  %v3531_v23 = vld [vmem:[%s8683_s0 + $0x160] sm:$0xff]  ;;  %v3532_v28 = vld [vmem:[%s8683_s0 + $0x168] sm:$0xff]  ;;  %v3497_v30 = vld [vmem:[%s8683_s0 + $0x50] sm:$0xff] }
   0xd   :  { %v3515_v27 = vld [vmem:[%s8683_s0 + $0xe0] sm:$0xff]  ;;  %v3516_v32 = vld [vmem:[%s8683_s0 + $0xe8] sm:$0xff]  ;;  %v3533_v33 = vld [vmem:[%s8683_s0 + $0x170] sm:$0xff] }
   0xe   :  { %3402 = vmatmul.msk.bf16.vlgmr.msra.gmra.mxu0 %vm630_vm2, %v3487_v7  ;;  %3424 = vmatmul.msk.bf16.vlgmr.msra.gmra.mxu1 %vm630_vm2, %v3509_v11  ;;  %v3498_v35 = vld [vmem:[%s8683_s0 + $0x58] sm:$0xff]  ;;  %v3517_v38 = vld [vmem:[%s8683_s0 + $0xf0] sm:$0xff]  ;;  %v3499_v42 = vld [vmem:[%s8683_s0 + $0x60] sm:$0xff] }
   0xf   :  { %3446 = vmatmul.msk.bf16.vlgmr.msra.gmra.mxu2 %vm630_vm2, %v3531_v23  ;;  %v3534_v39 = vld [vmem:[%s8683_s0 + $0x178] sm:$0xff]  ;;  %v3535_v46 = vld [vmem:[%s8683_s0 + $0x180] sm:$0xff]  ;;  %v3500_v49 = vld [vmem:[%s8683_s0 + $0x68] sm:$0xff] }
  0x10   :  { %v3518_v45 = vld [vmem:[%s8683_s0 + $0xf8] sm:$0xff]  ;;  %v3519_v52 = vld [vmem:[%s8683_s0 + $0x100] sm:$0xff]  ;;  %v3536_v53 = vld [vmem:[%s8683_s0 + $0x188] sm:$0xff] }
  0x11   :  { %v3501_v56 = vld [vmem:[%s8683_s0 + $0x70] sm:$0xff]  ;;  %v3520_v59 = vld [vmem:[%s8683_s0 + $0x108] sm:$0xff]  ;;  %v3502_v63 = vld [vmem:[%s8683_s0 + $0x78] sm:$0xff] }
  0x12   :  { %v3537_v60 = vld [vmem:[%s8683_s0 + $0x190] sm:$0xff]  ;;  %v3538_v3 = vld [vmem:[%s8683_s0 + $0x198] sm:$0xff]  ;;  %v3503_v6 = vld [vmem:[%s8683_s0 + $0x80] sm:$0xff] }
  0x13   :  { %v3521_v2 = vld [vmem:[%s8683_s0 + $0x110] sm:$0xff]  ;;  %v3539_v11 = vld [vmem:[%s8683_s0 + $0x1a0] sm:$0xff] }
  0x14   :  { %v3553_v7 = vld [vmem:[%s8683_s0 + $0x210] sm:$0xff] }
  0x15   :  { %3468 = vmatmul.msk.bf16.vlgmr.msra.gmra.mxu3 %vm630_vm2, %v3553_v7  ;;  %v3507_v7 = vld [vmem:[%s8683_s0 + $0xa0] sm:$0xff] }
  0x1e   :  { %3403 = vmatmul.msk.bf16.gmra.mxu0 %vm630_vm2, %v3488_v8  ;;  %3425 = vmatmul.msk.bf16.gmra.mxu1 %vm630_vm2, %v3510_v13 }
  0x1f   :  { %3447 = vmatmul.msk.bf16.gmra.mxu2 %vm630_vm2, %v3532_v28  ;;  %v3505_v28 = vld [vmem:[%s8683_s0 + $0x90] sm:$0xff] }
  0x2e   :  { %3404 = vmatmul.msk.bf16.gmra.mxu0 %vm630_vm2, %v3489_v9  ;;  %3426 = vmatmul.msk.bf16.gmra.mxu1 %vm630_vm2, %v3511_v15  ;;  %v3504_v15 = vld [vmem:[%s8683_s0 + $0x88] sm:$0xff] }
  0x2f   :  { %3448 = vmatmul.msk.bf16.gmra.mxu2 %vm630_vm2, %v3533_v33 }
  0x3e   :  { %3405 = vmatmul.msk.bf16.gmra.mxu0 %vm630_vm2, %v3490_v10  ;;  %3427 = vmatmul.msk.bf16.gmra.mxu1 %vm630_vm2, %v3512_v17  ;;  %v3522_v10 = vld [vmem:[%s8683_s0 + $0x118] sm:$0xff] }
  0x3f   :  { %3449 = vmatmul.msk.bf16.gmra.mxu2 %vm630_vm2, %v3534_v39  ;;  %v3541_v39 = vld [vmem:[%s8683_s0 + $0x1b0] sm:$0xff] }
  0x4e   :  { %3406 = vmatmul.msk.bf16.gmra.mxu0 %vm630_vm2, %v3491_v12  ;;  %3428 = vmatmul.msk.bf16.gmra.mxu1 %vm630_vm2, %v3513_v19 }
  0x4f   :  { %3450 = vmatmul.msk.bf16.gmra.mxu2 %vm630_vm2, %v3535_v46 }
  0x5e   :  { %3407 = vmatmul.msk.bf16.gmra.mxu0 %vm630_vm2, %v3492_v14  ;;  %3429 = vmatmul.msk.bf16.gmra.mxu1 %vm630_vm2, %v3514_v22  ;;  %v3540_v22 = vld [vmem:[%s8683_s0 + $0x1a8] sm:$0xff] }
  0x5f   :  { %3451 = vmatmul.msk.bf16.gmra.mxu2 %vm630_vm2, %v3536_v53 }
  0x6e   :  { %3408 = vmatmul.msk.bf16.gmra.mxu0 %vm630_vm2, %v3493_v16  ;;  %3430 = vmatmul.msk.bf16.gmra.mxu1 %vm630_vm2, %v3515_v27  ;;  %v3554_v16 = vld [vmem:[%s8683_s0 + $0x218] sm:$0xff] }
  0x6f   :  { %3452 = vmatmul.msk.bf16.gmra.mxu2 %vm630_vm2, %v3537_v60  ;;  %3469 = vmatmul.msk.bf16.gmra.mxu3 %vm630_vm2, %v3554_v16  ;;  %v3525_v60 = vld [vmem:[%s8683_s0 + $0x130] sm:$0xff] }
  0x7e   :  { %3409 = vmatmul.msk.bf16.gmra.mxu0 %vm630_vm2, %v3494_v18  ;;  %3431 = vmatmul.msk.bf16.gmra.mxu1 %vm630_vm2, %v3516_v32 }
  0x7f   :  { %3453 = vmatmul.msk.bf16.gmra.mxu2 %vm630_vm2, %v3538_v3 }
  0x8b   :  { %v4194_v21 = vpop.f32.mrf.mxu0  ;;  %v4244_v37 = vpop.f32.mrf.mxu1 }
  0x8c   :  { %9120 = vst [vmem:[#allocation5_spill] sm:$0xff] %v4194_v21 }
  0x8d   :  { %9126 = vst [vmem:[#allocation11_spill] sm:$0xff] %v4244_v37 }
  0x8e   :  { %3410 = vmatmul.msk.bf16.gmra.mxu0 %vm630_vm2, %v3495_v20  ;;  %3432 = vmatmul.msk.bf16.gmra.mxu1 %vm630_vm2, %v3517_v38  ;;  %v3523_v20 = vld [vmem:[%s8683_s0 + $0x120] sm:$0xff]  ;;  %v3524_v38 = vld [vmem:[%s8683_s0 + $0x128] sm:$0xff] }
  0x8f   :  { %3454 = vmatmul.msk.bf16.gmra.mxu2 %vm630_vm2, %v3539_v11 }
  0x92   :  { %v4363_v14 = vpop.f32.mrf.mxu2 }
  0x93   :  { %v4205_v24 = vpop.f32.mrf.mxu0  ;;  %v4257_v41 = vpop.f32.mrf.mxu1  ;;  %9149 = vst [vmem:[#allocation34_spill] sm:$0xff] %v4363_v14 }
  0x94   :  { %9121 = vst [vmem:[#allocation6_spill] sm:$0xff] %v4205_v24 }
  0x95   :  { %9128 = vst [vmem:[#allocation13_spill] sm:$0xff] %v4257_v41 }
  0x9a   :  { %v4375_v19 = vpop.f32.mrf.mxu2 }
  0x9b   :  { %v4210_v26 = vpop.f32.mrf.mxu0  ;;  %v4264_v44 = vpop.f32.mrf.mxu1  ;;  %9152 = vst [vmem:[#allocation37_spill] sm:$0xff] %v4375_v19 }
  0x9c   :  { %9130 = vst [vmem:[#allocation15_spill] sm:$0xff] %v4264_v44 }
  0x9e   :  { %3411 = vmatmul.msk.bf16.gmra.mxu0 %vm630_vm2, %v3496_v25  ;;  %3433 = vmatmul.msk.bf16.gmra.mxu1 %vm630_vm2, %v3518_v45 }
  0x9f   :  { %3455 = vmatmul.msk.bf16.gmra.mxu2 %vm630_vm2, %v3540_v22  ;;  %v3543_v22 = vld [vmem:[%s8683_s0 + $0x1c0] sm:$0xff] }
  0xa2   :  { %v4391_v27 = vpop.f32.mrf.mxu2 }
  0xa3   :  { %v4221_v29 = vpop.f32.mrf.mxu0  ;;  %v4277_v48 = vpop.f32.mrf.mxu1  ;;  %9155 = vst [vmem:[#allocation40_spill] sm:$0xff] %v4391_v27 }
  0xa4   :  { %9122 = vst [vmem:[#allocation7_spill] sm:$0xff] %v4221_v29 }
  0xa5   :  { %9132 = vst [vmem:[#allocation17_spill] sm:$0xff] %v4277_v48 }
  0xab   :  { %v4226_v31 = vpop.f32.mrf.mxu0  ;;  %v4284_v51 = vpop.f32.mrf.mxu1 }
  0xac   :  { %9123 = vst [vmem:[#allocation8_spill] sm:$0xff] %v4226_v31 }
  0xad   :  { %9134 = vst [vmem:[#allocation19_spill] sm:$0xff] %v4284_v51 }
  0xae   :  { %3412 = vmatmul.msk.bf16.gmra.mxu0 %vm630_vm2, %v3497_v30  ;;  %3434 = vmatmul.msk.bf16.gmra.mxu1 %vm630_vm2, %v3519_v52  ;;  %v3555_v30 = vld [vmem:[%s8683_s0 + $0x220] sm:$0xff]  ;;  %v3556_v52 = vld [vmem:[%s8683_s0 + $0x228] sm:$0xff] }
  0xaf   :  { %3470 = vmatmul.msk.bf16.gmra.mxu3 %vm630_vm2, %v3555_v30  ;;  %3456 = vmatmul.msk.bf16.gmra.mxu2 %vm630_vm2, %v3541_v39  ;;  %v3508_v39 = vld [vmem:[%s8683_s0 + $0xa8] sm:$0xff] }
  0xb3   :  { %v4237_v34 = vpop.f32.mrf.mxu0  ;;  %v4297_v55 = vpop.f32.mrf.mxu1 }
  0xb4   :  { %9124 = vst [vmem:[#allocation9_spill] sm:$0xff] %v4237_v34 }
  0xb5   :  { %9136 = vst [vmem:[#allocation21_spill] sm:$0xff] %v4297_v55 }
  0xbb   :  { %v4242_v36 = vpop.f32.mrf.mxu0  ;;  %v4304_v58 = vpop.f32.mrf.mxu1 }
  0xbc   :  { %9125 = vst [vmem:[#allocation10_spill] sm:$0xff] %v4242_v36 }
  0xbd   :  { %9138 = vst [vmem:[#allocation23_spill] sm:$0xff] %v4304_v58 }
  0xbe   :  { %3413 = vmatmul.msk.bf16.gmra.mxu0 %vm630_vm2, %v3498_v35  ;;  %3435 = vmatmul.msk.bf16.gmra.mxu1 %vm630_vm2, %v3520_v59  ;;  %v4403_v35 = vpop.f32.mrf.mxu2 }
  0xbf   :  { %9158 = vst [vmem:[#allocation43_spill] sm:$0xff] %v4403_v35  ;;  %3471 = vmatmul.msk.bf16.gmra.mxu3 %vm630_vm2, %v3556_v52 }
  0xc3   :  { %v4255_v40 = vpop.f32.mrf.mxu0  ;;  %v4317_v62 = vpop.f32.mrf.mxu1 }
  0xc4   :  { %9127 = vst [vmem:[#allocation12_spill] sm:$0xff] %v4255_v40 }
  0xc5   :  { %9140 = vst [vmem:[#allocation25_spill] sm:$0xff] %v4317_v62 }
  0xc6   :  { %v4419_v46 = vpop.f32.mrf.mxu2 }
  0xc7   :  { %9161 = vst [vmem:[#allocation46_spill] sm:$0xff] %v4419_v46 }
  0xcb   :  { %v4262_v43 = vpop.f32.mrf.mxu0  ;;  %v4324_v1 = vpop.f32.mrf.mxu1 }
  0xcc   :  { %9129 = vst [vmem:[#allocation14_spill] sm:$0xff] %v4262_v43 }
  0xcd   :  { %9142 = vst [vmem:[#allocation27_spill] sm:$0xff] %v4324_v1 }
  0xce   :  { %3414 = vmatmul.msk.bf16.gmra.mxu0 %vm630_vm2, %v3499_v42  ;;  %3436 = vmatmul.msk.bf16.gmra.mxu1 %vm630_vm2, %v3521_v2  ;;  %v4431_v59 = vpop.f32.mrf.mxu2 }
  0xcf   :  { %9164 = vst [vmem:[#allocation49_spill] sm:$0xff] %v4431_v59 }
  0xd3   :  { %v4275_v47 = vpop.f32.mrf.mxu0  ;;  %v4337_v5 = vpop.f32.mrf.mxu1 }
  0xd4   :  { %9131 = vst [vmem:[#allocation16_spill] sm:$0xff] %v4275_v47 }
  0xd5   :  { %9144 = vst [vmem:[#allocation29_spill] sm:$0xff] %v4337_v5 }
  0xdb   :  { %v4282_v50 = vpop.f32.mrf.mxu0  ;;  %v4347_v9 = vpop.f32.mrf.mxu1 }
  0xdc   :  { %9133 = vst [vmem:[#allocation18_spill] sm:$0xff] %v4282_v50 }
  0xdd   :  { %9146 = vst [vmem:[#allocation31_spill] sm:$0xff] %v4347_v9 }
  0xde   :  { %3415 = vmatmul.msk.bf16.gmra.mxu0 %vm630_vm2, %v3500_v49  ;;  %3437 = vmatmul.msk.bf16.gmra.mxu1 %vm630_vm2, %v3522_v10  ;;  %v3506_v49 = vld [vmem:[%s8683_s0 + $0x98] sm:$0xff]  ;;  %v3557_v10 = vld [vmem:[%s8683_s0 + $0x230] sm:$0xff] }
  0xdf   :  { %3472 = vmatmul.msk.bf16.gmra.mxu3 %vm630_vm2, %v3557_v10  ;;  %v3544_v10 = vld [vmem:[%s8683_s0 + $0x1c8] sm:$0xff] }
  0xe3   :  { %v4295_v54 = vpop.f32.mrf.mxu0  ;;  %v4361_v13 = vpop.f32.mrf.mxu1 }
  0xe4   :  { %9135 = vst [vmem:[#allocation20_spill] sm:$0xff] %v4295_v54 }
  0xe5   :  { %9148 = vst [vmem:[#allocation33_spill] sm:$0xff] %v4361_v13 }
  0xeb   :  { %v4302_v57 = vpop.f32.mrf.mxu0  ;;  %v4373_v18 = vpop.f32.mrf.mxu1 }
  0xec   :  { %9137 = vst [vmem:[#allocation22_spill] sm:$0xff] %v4302_v57 }
  0xed   :  { %9151 = vst [vmem:[#allocation36_spill] sm:$0xff] %v4373_v18 }
  0xee   :  { %3416 = vmatmul.msk.bf16.gmra.mxu0 %vm630_vm2, %v3501_v56  ;;  %3438 = vmatmul.msk.bf16.gmra.mxu1 %vm630_vm2, %v3523_v20  ;;  %v3526_v20 = vld [vmem:[%s8683_s0 + $0x138] sm:$0xff] }
  0xf3   :  { %v4315_v61 = vpop.f32.mrf.mxu0  ;;  %v4389_v25 = vpop.f32.mrf.mxu1 }
  0xf4   :  { %9139 = vst [vmem:[#allocation24_spill] sm:$0xff] %v4315_v61 }
  0xf5   :  { %9154 = vst [vmem:[#allocation39_spill] sm:$0xff] %v4389_v25 }
  0xfb   :  { %v4322_v0 = vpop.f32.mrf.mxu0  ;;  %v4401_v33 = vpop.f32.mrf.mxu1 }
  0xfc   :  { %9141 = vst [vmem:[#allocation26_spill] sm:$0xff] %v4322_v0 }
  0xfd   :  { %9157 = vst [vmem:[#allocation42_spill] sm:$0xff] %v4401_v33 }
  0xfe   :  { %3417 = vmatmul.msk.bf16.gmra.mxu0 %vm630_vm2, %v3502_v63  ;;  %3439 = vmatmul.msk.bf16.gmra.mxu1 %vm630_vm2, %v3524_v38  ;;  %v3542_v63 = vld [vmem:[%s8683_s0 + $0x1b8] sm:$0xff] }
  0xff   :  { %3457 = vmatmul.msk.bf16.gmra.mxu2 %vm630_vm2, %v3542_v63 }
 0x103   :  { %v4335_v4 = vpop.f32.mrf.mxu0  ;;  %v4417_v45 = vpop.f32.mrf.mxu1 }
 0x104   :  { %9143 = vst [vmem:[#allocation28_spill] sm:$0xff] %v4335_v4 }
 0x105   :  { %9160 = vst [vmem:[#allocation45_spill] sm:$0xff] %v4417_v45 }
 0x10b   :  { %v4345_v8 = vpop.f32.mrf.mxu0  ;;  %v4429_v56 = vpop.f32.mrf.mxu1 }
 0x10c   :  { %9145 = vst [vmem:[#allocation30_spill] sm:$0xff] %v4345_v8 }
 0x10d   :  { %9163 = vst [vmem:[#allocation48_spill] sm:$0xff] %v4429_v56 }
 0x10e   :  { %3418 = vmatmul.msk.bf16.gmra.mxu0 %vm630_vm2, %v3503_v6  ;;  %3440 = vmatmul.msk.bf16.gmra.mxu1 %vm630_vm2, %v3525_v60  ;;  %v4447_v6 = vpop.f32.mrf.mxu2 }
 0x10f   :  { %9167 = vst [vmem:[#allocation52_spill] sm:$0xff] %v4447_v6  ;;  %3458 = vmatmul.msk.bf16.gmra.mxu2 %vm630_vm2, %v3543_v22 }
 0x113   :  { %v4359_v12 = vpop.f32.mrf.mxu0  ;;  %v4445_v3 = vpop.f32.mrf.mxu1 }
 0x114   :  { %9147 = vst [vmem:[#allocation32_spill] sm:$0xff] %v4359_v12 }
 0x115   :  { %9166 = vst [vmem:[#allocation51_spill] sm:$0xff] %v4445_v3 }
 0x116   :  { %v4459_v16 = vpop.f32.mrf.mxu2 }
 0x117   :  { %9170 = vst [vmem:[#allocation55_spill] sm:$0xff] %v4459_v16 }
 0x11b   :  { %v4371_v17 = vpop.f32.mrf.mxu0 }
 0x11c   :  { %9150 = vst [vmem:[#allocation35_spill] sm:$0xff] %v4371_v17 }
 0x11e   :  { %3419 = vmatmul.msk.bf16.gmra.mxu0 %vm630_vm2, %v3504_v15  ;;  %v4457_v15 = vpop.f32.mrf.mxu1  ;;  %3441 = vmatmul.msk.bf16.gmra.mxu1 %vm630_vm2, %v3526_v20  ;;  %v4475_v38 = vpop.f32.mrf.mxu2 }
 0x11f   :  { %9169 = vst [vmem:[#allocation54_spill] sm:$0xff] %v4457_v15  ;;  %3459 = vmatmul.msk.bf16.gmra.mxu2 %vm630_vm2, %v3544_v10  ;;  %v3528_v10 = vld [vmem:[%s8683_s0 + $0x148] sm:$0xff] }
 0x120   :  { %9173 = vst [vmem:[#allocation58_spill] sm:$0xff] %v4475_v38 }
 0x123   :  { %v4387_v23 = vpop.f32.mrf.mxu0 }
 0x124   :  { %9153 = vst [vmem:[#allocation38_spill] sm:$0xff] %v4387_v23 }
 0x126   :  { %v4473_v30 = vpop.f32.mrf.mxu1  ;;  %v4487_v63 = vpop.f32.mrf.mxu2 }
 0x127   :  { %9172 = vst [vmem:[#allocation57_spill] sm:$0xff] %v4473_v30  ;;  %v1507_v30 = vmul.f32 %v4226_v31, %v4226_v31 }
 0x128   :  { %9176 = vst [vmem:[#allocation61_spill] sm:$0xff] %v4487_v63 }
 0x12b   :  { %v4399_v32 = vpop.f32.mrf.mxu0 }
 0x12c   :  { %9156 = vst [vmem:[#allocation41_spill] sm:$0xff] %v4399_v32 }
 0x12e   :  { %3420 = vmatmul.msk.bf16.gmra.mxu0 %vm630_vm2, %v3505_v28  ;;  %v4485_v60 = vpop.f32.mrf.mxu1  ;;  %v4503_v63 = vpop.f32.mrf.mxu2 }
 0x12f   :  { %9175 = vst [vmem:[#allocation60_spill] sm:$0xff] %v4485_v60 }
 0x130   :  { %9179 = vst [vmem:[#allocation64_spill] sm:$0xff] %v4503_v63  ;;  %v3545_v63 = vld [vmem:[%s8683_s0 + $0x1d0] sm:$0xff] }
 0x131   :  { %3460 = vmatmul.msk.bf16.gmra.mxu2 %vm630_vm2, %v3545_v63  ;;  %v3529_v63 = vld [vmem:[%s8683_s0 + $0x150] sm:$0xff] }
 0x133   :  { %v4415_v42 = vpop.f32.mrf.mxu0 }
 0x134   :  { %9159 = vst [vmem:[#allocation44_spill] sm:$0xff] %v4415_v42 }
 0x136   :  { %v4501_v22 = vpop.f32.mrf.mxu1 }
 0x137   :  { %9178 = vst [vmem:[#allocation63_spill] sm:$0xff] %v4501_v22  ;;  %v1506_v22 = vmul.f32 %v4221_v29, %v4221_v29 }
 0x13b   :  { %v4427_v53 = vpop.f32.mrf.mxu0 }
 0x13c   :  { %9162 = vst [vmem:[#allocation47_spill] sm:$0xff] %v4427_v53 }
 0x13e   :  { %3421 = vmatmul.msk.bf16.gmra.mxu0 %vm630_vm2, %v3506_v49  ;;  %v3558_v49 = vld [vmem:[%s8683_s0 + $0x238] sm:$0xff] }
 0x13f   :  { %3473 = vmatmul.msk.bf16.gmra.mxu3 %vm630_vm2, %v3558_v49  ;;  %v3559_v49 = vld [vmem:[%s8683_s0 + $0x240] sm:$0xff] }
 0x143   :  { %v4443_v2 = vpop.f32.mrf.mxu0 }
 0x144   :  { %9165 = vst [vmem:[#allocation50_spill] sm:$0xff] %v4443_v2 }
 0x14b   :  { %v4455_v11 = vpop.f32.mrf.mxu0 }
 0x14c   :  { %9168 = vst [vmem:[#allocation53_spill] sm:$0xff] %v4455_v11 }
 0x14e   :  { %3422 = vmatmul.msk.bf16.gmra.mxu0 %vm630_vm2, %v3507_v7  ;;  %v3527_v7 = vld [vmem:[%s8683_s0 + $0x140] sm:$0xff] }
 0x14f   :  { %3442 = vmatmul.msk.bf16.gmra.mxu1 %vm630_vm2, %v3527_v7  ;;  %v4512_v7 = vpop.f32.mrf.mxu2  ;;  %3474 = vmatmul.msk.bf16.gmra.mxu3 %vm630_vm2, %v3559_v49  ;;  %v3560_v49 = vld [vmem:[%s8683_s0 + $0x248] sm:$0xff] }
 0x150   :  { %9182 = vst [vmem:[#allocation67_spill] sm:$0xff] %v4512_v7 }
 0x153   :  { %v4471_v28 = vpop.f32.mrf.mxu0 }
 0x154   :  { %9171 = vst [vmem:[#allocation56_spill] sm:$0xff] %v4471_v28 }
 0x157   :  { %v4527_v59 = vpop.f32.mrf.mxu2 }
 0x158   :  { %9185 = vst [vmem:[#allocation70_spill] sm:$0xff] %v4527_v59  ;;  %v3546_v59 = vld [vmem:[%s8683_s0 + $0x1d8] sm:$0xff] }
 0x159   :  { %3461 = vmatmul.msk.bf16.gmra.mxu2 %vm630_vm2, %v3546_v59  ;;  %v3530_v59 = vld [vmem:[%s8683_s0 + $0x158] sm:$0xff] }
 0x15b   :  { %v4483_v52 = vpop.f32.mrf.mxu0 }
 0x15c   :  { %9174 = vst [vmem:[#allocation59_spill] sm:$0xff] %v4483_v52 }
 0x15e   :  { %3423 = vmatmul.msk.bf16.gmra.mxu0 %vm630_vm2, %v3508_v39  ;;  %v4510_v39 = vpop.f32.mrf.mxu1 }
 0x15f   :  { %9181 = vst [vmem:[#allocation66_spill] sm:$0xff] %v4510_v39  ;;  %3443 = vmatmul.msk.bf16.gmra.mxu1 %vm630_vm2, %v3528_v10  ;;  %v4536_v10 = vpop.f32.mrf.mxu2  ;;  %3475 = vmatmul.msk.bf16.gmra.mxu3 %vm630_vm2, %v3560_v49  ;;  %v3561_v49 = vld [vmem:[%s8683_s0 + $0x250] sm:$0xff] }
 0x160   :  { %9188 = vst [vmem:[#allocation73_spill] sm:$0xff] %v4536_v10 }
 0x163   :  { %v4499_v20 = vpop.f32.mrf.mxu0 }
 0x164   :  { %9177 = vst [vmem:[#allocation62_spill] sm:$0xff] %v4499_v20 }
 0x166   :  { %v4525_v6 = vpop.f32.mrf.mxu1 }
 0x167   :  { %9184 = vst [vmem:[#allocation69_spill] sm:$0xff] %v4525_v6  ;;  %v4549_v27 = vpop.f32.mrf.mxu2  ;;  %v1505_v6 = vmul.f32 %v4210_v26, %v4210_v26 }
 0x168   :  { %9190 = vst [vmem:[#allocation75_spill] sm:$0xff] %v4549_v27  ;;  %v3547_v27 = vld [vmem:[%s8683_s0 + $0x1e0] sm:$0xff] }
 0x169   :  { %3462 = vmatmul.msk.bf16.gmra.mxu2 %vm630_vm2, %v3547_v27  ;;  %v1508_v27 = vmul.f32 %v4237_v34, %v4237_v34 }
 0x16b   :  { %v4508_v38 = vpop.f32.mrf.mxu0 }
 0x16c   :  { %9180 = vst [vmem:[#allocation65_spill] sm:$0xff] %v4508_v38 }
 0x16e   :  { %v4534_v46 = vpop.f32.mrf.mxu1 }
 0x16f   :  { %9187 = vst [vmem:[#allocation72_spill] sm:$0xff] %v4534_v46  ;;  %3444 = vmatmul.msk.bf16.gmra.mxu1 %vm630_vm2, %v3529_v63  ;;  %v4558_v14 = vpop.f32.mrf.mxu2  ;;  %3476 = vmatmul.msk.bf16.gmra.mxu3 %vm630_vm2, %v3561_v49  ;;  %v1504_v63 = vmul.f32 %v4205_v24, %v4205_v24  ;;  %v4572_v46 = vpop.f32.mrf.mxu3  ;;  %v1503_v49 = vmul.f32 %v4194_v21, %v4194_v21 }
 0x170   :  { %9193 = vst [vmem:[#allocation78_spill] sm:$0xff] %v4558_v14  ;;  %v1327_v14 = vadd.f32 %v4205_v24, %v4194_v21 }
 0x171   :  { %9195 = vst [vmem:[#allocation80_spill] sm:$0xff] %v4572_v46 }
 0x172   :  { %v1328_v39 = vadd.f32 %v1327_v14, %v4210_v26 }
 0x173   :  { %v4523_v16 = vpop.f32.mrf.mxu0 }
 0x174   :  { %9183 = vst [vmem:[#allocation68_spill] sm:$0xff] %v4523_v16  ;;  %v1329_v60 = vadd.f32 %v1328_v39, %v4221_v29 }
 0x176   :  { %v4551_v19 = vpop.f32.mrf.mxu1  ;;  %v1330_v15 = vadd.f32 %v1329_v60, %v4226_v31  ;;  %v3562_v60 = vld [vmem:[%s8683_s0 + $0x258] sm:$0xff] }
 0x177   :  { %9191 = vst [vmem:[#allocation76_spill] sm:$0xff] %v4551_v19  ;;  %v4589_v24 = vpop.f32.mrf.mxu2  ;;  %v4594_v14 = vpop.f32.mrf.mxu3 }
 0x178   :  { %9197 = vst [vmem:[#allocation82_spill] sm:$0xff] %v4589_v24 }
 0x17b   :  { %v4532_v7 = vpop.f32.mrf.mxu0 }
 0x17c   :  { %9186 = vst [vmem:[#allocation71_spill] sm:$0xff] %v4532_v7 }
 0x17e   :  { %v4570_v19 = vpop.f32.mrf.mxu1 }
 0x17f   :  { %3445 = vmatmul.msk.bf16.gmra.mxu1 %vm630_vm2, %v3530_v59  ;;  %9194 = vst [vmem:[#allocation79_spill] sm:$0xff] %v4570_v19  ;;  %v1673_v59 = vadd.f32 %v1504_v63, %v1503_v49  ;;  %v1331_v49 = vadd.f32 %v1330_v15, %v4237_v34  ;;  %v4612_v34 = vpop.f32.mrf.mxu2  ;;  %3477 = vmatmul.msk.bf16.gmra.mxu3 %vm630_vm2, %v3562_v60 }
 0x180   :  { %9200 = vst [vmem:[#allocation85_spill] sm:$0xff] %v4612_v34 }
 0x181   :  { %v1674_v46 = vadd.f32 %v1673_v59, %v1505_v6  ;;  %v1509_v6 = vmul.f32 %v4242_v36, %v4242_v36  ;;  %v1332_v29 = vadd.f32 %v1331_v49, %v4242_v36  ;;  %v1512_v49 = vmul.f32 %v4275_v47, %v4275_v47  ;;  %v3548_v36 = vld [vmem:[%s8683_s0 + $0x1e8] sm:$0xff] }
 0x182   :  { %3463 = vmatmul.msk.bf16.gmra.mxu2 %vm630_vm2, %v3548_v36 }
 0x183   :  { %v4547_v35 = vpop.f32.mrf.mxu0  ;;  %v1675_v21 = vadd.f32 %v1674_v46, %v1506_v22  ;;  %v1510_v46 = vmul.f32 %v4255_v40, %v4255_v40  ;;  %v1333_v15 = vadd.f32 %v1332_v29, %v4255_v40  ;;  %v4624_v40 = vpop.f32.mrf.mxu3 }
 0x184   :  { %9189 = vst [vmem:[#allocation74_spill] sm:$0xff] %v4547_v35 }
 0x185   :  { %v1676_v63 = vadd.f32 %v1675_v21, %v1507_v30  ;;  %v1511_v30 = vmul.f32 %v4262_v43, %v4262_v43 }
 0x186   :  { %v4599_v39 = vpop.f32.mrf.mxu1 }
 0x187   :  { %9198 = vst [vmem:[#allocation83_spill] sm:$0xff] %v4599_v39  ;;  %v1677_v59 = vadd.f32 %v1676_v63, %v1508_v27  ;;  %v1334_v63 = vadd.f32 %v1333_v15, %v4262_v43 }
 0x189   :  { %v1678_v21 = vadd.f32 %v1677_v59, %v1509_v6  ;;  %v1335_v29 = vadd.f32 %v1334_v63, %v4275_v47  ;;  %v1513_v59 = vmul.f32 %v4282_v50, %v4282_v50  ;;  %v1515_v63 = vmul.f32 %v4302_v57, %v4302_v57  ;;  %v4637_v47 = vpop.f32.mrf.mxu2 }
 0x18a   :  { %9203 = vst [vmem:[#allocation88_spill] sm:$0xff] %v4637_v47 }
 0x18b   :  { %v4556_v10 = vpop.f32.mrf.mxu0  ;;  %v1679_v27 = vadd.f32 %v1678_v21, %v1510_v46  ;;  %v1336_v60 = vadd.f32 %v1335_v29, %v4282_v50  ;;  %v1514_v21 = vmul.f32 %v4295_v54, %v4295_v54  ;;  %v1517_v50 = vmul.f32 %v4322_v0, %v4322_v0 }
 0x18c   :  { %9192 = vst [vmem:[#allocation77_spill] sm:$0xff] %v4556_v10 }
 0x18d   :  { %v1680_v6 = vadd.f32 %v1679_v27, %v1511_v30  ;;  %v1337_v27 = vadd.f32 %v1336_v60, %v4295_v54  ;;  %v1518_v60 = vmul.f32 %v4335_v4, %v4335_v4  ;;  %v4648_v54 = vpop.f32.mrf.mxu3 }
 0x18e   :  { %v4632_v43 = vpop.f32.mrf.mxu1 }
 0x18f   :  { %v1681_v46 = vadd.f32 %v1680_v6, %v1512_v49  ;;  %9202 = vst [vmem:[#allocation87_spill] sm:$0xff] %v4632_v43  ;;  %v1338_v36 = vadd.f32 %v1337_v27, %v4302_v57  ;;  %v1516_v49 = vmul.f32 %v4315_v61, %v4315_v61 }
 0x191   :  { %v1682_v30 = vadd.f32 %v1681_v46, %v1513_v59  ;;  %v1339_v29 = vadd.f32 %v1338_v36, %v4315_v61  ;;  %v4658_v36 = vpop.f32.mrf.mxu2 }
 0x192   :  { %9205 = vst [vmem:[#allocation90_spill] sm:$0xff] %v4658_v36 }
 0x193   :  { %v4584_v19 = vpop.f32.mrf.mxu0  ;;  %v1683_v31 = vadd.f32 %v1682_v30, %v1514_v21  ;;  %v1340_v46 = vadd.f32 %v1339_v29, %v4322_v0  ;;  %v3563_v21 = vld [vmem:[%s8683_s0 + $0x260] sm:$0xff]  ;;  %v1520_v0 = vmul.f32 %v4359_v12, %v4359_v12 }
 0x194   :  { %9196 = vst [vmem:[#allocation81_spill] sm:$0xff] %v4584_v19  ;;  %3478 = vmatmul.msk.bf16.gmra.mxu3 %vm630_vm2, %v3563_v21 }
 0x195   :  { %v1684_v6 = vadd.f32 %v1683_v31, %v1515_v63  ;;  %v1341_v27 = vadd.f32 %v1340_v46, %v4335_v4  ;;  %v1519_v63 = vmul.f32 %v4345_v8, %v4345_v8  ;;  %v1521_v4 = vmul.f32 %v4371_v17, %v4371_v17 }
 0x197   :  { %v1685_v59 = vadd.f32 %v1684_v6, %v1516_v49  ;;  %v4661_v49 = vpop.f32.mrf.mxu1  ;;  %v1342_v6 = vadd.f32 %v1341_v27, %v4345_v8 }
 0x198   :  { %9206 = vst [vmem:[#allocation91_spill] sm:$0xff] %v4661_v49 }
 0x199   :  { %v1686_v31 = vadd.f32 %v1685_v59, %v1517_v50  ;;  %v3549_v50 = vld [vmem:[%s8683_s0 + $0x1f0] sm:$0xff]  ;;  %v1343_v46 = vadd.f32 %v1342_v6, %v4359_v12  ;;  %v4681_v6 = vpop.f32.mrf.mxu3 }
 0x19a   :  { %3464 = vmatmul.msk.bf16.gmra.mxu2 %vm630_vm2, %v3549_v50 }
 0x19b   :  { %v4607_v22 = vpop.f32.mrf.mxu0  ;;  %v1687_v29 = vadd.f32 %v1686_v31, %v1518_v60  ;;  %v1344_v21 = vadd.f32 %v1343_v46, %v4371_v17  ;;  %v1522_v60 = vmul.f32 %v4387_v23, %v4387_v23  ;;  %v1526_v17 = vmul.f32 %v4443_v2, %v4443_v2 }
 0x19c   :  { %9199 = vst [vmem:[#allocation84_spill] sm:$0xff] %v4607_v22 }
 0x19d   :  { %v1688_v59 = vadd.f32 %v1687_v29, %v1519_v63  ;;  %v1345_v8 = vadd.f32 %v1344_v21, %v4387_v23  ;;  %v1523_v63 = vmul.f32 %v4399_v32, %v4399_v32  ;;  %v4683_v29 = vpop.f32.mrf.mxu2 }
 0x19e   :  { %9208 = vst [vmem:[#allocation93_spill] sm:$0xff] %v4683_v29 }
 0x19f   :  { %v1689_v61 = vadd.f32 %v1688_v59, %v1520_v0  ;;  %v1346_v50 = vadd.f32 %v1345_v8, %v4399_v32  ;;  %v1524_v0 = vmul.f32 %v4415_v42, %v4415_v42  ;;  %v4688_v59 = vpop.f32.mrf.mxu1  ;;  %v3564_v8 = vld [vmem:[%s8683_s0 + $0x268] sm:$0xff] }
 0x1a0   :  { %9209 = vst [vmem:[#allocation94_spill] sm:$0xff] %v4688_v59 }
 0x1a1   :  { %v1690_v27 = vadd.f32 %v1689_v61, %v1521_v4  ;;  %v1347_v61 = vadd.f32 %v1346_v50, %v4415_v42  ;;  %v1525_v4 = vmul.f32 %v4427_v53, %v4427_v53 }
 0x1a3   :  { %v4630_v15 = vpop.f32.mrf.mxu0  ;;  %v1691_v12 = vadd.f32 %v1690_v27, %v1522_v60  ;;  %v1348_v23 = vadd.f32 %v1347_v61, %v4427_v53  ;;  %v1528_v61 = vmul.f32 %v4471_v28, %v4471_v28  ;;  %v4710_v53 = vpop.f32.mrf.mxu3 }
 0x1a4   :  { %9201 = vst [vmem:[#allocation86_spill] sm:$0xff] %v4630_v15  ;;  %3479 = vmatmul.msk.bf16.gmra.mxu3 %vm630_vm2, %v3564_v8 }
 0x1a5   :  { %v1692_v46 = vadd.f32 %v1691_v12, %v1523_v63  ;;  %v1349_v12 = vadd.f32 %v1348_v23, %v4443_v2  ;;  %v1527_v63 = vmul.f32 %v4455_v11, %v4455_v11  ;;  %v4704_v50 = vpop.f32.mrf.mxu2  ;;  %v1529_v2 = vmul.f32 %v4483_v52, %v4483_v52 }
 0x1a6   :  { %9211 = vst [vmem:[#allocation96_spill] sm:$0xff] %v4704_v50 }
 0x1a7   :  { %v1693_v21 = vadd.f32 %v1692_v46, %v1524_v0  ;;  %v1350_v46 = vadd.f32 %v1349_v12, %v4455_v11  ;;  %v1530_v12 = vmul.f32 %v4499_v20, %v4499_v20 }
 0x1a9   :  { %v1694_v27 = vadd.f32 %v1693_v21, %v1525_v4  ;;  %v3550_v4 = vld [vmem:[%s8683_s0 + $0x1f8] sm:$0xff]  ;;  %v1351_v21 = vadd.f32 %v1350_v46, %v4471_v28 }
 0x1aa   :  { %3465 = vmatmul.msk.bf16.gmra.mxu2 %vm630_vm2, %v3550_v4 }
 0x1ab   :  { %v4653_v30 = vpop.f32.mrf.mxu0  ;;  %v1695_v0 = vadd.f32 %v1694_v27, %v1526_v17  ;;  %v4719_v17 = vpop.f32.mrf.mxu1  ;;  %v1352_v27 = vadd.f32 %v1351_v21, %v4483_v52  ;;  %v1533_v52 = vmul.f32 %v4532_v7, %v4532_v7 }
 0x1ac   :  { %9204 = vst [vmem:[#allocation89_spill] sm:$0xff] %v4653_v30 }
 0x1ad   :  { %v1696_v23 = vadd.f32 %v1695_v0, %v1527_v63  ;;  %9212 = vst [vmem:[#allocation97_spill] sm:$0xff] %v4719_v17  ;;  %v1353_v63 = vadd.f32 %v1352_v27, %v4499_v20  ;;  %v1531_v0 = vmul.f32 %v4508_v38, %v4508_v38  ;;  %v4729_v46 = vpop.f32.mrf.mxu2  ;;  %v1534_v20 = vmul.f32 %v4547_v35, %v4547_v35 }
 0x1ae   :  { %9214 = vst [vmem:[#allocation99_spill] sm:$0xff] %v4729_v46 }
 0x1af   :  { %v1697_v8 = vadd.f32 %v1696_v23, %v1528_v61  ;;  %v1354_v4 = vadd.f32 %v1353_v63, %v4508_v38  ;;  %v1532_v61 = vmul.f32 %v4523_v16, %v4523_v16 }
 0x1b1   :  { %v1698_v42 = vadd.f32 %v1697_v8, %v1529_v2  ;;  %v1355_v21 = vadd.f32 %v1354_v4, %v4523_v16  ;;  %v4737_v2 = vpop.f32.mrf.mxu3  ;;  %v1535_v4 = vmul.f32 %v4556_v10, %v4556_v10  ;;  %v3551_v16 = vld [vmem:[%s8683_s0 + $0x200] sm:$0xff] }
 0x1b3   :  { %v4676_v31 = vpop.f32.mrf.mxu0  ;;  %v1699_v28 = vadd.f32 %v1698_v42, %v1530_v12  ;;  %v1356_v27 = vadd.f32 %v1355_v21, %v4532_v7  ;;  %v3565_v42 = vld [vmem:[%s8683_s0 + $0x270] sm:$0xff]  ;;  %v1536_v7 = vmul.f32 %v4584_v19, %v4584_v19 }
 0x1b4   :  { %9207 = vst [vmem:[#allocation92_spill] sm:$0xff] %v4676_v31  ;;  %3480 = vmatmul.msk.bf16.gmra.mxu3 %vm630_vm2, %v3565_v42  ;;  %v1538_v42 = vmul.f32 %v4630_v15, %v4630_v15 }
 0x1b5   :  { %v1700_v23 = vadd.f32 %v1699_v28, %v1531_v0  ;;  %v4747_v28 = vpop.f32.mrf.mxu1  ;;  %v1357_v0 = vadd.f32 %v1356_v27, %v4547_v35  ;;  %v1537_v27 = vmul.f32 %v4607_v22, %v4607_v22 }
 0x1b6   :  { %9216 = vst [vmem:[#allocation101_spill] sm:$0xff] %v4747_v28 }
 0x1b7   :  { %v1701_v8 = vadd.f32 %v1700_v23, %v1532_v61  ;;  %v4752_v61 = vpop.f32.mrf.mxu2  ;;  %v1358_v21 = vadd.f32 %v1357_v0, %v4556_v10 }
 0x1b8   :  { %9217 = vst [vmem:[#allocation102_spill] sm:$0xff] %v4752_v61 }
 0x1b9   :  { %v1702_v63 = vadd.f32 %v1701_v8, %v1533_v52  ;;  %v1359_v8 = vadd.f32 %v1358_v21, %v4584_v19 }
 0x1ba   :  { %3466 = vmatmul.msk.bf16.gmra.mxu2 %vm630_vm2, %v3551_v16 }
 0x1bb   :  { %v4699_v60 = vpop.f32.mrf.mxu0  ;;  %v1703_v23 = vadd.f32 %v1702_v63, %v1534_v20  ;;  %v1360_v20 = vadd.f32 %v1359_v8, %v4607_v22  ;;  %v4768_v63 = vpop.f32.mrf.mxu3 }
 0x1bc   :  { %9210 = vst [vmem:[#allocation95_spill] sm:$0xff] %v4699_v60 }
 0x1bd   :  { %v1704_v52 = vadd.f32 %v1703_v23, %v1535_v4  ;;  %v1361_v4 = vadd.f32 %v1360_v20, %v4630_v15  ;;  %v1539_v23 = vmul.f32 %v4653_v30, %v4653_v30  ;;  %v4777_v19 = vpop.f32.mrf.mxu1 }
 0x1be   :  { %9220 = vst [vmem:[#allocation105_spill] sm:$0xff] %v4777_v19 }
 0x1bf   :  { %v1705_v35 = vadd.f32 %v1704_v52, %v1536_v7  ;;  %v4775_v21 = vpop.f32.mrf.mxu2  ;;  %v1362_v7 = vadd.f32 %v1361_v4, %v4653_v30  ;;  %v1540_v52 = vmul.f32 %v4676_v31, %v4676_v31 }
 0x1c0   :  { %9219 = vst [vmem:[#allocation104_spill] sm:$0xff] %v4775_v21 }
 0x1c1   :  { %v1706_v10 = vadd.f32 %v1705_v35, %v1537_v27  ;;  %v1363_v22 = vadd.f32 %v1362_v7, %v4676_v31  ;;  %v1541_v35 = vmul.f32 %v4699_v60, %v4699_v60 }
 0x1c3   :  { %v4724_v11 = vpop.f32.mrf.mxu0  ;;  %v1707_v16 = vadd.f32 %v1706_v10, %v1538_v42  ;;  %v1364_v20 = vadd.f32 %v1363_v22, %v4699_v60  ;;  %v3566_v10 = vld [vmem:[%s8683_s0 + $0x278] sm:$0xff]  ;;  %v4796_v7 = vpop.f32.mrf.mxu3 }
 0x1c4   :  { %9213 = vst [vmem:[#allocation98_spill] sm:$0xff] %v4724_v11  ;;  %v1542_v15 = vmul.f32 %v4724_v11, %v4724_v11  ;;  %3481 = vmatmul.msk.bf16.gmra.mxu3 %vm630_vm2, %v3566_v10 }
 0x1c5   :  { %v1708_v8 = vadd.f32 %v1707_v16, %v1539_v23  ;;  %v1365_v23 = vadd.f32 %v1364_v20, %v4724_v11 }
 0x1c7   :  { %v1709_v27 = vadd.f32 %v1708_v8, %v1540_v52  ;;  %v4799_v22 = vpop.f32.mrf.mxu2 }
 0x1c8   :  { %9222 = vst [vmem:[#allocation107_spill] sm:$0xff] %v4799_v22 }
 0x1c9   :  { %v1710_v4 = vadd.f32 %v1709_v27, %v1541_v35  ;;  %v3552_v35 = vld [vmem:[%s8683_s0 + $0x208] sm:$0xff]  ;;  %v4807_v27 = vpop.f32.mrf.mxu1 }
 0x1ca   :  { %9223 = vst [vmem:[#allocation108_spill] sm:$0xff] %v4807_v27  ;;  %3467 = vmatmul.msk.bf16.gmra.mxu2 %vm630_vm2, %v3552_v35 }
 0x1cb   :  { %v4745_v12 = vpop.f32.mrf.mxu0  ;;  %v1711_v52 = vadd.f32 %v1710_v4, %v1542_v15 }
 0x1cc   :  { %9215 = vst [vmem:[#allocation100_spill] sm:$0xff] %v4745_v12  ;;  %v1543_v16 = vmul.f32 %v4745_v12, %v4745_v12  ;;  %v1366_v8 = vadd.f32 %v1365_v23, %v4745_v12 }
 0x1ce   :  { %v1712_v20 = vadd.f32 %v1711_v52, %v1543_v16  ;;  %v1547_v16 = vmul.f32 %v4244_v37, %v4244_v37 }
 0x1cf   :  { %v4824_v35 = vpop.f32.mrf.mxu2 }
 0x1d0   :  { %9225 = vst [vmem:[#allocation110_spill] sm:$0xff] %v4824_v35 }
 0x1d3   :  { %v4770_v0 = vpop.f32.mrf.mxu0 }
 0x1d4   :  { %9218 = vst [vmem:[#allocation103_spill] sm:$0xff] %v4770_v0  ;;  %v1544_v60 = vmul.f32 %v4770_v0, %v4770_v0  ;;  %v1367_v11 = vadd.f32 %v1366_v8, %v4770_v0  ;;  %v4822_v0 = vpop.f32.mrf.mxu3 }
 0x1d6   :  { %v1713_v15 = vadd.f32 %v1712_v20, %v1544_v60 }
 0x1db   :  { %v4791_v42 = vpop.f32.mrf.mxu0 }
 0x1dc   :  { %9221 = vst [vmem:[#allocation106_spill] sm:$0xff] %v4791_v42  ;;  %v1545_v10 = vmul.f32 %v4791_v42, %v4791_v42  ;;  %v1368_v4 = vadd.f32 %v1367_v11, %v4791_v42  ;;  %v1548_v11 = vmul.f32 %v4257_v41, %v4257_v41 }
 0x1de   :  { %v1714_v12 = vadd.f32 %v1713_v15, %v1545_v10  ;;  %v4829_v10 = vpop.f32.mrf.mxu1  ;;  %v1549_v15 = vmul.f32 %v4264_v44, %v4264_v44 }
 0x1df   :  { %9226 = vst [vmem:[#allocation111_spill] sm:$0xff] %v4829_v10 }
 0x1e3   :  { %v4814_v23 = vpop.f32.mrf.mxu0 }
 0x1e4   :  { %9224 = vst [vmem:[#allocation109_spill] sm:$0xff] %v4814_v23  ;;  %v1369_v31 = vadd.f32 %v1368_v4, %v4814_v23  ;;  %v1546_v30 = vmul.f32 %v4814_v23, %v4814_v23 }
 0x1e6   :  { %v1370_v52 = vadd.f32 %v1369_v31, %v4244_v37  ;;  %v1715_v8 = vadd.f32 %v1714_v12, %v1546_v30  ;;  %v3567_v30 = vld [vmem:[%s8683_s0 + $0x280] sm:$0xff]  ;;  %v1550_v31 = vmul.f32 %v4277_v48, %v4277_v48 }
 0x1e7   :  { %3482 = vmatmul.msk.bf16.gmra.mxu3 %vm630_vm2, %v3567_v30  ;;  %v4854_v30 = vpop.f32.mrf.mxu1 }
 0x1e8   :  { %v1371_v60 = vadd.f32 %v1370_v52, %v4257_v41  ;;  %v1716_v20 = vadd.f32 %v1715_v8, %v1547_v16  ;;  %v1551_v16 = vmul.f32 %v4284_v51, %v4284_v51  ;;  %v4849_v41 = vpop.f32.mrf.mxu2  ;;  %9228 = vst [vmem:[#allocation113_spill] sm:$0xff] %v4854_v30 }
 0x1e9   :  { %9227 = vst [vmem:[#allocation112_spill] sm:$0xff] %v4849_v41 }
 0x1ea   :  { %v1372_v4 = vadd.f32 %v1371_v60, %v4264_v44  ;;  %v1717_v23 = vadd.f32 %v1716_v20, %v1548_v11  ;;  %v1552_v11 = vmul.f32 %v4297_v55, %v4297_v55  ;;  %v4847_v44 = vpop.f32.mrf.mxu3 }
 0x1ec   :  { %v1373_v12 = vadd.f32 %v1372_v4, %v4277_v48  ;;  %v1718_v37 = vadd.f32 %v1717_v23, %v1549_v15  ;;  %v1553_v23 = vmul.f32 %v4304_v58, %v4304_v58 }
 0x1ee   :  { %v1374_v52 = vadd.f32 %v1373_v12, %v4284_v51  ;;  %v1719_v8 = vadd.f32 %v1718_v37, %v1550_v31  ;;  %v1554_v37 = vmul.f32 %v4317_v62, %v4317_v62 }
 0x1f0   :  { %v1375_v60 = vadd.f32 %v1374_v52, %v4297_v55  ;;  %v1720_v20 = vadd.f32 %v1719_v8, %v1551_v16  ;;  %v1555_v16 = vmul.f32 %v4324_v1, %v4324_v1  ;;  %v1556_v55 = vmul.f32 %v4337_v5, %v4337_v5 }
 0x1f2   :  { %v1376_v15 = vadd.f32 %v1375_v60, %v4304_v58  ;;  %v1721_v4 = vadd.f32 %v1720_v20, %v1552_v11  ;;  %v1557_v20 = vmul.f32 %v4347_v9, %v4347_v9 }
 0x1f4   :  { %v1377_v31 = vadd.f32 %v1376_v15, %v4317_v62  ;;  %v1722_v12 = vadd.f32 %v1721_v4, %v1553_v23  ;;  %v4868_v15 = vpop.f32.mrf.mxu3  ;;  %v3568_v23 = vld [vmem:[%s8683_s0 + $0x288] sm:$0xff]  ;;  %v4873_v4 = vpop.f32.mrf.mxu2 }
 0x1f5   :  { %9229 = vst [vmem:[#allocation114_spill] sm:$0xff] %v4873_v4 }
 0x1f6   :  { %v1378_v52 = vadd.f32 %v1377_v31, %v4324_v1  ;;  %v1723_v8 = vadd.f32 %v1722_v12, %v1554_v37  ;;  %v1558_v37 = vmul.f32 %v4361_v13, %v4361_v13  ;;  %v9241_v1 = vld [vmem:[#allocation72_spill] sm:$0xff] }
 0x1f7   :  { %3483 = vmatmul.msk.bf16.gmra.mxu3 %vm630_vm2, %v3568_v23  ;;  %v1562_v23 = vmul.f32 %v4417_v45, %v4417_v45  ;;  %v1571_v62 = vmul.f32 %v9241_v1, %v9241_v1 }
 0x1f8   :  { %v1379_v60 = vadd.f32 %v1378_v52, %v4337_v5  ;;  %v1724_v11 = vadd.f32 %v1723_v8, %v1555_v16  ;;  %v4879_v16 = vpop.f32.mrf.mxu1 }
 0x1f9   :  { %9230 = vst [vmem:[#allocation115_spill] sm:$0xff] %v4879_v16 }
 0x1fa   :  { %v1380_v58 = vadd.f32 %v1379_v60, %v4347_v9  ;;  %v1725_v51 = vadd.f32 %v1724_v11, %v1556_v55  ;;  %v1559_v55 = vmul.f32 %v4373_v18, %v4373_v18  ;;  %v1560_v60 = vmul.f32 %v4389_v25, %v4389_v25 }
 0x1fc   :  { %v1381_v31 = vadd.f32 %v1380_v58, %v4361_v13  ;;  %v1726_v12 = vadd.f32 %v1725_v51, %v1557_v20  ;;  %v1561_v58 = vmul.f32 %v4401_v33, %v4401_v33 }
 0x1fe   :  { %v1382_v52 = vadd.f32 %v1381_v31, %v4373_v18  ;;  %v1727_v8 = vadd.f32 %v1726_v12, %v1558_v37  ;;  %v4893_v31 = vpop.f32.mrf.mxu3  ;;  %v4895_v37 = vpop.f32.mrf.mxu2  ;;  %v1563_v12 = vmul.f32 %v4429_v56, %v4429_v56 }
 0x1ff   :  { %9231 = vst [vmem:[#allocation116_spill] sm:$0xff] %v4895_v37 }
 0x200   :  { %v1383_v11 = vadd.f32 %v1382_v52, %v4389_v25  ;;  %v1728_v9 = vadd.f32 %v1727_v8, %v1559_v55  ;;  %v4900_v8 = vpop.f32.mrf.mxu1 }
 0x201   :  { %9232 = vst [vmem:[#allocation117_spill] sm:$0xff] %v4900_v8 }
 0x202   :  { %v1384_v51 = vadd.f32 %v1383_v11, %v4401_v33  ;;  %v1729_v20 = vadd.f32 %v1728_v9, %v1560_v60  ;;  %v1564_v9 = vmul.f32 %v4445_v3, %v4445_v3  ;;  %v3569_v33 = vld [vmem:[%s8683_s0 + $0x290] sm:$0xff] }
 0x204   :  { %v1385_v13 = vadd.f32 %v1384_v51, %v4417_v45  ;;  %v1730_v5 = vadd.f32 %v1729_v20, %v1561_v58  ;;  %v9233_v51 = vld [vmem:[#allocation54_spill] sm:$0xff] }
 0x205   :  { %v1565_v58 = vmul.f32 %v9233_v51, %v9233_v51 }
 0x206   :  { %v1386_v55 = vadd.f32 %v1385_v13, %v4429_v56  ;;  %v1731_v52 = vadd.f32 %v1730_v5, %v1562_v23  ;;  %v9234_v13 = vld [vmem:[#allocation57_spill] sm:$0xff] }
 0x207   :  { %v1566_v5 = vmul.f32 %v9234_v13, %v9234_v13  ;;  %3484 = vmatmul.msk.bf16.gmra.mxu3 %vm630_vm2, %v3569_v33 }
 0x208   :  { %v1732_v60 = vadd.f32 %v1731_v52, %v1563_v12  ;;  %v1387_v11 = vadd.f32 %v1386_v55, %v4445_v3  ;;  %v9235_v12 = vld [vmem:[#allocation60_spill] sm:$0xff] }
 0x209   :  { %v1567_v55 = vmul.f32 %v9235_v12, %v9235_v12 }
 0x20a   :  { %v1388_v20 = vadd.f32 %v1387_v11, %v9233_v51  ;;  %v1733_v45 = vadd.f32 %v1732_v60, %v1564_v9  ;;  %v4918_v11 = vpop.f32.mrf.mxu3  ;;  %v4920_v9 = vpop.f32.mrf.mxu2  ;;  %v9237_v60 = vld [vmem:[#allocation63_spill] sm:$0xff] }
 0x20b   :  { %9236 = vst [vmem:[#allocation118_spill] sm:$0xff] %v4920_v9  ;;  %v1568_v51 = vmul.f32 %v9237_v60, %v9237_v60 }
 0x20c   :  { %v1389_v23 = vadd.f32 %v1388_v20, %v9234_v13  ;;  %v1734_v56 = vadd.f32 %v1733_v45, %v1565_v58  ;;  %v4925_v20 = vpop.f32.mrf.mxu1  ;;  %v9239_v45 = vld [vmem:[#allocation66_spill] sm:$0xff] }
 0x20d   :  { %9238 = vst [vmem:[#allocation119_spill] sm:$0xff] %v4925_v20  ;;  %v1569_v33 = vmul.f32 %v9239_v45, %v9239_v45 }
 0x20e   :  { %v1390_v52 = vadd.f32 %v1389_v23, %v9235_v12  ;;  %v1735_v3 = vadd.f32 %v1734_v56, %v1566_v5  ;;  %v9240_v23 = vld [vmem:[#allocation69_spill] sm:$0xff] }
 0x20f   :  { %v1570_v56 = vmul.f32 %v9240_v23, %v9240_v23 }
 0x210   :  { %v1391_v25 = vadd.f32 %v1390_v52, %v9237_v60  ;;  %v1736_v18 = vadd.f32 %v1735_v3, %v1567_v55  ;;  %v9242_v55 = vld [vmem:[#allocation76_spill] sm:$0xff] }
 0x211   :  { %v1572_v60 = vmul.f32 %v9242_v55, %v9242_v55 }
 0x212   :  { %v1392_v58 = vadd.f32 %v1391_v25, %v9239_v45  ;;  %v1737_v13 = vadd.f32 %v1736_v18, %v1568_v51  ;;  %v4939_v25 = vpop.f32.mrf.mxu3  ;;  %v4941_v18 = vpop.f32.mrf.mxu2  ;;  %v9244_v51 = vld [vmem:[#allocation79_spill] sm:$0xff] }
 0x213   :  { %9243 = vst [vmem:[#allocation120_spill] sm:$0xff] %v4941_v18 }
 0x214   :  { %v1393_v5 = vadd.f32 %v1392_v58, %v9240_v23  ;;  %v1738_v12 = vadd.f32 %v1737_v13, %v1569_v33  ;;  %v1573_v58 = vmul.f32 %v9244_v51, %v9244_v51 }
 0x216   :  { %v1394_v52 = vadd.f32 %v1393_v5, %v9241_v1  ;;  %v1739_v3 = vadd.f32 %v1738_v12, %v1570_v56  ;;  %v3570_v12 = vld [vmem:[%s8683_s0 + $0x298] sm:$0xff]  ;;  %v4949_v56 = vpop.f32.mrf.mxu1  ;;  %v1574_v5 = vmul.f32 %v4599_v39, %v4599_v39  ;;  %v1577_v1 = vmul.f32 %v4688_v59, %v4688_v59 }
 0x217   :  { %9245 = vst [vmem:[#allocation121_spill] sm:$0xff] %v4949_v56  ;;  %3485 = vmatmul.msk.bf16.gmra.mxu3 %vm630_vm2, %v3570_v12 }
 0x218   :  { %v1395_v48 = vadd.f32 %v1394_v52, %v9242_v55  ;;  %v1740_v42 = vadd.f32 %v1739_v3, %v1571_v62  ;;  %v1575_v3 = vmul.f32 %v4632_v43, %v4632_v43 }
 0x21a   :  { %v1396_v13 = vadd.f32 %v1395_v48, %v9244_v51  ;;  %v1741_v33 = vadd.f32 %v1740_v42, %v1572_v60  ;;  %v1576_v60 = vmul.f32 %v4661_v49, %v4661_v49  ;;  %v4966_v12 = vpop.f32.mrf.mxu2 }
 0x21b   :  { %9246 = vst [vmem:[#allocation122_spill] sm:$0xff] %v4966_v12 }
 0x21c   :  { %v1397_v62 = vadd.f32 %v1396_v13, %v4599_v39  ;;  %v1742_v52 = vadd.f32 %v1741_v33, %v1573_v58  ;;  %v4964_v33 = vpop.f32.mrf.mxu3 }
 0x21e   :  { %v1398_v48 = vadd.f32 %v1397_v62, %v4632_v43  ;;  %v1743_v42 = vadd.f32 %v1742_v52, %v1574_v5  ;;  %v1578_v62 = vmul.f32 %v4719_v17, %v4719_v17  ;;  %v4971_v43 = vpop.f32.mrf.mxu1 }
 0x21f   :  { %9247 = vst [vmem:[#allocation123_spill] sm:$0xff] %v4971_v43 }
 0x220   :  { %v1399_v51 = vadd.f32 %v1398_v48, %v4661_v49  ;;  %v1744_v55 = vadd.f32 %v1743_v42, %v1575_v3  ;;  %v1579_v3 = vmul.f32 %v4747_v28, %v4747_v28 }
 0x222   :  { %v1400_v13 = vadd.f32 %v1399_v51, %v4688_v59  ;;  %v1745_v58 = vadd.f32 %v1744_v55, %v1576_v60  ;;  %v1580_v51 = vmul.f32 %v4777_v19, %v4777_v19 }
 0x224   :  { %v1401_v5 = vadd.f32 %v1400_v13, %v4719_v17  ;;  %v1746_v52 = vadd.f32 %v1745_v58, %v1577_v1  ;;  %v1581_v1 = vmul.f32 %v4807_v27, %v4807_v27  ;;  %v3571_v13 = vld [vmem:[%s8683_s0 + $0x2a0] sm:$0xff] }
 0x226   :  { %v1402_v48 = vadd.f32 %v1401_v5, %v4747_v28  ;;  %v1747_v42 = vadd.f32 %v1746_v52, %v1578_v62  ;;  %v1582_v62 = vmul.f32 %v4829_v10, %v4829_v10  ;;  %v4988_v52 = vpop.f32.mrf.mxu3 }
 0x227   :  { %3486 = vmatmul.msk.bf16.gmra.mxu3 %vm630_vm2, %v3571_v13  ;;  %v1585_v13 = vmul.f32 %v4900_v8, %v4900_v8 }
 0x228   :  { %v1403_v55 = vadd.f32 %v1402_v48, %v4777_v19  ;;  %v1748_v60 = vadd.f32 %v1747_v42, %v1579_v3  ;;  %v4991_v3 = vpop.f32.mrf.mxu2 }
 0x229   :  { %9248 = vst [vmem:[#allocation124_spill] sm:$0xff] %v4991_v3 }
 0x22a   :  { %v1749_v59 = vadd.f32 %v1748_v60, %v1580_v51  ;;  %v1404_v49 = vadd.f32 %v1403_v55, %v4807_v27  ;;  %v1583_v55 = vmul.f32 %v4854_v30, %v4854_v30  ;;  %v4996_v51 = vpop.f32.mrf.mxu1  ;;  %v1584_v60 = vmul.f32 %v4879_v16, %v4879_v16  ;;  %v9256_v27 = vld [vmem:[#allocation43_spill] sm:$0xff] }
 0x22b   :  { %9249 = vst [vmem:[#allocation125_spill] sm:$0xff] %v4996_v51 }
 0x22c   :  { %v1750_v58 = vadd.f32 %v1749_v59, %v1581_v1  ;;  %v1405_v5 = vadd.f32 %v1404_v49, %v4829_v10 }
 0x22e   :  { %v1751_v48 = vadd.f32 %v1750_v58, %v1582_v62  ;;  %v1406_v42 = vadd.f32 %v1405_v5, %v4854_v30  ;;  %v1586_v62 = vmul.f32 %v4925_v20, %v4925_v20 }
 0x230   :  { %v1752_v59 = vadd.f32 %v1751_v48, %v1583_v55  ;;  %v1407_v49 = vadd.f32 %v1406_v42, %v4879_v16  ;;  %v1587_v42 = vmul.f32 %v4949_v56, %v4949_v56  ;;  %v5010_v55 = vpop.f32.mrf.mxu3 }
 0x232   :  { %v1753_v1 = vadd.f32 %v1752_v59, %v1584_v60  ;;  %v1408_v10 = vadd.f32 %v1407_v49, %v4900_v8  ;;  %v5012_v59 = vpop.f32.mrf.mxu2  ;;  %v9253_v8 = vld [vmem:[#allocation37_spill] sm:$0xff] }
 0x233   :  { %9250 = vst [vmem:[#allocation126_spill] sm:$0xff] %v5012_v59 }
 0x234   :  { %v1754_v58 = vadd.f32 %v1753_v1, %v1585_v13  ;;  %v1409_v5 = vadd.f32 %v1408_v10, %v4925_v20  ;;  %v1588_v1 = vmul.f32 %v4971_v43, %v4971_v43  ;;  %v5017_v10 = vpop.f32.mrf.mxu1 }
 0x235   :  { %9251 = vst [vmem:[#allocation127_spill] sm:$0xff] %v5017_v10  ;;  %v1590_v20 = vmul.f32 %v5017_v10, %v5017_v10 }
 0x236   :  { %v1755_v30 = vadd.f32 %v1754_v58, %v1586_v62  ;;  %v1410_v48 = vadd.f32 %v1409_v5, %v4949_v56  ;;  %v1589_v5 = vmul.f32 %v4996_v51, %v4996_v51 }
 0x238   :  { %v1756_v49 = vadd.f32 %v1755_v30, %v1587_v42  ;;  %v1411_v60 = vadd.f32 %v1410_v48, %v4971_v43  ;;  %v9252_v30 = vld [vmem:[#allocation34_spill] sm:$0xff]  ;;  %v5031_v16 = vpop.f32.mrf.mxu3 }
 0x239   :  { %v1591_v48 = vmul.f32 %v9252_v30, %v9252_v30 }
 0x23a   :  { %v1757_v13 = vadd.f32 %v1756_v49, %v1588_v1  ;;  %v1412_v58 = vadd.f32 %v1411_v60, %v4996_v51  ;;  %v1592_v49 = vmul.f32 %v9253_v8, %v9253_v8 }
 0x23c   :  { %v1758_v62 = vadd.f32 %v1757_v13, %v1589_v5  ;;  %v1413_v56 = vadd.f32 %v1412_v58, %v5017_v10  ;;  %v5033_v13 = vpop.f32.mrf.mxu2  ;;  %v9255_v58 = vld [vmem:[#allocation40_spill] sm:$0xff] }
 0x23d   :  { %9254 = vst [vmem:[#allocation128_spill] sm:$0xff] %v5033_v13  ;;  %v1593_v5 = vmul.f32 %v9255_v58, %v9255_v58 }
 0x23e   :  { %v1414_v42 = vadd.f32 %v1413_v56, %v9252_v30  ;;  %v1759_v43 = vadd.f32 %v1758_v62, %v1590_v20  ;;  %v1594_v56 = vmul.f32 %v9256_v27, %v9256_v27  ;;  %v9257_v30 = vld [vmem:[#allocation46_spill] sm:$0xff] }
 0x240   :  { %v1415_v60 = vadd.f32 %v1414_v42, %v9253_v8  ;;  %v1760_v1 = vadd.f32 %v1759_v43, %v1591_v48  ;;  %v1595_v42 = vmul.f32 %v9257_v30, %v9257_v30  ;;  %v9258_v8 = vld [vmem:[#allocation49_spill] sm:$0xff] }
 0x241   :  { %v1596_v19 = vmul.f32 %v9258_v8, %v9258_v8 }
 0x242   :  { %v1416_v10 = vadd.f32 %v1415_v60, %v9255_v58  ;;  %v1761_v51 = vadd.f32 %v1760_v1, %v1592_v49  ;;  %v9259_v60 = vld [vmem:[#allocation52_spill] sm:$0xff] }
 0x243   :  { %v1597_v49 = vmul.f32 %v9259_v60, %v9259_v60 }
 0x244   :  { %v1417_v20 = vadd.f32 %v1416_v10, %v9256_v27  ;;  %v1762_v62 = vadd.f32 %v1761_v51, %v1593_v5  ;;  %v5050_v10 = vpop.f32.mrf.mxu3  ;;  %v5052_v51 = vpop.f32.mrf.mxu2  ;;  %v9261_v5 = vld [vmem:[#allocation55_spill] sm:$0xff] }
 0x245   :  { %9260 = vst [vmem:[#allocation129_spill] sm:$0xff] %v5052_v51 }
 0x246   :  { %v1418_v43 = vadd.f32 %v1417_v20, %v9257_v30  ;;  %v1763_v48 = vadd.f32 %v1762_v62, %v1594_v56  ;;  %v1598_v20 = vmul.f32 %v9261_v5, %v9261_v5  ;;  %v9262_v30 = vld [vmem:[#allocation58_spill] sm:$0xff] }
 0x248   :  { %v1419_v28 = vadd.f32 %v1418_v43, %v9258_v8  ;;  %v1764_v17 = vadd.f32 %v1763_v48, %v1595_v42  ;;  %v1599_v43 = vmul.f32 %v9262_v30, %v9262_v30  ;;  %v9263_v8 = vld [vmem:[#allocation61_spill] sm:$0xff] }
 0x24a   :  { %v1420_v1 = vadd.f32 %v1419_v28, %v9259_v60  ;;  %v1765_v58 = vadd.f32 %v1764_v17, %v1596_v19  ;;  %v1600_v28 = vmul.f32 %v9263_v8, %v9263_v8  ;;  %v9264_v60 = vld [vmem:[#allocation64_spill] sm:$0xff] }
 0x24b   :  { %v1601_v27 = vmul.f32 %v9264_v60, %v9264_v60 }
 0x24c   :  { %v1421_v56 = vadd.f32 %v1420_v1, %v9261_v5  ;;  %v1766_v62 = vadd.f32 %v1765_v58, %v1597_v49  ;;  %v9265_v1 = vld [vmem:[#allocation67_spill] sm:$0xff] }
 0x24d   :  { %v1602_v58 = vmul.f32 %v9265_v1, %v9265_v1 }
 0x24e   :  { %v1422_v42 = vadd.f32 %v1421_v56, %v9262_v30  ;;  %v1767_v48 = vadd.f32 %v1766_v62, %v1598_v20  ;;  %v5069_v56 = vpop.f32.mrf.mxu3  ;;  %v5071_v20 = vpop.f32.mrf.mxu2  ;;  %v9267_v62 = vld [vmem:[#allocation70_spill] sm:$0xff] }
 0x24f   :  { %9266 = vst [vmem:[#allocation130_spill] sm:$0xff] %v5071_v20 }
 0x250   :  { %v1423_v19 = vadd.f32 %v1422_v42, %v9263_v8  ;;  %v1768_v17 = vadd.f32 %v1767_v48, %v1599_v43  ;;  %v1603_v42 = vmul.f32 %v9267_v62, %v9267_v62  ;;  %v9268_v8 = vld [vmem:[#allocation73_spill] sm:$0xff] }
 0x252   :  { %v1424_v39 = vadd.f32 %v1423_v19, %v9264_v60  ;;  %v1769_v23 = vadd.f32 %v1768_v17, %v1600_v28  ;;  %v1604_v19 = vmul.f32 %v9268_v8, %v9268_v8  ;;  %v9269_v60 = vld [vmem:[#allocation75_spill] sm:$0xff] }
 0x254   :  { %v1425_v49 = vadd.f32 %v1424_v39, %v9265_v1  ;;  %v1770_v5 = vadd.f32 %v1769_v23, %v1601_v27  ;;  %v1605_v39 = vmul.f32 %v9269_v60, %v9269_v60  ;;  %v9270_v1 = vld [vmem:[#allocation78_spill] sm:$0xff] }
 0x255   :  { %v1606_v30 = vmul.f32 %v9270_v1, %v9270_v1 }
 0x256   :  { %v1426_v43 = vadd.f32 %v1425_v49, %v9267_v62  ;;  %v1771_v48 = vadd.f32 %v1770_v5, %v1602_v58  ;;  %v1607_v5 = vmul.f32 %v4589_v24, %v4589_v24 }
 0x258   :  { %v1427_v28 = vadd.f32 %v1426_v43, %v9268_v8  ;;  %v1772_v17 = vadd.f32 %v1771_v48, %v1603_v42  ;;  %v5088_v43 = vpop.f32.mrf.mxu3  ;;  %v5090_v42 = vpop.f32.mrf.mxu2  ;;  %v1608_v48 = vmul.f32 %v4612_v34, %v4612_v34 }
 0x259   :  { %9271 = vst [vmem:[#allocation131_spill] sm:$0xff] %v5090_v42 }
 0x25a   :  { %v1428_v27 = vadd.f32 %v1427_v28, %v9269_v60  ;;  %v1773_v23 = vadd.f32 %v1772_v17, %v1604_v19  ;;  %v1609_v17 = vmul.f32 %v4637_v47, %v4637_v47 }
 0x25c   :  { %v1429_v45 = vadd.f32 %v1428_v27, %v9270_v1  ;;  %v1774_v38 = vadd.f32 %v1773_v23, %v1605_v39  ;;  %v1611_v23 = vmul.f32 %v4683_v29, %v4683_v29 }
 0x25e   :  { %v1775_v58 = vadd.f32 %v1774_v38, %v1606_v30  ;;  %v1430_v49 = vadd.f32 %v1429_v45, %v4589_v24  ;;  %v1610_v38 = vmul.f32 %v4658_v36, %v4658_v36 }
 0x260   :  { %v1431_v19 = vadd.f32 %v1430_v49, %v4612_v34  ;;  %v1776_v28 = vadd.f32 %v1775_v58, %v1607_v5  ;;  %v1612_v5 = vmul.f32 %v4704_v50, %v4704_v50 }
 0x262   :  { %v1432_v39 = vadd.f32 %v1431_v19, %v4637_v47  ;;  %v1777_v27 = vadd.f32 %v1776_v28, %v1608_v48  ;;  %v5107_v19 = vpop.f32.mrf.mxu3  ;;  %v5109_v48 = vpop.f32.mrf.mxu2  ;;  %v1613_v28 = vmul.f32 %v4729_v46, %v4729_v46 }
 0x263   :  { %9272 = vst [vmem:[#allocation132_spill] sm:$0xff] %v5109_v48 }
 0x264   :  { %v1433_v45 = vadd.f32 %v1432_v39, %v4658_v36  ;;  %v1778_v30 = vadd.f32 %v1777_v27, %v1609_v17  ;;  %v1614_v27 = vmul.f32 %v4752_v61, %v4752_v61 }
 0x266   :  { %v1434_v24 = vadd.f32 %v1433_v45, %v4683_v29  ;;  %v1779_v1 = vadd.f32 %v1778_v30, %v1610_v38 }
 0x268   :  { %v1435_v58 = vadd.f32 %v1434_v24, %v4704_v50  ;;  %v1780_v49 = vadd.f32 %v1779_v1, %v1611_v23  ;;  %v1615_v24 = vmul.f32 %v4775_v21, %v4775_v21  ;;  %v1616_v23 = vmul.f32 %v4799_v22, %v4799_v22 }
 0x26a   :  { %v1436_v17 = vadd.f32 %v1435_v58, %v4729_v46  ;;  %v1781_v39 = vadd.f32 %v1780_v49, %v1612_v5  ;;  %v1617_v5 = vmul.f32 %v4824_v35, %v4824_v35 }
 0x26c   :  { %v1437_v38 = vadd.f32 %v1436_v17, %v4752_v61  ;;  %v1782_v45 = vadd.f32 %v1781_v39, %v1613_v28  ;;  %v5126_v17 = vpop.f32.mrf.mxu3  ;;  %v5128_v28 = vpop.f32.mrf.mxu2  ;;  %v1618_v39 = vmul.f32 %v4849_v41, %v4849_v41 }
 0x26e   :  { %v1438_v1 = vadd.f32 %v1437_v38, %v4775_v21  ;;  %v1783_v30 = vadd.f32 %v1782_v45, %v1614_v27  ;;  %v1619_v45 = vmul.f32 %v4873_v4, %v4873_v4 }
 0x270   :  { %v1439_v50 = vadd.f32 %v1438_v1, %v4799_v22  ;;  %v1784_v29 = vadd.f32 %v1783_v30, %v1615_v24 }
 0x272   :  { %v1440_v58 = vadd.f32 %v1439_v50, %v4824_v35  ;;  %v1785_v49 = vadd.f32 %v1784_v29, %v1616_v23  ;;  %v1620_v50 = vmul.f32 %v4895_v37, %v4895_v37  ;;  %v1621_v23 = vmul.f32 %v4920_v9, %v4920_v9 }
 0x274   :  { %v1441_v27 = vadd.f32 %v1440_v58, %v4849_v41  ;;  %v1786_v38 = vadd.f32 %v1785_v49, %v1617_v5  ;;  %v1622_v5 = vmul.f32 %v4941_v18, %v4941_v18 }
 0x276   :  { %v1442_v24 = vadd.f32 %v1441_v27, %v4873_v4  ;;  %v1787_v1 = vadd.f32 %v1786_v38, %v1618_v39  ;;  %v5145_v27 = vpop.f32.mrf.mxu3  ;;  %v5147_v39 = vpop.f32.mrf.mxu2 }
 0x278   :  { %v1443_v29 = vadd.f32 %v1442_v24, %v4895_v37  ;;  %v1788_v30 = vadd.f32 %v1787_v1, %v1619_v45  ;;  %v1623_v45 = vmul.f32 %v4966_v12, %v4966_v12  ;;  %v1656_v37 = vmul.f32 %v5088_v43, %v5088_v43 }
 0x27a   :  { %v1444_v35 = vadd.f32 %v1443_v29, %v4920_v9  ;;  %v1789_v22 = vadd.f32 %v1788_v30, %v1620_v50  ;;  %v1624_v50 = vmul.f32 %v4991_v3, %v4991_v3 }
 0x27c   :  { %v1445_v58 = vadd.f32 %v1444_v35, %v4941_v18  ;;  %v1790_v49 = vadd.f32 %v1789_v22, %v1621_v23  ;;  %v1625_v22 = vmul.f32 %v5012_v59, %v5012_v59 }
 0x27e   :  { %v1446_v38 = vadd.f32 %v1445_v58, %v4966_v12  ;;  %v1791_v24 = vadd.f32 %v1790_v49, %v1622_v5  ;;  %v1626_v58 = vmul.f32 %v5033_v13, %v5033_v13  ;;  %v1627_v49 = vmul.f32 %v5052_v51, %v5052_v51 }
 0x280   :  { %v1792_v1 = vadd.f32 %v1791_v24, %v1623_v45  ;;  %v1447_v29 = vadd.f32 %v1446_v38, %v4991_v3  ;;  %v5164_v38 = vpop.f32.mrf.mxu3  ;;  %v5166_v45 = vpop.f32.mrf.mxu2 }
 0x282   :  { %v1793_v30 = vadd.f32 %v1792_v1, %v1624_v50  ;;  %v1448_v35 = vadd.f32 %v1447_v29, %v5012_v59  ;;  %v1628_v29 = vmul.f32 %v5071_v20, %v5071_v20 }
 0x284   :  { %v1794_v23 = vadd.f32 %v1793_v30, %v1625_v22  ;;  %v1449_v18 = vadd.f32 %v1448_v35, %v5033_v13  ;;  %v1629_v35 = vmul.f32 %v5090_v42, %v5090_v42 }
 0x286   :  { %v1795_v12 = vadd.f32 %v1794_v23, %v1626_v58  ;;  %v1450_v5 = vadd.f32 %v1449_v18, %v5052_v51  ;;  %v1630_v23 = vmul.f32 %v5109_v48, %v5109_v48  ;;  %v1638_v51 = vmul.f32 %v4648_v54, %v4648_v54 }
 0x288   :  { %v1796_v24 = vadd.f32 %v1795_v12, %v1627_v49  ;;  %v1451_v1 = vadd.f32 %v1450_v5, %v5071_v20  ;;  %v1631_v5 = vmul.f32 %v5128_v28, %v5128_v28 }
 0x28a   :  { %v1797_v50 = vadd.f32 %v1796_v24, %v1628_v29  ;;  %v1452_v30 = vadd.f32 %v1451_v1, %v5090_v42  ;;  %v1632_v1 = vmul.f32 %v5147_v39, %v5147_v39  ;;  %v5183_v29 = vpop.f32.mrf.mxu3 }
 0x28c   :  { %v1798_v18 = vadd.f32 %v1797_v50, %v1629_v35  ;;  %v1453_v22 = vadd.f32 %v1452_v30, %v5109_v48  ;;  %v5185_v50 = vpop.f32.mrf.mxu2 }
 0x28e   :  { %v1799_v58 = vadd.f32 %v1798_v18, %v1630_v23  ;;  %v1454_v12 = vadd.f32 %v1453_v22, %v5128_v28  ;;  %v1633_v18 = vmul.f32 %v5166_v45, %v5166_v45 }
 0x290   :  { %v1800_v49 = vadd.f32 %v1799_v58, %v1631_v5  ;;  %v1455_v24 = vadd.f32 %v1454_v12, %v5147_v39  ;;  %v1634_v58 = vmul.f32 %v5185_v50, %v5185_v50  ;;  %v9273_v12 = vld [vmem:[#allocation80_spill] sm:$0xff] }
 0x291   :  { %v1635_v5 = vmul.f32 %v9273_v12, %v9273_v12 }
 0x292   :  { %v1801_v30 = vadd.f32 %v1800_v49, %v1632_v1  ;;  %v1456_v35 = vadd.f32 %v1455_v24, %v5166_v45  ;;  %v1636_v49 = vmul.f32 %v4594_v14, %v4594_v14 }
 0x294   :  { %v1802_v22 = vadd.f32 %v1801_v30, %v1633_v18  ;;  %v1457_v23 = vadd.f32 %v1456_v35, %v5185_v50  ;;  %v1637_v30 = vmul.f32 %v4624_v40, %v4624_v40  ;;  %v5201_v18 = vpop.f32.mrf.mxu3 }
 0x296   :  { %v1458_v48 = vadd.f32 %v1457_v23, %v9273_v12  ;;  %v1803_v42 = vadd.f32 %v1802_v22, %v1634_v58  ;;  %v1639_v58 = vmul.f32 %v4681_v6, %v4681_v6 }
 0x298   :  { %v1459_v24 = vadd.f32 %v1458_v48, %v4594_v14  ;;  %v1804_v1 = vadd.f32 %v1803_v42, %v1635_v5  ;;  %v1640_v5 = vmul.f32 %v4710_v53, %v4710_v53 }
 0x29a   :  { %v1460_v35 = vadd.f32 %v1459_v24, %v4624_v40  ;;  %v1805_v20 = vadd.f32 %v1804_v1, %v1636_v49  ;;  %v1641_v49 = vmul.f32 %v4737_v2, %v4737_v2 }
 0x29c   :  { %v1461_v23 = vadd.f32 %v1460_v35, %v4648_v54  ;;  %v1806_v22 = vadd.f32 %v1805_v20, %v1637_v30  ;;  %v1642_v20 = vmul.f32 %v4768_v63, %v4768_v63 }
 0x29e   :  { %v1462_v48 = vadd.f32 %v1461_v23, %v4681_v6  ;;  %v1807_v42 = vadd.f32 %v1806_v22, %v1638_v51  ;;  %v5219_v23 = vpop.f32.mrf.mxu3  ;;  %v1643_v51 = vmul.f32 %v4796_v7, %v4796_v7 }
 0x2a0   :  { %v1463_v13 = vadd.f32 %v1462_v48, %v4710_v53  ;;  %v1808_v59 = vadd.f32 %v1807_v42, %v1639_v58  ;;  %v1644_v48 = vmul.f32 %v4822_v0, %v4822_v0  ;;  %v1645_v42 = vmul.f32 %v4847_v44, %v4847_v44 }
 0x2a2   :  { %v1464_v24 = vadd.f32 %v1463_v13, %v4737_v2  ;;  %v1809_v1 = vadd.f32 %v1808_v59, %v1640_v5 }
 0x2a4   :  { %v1465_v30 = vadd.f32 %v1464_v24, %v4768_v63  ;;  %v1810_v35 = vadd.f32 %v1809_v1, %v1641_v49  ;;  %v1646_v24 = vmul.f32 %v4868_v15, %v4868_v15 }
 0x2a6   :  { %v1466_v22 = vadd.f32 %v1465_v30, %v4796_v7  ;;  %v1811_v58 = vadd.f32 %v1810_v35, %v1642_v20  ;;  %v1647_v20 = vmul.f32 %v4893_v31, %v4893_v31 }
 0x2a8   :  { %v1467_v13 = vadd.f32 %v1466_v22, %v4822_v0  ;;  %v1812_v59 = vadd.f32 %v1811_v58, %v1643_v51  ;;  %v5236_v22 = vpop.f32.mrf.mxu3  ;;  %v1648_v51 = vmul.f32 %v4918_v11, %v4918_v11 }
 0x2aa   :  { %v1468_v5 = vadd.f32 %v1467_v13, %v4847_v44  ;;  %v1813_v49 = vadd.f32 %v1812_v59, %v1644_v48  ;;  %v1649_v13 = vmul.f32 %v4939_v25, %v4939_v25 }
 0x2ac   :  { %v1469_v1 = vadd.f32 %v1468_v5, %v4868_v15  ;;  %v1814_v3 = vadd.f32 %v1813_v49, %v1645_v42  ;;  %v1650_v5 = vmul.f32 %v4964_v33, %v4964_v33 }
 0x2ae   :  { %v1470_v30 = vadd.f32 %v1469_v1, %v4893_v31  ;;  %v1815_v35 = vadd.f32 %v1814_v3, %v1646_v24  ;;  %v1651_v24 = vmul.f32 %v4988_v52, %v4988_v52 }
 0x2b0   :  { %v1471_v58 = vadd.f32 %v1470_v30, %v4918_v11  ;;  %v1816_v48 = vadd.f32 %v1815_v35, %v1647_v20  ;;  %v1652_v20 = vmul.f32 %v5010_v55, %v5010_v55 }
 0x2b2   :  { %v1817_v59 = vadd.f32 %v1816_v48, %v1648_v51  ;;  %v1472_v42 = vadd.f32 %v1471_v58, %v4939_v25  ;;  %v5253_v51 = vpop.f32.mrf.mxu3  ;;  %v1653_v58 = vmul.f32 %v5031_v16, %v5031_v16 }
 0x2b4   :  { %v1473_v49 = vadd.f32 %v1472_v42, %v4964_v33  ;;  %v1818_v3 = vadd.f32 %v1817_v59, %v1649_v13  ;;  %v1654_v59 = vmul.f32 %v5050_v10, %v5050_v10 }
 0x2b6   :  { %v1474_v1 = vadd.f32 %v1473_v49, %v4988_v52  ;;  %v1819_v9 = vadd.f32 %v1818_v3, %v1650_v5  ;;  %v1655_v49 = vmul.f32 %v5069_v56, %v5069_v56 }
 0x2b8   :  { %v1475_v30 = vadd.f32 %v1474_v1, %v5010_v55  ;;  %v1820_v35 = vadd.f32 %v1819_v9, %v1651_v24 }
 0x2ba   :  { %v1476_v48 = vadd.f32 %v1475_v30, %v5031_v16  ;;  %v1821_v13 = vadd.f32 %v1820_v35, %v1652_v20  ;;  %v5267_v30 = vpop.f32.mrf.mxu3 }
 0x2bc   :  { %v1477_v42 = vadd.f32 %v1476_v48, %v5050_v10  ;;  %v1822_v5 = vadd.f32 %v1821_v13, %v1653_v58  ;;  %v1657_v58 = vmul.f32 %v5107_v19, %v5107_v19 }
 0x2be   :  { %v1478_v3 = vadd.f32 %v1477_v42, %v5069_v56  ;;  %v1823_v9 = vadd.f32 %v1822_v5, %v1654_v59  ;;  %v1658_v59 = vmul.f32 %v5126_v17, %v5126_v17 }
 0x2c0   :  { %v1479_v24 = vadd.f32 %v1478_v3, %v5088_v43  ;;  %v1824_v1 = vadd.f32 %v1823_v9, %v1655_v49  ;;  %v1659_v3 = vmul.f32 %v5145_v27, %v5145_v27 }
 0x2c2   :  { %v1480_v20 = vadd.f32 %v1479_v24, %v5107_v19  ;;  %v1825_v35 = vadd.f32 %v1824_v1, %v1656_v37  ;;  %v5276_v49 = vpop.f32.mrf.mxu3  ;;  %v1660_v24 = vmul.f32 %v5164_v38, %v5164_v38 }
 0x2c4   :  { %v1481_v48 = vadd.f32 %v1480_v20, %v5126_v17  ;;  %v1826_v13 = vadd.f32 %v1825_v35, %v1657_v58  ;;  %v1661_v35 = vmul.f32 %v5183_v29, %v5183_v29 }
 0x2c6   :  { %v1482_v42 = vadd.f32 %v1481_v48, %v5145_v27  ;;  %v1827_v5 = vadd.f32 %v1826_v13, %v1658_v59  ;;  %v1662_v59 = vmul.f32 %v5201_v18, %v5201_v18 }
 0x2c8   :  { %v1483_v9 = vadd.f32 %v1482_v42, %v5164_v38  ;;  %v1828_v37 = vadd.f32 %v1827_v5, %v1659_v3  ;;  %v1663_v3 = vmul.f32 %v5219_v23, %v5219_v23 }
 0x2ca   :  { %v1484_v1 = vadd.f32 %v1483_v9, %v5183_v29  ;;  %v1829_v20 = vadd.f32 %v1828_v37, %v1660_v24  ;;  %v5286_v58 = vpop.f32.mrf.mxu3  ;;  %v1664_v24 = vmul.f32 %v5236_v22, %v5236_v22 }
 0x2cc   :  { %v1485_v48 = vadd.f32 %v1484_v1, %v5201_v18  ;;  %v1830_v13 = vadd.f32 %v1829_v20, %v1661_v35  ;;  %v1665_v20 = vmul.f32 %v5253_v51, %v5253_v51 }
 0x2ce   :  { %v1486_v42 = vadd.f32 %v1485_v48, %v5219_v23  ;;  %v1831_v5 = vadd.f32 %v1830_v13, %v1662_v59  ;;  %v1666_v13 = vmul.f32 %v5267_v30, %v5267_v30 }
 0x2d0   :  { %v1832_v4 = vadd.f32 %v1831_v5, %v1663_v3  ;;  %v1487_v9 = vadd.f32 %v1486_v42, %v5236_v22  ;;  %v1667_v3 = vmul.f32 %v5276_v49, %v5276_v49 }
 0x2d2   :  { %v5295_v37 = vpop.f32.mrf.mxu3  ;;  %v1833_v41 = vadd.f32 %v1832_v4, %v1664_v24  ;;  %v1488_v1 = vadd.f32 %v1487_v9, %v5253_v51  ;;  %v1668_v24 = vmul.f32 %v5286_v58, %v5286_v58 }
 0x2d3   :  { %v1669_v21 = vmul.f32 %v5295_v37, %v5295_v37 }
 0x2d4   :  { %v1834_v35 = vadd.f32 %v1833_v41, %v1665_v20  ;;  %v1489_v48 = vadd.f32 %v1488_v1, %v5267_v30 }
 0x2d6   :  { %v1835_v42 = vadd.f32 %v1834_v35, %v1666_v13  ;;  %v1490_v5 = vadd.f32 %v1489_v48, %v5276_v49 }
 0x2d8   :  { %v1836_v4 = vadd.f32 %v1835_v42, %v1667_v3  ;;  %v1491_v9 = vadd.f32 %v1490_v5, %v5286_v58 }
 0x2da   :  { %v5305_v59 = vpop.f32.mrf.mxu3  ;;  %v1837_v41 = vadd.f32 %v1836_v4, %v1668_v24  ;;  %v1492_v1 = vadd.f32 %v1491_v9, %v5295_v37 }
 0x2db   :  { %v1670_v13 = vmul.f32 %v5305_v59, %v5305_v59 }
 0x2dc   :  { %v1838_v35 = vadd.f32 %v1837_v41, %v1669_v21  ;;  %v1493_v48 = vadd.f32 %v1492_v1, %v5305_v59 }
 0x2de   :  { %v1839_v42 = vadd.f32 %v1838_v35, %v1670_v13 }
 0x2e2   :  { %v5314_v20 = vpop.f32.mrf.mxu3 }
 0x2e3   :  { %v1494_v5 = vadd.f32 %v1493_v48, %v5314_v20  ;;  %v1671_v3 = vmul.f32 %v5314_v20, %v5314_v20 }
 0x2e5   :  { %v1840_v9 = vadd.f32 %v1839_v42, %v1671_v3 }
 0x2ea   :  { %v5324_v4 = vpop.f32.mrf.mxu3 }
 0x2eb   :  { %v1495_v24 = vadd.f32 %v1494_v5, %v5324_v4  ;;  %v1672_v61 = vmul.f32 %v5324_v4, %v5324_v4 }
 0x2ed   :  { %v1496_v21 = vrot.slane %v1495_v24, 4  ;;  %v1841_v41 = vadd.f32 %v1840_v9, %v1672_v61 }
 0x2ef   :  { %v1497_v1 = vadd.f32 %v1496_v21, %v1495_v24  ;;  %v1842_v46 = vrot.slane %v1841_v41, 4 }
 0x2f1   :  { %v1498_v36 = vrot.slane %v1497_v1, 2  ;;  %v1843_v47 = vadd.f32 %v1842_v46, %v1841_v41 }
 0x2f3   :  { %v1499_v35 = vadd.f32 %v1498_v36, %v1497_v1  ;;  %v1844_v13 = vrot.slane %v1843_v47, 2 }
 0x2f5   :  { %v1500_v48 = vrot.slane %v1499_v35, 1  ;;  %v1845_v34 = vadd.f32 %v1844_v13, %v1843_v47 }
 0x2f7   :  { %v1501_v60 = vadd.f32 %v1500_v48, %v1499_v35  ;;  %v1846_v8 = vrot.slane %v1845_v34, 1 }
 0x2f9   :  { %v5329_v62 = vmul.f32 0.000739645, %v1501_v60  ;;  %v1847_v42 = vadd.f32 %v1846_v8, %v1845_v34 }
 0x2fb   :  { %v1848_v3 = vmul.f32 0.000739645, %v1847_v42  ;;  %v1849_v5 = vmul.f32 %v5329_v62, %v5329_v62  ;;  %v1980_v47 = vsub.f32 %v5128_v28, %v5329_v62  ;;  %v1981_v60 = vsub.f32 %v5147_v39, %v5329_v62 }
 0x2fc   :  { %v1982_v34 = vsub.f32 %v5166_v45, %v5329_v62  ;;  %v1983_v8 = vsub.f32 %v5185_v50, %v5329_v62  ;;  %v1986_v41 = vsub.f32 %v4624_v40, %v5329_v62  ;;  %v1987_v28 = vsub.f32 %v4648_v54, %v5329_v62 }
 0x2fd   :  { %v1850_v32 = vsub.f32 %v1848_v3, %v1849_v5  ;;  %v1988_v39 = vsub.f32 %v4681_v6, %v5329_v62  ;;  %v1989_v45 = vsub.f32 %v4710_v53, %v5329_v62  ;;  %v1990_v50 = vsub.f32 %v4737_v2, %v5329_v62 }
 0x2fe   :  { %v1993_v40 = vsub.f32 %v4822_v0, %v5329_v62  ;;  %v1994_v54 = vsub.f32 %v4847_v44, %v5329_v62  ;;  %v1995_v6 = vsub.f32 %v4868_v15, %v5329_v62  ;;  %v1996_v53 = vsub.f32 %v4893_v31, %v5329_v62 }
 0x2ff   :  { %v1851_v57 = vmax.f32 %v1850_v32, 0.0  ;;  %v1985_v32 = vsub.f32 %v4594_v14, %v5329_v62  ;;  %v1992_v14 = vsub.f32 %v4796_v7, %v5329_v62  ;;  %v1997_v2 = vsub.f32 %v4918_v11, %v5329_v62 }
 0x300   :  { %v1999_v7 = vsub.f32 %v4964_v33, %v5329_v62  ;;  %v2000_v44 = vsub.f32 %v4988_v52, %v5329_v62  ;;  %v2001_v0 = vsub.f32 %v5010_v55, %v5329_v62  ;;  %v2002_v15 = vsub.f32 %v5031_v16, %v5329_v62 }
 0x301   :  { %v2022_v61 = vadd.f32 1e-05, %v1851_v57  ;;  %v1984_v57 = vsub.f32 %v9273_v12, %v5329_v62  ;;  %v1991_v12 = vsub.f32 %v4768_v63, %v5329_v62  ;;  %v1998_v63 = vsub.f32 %v4939_v25, %v5329_v62 }
 0x302   :  { %v2003_v31 = vsub.f32 %v5050_v10, %v5329_v62  ;;  %v2004_v11 = vsub.f32 %v5069_v56, %v5329_v62  ;;  %v2005_v25 = vsub.f32 %v5088_v43, %v5329_v62  ;;  %v2006_v33 = vsub.f32 %v5107_v19, %v5329_v62 }
 0x303   :  { %4089 = vrsqrt.f32 %v2022_v61  ;;  %vm2029_vm4 = vweird.f32 %v2022_v61  ;;  %v2007_v52 = vsub.f32 %v5126_v17, %v5329_v62  ;;  %v2008_v55 = vsub.f32 %v5145_v27, %v5329_v62 }
 0x304   :  { %v2009_v16 = vsub.f32 %v5164_v38, %v5329_v62  ;;  %v2010_v10 = vsub.f32 %v5183_v29, %v5329_v62  ;;  %v2011_v56 = vsub.f32 %v5201_v18, %v5329_v62  ;;  %v2012_v43 = vsub.f32 %v5219_v23, %v5329_v62 }
 0x305   :  { %v2013_v19 = vsub.f32 %v5236_v22, %v5329_v62  ;;  %v2014_v27 = vsub.f32 %v5253_v51, %v5329_v62  ;;  %v2015_v38 = vsub.f32 %v5267_v30, %v5329_v62  ;;  %v2016_v29 = vsub.f32 %v5276_v49, %v5329_v62 }
 0x306   :  { %v2017_v18 = vsub.f32 %v5286_v58, %v5329_v62  ;;  %v2018_v23 = vsub.f32 %v5295_v37, %v5329_v62  ;;  %v2019_v22 = vsub.f32 %v5305_v59, %v5329_v62  ;;  %v2020_v35 = vsub.f32 %v5314_v20, %v5329_v62 }
 0x307   :  { %v2021_v51 = vsub.f32 %v5324_v4, %v5329_v62 }
 0x309   :  { %v4090_v9 = vpop.eup %4089 }
 0x30a   :  { %v2024_v24 = vmul.f32 %v4090_v9, %v2022_v61  ;;  %vm2030_vm3 = vweird.f32 %v4090_v9 }
 0x30b   :  { %vm2031_vm5 = vmor %vm2029_vm4, %vm2030_vm3 }
 0x30c   :  { %v2025_v46 = vmul.f32 %v4090_v9, %v2024_v24 }
 0x30e   :  { %v2026_v36 = vmul.f32 0.5, %v2025_v46 }
 0x310   :  { %v2027_v21 = vsub.f32 1.5, %v2026_v36 }
 0x312   :  { %v2028_v1 = vmul.f32 %v4090_v9, %v2027_v21 }
 0x314   :  { %v5401_v17 = vsel %vm2031_vm5, %v4090_v9, %v2028_v1 }
 0x315   :  { %v5420_v30 = vmul.f32 %v5401_v17, %v1980_v47  ;;  %v5423_v49 = vmul.f32 %v5401_v17, %v1981_v60  ;;  %v5426_v58 = vmul.f32 %v5401_v17, %v1982_v34  ;;  %v5429_v37 = vmul.f32 %v5401_v17, %v1983_v8 }
 0x316   :  { %v5432_v59 = vmul.f32 %v5401_v17, %v1984_v57  ;;  %v5435_v20 = vmul.f32 %v5401_v17, %v1985_v32  ;;  %v5438_v4 = vmul.f32 %v5401_v17, %v1986_v41  ;;  %v5441_v13 = vmul.f32 %v5401_v17, %v1987_v28 }
 0x317   :  { %9274 = vst [vmem:[#allocation80_spill] sm:$0xff] %v5420_v30  ;;  %v5444_v48 = vmul.f32 %v5401_v17, %v1988_v39  ;;  %v5447_v42 = vmul.f32 %v5401_v17, %v1989_v45  ;;  %v5450_v3 = vmul.f32 %v5401_v17, %v1990_v50  ;;  %v5453_v5 = vmul.f32 %v5401_v17, %v1991_v12 }
 0x318   :  { %9275 = vst [vmem:[#allocation133_spill] sm:$0xff] %v5423_v49  ;;  %v5456_v61 = vmul.f32 %v5401_v17, %v1992_v14  ;;  %v5459_v9 = vmul.f32 %v5401_v17, %v1993_v40  ;;  %v5462_v24 = vmul.f32 %v5401_v17, %v1994_v54  ;;  %v5465_v46 = vmul.f32 %v5401_v17, %v1995_v6 }
 0x319   :  { %9276 = vst [vmem:[#allocation134_spill] sm:$0xff] %v5426_v58  ;;  %v5468_v36 = vmul.f32 %v5401_v17, %v1996_v53  ;;  %v5471_v47 = vmul.f32 %v5401_v17, %v1997_v2  ;;  %v5474_v60 = vmul.f32 %v5401_v17, %v1998_v63  ;;  %v5477_v34 = vmul.f32 %v5401_v17, %v1999_v7 }
 0x31a   :  { %9277 = vst [vmem:[#allocation135_spill] sm:$0xff] %v5429_v37  ;;  %v5480_v8 = vmul.f32 %v5401_v17, %v2000_v44  ;;  %v5483_v57 = vmul.f32 %v5401_v17, %v2001_v0  ;;  %v5486_v32 = vmul.f32 %v5401_v17, %v2002_v15  ;;  %v5489_v21 = vmul.f32 %v5401_v17, %v2003_v31  ;;  %v9316_v31 = vld [vmem:[#allocation5_spill] sm:$0xff] }
 0x31b   :  { %9278 = vst [vmem:[#allocation136_spill] sm:$0xff] %v5432_v59  ;;  %v5492_v41 = vmul.f32 %v5401_v17, %v2004_v11  ;;  %v5495_v28 = vmul.f32 %v5401_v17, %v2005_v25  ;;  %v5498_v39 = vmul.f32 %v5401_v17, %v2006_v33  ;;  %v5501_v45 = vmul.f32 %v5401_v17, %v2007_v52  ;;  %v9317_v25 = vld [vmem:[#allocation6_spill] sm:$0xff]  ;;  %v9332_v52 = vld [vmem:[#allocation32_spill] sm:$0xff]  ;;  %v9333_v33 = vld [vmem:[#allocation35_spill] sm:$0xff] }
 0x31c   :  { %9279 = vst [vmem:[#allocation137_spill] sm:$0xff] %v5435_v20  ;;  %v5504_v50 = vmul.f32 %v5401_v17, %v2008_v55  ;;  %v5507_v12 = vmul.f32 %v5401_v17, %v2009_v16  ;;  %v5510_v14 = vmul.f32 %v5401_v17, %v2010_v10  ;;  %v5513_v40 = vmul.f32 %v5401_v17, %v2011_v56  ;;  %v9318_v55 = vld [vmem:[#allocation7_spill] sm:$0xff]  ;;  %v9319_v10 = vld [vmem:[#allocation8_spill] sm:$0xff]  ;;  %v9325_v16 = vld [vmem:[#allocation18_spill] sm:$0xff] }
 0x31d   :  { %9280 = vst [vmem:[#allocation138_spill] sm:$0xff] %v5438_v4  ;;  %v5516_v54 = vmul.f32 %v5401_v17, %v2012_v43  ;;  %v5519_v6 = vmul.f32 %v5401_v17, %v2013_v19  ;;  %v5522_v53 = vmul.f32 %v5401_v17, %v2014_v27  ;;  %v5525_v2 = vmul.f32 %v5401_v17, %v2015_v38  ;;  %v9320_v43 = vld [vmem:[#allocation9_spill] sm:$0xff]  ;;  %v9321_v27 = vld [vmem:[#allocation10_spill] sm:$0xff]  ;;  %v9326_v56 = vld [vmem:[#allocation20_spill] sm:$0xff] }
 0x31e   :  { %9281 = vst [vmem:[#allocation139_spill] sm:$0xff] %v5441_v13  ;;  %v5528_v63 = vmul.f32 %v5401_v17, %v2016_v29  ;;  %v5531_v7 = vmul.f32 %v5401_v17, %v2017_v18  ;;  %v5534_v1 = vmul.f32 %v5401_v17, %v2018_v23  ;;  %v5537_v44 = vmul.f32 %v5401_v17, %v2019_v22  ;;  %v9322_v29 = vld [vmem:[#allocation12_spill] sm:$0xff]  ;;  %v9323_v23 = vld [vmem:[#allocation14_spill] sm:$0xff] }
 0x31f   :  { %9282 = vst [vmem:[#allocation140_spill] sm:$0xff] %v5444_v48  ;;  %v5540_v0 = vmul.f32 %v5401_v17, %v2020_v35  ;;  %v5543_v15 = vmul.f32 %v5401_v17, %v2021_v51  ;;  %v9324_v35 = vld [vmem:[#allocation16_spill] sm:$0xff]  ;;  %v9327_v19 = vld [vmem:[#allocation22_spill] sm:$0xff]  ;;  %v9443_v37 = vsub.f32 %v9316_v31, %v5329_v62  ;;  %v9444_v49 = vsub.f32 %v9317_v25, %v5329_v62 }
 0x320   :  { %9283 = vst [vmem:[#allocation141_spill] sm:$0xff] %v5447_v42  ;;  %v9328_v38 = vld [vmem:[#allocation24_spill] sm:$0xff]  ;;  %v9329_v18 = vld [vmem:[#allocation26_spill] sm:$0xff] }
 0x321   :  { %9284 = vst [vmem:[#allocation142_spill] sm:$0xff] %v5450_v3  ;;  %v9330_v22 = vld [vmem:[#allocation28_spill] sm:$0xff]  ;;  %v9331_v51 = vld [vmem:[#allocation30_spill] sm:$0xff]  ;;  %v5805_v58 = vmul.f32 %v5401_v17, %v9443_v37  ;;  %v5811_v30 = vmul.f32 %v5401_v17, %v9444_v49  ;;  %v9447_v37 = vsub.f32 %v9319_v10, %v5329_v62  ;;  %v9448_v49 = vsub.f32 %v9320_v43, %v5329_v62 }
 0x322   :  { %9285 = vst [vmem:[#allocation143_spill] sm:$0xff] %v5453_v5  ;;  %v9334_v11 = vld [vmem:[#allocation38_spill] sm:$0xff]  ;;  %v9446_v5 = vsub.f32 %v9318_v55, %v5329_v62 }
 0x323   :  { %9286 = vst [vmem:[#allocation144_spill] sm:$0xff] %v5456_v61  ;;  %v5829_v25 = vmul.f32 %v5401_v17, %v9447_v37  ;;  %v9451_v37 = vsub.f32 %v9323_v23, %v5329_v62  ;;  %vm2203_vm6 = vcmp.ge.f32.partialorder %v5805_v58, 0.0  ;;  %vm2204_vm7 = vcmp.ge.f32.partialorder %v5811_v30, 0.0 }
 0x324   :  { %9287 = vst [vmem:[#allocation145_spill] sm:$0xff] %v5459_v9  ;;  %v9445_v9 = vsub.f32 %v4210_v26, %v5329_v62  ;;  %v5823_v31 = vmul.f32 %v5401_v17, %v9446_v5  ;;  %v5835_v26 = vmul.f32 %v5401_v17, %v9448_v49  ;;  %v9450_v5 = vsub.f32 %v9322_v29, %v5329_v62 }
 0x325   :  { %9288 = vst [vmem:[#allocation146_spill] sm:$0xff] %v5462_v24  ;;  %v9362_v24 = vld [vmem:[#allocation17_spill] sm:$0xff]  ;;  %v5853_v43 = vmul.f32 %v5401_v17, %v9451_v37  ;;  %v9452_v49 = vsub.f32 %v9324_v35, %v5329_v62  ;;  %v9455_v37 = vsub.f32 %v9327_v19, %v5329_v62  ;;  %vm2207_vm10 = vcmp.ge.f32.partialorder %v5829_v25, 0.0 }
 0x326   :  { %9289 = vst [vmem:[#allocation147_spill] sm:$0xff] %v5465_v46  ;;  %v9361_v46 = vld [vmem:[#allocation15_spill] sm:$0xff]  ;;  %v5817_v61 = vmul.f32 %v5401_v17, %v9445_v9  ;;  %v9449_v9 = vsub.f32 %v9321_v27, %v5329_v62  ;;  %v5847_v10 = vmul.f32 %v5401_v17, %v9450_v5  ;;  %v9454_v5 = vsub.f32 %v9326_v56, %v5329_v62 }
 0x327   :  { %9290 = vst [vmem:[#allocation148_spill] sm:$0xff] %v5468_v36  ;;  %v9360_v36 = vld [vmem:[#allocation13_spill] sm:$0xff]  ;;  %v5859_v27 = vmul.f32 %v5401_v17, %v9452_v49  ;;  %v5877_v35 = vmul.f32 %v5401_v17, %v9455_v37  ;;  %v9456_v49 = vsub.f32 %v9328_v38, %v5329_v62  ;;  %v9459_v37 = vsub.f32 %v9331_v51, %v5329_v62 }
 0x328   :  { %9291 = vst [vmem:[#allocation149_spill] sm:$0xff] %v5471_v47  ;;  %v9359_v47 = vld [vmem:[#allocation11_spill] sm:$0xff]  ;;  %v5841_v55 = vmul.f32 %v5401_v17, %v9449_v9  ;;  %v9453_v9 = vsub.f32 %v9325_v16, %v5329_v62  ;;  %v5871_v23 = vmul.f32 %v5401_v17, %v9454_v5  ;;  %v9458_v5 = vsub.f32 %v9330_v22, %v5329_v62 }
 0x329   :  { %9292 = vst [vmem:[#allocation150_spill] sm:$0xff] %v5474_v60  ;;  %v9358_v60 = vld [vmem:[#allocation109_spill] sm:$0xff]  ;;  %v5883_v16 = vmul.f32 %v5401_v17, %v9456_v49  ;;  %v5901_v38 = vmul.f32 %v5401_v17, %v9459_v37  ;;  %v9460_v49 = vsub.f32 %v9332_v52, %v5329_v62  ;;  %vm2205_vm8 = vcmp.ge.f32.partialorder %v5817_v61, 0.0 }
 0x32a   :  { %9293 = vst [vmem:[#allocation151_spill] sm:$0xff] %v5477_v34  ;;  %v9357_v34 = vld [vmem:[#allocation106_spill] sm:$0xff]  ;;  %v5865_v29 = vmul.f32 %v5401_v17, %v9453_v9  ;;  %v9457_v9 = vsub.f32 %v9329_v18, %v5329_v62  ;;  %v5895_v19 = vmul.f32 %v5401_v17, %v9458_v5  ;;  %v9462_v5 = vsub.f32 %v9334_v11, %v5329_v62 }
 0x32b   :  { %9294 = vst [vmem:[#allocation152_spill] sm:$0xff] %v5480_v8  ;;  %v9356_v8 = vld [vmem:[#allocation103_spill] sm:$0xff]  ;;  %v5907_v18 = vmul.f32 %v5401_v17, %v9460_v49  ;;  %vm2206_vm9 = vcmp.ge.f32.partialorder %v5823_v31, 0.0  ;;  %vm2208_vm11 = vcmp.ge.f32.partialorder %v5835_v26, 0.0  ;;  %vm2209_vm12 = vcmp.ge.f32.partialorder %v5841_v55, 0.0 }
 0x32c   :  { %9295 = vst [vmem:[#allocation153_spill] sm:$0xff] %v5483_v57  ;;  %v9355_v57 = vld [vmem:[#allocation100_spill] sm:$0xff]  ;;  %v5889_v56 = vmul.f32 %v5401_v17, %v9457_v9  ;;  %v9461_v9 = vsub.f32 %v9333_v33, %v5329_v62  ;;  %v5919_v51 = vmul.f32 %v5401_v17, %v9462_v5  ;;  %vm2210_vm13 = vcmp.ge.f32.partialorder %v5847_v10, 0.0 }
 0x32d   :  { %9296 = vst [vmem:[#allocation154_spill] sm:$0xff] %v5486_v32  ;;  %v9354_v32 = vld [vmem:[#allocation98_spill] sm:$0xff]  ;;  %vm2211_vm14 = vcmp.ge.f32.partialorder %v5853_v43, 0.0  ;;  %vm2212_vm15 = vcmp.ge.f32.partialorder %v5859_v27, 0.0  ;;  %vm2213_vm0 = vcmp.ge.f32.partialorder %v5865_v29, 0.0  ;;  %vm2214_vm1 = vcmp.ge.f32.partialorder %v5871_v23, 0.0 }
 0x32e   :  { %9297 = vst [vmem:[#allocation155_spill] sm:$0xff] %v5489_v21  ;;  %v9353_v21 = vld [vmem:[#allocation95_spill] sm:$0xff]  ;;  %v5913_v22 = vmul.f32 %v5401_v17, %v9461_v9  ;;  %vm2215_vm2 = vcmp.ge.f32.partialorder %v5877_v35, 0.0  ;;  %vm2216_vm3 = vcmp.ge.f32.partialorder %v5883_v16, 0.0  ;;  %vm2217_vm4 = vcmp.ge.f32.partialorder %v5889_v56, 0.0 }
 0x32f   :  { %9298 = vst [vmem:[#allocation156_spill] sm:$0xff] %v5492_v41  ;;  %v9352_v41 = vld [vmem:[#allocation92_spill] sm:$0xff]  ;;  %vm2218_vm5 = vcmp.ge.f32.partialorder %v5895_v19, 0.0 }
 0x330   :  { %9299 = vst [vmem:[#allocation157_spill] sm:$0xff] %v5495_v28  ;;  %v9351_v28 = vld [vmem:[#allocation89_spill] sm:$0xff] }
 0x331   :  { %9300 = vst [vmem:[#allocation158_spill] sm:$0xff] %v5498_v39  ;;  %v9350_v39 = vld [vmem:[#allocation86_spill] sm:$0xff] }
 0x332   :  { %9301 = vst [vmem:[#allocation159_spill] sm:$0xff] %v5501_v45  ;;  %v9349_v45 = vld [vmem:[#allocation84_spill] sm:$0xff] }
 0x333   :  { %9302 = vst [vmem:[#allocation160_spill] sm:$0xff] %v5504_v50  ;;  %v9348_v50 = vld [vmem:[#allocation81_spill] sm:$0xff] }
 0x334   :  { %9303 = vst [vmem:[#allocation161_spill] sm:$0xff] %v5507_v12  ;;  %v9347_v12 = vld [vmem:[#allocation77_spill] sm:$0xff] }
 0x335   :  { %9304 = vst [vmem:[#allocation162_spill] sm:$0xff] %v5510_v14  ;;  %v9346_v14 = vld [vmem:[#allocation74_spill] sm:$0xff] }
 0x336   :  { %9305 = vst [vmem:[#allocation163_spill] sm:$0xff] %v5513_v40  ;;  %v9345_v40 = vld [vmem:[#allocation71_spill] sm:$0xff] }
 0x337   :  { %9306 = vst [vmem:[#allocation164_spill] sm:$0xff] %v5516_v54  ;;  %v9344_v54 = vld [vmem:[#allocation68_spill] sm:$0xff] }
 0x338   :  { %9307 = vst [vmem:[#allocation165_spill] sm:$0xff] %v5519_v6  ;;  %v9343_v6 = vld [vmem:[#allocation65_spill] sm:$0xff] }
 0x339   :  { %9308 = vst [vmem:[#allocation166_spill] sm:$0xff] %v5522_v53  ;;  %v9342_v53 = vld [vmem:[#allocation62_spill] sm:$0xff] }
 0x33a   :  { %9309 = vst [vmem:[#allocation167_spill] sm:$0xff] %v5525_v2  ;;  %v9341_v2 = vld [vmem:[#allocation59_spill] sm:$0xff] }
 0x33b   :  { %9310 = vst [vmem:[#allocation168_spill] sm:$0xff] %v5528_v63  ;;  %v9340_v63 = vld [vmem:[#allocation56_spill] sm:$0xff] }
 0x33c   :  { %9311 = vst [vmem:[#allocation169_spill] sm:$0xff] %v5531_v7  ;;  %v9339_v7 = vld [vmem:[#allocation53_spill] sm:$0xff] }
 0x33d   :  { %9312 = vst [vmem:[#allocation170_spill] sm:$0xff] %v5534_v1  ;;  %v9338_v1 = vld [vmem:[#allocation50_spill] sm:$0xff] }
 0x33e   :  { %9313 = vst [vmem:[#allocation171_spill] sm:$0xff] %v5537_v44  ;;  %v9337_v44 = vld [vmem:[#allocation47_spill] sm:$0xff]  ;;  %v9466_v5 = vsub.f32 %v9338_v1, %v5329_v62 }
 0x33f   :  { %9314 = vst [vmem:[#allocation172_spill] sm:$0xff] %v5540_v0  ;;  %v9336_v0 = vld [vmem:[#allocation44_spill] sm:$0xff]  ;;  %v9465_v9 = vsub.f32 %v9337_v44, %v5329_v62 }
 0x340   :  { %9315 = vst [vmem:[#allocation173_spill] sm:$0xff] %v5543_v15  ;;  %v9335_v15 = vld [vmem:[#allocation41_spill] sm:$0xff]  ;;  %v9464_v49 = vsub.f32 %v9336_v0, %v5329_v62 }
 0x341   :  { %v9463_v37 = vsub.f32 %v9335_v15, %v5329_v62  ;;  %v5937_v11 = vmul.f32 %v5401_v17, %v9465_v9  ;;  %v5943_v15 = vmul.f32 %v5401_v17, %v9466_v5  ;;  %v9469_v9 = vsub.f32 %v9341_v2, %v5329_v62 }
 0x342   :  { %v5931_v33 = vmul.f32 %v5401_v17, %v9464_v49  ;;  %v9468_v49 = vsub.f32 %v9340_v63, %v5329_v62  ;;  %v9470_v5 = vsub.f32 %v9342_v53, %v5329_v62 }
 0x343   :  { %v5925_v52 = vmul.f32 %v5401_v17, %v9463_v37  ;;  %v9467_v37 = vsub.f32 %v9339_v7, %v5329_v62  ;;  %v5961_v1 = vmul.f32 %v5401_v17, %v9469_v9  ;;  %v9474_v9 = vsub.f32 %v9345_v40, %v5329_v62 }
 0x344   :  { %v5955_v44 = vmul.f32 %v5401_v17, %v9468_v49  ;;  %v5967_v7 = vmul.f32 %v5401_v17, %v9470_v5  ;;  %v9473_v49 = vsub.f32 %v9344_v54, %v5329_v62  ;;  %v9476_v5 = vsub.f32 %v9346_v14, %v5329_v62 }
 0x345   :  { %v5949_v0 = vmul.f32 %v5401_v17, %v9467_v37  ;;  %v9472_v37 = vsub.f32 %v9343_v6, %v5329_v62  ;;  %v5985_v53 = vmul.f32 %v5401_v17, %v9474_v9  ;;  %v9480_v9 = vsub.f32 %v9349_v45, %v5329_v62 }
 0x346   :  { %9471 = vst [vmem:[#allocation5_spill] sm:$0xff] %v5967_v7  ;;  %v5979_v2 = vmul.f32 %v5401_v17, %v9473_v49  ;;  %v5991_v6 = vmul.f32 %v5401_v17, %v9476_v5  ;;  %v9478_v49 = vsub.f32 %v9348_v50, %v5329_v62  ;;  %v9481_v5 = vsub.f32 %v9350_v39, %v5329_v62 }
 0x347   :  { %v5973_v63 = vmul.f32 %v5401_v17, %v9472_v37  ;;  %9475 = vst [vmem:[#allocation6_spill] sm:$0xff] %v5985_v53  ;;  %v9477_v37 = vsub.f32 %v9347_v12, %v5329_v62  ;;  %v6009_v14 = vmul.f32 %v5401_v17, %v9480_v9  ;;  %v9485_v9 = vsub.f32 %v9353_v21, %v5329_v62 }
 0x348   :  { %v6003_v40 = vmul.f32 %v5401_v17, %v9478_v49  ;;  %v6015_v12 = vmul.f32 %v5401_v17, %v9481_v5  ;;  %v9484_v49 = vsub.f32 %v9352_v41, %v5329_v62  ;;  %v9486_v5 = vsub.f32 %v9354_v32, %v5329_v62 }
 0x349   :  { %v5997_v54 = vmul.f32 %v5401_v17, %v9477_v37  ;;  %v9482_v37 = vsub.f32 %v9351_v28, %v5329_v62  ;;  %v6033_v39 = vmul.f32 %v5401_v17, %v9485_v9  ;;  %v9492_v9 = vsub.f32 %v9357_v34, %v5329_v62 }
 0x34a   :  { %9479 = vst [vmem:[#allocation7_spill] sm:$0xff] %v6003_v40  ;;  %v6027_v45 = vmul.f32 %v5401_v17, %v9484_v49  ;;  %v6039_v28 = vmul.f32 %v5401_v17, %v9486_v5  ;;  %v9490_v49 = vsub.f32 %v9356_v8, %v5329_v62  ;;  %v9494_v5 = vsub.f32 %v9358_v60, %v5329_v62 }
 0x34b   :  { %v6021_v50 = vmul.f32 %v5401_v17, %v9482_v37  ;;  %v9488_v37 = vsub.f32 %v9355_v57, %v5329_v62  ;;  %v6057_v32 = vmul.f32 %v5401_v17, %v9492_v9  ;;  %v9500_v9 = vsub.f32 %v9361_v46, %v5329_v62 }
 0x34c   :  { %9487 = vst [vmem:[#allocation9_spill] sm:$0xff] %v6039_v28  ;;  %v6051_v21 = vmul.f32 %v5401_v17, %v9490_v49  ;;  %v6063_v57 = vmul.f32 %v5401_v17, %v9494_v5  ;;  %v9498_v49 = vsub.f32 %v9360_v36, %v5329_v62  ;;  %v9502_v5 = vsub.f32 %v9362_v24, %v5329_v62 }
 0x34d   :  { %9483 = vst [vmem:[#allocation8_spill] sm:$0xff] %v6021_v50  ;;  %v6045_v41 = vmul.f32 %v5401_v17, %v9488_v37  ;;  %v9496_v37 = vsub.f32 %v9359_v47, %v5329_v62  ;;  %v6081_v60 = vmul.f32 %v5401_v17, %v9500_v9  ;;  %v9510_v9 = vld [vmem:[#allocation23_spill] sm:$0xff] }
 0x34e   :  { %9491 = vst [vmem:[#allocation12_spill] sm:$0xff] %v6051_v21  ;;  %v6075_v34 = vmul.f32 %v5401_v17, %v9498_v49  ;;  %v6087_v47 = vmul.f32 %v5401_v17, %v9502_v5  ;;  %v9507_v49 = vld [vmem:[#allocation21_spill] sm:$0xff]  ;;  %v9511_v4 = vsub.f32 %v9510_v9, %v5329_v62 }
 0x34f   :  { %9489 = vst [vmem:[#allocation10_spill] sm:$0xff] %v6045_v41  ;;  %v6069_v8 = vmul.f32 %v5401_v17, %v9496_v37  ;;  %v9504_v37 = vld [vmem:[#allocation19_spill] sm:$0xff]  ;;  %v9508_v20 = vsub.f32 %v9507_v49, %v5329_v62  ;;  %v9513_v5 = vld [vmem:[#allocation25_spill] sm:$0xff] }
 0x350   :  { %9493 = vst [vmem:[#allocation14_spill] sm:$0xff] %v6057_v32  ;;  %v9505_v59 = vsub.f32 %v9504_v37, %v5329_v62  ;;  %v6105_v24 = vmul.f32 %v5401_v17, %v9511_v4  ;;  %v9514_v13 = vsub.f32 %v9513_v5, %v5329_v62  ;;  %v9522_v4 = vld [vmem:[#allocation31_spill] sm:$0xff] }
 0x351   :  { %9495 = vst [vmem:[#allocation16_spill] sm:$0xff] %v6063_v57  ;;  %v6099_v46 = vmul.f32 %v5401_v17, %v9508_v20  ;;  %v9519_v20 = vld [vmem:[#allocation29_spill] sm:$0xff]  ;;  %v9523_v3 = vsub.f32 %v9522_v4, %v5329_v62 }
 0x352   :  { %9497 = vst [vmem:[#allocation18_spill] sm:$0xff] %v6069_v8  ;;  %v6093_v36 = vmul.f32 %v5401_v17, %v9505_v59  ;;  %v6111_v37 = vmul.f32 %v5401_v17, %v9514_v13  ;;  %v9516_v59 = vld [vmem:[#allocation27_spill] sm:$0xff]  ;;  %v9520_v42 = vsub.f32 %v9519_v20, %v5329_v62  ;;  %v9525_v13 = vld [vmem:[#allocation33_spill] sm:$0xff] }
 0x353   :  { %9499 = vst [vmem:[#allocation20_spill] sm:$0xff] %v6075_v34  ;;  %v9517_v48 = vsub.f32 %v9516_v59, %v5329_v62  ;;  %v6129_v5 = vmul.f32 %v5401_v17, %v9523_v3  ;;  %v9534_v3 = vld [vmem:[#allocation42_spill] sm:$0xff] }
 0x354   :  { %9501 = vst [vmem:[#allocation22_spill] sm:$0xff] %v6081_v60  ;;  %v6123_v9 = vmul.f32 %v5401_v17, %v9520_v42  ;;  %v9531_v42 = vld [vmem:[#allocation39_spill] sm:$0xff] }
 0x355   :  { %9503 = vst [vmem:[#allocation24_spill] sm:$0xff] %v6087_v47  ;;  %v6117_v49 = vmul.f32 %v5401_v17, %v9517_v48  ;;  %v9528_v48 = vld [vmem:[#allocation36_spill] sm:$0xff] }
 0x356   :  { %9506 = vst [vmem:[#allocation26_spill] sm:$0xff] %v6093_v36 }
 0x357   :  { %9509 = vst [vmem:[#allocation28_spill] sm:$0xff] %v6099_v46 }
 0x358   :  { %9512 = vst [vmem:[#allocation30_spill] sm:$0xff] %v6105_v24 }
 0x359   :  { %9515 = vst [vmem:[#allocation32_spill] sm:$0xff] %v6111_v37  ;;  %v9526_v37 = vsub.f32 %v9525_v13, %v5329_v62 }
 0x35a   :  { %9518 = vst [vmem:[#allocation35_spill] sm:$0xff] %v6117_v49  ;;  %v9529_v49 = vsub.f32 %v9528_v48, %v5329_v62 }
 0x35b   :  { %9521 = vst [vmem:[#allocation38_spill] sm:$0xff] %v6123_v9  ;;  %v6135_v59 = vmul.f32 %v5401_v17, %v9526_v37  ;;  %v9532_v9 = vsub.f32 %v9531_v42, %v5329_v62  ;;  %v9537_v37 = vld [vmem:[#allocation45_spill] sm:$0xff] }
 0x35c   :  { %9524 = vst [vmem:[#allocation41_spill] sm:$0xff] %v6129_v5  ;;  %v6141_v20 = vmul.f32 %v5401_v17, %v9529_v49  ;;  %v9535_v5 = vsub.f32 %v9534_v3, %v5329_v62  ;;  %v9540_v49 = vld [vmem:[#allocation48_spill] sm:$0xff] }
 0x35d   :  { %9527 = vst [vmem:[#allocation44_spill] sm:$0xff] %v6135_v59  ;;  %v6147_v4 = vmul.f32 %v5401_v17, %v9532_v9  ;;  %v9538_v59 = vsub.f32 %v9537_v37, %v5329_v62  ;;  %v9543_v9 = vld [vmem:[#allocation51_spill] sm:$0xff] }
 0x35e   :  { %9530 = vst [vmem:[#allocation47_spill] sm:$0xff] %v6141_v20  ;;  %v6153_v13 = vmul.f32 %v5401_v17, %v9535_v5  ;;  %v9541_v20 = vsub.f32 %v9540_v49, %v5329_v62  ;;  %v9546_v5 = vld [vmem:[#allocation54_spill] sm:$0xff] }
 0x35f   :  { %9533 = vst [vmem:[#allocation50_spill] sm:$0xff] %v6147_v4  ;;  %v6159_v48 = vmul.f32 %v5401_v17, %v9538_v59  ;;  %v9544_v4 = vsub.f32 %v9543_v9, %v5329_v62  ;;  %v9549_v59 = vld [vmem:[#allocation57_spill] sm:$0xff] }
 0x360   :  { %9536 = vst [vmem:[#allocation53_spill] sm:$0xff] %v6153_v13  ;;  %v6165_v42 = vmul.f32 %v5401_v17, %v9541_v20  ;;  %v9547_v13 = vsub.f32 %v9546_v5, %v5329_v62  ;;  %v9552_v20 = vld [vmem:[#allocation60_spill] sm:$0xff] }
 0x361   :  { %9539 = vst [vmem:[#allocation56_spill] sm:$0xff] %v6159_v48  ;;  %v6171_v3 = vmul.f32 %v5401_v17, %v9544_v4  ;;  %v9550_v48 = vsub.f32 %v9549_v59, %v5329_v62  ;;  %v9555_v4 = vld [vmem:[#allocation63_spill] sm:$0xff] }
 0x362   :  { %9542 = vst [vmem:[#allocation59_spill] sm:$0xff] %v6165_v42  ;;  %v6177_v37 = vmul.f32 %v5401_v17, %v9547_v13  ;;  %v9553_v42 = vsub.f32 %v9552_v20, %v5329_v62  ;;  %v9558_v13 = vld [vmem:[#allocation66_spill] sm:$0xff] }
 0x363   :  { %9545 = vst [vmem:[#allocation62_spill] sm:$0xff] %v6171_v3  ;;  %v6183_v49 = vmul.f32 %v5401_v17, %v9550_v48  ;;  %v9556_v3 = vsub.f32 %v9555_v4, %v5329_v62  ;;  %v9561_v48 = vld [vmem:[#allocation69_spill] sm:$0xff] }
 0x364   :  { %9548 = vst [vmem:[#allocation65_spill] sm:$0xff] %v6177_v37  ;;  %v6189_v9 = vmul.f32 %v5401_v17, %v9553_v42  ;;  %v9559_v37 = vsub.f32 %v9558_v13, %v5329_v62  ;;  %v9564_v42 = vld [vmem:[#allocation72_spill] sm:$0xff] }
 0x365   :  { %9551 = vst [vmem:[#allocation68_spill] sm:$0xff] %v6183_v49  ;;  %v6195_v5 = vmul.f32 %v5401_v17, %v9556_v3  ;;  %v9562_v49 = vsub.f32 %v9561_v48, %v5329_v62  ;;  %v9567_v3 = vld [vmem:[#allocation76_spill] sm:$0xff] }
 0x366   :  { %9554 = vst [vmem:[#allocation71_spill] sm:$0xff] %v6189_v9  ;;  %v6201_v59 = vmul.f32 %v5401_v17, %v9559_v37  ;;  %v9565_v9 = vsub.f32 %v9564_v42, %v5329_v62  ;;  %v9570_v37 = vld [vmem:[#allocation79_spill] sm:$0xff] }
 0x367   :  { %9557 = vst [vmem:[#allocation74_spill] sm:$0xff] %v6195_v5  ;;  %v6207_v20 = vmul.f32 %v5401_v17, %v9562_v49  ;;  %v9568_v5 = vsub.f32 %v9567_v3, %v5329_v62  ;;  %v9573_v49 = vld [vmem:[#allocation83_spill] sm:$0xff] }
 0x368   :  { %9560 = vst [vmem:[#allocation77_spill] sm:$0xff] %v6201_v59  ;;  %v6213_v4 = vmul.f32 %v5401_v17, %v9565_v9  ;;  %v9571_v59 = vsub.f32 %v9570_v37, %v5329_v62  ;;  %v9576_v9 = vld [vmem:[#allocation87_spill] sm:$0xff] }
 0x369   :  { %9563 = vst [vmem:[#allocation81_spill] sm:$0xff] %v6207_v20  ;;  %v6219_v13 = vmul.f32 %v5401_v17, %v9568_v5  ;;  %v9574_v20 = vsub.f32 %v9573_v49, %v5329_v62  ;;  %v9579_v5 = vld [vmem:[#allocation91_spill] sm:$0xff] }
 0x36a   :  { %9566 = vst [vmem:[#allocation84_spill] sm:$0xff] %v6213_v4  ;;  %v6225_v48 = vmul.f32 %v5401_v17, %v9571_v59  ;;  %v9577_v4 = vsub.f32 %v9576_v9, %v5329_v62  ;;  %v9582_v59 = vld [vmem:[#allocation94_spill] sm:$0xff] }
 0x36b   :  { %9569 = vst [vmem:[#allocation86_spill] sm:$0xff] %v6219_v13  ;;  %v6231_v42 = vmul.f32 %v5401_v17, %v9574_v20  ;;  %v9580_v13 = vsub.f32 %v9579_v5, %v5329_v62  ;;  %v9585_v20 = vld [vmem:[#allocation97_spill] sm:$0xff] }
 0x36c   :  { %9572 = vst [vmem:[#allocation89_spill] sm:$0xff] %v6225_v48  ;;  %v6237_v3 = vmul.f32 %v5401_v17, %v9577_v4  ;;  %v9583_v48 = vsub.f32 %v9582_v59, %v5329_v62  ;;  %v9588_v4 = vld [vmem:[#allocation101_spill] sm:$0xff] }
 0x36d   :  { %9575 = vst [vmem:[#allocation92_spill] sm:$0xff] %v6231_v42  ;;  %v6243_v37 = vmul.f32 %v5401_v17, %v9580_v13  ;;  %v9586_v42 = vsub.f32 %v9585_v20, %v5329_v62  ;;  %v9591_v13 = vld [vmem:[#allocation105_spill] sm:$0xff] }
 0x36e   :  { %9578 = vst [vmem:[#allocation95_spill] sm:$0xff] %v6237_v3  ;;  %v6249_v49 = vmul.f32 %v5401_v17, %v9583_v48  ;;  %v9589_v3 = vsub.f32 %v9588_v4, %v5329_v62  ;;  %v9594_v48 = vld [vmem:[#allocation108_spill] sm:$0xff] }
 0x36f   :  { %9581 = vst [vmem:[#allocation98_spill] sm:$0xff] %v6243_v37  ;;  %v6255_v9 = vmul.f32 %v5401_v17, %v9586_v42  ;;  %v9592_v37 = vsub.f32 %v9591_v13, %v5329_v62  ;;  %v9597_v42 = vld [vmem:[#allocation111_spill] sm:$0xff] }
 0x370   :  { %9584 = vst [vmem:[#allocation100_spill] sm:$0xff] %v6249_v49  ;;  %v6261_v5 = vmul.f32 %v5401_v17, %v9589_v3  ;;  %v9595_v49 = vsub.f32 %v9594_v48, %v5329_v62  ;;  %v9600_v3 = vld [vmem:[#allocation113_spill] sm:$0xff] }
 0x371   :  { %9587 = vst [vmem:[#allocation103_spill] sm:$0xff] %v6255_v9  ;;  %v6267_v59 = vmul.f32 %v5401_v17, %v9592_v37  ;;  %v9598_v9 = vsub.f32 %v9597_v42, %v5329_v62  ;;  %v9603_v37 = vld [vmem:[#allocation115_spill] sm:$0xff] }
 0x372   :  { %9590 = vst [vmem:[#allocation106_spill] sm:$0xff] %v6261_v5  ;;  %v6273_v20 = vmul.f32 %v5401_v17, %v9595_v49  ;;  %v9601_v5 = vsub.f32 %v9600_v3, %v5329_v62  ;;  %v9606_v49 = vld [vmem:[#allocation117_spill] sm:$0xff] }
 0x373   :  { %9593 = vst [vmem:[#allocation109_spill] sm:$0xff] %v6267_v59  ;;  %v6279_v4 = vmul.f32 %v5401_v17, %v9598_v9  ;;  %v9604_v59 = vsub.f32 %v9603_v37, %v5329_v62  ;;  %v9609_v9 = vld [vmem:[#allocation119_spill] sm:$0xff] }
 0x374   :  { %9596 = vst [vmem:[#allocation11_spill] sm:$0xff] %v6273_v20  ;;  %v6285_v13 = vmul.f32 %v5401_v17, %v9601_v5  ;;  %v9607_v20 = vsub.f32 %v9606_v49, %v5329_v62  ;;  %v9612_v5 = vld [vmem:[#allocation121_spill] sm:$0xff] }
 0x375   :  { %9599 = vst [vmem:[#allocation13_spill] sm:$0xff] %v6279_v4  ;;  %v6291_v48 = vmul.f32 %v5401_v17, %v9604_v59  ;;  %v9610_v4 = vsub.f32 %v9609_v9, %v5329_v62  ;;  %v9615_v59 = vld [vmem:[#allocation123_spill] sm:$0xff] }
 0x376   :  { %9602 = vst [vmem:[#allocation15_spill] sm:$0xff] %v6285_v13  ;;  %v6297_v42 = vmul.f32 %v5401_v17, %v9607_v20  ;;  %v9613_v13 = vsub.f32 %v9612_v5, %v5329_v62  ;;  %v9618_v20 = vld [vmem:[#allocation125_spill] sm:$0xff] }
 0x377   :  { %9605 = vst [vmem:[#allocation17_spill] sm:$0xff] %v6291_v48  ;;  %v6303_v3 = vmul.f32 %v5401_v17, %v9610_v4  ;;  %v9616_v48 = vsub.f32 %v9615_v59, %v5329_v62  ;;  %v9621_v4 = vld [vmem:[#allocation127_spill] sm:$0xff] }
 0x378   :  { %9608 = vst [vmem:[#allocation19_spill] sm:$0xff] %v6297_v42  ;;  %v6309_v37 = vmul.f32 %v5401_v17, %v9613_v13  ;;  %v9619_v42 = vsub.f32 %v9618_v20, %v5329_v62  ;;  %v9624_v13 = vld [vmem:[#allocation34_spill] sm:$0xff] }
 0x379   :  { %9611 = vst [vmem:[#allocation21_spill] sm:$0xff] %v6303_v3  ;;  %v6315_v49 = vmul.f32 %v5401_v17, %v9616_v48  ;;  %v9622_v3 = vsub.f32 %v9621_v4, %v5329_v62  ;;  %v9627_v48 = vld [vmem:[#allocation37_spill] sm:$0xff] }
 0x37a   :  { %9614 = vst [vmem:[#allocation23_spill] sm:$0xff] %v6309_v37  ;;  %v6321_v9 = vmul.f32 %v5401_v17, %v9619_v42  ;;  %v9625_v37 = vsub.f32 %v9624_v13, %v5329_v62  ;;  %v9630_v42 = vld [vmem:[#allocation40_spill] sm:$0xff] }
 0x37b   :  { %9617 = vst [vmem:[#allocation25_spill] sm:$0xff] %v6315_v49  ;;  %v6327_v5 = vmul.f32 %v5401_v17, %v9622_v3  ;;  %v9628_v49 = vsub.f32 %v9627_v48, %v5329_v62  ;;  %v9633_v3 = vld [vmem:[#allocation43_spill] sm:$0xff] }
 0x37c   :  { %9620 = vst [vmem:[#allocation27_spill] sm:$0xff] %v6321_v9  ;;  %v6333_v59 = vmul.f32 %v5401_v17, %v9625_v37  ;;  %v9631_v9 = vsub.f32 %v9630_v42, %v5329_v62  ;;  %v9636_v37 = vld [vmem:[#allocation46_spill] sm:$0xff] }
 0x37d   :  { %9623 = vst [vmem:[#allocation29_spill] sm:$0xff] %v6327_v5  ;;  %v6339_v20 = vmul.f32 %v5401_v17, %v9628_v49  ;;  %v9634_v5 = vsub.f32 %v9633_v3, %v5329_v62  ;;  %v9639_v49 = vld [vmem:[#allocation49_spill] sm:$0xff] }
 0x37e   :  { %9626 = vst [vmem:[#allocation31_spill] sm:$0xff] %v6333_v59  ;;  %v6345_v4 = vmul.f32 %v5401_v17, %v9631_v9  ;;  %v9637_v59 = vsub.f32 %v9636_v37, %v5329_v62  ;;  %v9642_v9 = vld [vmem:[#allocation52_spill] sm:$0xff] }
 0x37f   :  { %9629 = vst [vmem:[#allocation33_spill] sm:$0xff] %v6339_v20  ;;  %v6351_v13 = vmul.f32 %v5401_v17, %v9634_v5  ;;  %v9640_v20 = vsub.f32 %v9639_v49, %v5329_v62  ;;  %v9645_v5 = vld [vmem:[#allocation55_spill] sm:$0xff] }
 0x380   :  { %9632 = vst [vmem:[#allocation36_spill] sm:$0xff] %v6345_v4  ;;  %v6357_v48 = vmul.f32 %v5401_v17, %v9637_v59  ;;  %v9643_v4 = vsub.f32 %v9642_v9, %v5329_v62  ;;  %v9648_v59 = vld [vmem:[#allocation58_spill] sm:$0xff] }
 0x381   :  { %9635 = vst [vmem:[#allocation39_spill] sm:$0xff] %v6351_v13  ;;  %v6363_v42 = vmul.f32 %v5401_v17, %v9640_v20  ;;  %v9646_v13 = vsub.f32 %v9645_v5, %v5329_v62  ;;  %v9651_v20 = vld [vmem:[#allocation61_spill] sm:$0xff] }
 0x382   :  { %9638 = vst [vmem:[#allocation42_spill] sm:$0xff] %v6357_v48  ;;  %v6369_v3 = vmul.f32 %v5401_v17, %v9643_v4  ;;  %v9649_v48 = vsub.f32 %v9648_v59, %v5329_v62  ;;  %v9654_v4 = vld [vmem:[#allocation64_spill] sm:$0xff] }
 0x383   :  { %9641 = vst [vmem:[#allocation45_spill] sm:$0xff] %v6363_v42  ;;  %v6375_v37 = vmul.f32 %v5401_v17, %v9646_v13  ;;  %v9652_v42 = vsub.f32 %v9651_v20, %v5329_v62  ;;  %v9657_v13 = vld [vmem:[#allocation67_spill] sm:$0xff] }
 0x384   :  { %9644 = vst [vmem:[#allocation48_spill] sm:$0xff] %v6369_v3  ;;  %v6381_v49 = vmul.f32 %v5401_v17, %v9649_v48  ;;  %v9655_v3 = vsub.f32 %v9654_v4, %v5329_v62  ;;  %v9660_v48 = vld [vmem:[#allocation70_spill] sm:$0xff] }
 0x385   :  { %9647 = vst [vmem:[#allocation51_spill] sm:$0xff] %v6375_v37  ;;  %v6387_v9 = vmul.f32 %v5401_v17, %v9652_v42  ;;  %v9658_v37 = vsub.f32 %v9657_v13, %v5329_v62  ;;  %v9663_v42 = vld [vmem:[#allocation73_spill] sm:$0xff] }
 0x386   :  { %9650 = vst [vmem:[#allocation54_spill] sm:$0xff] %v6381_v49  ;;  %v6393_v5 = vmul.f32 %v5401_v17, %v9655_v3  ;;  %v9661_v49 = vsub.f32 %v9660_v48, %v5329_v62  ;;  %v9666_v3 = vld [vmem:[#allocation75_spill] sm:$0xff] }
 0x387   :  { %9653 = vst [vmem:[#allocation57_spill] sm:$0xff] %v6387_v9  ;;  %v6399_v59 = vmul.f32 %v5401_v17, %v9658_v37  ;;  %v9664_v9 = vsub.f32 %v9663_v42, %v5329_v62  ;;  %v9669_v37 = vld [vmem:[#allocation78_spill] sm:$0xff]  ;;  %v6429_v42 = vmul.f32 0.01, %v5811_v30 }
 0x388   :  { %9656 = vst [vmem:[#allocation60_spill] sm:$0xff] %v6393_v5  ;;  %v6405_v20 = vmul.f32 %v5401_v17, %v9661_v49  ;;  %v9667_v5 = vsub.f32 %v9666_v3, %v5329_v62  ;;  %v6426_v49 = vmul.f32 0.01, %v5805_v58 }
 0x389   :  { %9659 = vst [vmem:[#allocation63_spill] sm:$0xff] %v6399_v59  ;;  %v6411_v4 = vmul.f32 %v5401_v17, %v9664_v9  ;;  %v9670_v59 = vsub.f32 %v9669_v37, %v5329_v62  ;;  %v9672_v9 = vld [vmem:[#allocation82_spill] sm:$0xff]  ;;  %v6441_v37 = vmul.f32 0.01, %v5823_v31 }
 0x38a   :  { %9662 = vst [vmem:[#allocation66_spill] sm:$0xff] %v6405_v20  ;;  %v6417_v13 = vmul.f32 %v5401_v17, %v9667_v5  ;;  %v6438_v5 = vmul.f32 0.01, %v5817_v61 }
 0x38b   :  { %9665 = vst [vmem:[#allocation69_spill] sm:$0xff] %v6411_v4  ;;  %v6423_v48 = vmul.f32 %v5401_v17, %v9670_v59  ;;  %v9673_v4 = vsub.f32 %v9672_v9, %v5329_v62  ;;  %v6444_v59 = vmul.f32 0.01, %v5829_v25  ;;  %v6453_v9 = vmul.f32 0.01, %v5835_v26 }
 0x38c   :  { %9668 = vst [vmem:[#allocation72_spill] sm:$0xff] %v6417_v13 }
 0x38d   :  { %9671 = vst [vmem:[#allocation76_spill] sm:$0xff] %v6423_v48  ;;  %v6435_v3 = vmul.f32 %v5401_v17, %v9673_v4  ;;  %v9678_v48 = vld [vmem:[#allocation85_spill] sm:$0xff]  ;;  %v6456_v4 = vmul.f32 0.01, %v5841_v55 }
 0x38e   :  { %9675 = vst [vmem:[#allocation83_spill] sm:$0xff] %v6438_v5  ;;  %v9679_v13 = vsub.f32 %v9678_v48, %v5329_v62  ;;  %v9684_v5 = vld [vmem:[#allocation88_spill] sm:$0xff]  ;;  %v6468_v48 = vmul.f32 0.01, %v5853_v43 }
 0x38f   :  { %9674 = vst [vmem:[#allocation79_spill] sm:$0xff] %v6435_v3  ;;  %v6459_v3 = vmul.f32 0.01, %v5847_v10 }
 0x390   :  { %9676 = vst [vmem:[#allocation87_spill] sm:$0xff] %v6441_v37  ;;  %v6450_v20 = vmul.f32 %v5401_v17, %v9679_v13  ;;  %v9685_v37 = vsub.f32 %v9684_v5, %v5329_v62  ;;  %v6471_v13 = vmul.f32 0.01, %v5859_v27  ;;  %v6483_v5 = vmul.f32 0.01, %v5871_v23 }
 0x391   :  { %9677 = vst [vmem:[#allocation91_spill] sm:$0xff] %v6444_v59 }
 0x392   :  { %9680 = vst [vmem:[#allocation94_spill] sm:$0xff] %v6450_v20  ;;  %v6465_v59 = vmul.f32 %v5401_v17, %v9685_v37  ;;  %v6474_v20 = vmul.f32 0.01, %v5865_v29  ;;  %v6486_v37 = vmul.f32 0.01, %v5877_v35 }
 0x393   :  { %9681 = vst [vmem:[#allocation97_spill] sm:$0xff] %v6453_v9  ;;  %v9690_v9 = vld [vmem:[#allocation90_spill] sm:$0xff] }
 0x394   :  { %9682 = vst [vmem:[#allocation101_spill] sm:$0xff] %v6456_v4  ;;  %v9691_v4 = vsub.f32 %v9690_v9, %v5329_v62  ;;  %v6498_v9 = vmul.f32 0.01, %v5889_v56 }
 0x395   :  { %9683 = vst [vmem:[#allocation105_spill] sm:$0xff] %v6459_v3 }
 0x396   :  { %9686 = vst [vmem:[#allocation108_spill] sm:$0xff] %v6465_v59  ;;  %v6480_v3 = vmul.f32 %v5401_v17, %v9691_v4  ;;  %v6489_v59 = vmul.f32 0.01, %v5883_v16  ;;  %v6501_v4 = vmul.f32 0.01, %v5895_v19 }
 0x397   :  { %9687 = vst [vmem:[#allocation111_spill] sm:$0xff] %v6468_v48  ;;  %v9696_v48 = vld [vmem:[#allocation93_spill] sm:$0xff] }
 0x398   :  { %9688 = vst [vmem:[#allocation113_spill] sm:$0xff] %v6471_v13  ;;  %v9697_v13 = vsub.f32 %v9696_v48, %v5329_v62  ;;  %v6513_v48 = vmul.f32 0.01, %v5907_v18 }
 0x399   :  { %9689 = vst [vmem:[#allocation115_spill] sm:$0xff] %v6474_v20 }
 0x39a   :  { %9692 = vst [vmem:[#allocation117_spill] sm:$0xff] %v6480_v3  ;;  %v6495_v20 = vmul.f32 %v5401_v17, %v9697_v13  ;;  %v9702_v3 = vld [vmem:[#allocation96_spill] sm:$0xff]  ;;  %v6516_v13 = vmul.f32 0.01, %v5913_v22 }
 0x39b   :  { %9693 = vst [vmem:[#allocation119_spill] sm:$0xff] %v6483_v5  ;;  %v6504_v5 = vmul.f32 0.01, %v5901_v38 }
 0x39c   :  { %9694 = vst [vmem:[#allocation121_spill] sm:$0xff] %v6486_v37  ;;  %v9703_v37 = vsub.f32 %v9702_v3, %v5329_v62  ;;  %v6528_v3 = vmul.f32 0.01, %v5925_v52 }
 0x39d   :  { %9695 = vst [vmem:[#allocation123_spill] sm:$0xff] %v6489_v59 }
 0x39e   :  { %9698 = vst [vmem:[#allocation125_spill] sm:$0xff] %v6495_v20  ;;  %v6510_v59 = vmul.f32 %v5401_v17, %v9703_v37  ;;  %v9708_v20 = vld [vmem:[#allocation99_spill] sm:$0xff]  ;;  %v6531_v37 = vmul.f32 0.01, %v5931_v33 }
 0x39f   :  { %9699 = vst [vmem:[#allocation127_spill] sm:$0xff] %v6498_v9  ;;  %v6519_v9 = vmul.f32 0.01, %v5919_v51 }
 0x3a0   :  { %9700 = vst [vmem:[#allocation34_spill] sm:$0xff] %v6501_v4  ;;  %v9709_v4 = vsub.f32 %v9708_v20, %v5329_v62  ;;  %v6543_v20 = vmul.f32 0.01, %v5943_v15 }
 0x3a1   :  { %9701 = vst [vmem:[#allocation37_spill] sm:$0xff] %v6504_v5 }
 0x3a2   :  { %9704 = vst [vmem:[#allocation40_spill] sm:$0xff] %v6510_v59  ;;  %v6525_v5 = vmul.f32 %v5401_v17, %v9709_v4  ;;  %v9714_v59 = vld [vmem:[#allocation102_spill] sm:$0xff]  ;;  %v6546_v4 = vmul.f32 0.01, %v5949_v0 }
 0x3a3   :  { %9705 = vst [vmem:[#allocation43_spill] sm:$0xff] %v6513_v48  ;;  %v6534_v48 = vmul.f32 0.01, %v5937_v11 }
 0x3a4   :  { %9706 = vst [vmem:[#allocation46_spill] sm:$0xff] %v6516_v13  ;;  %v9715_v13 = vsub.f32 %v9714_v59, %v5329_v62  ;;  %v6558_v59 = vmul.f32 0.01, %v5961_v1 }
 0x3a5   :  { %9707 = vst [vmem:[#allocation49_spill] sm:$0xff] %v6519_v9 }
 0x3a6   :  { %9710 = vst [vmem:[#allocation52_spill] sm:$0xff] %v6525_v5  ;;  %v6540_v9 = vmul.f32 %v5401_v17, %v9715_v13  ;;  %v9720_v5 = vld [vmem:[#allocation104_spill] sm:$0xff]  ;;  %v6561_v13 = vmul.f32 0.01, %v5967_v7  ;;  %v9732_v7 = vld [vmem:[#allocation110_spill] sm:$0xff] }
 0x3a7   :  { %9711 = vst [vmem:[#allocation55_spill] sm:$0xff] %v6528_v3  ;;  %v6549_v3 = vmul.f32 0.01, %v5955_v44 }
 0x3a8   :  { %9712 = vst [vmem:[#allocation58_spill] sm:$0xff] %v6531_v37  ;;  %v9721_v37 = vsub.f32 %v9720_v5, %v5329_v62  ;;  %v6573_v5 = vmul.f32 0.01, %v5979_v2 }
 0x3a9   :  { %9713 = vst [vmem:[#allocation61_spill] sm:$0xff] %v6534_v48 }
 0x3aa   :  { %9716 = vst [vmem:[#allocation64_spill] sm:$0xff] %v6540_v9  ;;  %v6555_v48 = vmul.f32 %v5401_v17, %v9721_v37  ;;  %v9726_v9 = vld [vmem:[#allocation107_spill] sm:$0xff]  ;;  %v6576_v37 = vmul.f32 0.01, %v5985_v53  ;;  %v9738_v53 = vld [vmem:[#allocation112_spill] sm:$0xff] }
 0x3ab   :  { %9717 = vst [vmem:[#allocation67_spill] sm:$0xff] %v6543_v20  ;;  %v6564_v20 = vmul.f32 0.01, %v5973_v63 }
 0x3ac   :  { %9718 = vst [vmem:[#allocation70_spill] sm:$0xff] %v6546_v4  ;;  %v9727_v4 = vsub.f32 %v9726_v9, %v5329_v62  ;;  %v6588_v9 = vmul.f32 0.01, %v5997_v54 }
 0x3ad   :  { %9719 = vst [vmem:[#allocation73_spill] sm:$0xff] %v6549_v3 }
 0x3ae   :  { %9722 = vst [vmem:[#allocation75_spill] sm:$0xff] %v6555_v48  ;;  %v6570_v3 = vmul.f32 %v5401_v17, %v9727_v4  ;;  %v6591_v4 = vmul.f32 0.01, %v6003_v40  ;;  %v9744_v40 = vld [vmem:[#allocation114_spill] sm:$0xff] }
 0x3af   :  { %9723 = vst [vmem:[#allocation78_spill] sm:$0xff] %v6558_v59  ;;  %v6579_v59 = vmul.f32 0.01, %v5991_v6 }
 0x3b0   :  { %9724 = vst [vmem:[#allocation82_spill] sm:$0xff] %v6561_v13  ;;  %v9733_v13 = vsub.f32 %v9732_v7, %v5329_v62  ;;  %v6603_v7 = vmul.f32 0.01, %v6015_v12 }
 0x3b1   :  { %9725 = vst [vmem:[#allocation85_spill] sm:$0xff] %v6564_v20 }
 0x3b2   :  { %9728 = vst [vmem:[#allocation88_spill] sm:$0xff] %v6570_v3  ;;  %v6585_v20 = vmul.f32 %v5401_v17, %v9733_v13  ;;  %v6606_v13 = vmul.f32 0.01, %v6021_v50  ;;  %v9750_v50 = vld [vmem:[#allocation116_spill] sm:$0xff] }
 0x3b3   :  { %9729 = vst [vmem:[#allocation90_spill] sm:$0xff] %v6573_v5  ;;  %v6594_v5 = vmul.f32 0.01, %v6009_v14 }
 0x3b4   :  { %9730 = vst [vmem:[#allocation93_spill] sm:$0xff] %v6576_v37  ;;  %v9739_v37 = vsub.f32 %v9738_v53, %v5329_v62  ;;  %v6618_v53 = vmul.f32 0.01, %v6033_v39 }
 0x3b5   :  { %9731 = vst [vmem:[#allocation96_spill] sm:$0xff] %v6579_v59 }
 0x3b6   :  { %9734 = vst [vmem:[#allocation99_spill] sm:$0xff] %v6585_v20  ;;  %v6600_v59 = vmul.f32 %v5401_v17, %v9739_v37  ;;  %v6621_v37 = vmul.f32 0.01, %v6039_v28  ;;  %v9817_v28 = vld [vmem:[#allocation77_spill] sm:$0xff] }
 0x3b7   :  { %9735 = vst [vmem:[#allocation102_spill] sm:$0xff] %v6588_v9  ;;  %v6609_v9 = vmul.f32 0.01, %v6027_v45 }
 0x3b8   :  { %9736 = vst [vmem:[#allocation104_spill] sm:$0xff] %v6591_v4  ;;  %v9745_v4 = vsub.f32 %v9744_v40, %v5329_v62  ;;  %v6634_v40 = vmul.f32 0.01, %v6051_v21  ;;  %v9808_v21 = vld [vmem:[#allocation68_spill] sm:$0xff] }
 0x3b9   :  { %9737 = vst [vmem:[#allocation107_spill] sm:$0xff] %v6594_v5 }
 0x3ba   :  { %9740 = vst [vmem:[#allocation110_spill] sm:$0xff] %v6600_v59  ;;  %v6615_v5 = vmul.f32 %v5401_v17, %v9745_v4  ;;  %v6637_v4 = vmul.f32 0.01, %v6057_v32  ;;  %v9799_v32 = vld [vmem:[#allocation59_spill] sm:$0xff] }
 0x3bb   :  { %9741 = vst [vmem:[#allocation112_spill] sm:$0xff] %v6603_v7  ;;  %v6624_v7 = vmul.f32 0.01, %v6045_v41 }
 0x3bc   :  { %9742 = vst [vmem:[#allocation174_spill] sm:$0xff] %v6606_v13  ;;  %v9751_v13 = vsub.f32 %v9750_v50, %v5329_v62  ;;  %v6650_v50 = vmul.f32 0.01, %v6069_v8  ;;  %v9790_v8 = vld [vmem:[#allocation50_spill] sm:$0xff] }
 0x3bd   :  { %9743 = vst [vmem:[#allocation175_spill] sm:$0xff] %v6609_v9 }
 0x3be   :  { %9746 = vst [vmem:[#allocation114_spill] sm:$0xff] %v6615_v5  ;;  %v6630_v9 = vmul.f32 %v5401_v17, %v9751_v13  ;;  %v6653_v13 = vmul.f32 0.01, %v6075_v34  ;;  %v9781_v34 = vld [vmem:[#allocation41_spill] sm:$0xff] }
 0x3bf   :  { %9747 = vst [vmem:[#allocation176_spill] sm:$0xff] %v6618_v53  ;;  %v6640_v53 = vmul.f32 0.01, %v6063_v57 }
 0x3c0   :  { %9748 = vst [vmem:[#allocation177_spill] sm:$0xff] %v6621_v37  ;;  %v9756_v37 = vld [vmem:[#allocation118_spill] sm:$0xff] }
 0x3c1   :  { %9749 = vst [vmem:[#allocation178_spill] sm:$0xff] %v6624_v7  ;;  %v9757_v7 = vsub.f32 %v9756_v37, %v5329_v62  ;;  %v6669_v37 = vmul.f32 0.01, %v6093_v36 }
 0x3c2   :  { %9752 = vst [vmem:[#allocation116_spill] sm:$0xff] %v6630_v9 }
 0x3c3   :  { %9753 = vst [vmem:[#allocation179_spill] sm:$0xff] %v6634_v40  ;;  %v6646_v41 = vmul.f32 %v5401_v17, %v9757_v7  ;;  %v6656_v40 = vmul.f32 0.01, %v6081_v60  ;;  %v6666_v7 = vmul.f32 0.01, %v6087_v47 }
 0x3c4   :  { %9754 = vst [vmem:[#allocation180_spill] sm:$0xff] %v6637_v4  ;;  %v9762_v4 = vld [vmem:[#allocation120_spill] sm:$0xff] }
 0x3c5   :  { %9755 = vst [vmem:[#allocation181_spill] sm:$0xff] %v6640_v53  ;;  %v9763_v53 = vsub.f32 %v9762_v4, %v5329_v62  ;;  %v9772_v4 = vld [vmem:[#allocation32_spill] sm:$0xff] }
 0x3c6   :  { %9758 = vst [vmem:[#allocation118_spill] sm:$0xff] %v6646_v41  ;;  %v6685_v47 = vmul.f32 0.01, %v9772_v4 }
 0x3c7   :  { %9759 = vst [vmem:[#allocation182_spill] sm:$0xff] %v6650_v50  ;;  %v6662_v57 = vmul.f32 %v5401_v17, %v9763_v53  ;;  %v6672_v50 = vmul.f32 0.01, %v6099_v46  ;;  %v6682_v53 = vmul.f32 0.01, %v6105_v24 }
 0x3c8   :  { %9760 = vst [vmem:[#allocation183_spill] sm:$0xff] %v6653_v13  ;;  %v9768_v13 = vld [vmem:[#allocation122_spill] sm:$0xff]  ;;  %v6701_v24 = vmul.f32 0.01, %v9781_v34 }
 0x3c9   :  { %9761 = vst [vmem:[#allocation184_spill] sm:$0xff] %v6656_v40  ;;  %v9769_v40 = vsub.f32 %v9768_v13, %v5329_v62 }
 0x3ca   :  { %9764 = vst [vmem:[#allocation120_spill] sm:$0xff] %v6662_v57 }
 0x3cb   :  { %9765 = vst [vmem:[#allocation185_spill] sm:$0xff] %v6666_v7  ;;  %v6678_v60 = vmul.f32 %v5401_v17, %v9769_v40  ;;  %v9774_v7 = vld [vmem:[#allocation35_spill] sm:$0xff]  ;;  %v9779_v40 = vld [vmem:[#allocation38_spill] sm:$0xff] }
 0x3cc   :  { %9766 = vst [vmem:[#allocation186_spill] sm:$0xff] %v6669_v37  ;;  %v6688_v36 = vmul.f32 0.01, %v9774_v7  ;;  %v9776_v37 = vld [vmem:[#allocation124_spill] sm:$0xff]  ;;  %v6698_v13 = vmul.f32 0.01, %v9779_v40 }
 0x3cd   :  { %9767 = vst [vmem:[#allocation187_spill] sm:$0xff] %v6672_v50  ;;  %v9777_v50 = vsub.f32 %v9776_v37, %v5329_v62  ;;  %v6717_v40 = vmul.f32 0.01, %v9790_v8 }
 0x3ce   :  { %9770 = vst [vmem:[#allocation122_spill] sm:$0xff] %v6678_v60 }
 0x3cf   :  { %9771 = vst [vmem:[#allocation188_spill] sm:$0xff] %v6682_v53  ;;  %v6694_v46 = vmul.f32 %v5401_v17, %v9777_v50  ;;  %v9783_v53 = vld [vmem:[#allocation44_spill] sm:$0xff]  ;;  %v9788_v50 = vld [vmem:[#allocation47_spill] sm:$0xff] }
 0x3d0   :  { %9773 = vst [vmem:[#allocation189_spill] sm:$0xff] %v6685_v47  ;;  %v6704_v4 = vmul.f32 0.01, %v9783_v53  ;;  %v9785_v47 = vld [vmem:[#allocation126_spill] sm:$0xff]  ;;  %v6714_v37 = vmul.f32 0.01, %v9788_v50 }
 0x3d1   :  { %9775 = vst [vmem:[#allocation190_spill] sm:$0xff] %v6688_v36  ;;  %v9786_v36 = vsub.f32 %v9785_v47, %v5329_v62  ;;  %v9797_v47 = vld [vmem:[#allocation56_spill] sm:$0xff]  ;;  %v6733_v50 = vmul.f32 0.01, %v9799_v32 }
 0x3d2   :  { %9778 = vst [vmem:[#allocation124_spill] sm:$0xff] %v6694_v46 }
 0x3d3   :  { %9780 = vst [vmem:[#allocation191_spill] sm:$0xff] %v6698_v13  ;;  %v6710_v7 = vmul.f32 %v5401_v17, %v9786_v36  ;;  %v9792_v13 = vld [vmem:[#allocation53_spill] sm:$0xff]  ;;  %v6730_v36 = vmul.f32 0.01, %v9797_v47  ;;  %v6749_v47 = vmul.f32 0.01, %v9808_v21 }
 0x3d4   :  { %9782 = vst [vmem:[#allocation192_spill] sm:$0xff] %v6701_v24  ;;  %v6720_v34 = vmul.f32 0.01, %v9792_v13  ;;  %v9794_v24 = vld [vmem:[#allocation128_spill] sm:$0xff] }
 0x3d5   :  { %9784 = vst [vmem:[#allocation193_spill] sm:$0xff] %v6704_v4  ;;  %v9795_v4 = vsub.f32 %v9794_v24, %v5329_v62  ;;  %v9806_v24 = vld [vmem:[#allocation65_spill] sm:$0xff] }
 0x3d6   :  { %9787 = vst [vmem:[#allocation126_spill] sm:$0xff] %v6710_v7 }
 0x3d7   :  { %9789 = vst [vmem:[#allocation194_spill] sm:$0xff] %v6714_v37  ;;  %v6726_v53 = vmul.f32 %v5401_v17, %v9795_v4  ;;  %v9801_v37 = vld [vmem:[#allocation62_spill] sm:$0xff]  ;;  %v6746_v4 = vmul.f32 0.01, %v9806_v24  ;;  %v6765_v24 = vmul.f32 0.01, %v9817_v28 }
 0x3d8   :  { %9791 = vst [vmem:[#allocation195_spill] sm:$0xff] %v6717_v40  ;;  %v6736_v8 = vmul.f32 0.01, %v9801_v37  ;;  %v9803_v40 = vld [vmem:[#allocation129_spill] sm:$0xff] }
 0x3d9   :  { %9793 = vst [vmem:[#allocation196_spill] sm:$0xff] %v6720_v34  ;;  %v9804_v34 = vsub.f32 %v9803_v40, %v5329_v62 }
 0x3da   :  { %9796 = vst [vmem:[#allocation128_spill] sm:$0xff] %v6726_v53 }
 0x3db   :  { %9798 = vst [vmem:[#allocation197_spill] sm:$0xff] %v6730_v36  ;;  %v6742_v13 = vmul.f32 %v5401_v17, %v9804_v34  ;;  %v9810_v36 = vld [vmem:[#allocation71_spill] sm:$0xff]  ;;  %v9815_v34 = vld [vmem:[#allocation74_spill] sm:$0xff] }
 0x3dc   :  { %9800 = vst [vmem:[#allocation198_spill] sm:$0xff] %v6733_v50  ;;  %v6752_v32 = vmul.f32 0.01, %v9810_v36  ;;  %v9812_v50 = vld [vmem:[#allocation130_spill] sm:$0xff]  ;;  %v6762_v40 = vmul.f32 0.01, %v9815_v34 }
 0x3dd   :  { %9802 = vst [vmem:[#allocation199_spill] sm:$0xff] %v6736_v8  ;;  %v9813_v8 = vsub.f32 %v9812_v50, %v5329_v62 }
 0x3de   :  { %9805 = vst [vmem:[#allocation129_spill] sm:$0xff] %v6742_v13 }
 0x3df   :  { %9807 = vst [vmem:[#allocation200_spill] sm:$0xff] %v6746_v4  ;;  %v6758_v37 = vmul.f32 %v5401_v17, %v9813_v8  ;;  %v9819_v4 = vld [vmem:[#allocation81_spill] sm:$0xff]  ;;  %v9824_v8 = vld [vmem:[#allocation84_spill] sm:$0xff] }
 0x3e0   :  { %9809 = vst [vmem:[#allocation201_spill] sm:$0xff] %v6749_v47  ;;  %v6768_v21 = vmul.f32 0.01, %v9819_v4  ;;  %v9821_v47 = vld [vmem:[#allocation131_spill] sm:$0xff]  ;;  %v6778_v50 = vmul.f32 0.01, %v9824_v8 }
 0x3e1   :  { %9811 = vst [vmem:[#allocation202_spill] sm:$0xff] %v6752_v32  ;;  %v9822_v32 = vsub.f32 %v9821_v47, %v5329_v62 }
 0x3e2   :  { %9814 = vst [vmem:[#allocation130_spill] sm:$0xff] %v6758_v37  ;;  %v9826_v37 = vld [vmem:[#allocation86_spill] sm:$0xff] }
 0x3e3   :  { %9816 = vst [vmem:[#allocation203_spill] sm:$0xff] %v6762_v40  ;;  %v6774_v36 = vmul.f32 %v5401_v17, %v9822_v32  ;;  %v6781_v34 = vmul.f32 0.01, %v9826_v37  ;;  %v9828_v40 = vld [vmem:[#allocation89_spill] sm:$0xff]  ;;  %v9833_v32 = vld [vmem:[#allocation92_spill] sm:$0xff] }
 0x3e4   :  { %9818 = vst [vmem:[#allocation204_spill] sm:$0xff] %v6765_v24  ;;  %v6784_v28 = vmul.f32 0.01, %v9828_v40  ;;  %v9830_v24 = vld [vmem:[#allocation132_spill] sm:$0xff]  ;;  %v6794_v47 = vmul.f32 0.01, %v9833_v32 }
 0x3e5   :  { %9820 = vst [vmem:[#allocation205_spill] sm:$0xff] %v6768_v21  ;;  %v9831_v21 = vsub.f32 %v9830_v24, %v5329_v62  ;;  %v9841_v62 = vld [vmem:[#allocation103_spill] sm:$0xff] }
 0x3e6   :  { %9823 = vst [vmem:[#allocation131_spill] sm:$0xff] %v6774_v36  ;;  %v9835_v36 = vld [vmem:[#allocation95_spill] sm:$0xff]  ;;  %v6807_v24 = vmul.f32 0.01, %v9841_v62 }
 0x3e7   :  { %9825 = vst [vmem:[#allocation206_spill] sm:$0xff] %v6778_v50  ;;  %v6790_v4 = vmul.f32 %v5401_v17, %v9831_v21  ;;  %v6797_v8 = vmul.f32 0.01, %v9835_v36  ;;  %v9837_v50 = vld [vmem:[#allocation98_spill] sm:$0xff] }
 0x3e8   :  { %9827 = vst [vmem:[#allocation207_spill] sm:$0xff] %v6781_v34  ;;  %v6800_v37 = vmul.f32 0.01, %v9837_v50  ;;  %v9843_v17 = vld [vmem:[#allocation106_spill] sm:$0xff] }
 0x3e9   :  { %9829 = vst [vmem:[#allocation89_spill] sm:$0xff] %v6784_v28  ;;  %v9839_v28 = vld [vmem:[#allocation100_spill] sm:$0xff]  ;;  %v6810_v21 = vmul.f32 0.01, %v9843_v17 }
 0x3ea   :  { %9832 = vst [vmem:[#allocation132_spill] sm:$0xff] %v6790_v4  ;;  %v6804_v34 = vmul.f32 0.01, %v9839_v28  ;;  %v6816_v4 = vsel %vm2203_vm6, %v5805_v58, %v6426_v49  ;;  %v9851_v58 = vld [vmem:[#allocation15_spill] sm:$0xff]  ;;  %vm2219_vm6 = vcmp.ge.f32.partialorder %v5901_v38, 0.0 }
 0x3eb   :  { %9834 = vst [vmem:[#allocation92_spill] sm:$0xff] %v6794_v47  ;;  %v9847_v47 = vld [vmem:[#allocation11_spill] sm:$0xff]  ;;  %v6836_v49 = vmul.f32 0.01, %v9851_v58 }
 0x3ec   :  { %9836 = vst [vmem:[#allocation95_spill] sm:$0xff] %v6797_v8  ;;  %v6823_v28 = vmul.f32 0.01, %v9847_v47 }
 0x3ed   :  { %9838 = vst [vmem:[#allocation98_spill] sm:$0xff] %v6800_v37  ;;  %v9845_v37 = vld [vmem:[#allocation109_spill] sm:$0xff] }
 0x3ee   :  { %9840 = vst [vmem:[#allocation208_spill] sm:$0xff] %v6804_v34  ;;  %v6820_v8 = vmul.f32 0.01, %v9845_v37  ;;  %v9849_v34 = vld [vmem:[#allocation13_spill] sm:$0xff] }
 0x3ef   :  { %9842 = vst [vmem:[#allocation209_spill] sm:$0xff] %v6807_v24  ;;  %v6826_v62 = vmul.f32 0.01, %v9849_v34  ;;  %v9853_v24 = vld [vmem:[#allocation17_spill] sm:$0xff]  ;;  %v9860_v34 = vld [vmem:[#allocation23_spill] sm:$0xff] }
 0x3f0   :  { %9844 = vst [vmem:[#allocation106_spill] sm:$0xff] %v6810_v21  ;;  %v6832_v21 = vsel %vm2204_vm7, %v5811_v30, %v6429_v42  ;;  %v6839_v37 = vmul.f32 0.01, %v9853_v24  ;;  %v9858_v30 = vld [vmem:[#allocation21_spill] sm:$0xff]  ;;  %v6855_v58 = vmul.f32 0.01, %v9860_v34 }
 0x3f1   :  { %9846 = vst [vmem:[#allocation210_spill] sm:$0xff] %v6820_v8  ;;  %v9855_v8 = vld [vmem:[#allocation19_spill] sm:$0xff]  ;;  %v6852_v42 = vmul.f32 0.01, %v9858_v30  ;;  %vm2220_vm7 = vcmp.ge.f32.partialorder %v5907_v18, 0.0 }
 0x3f2   :  { %9848 = vst [vmem:[#allocation211_spill] sm:$0xff] %v6823_v28  ;;  %v6842_v47 = vmul.f32 0.01, %v9855_v8  ;;  %v9857_v28 = vld [vmem:[#allocation83_spill] sm:$0xff]  ;;  %v9867_v8 = vld [vmem:[#allocation29_spill] sm:$0xff] }
 0x3f3   :  { %9850 = vst [vmem:[#allocation212_spill] sm:$0xff] %v6826_v62  ;;  %v6848_v62 = vsel %vm2205_vm8, %v5817_v61, %v9857_v28  ;;  %v9865_v61 = vld [vmem:[#allocation27_spill] sm:$0xff]  ;;  %v6871_v30 = vmul.f32 0.01, %v9867_v8  ;;  %vm2221_vm8 = vcmp.ge.f32.partialorder %v5913_v22, 0.0 }
 0x3f4   :  { %9852 = vst [vmem:[#allocation213_spill] sm:$0xff] %v6836_v49  ;;  %v9862_v49 = vld [vmem:[#allocation25_spill] sm:$0xff]  ;;  %v6868_v28 = vmul.f32 0.01, %v9865_v61 }
 0x3f5   :  { %9854 = vst [vmem:[#allocation214_spill] sm:$0xff] %v6839_v37  ;;  %v6858_v24 = vmul.f32 0.01, %v9862_v49  ;;  %v9864_v37 = vld [vmem:[#allocation87_spill] sm:$0xff]  ;;  %v9874_v49 = vld [vmem:[#allocation36_spill] sm:$0xff] }
 0x3f6   :  { %9856 = vst [vmem:[#allocation215_spill] sm:$0xff] %v6842_v47  ;;  %v6864_v47 = vsel %vm2206_vm9, %v5823_v31, %v9864_v37  ;;  %v9872_v31 = vld [vmem:[#allocation33_spill] sm:$0xff]  ;;  %v6887_v61 = vmul.f32 0.01, %v9874_v49  ;;  %vm2222_vm9 = vcmp.ge.f32.partialorder %v5919_v51, 0.0 }
 0x3f7   :  { %9859 = vst [vmem:[#allocation83_spill] sm:$0xff] %v6852_v42  ;;  %v9869_v42 = vld [vmem:[#allocation31_spill] sm:$0xff]  ;;  %v6884_v37 = vmul.f32 0.01, %v9872_v31 }
 0x3f8   :  { %9861 = vst [vmem:[#allocation216_spill] sm:$0xff] %v6855_v58  ;;  %v6874_v34 = vmul.f32 0.01, %v9869_v42  ;;  %v9871_v58 = vld [vmem:[#allocation91_spill] sm:$0xff]  ;;  %v9888_v42 = vld [vmem:[#allocation54_spill] sm:$0xff] }
 0x3f9   :  { %9863 = vst [vmem:[#allocation217_spill] sm:$0xff] %v6858_v24  ;;  %v6880_v24 = vsel %vm2207_vm10, %v5829_v25, %v9871_v58  ;;  %v9879_v25 = vld [vmem:[#allocation42_spill] sm:$0xff]  ;;  %vm2223_vm10 = vcmp.ge.f32.partialorder %v5925_v52, 0.0 }
 0x3fa   :  { %9866 = vst [vmem:[#allocation87_spill] sm:$0xff] %v6868_v28  ;;  %v9876_v28 = vld [vmem:[#allocation39_spill] sm:$0xff]  ;;  %v6901_v58 = vmul.f32 0.01, %v9879_v25  ;;  %v6920_v25 = vmul.f32 0.01, %v9888_v42 }
 0x3fb   :  { %9868 = vst [vmem:[#allocation218_spill] sm:$0xff] %v6871_v30  ;;  %v6890_v8 = vmul.f32 0.01, %v9876_v28  ;;  %v9878_v30 = vld [vmem:[#allocation97_spill] sm:$0xff] }
 0x3fc   :  { %9870 = vst [vmem:[#allocation219_spill] sm:$0xff] %v6874_v34  ;;  %v6896_v34 = vsel %vm2208_vm11, %v5835_v26, %v9878_v30  ;;  %v9886_v26 = vld [vmem:[#allocation51_spill] sm:$0xff]  ;;  %vm2224_vm11 = vcmp.ge.f32.partialorder %v5931_v33, 0.0 }
 0x3fd   :  { %9873 = vst [vmem:[#allocation91_spill] sm:$0xff] %v6884_v37  ;;  %v9881_v37 = vld [vmem:[#allocation45_spill] sm:$0xff]  ;;  %v6917_v30 = vmul.f32 0.01, %v9886_v26 }
 0x3fe   :  { %9875 = vst [vmem:[#allocation220_spill] sm:$0xff] %v6887_v61  ;;  %v6904_v31 = vmul.f32 0.01, %v9881_v37  ;;  %v9883_v61 = vld [vmem:[#allocation48_spill] sm:$0xff] }
 0x3ff   :  { %9877 = vst [vmem:[#allocation221_spill] sm:$0xff] %v6890_v8  ;;  %v6907_v49 = vmul.f32 0.01, %v9883_v61  ;;  %v9885_v8 = vld [vmem:[#allocation101_spill] sm:$0xff]  ;;  %v9895_v61 = vld [vmem:[#allocation63_spill] sm:$0xff] }
 0x400   :  { %9880 = vst [vmem:[#allocation97_spill] sm:$0xff] %v6901_v58  ;;  %v6913_v28 = vsel %vm2209_vm12, %v5841_v55, %v9885_v8  ;;  %v9890_v58 = vld [vmem:[#allocation57_spill] sm:$0xff]  ;;  %v9893_v55 = vld [vmem:[#allocation60_spill] sm:$0xff]  ;;  %v6936_v26 = vmul.f32 0.01, %v9895_v61  ;;  %vm2225_vm12 = vcmp.ge.f32.partialorder %v5937_v11, 0.0 }
 0x401   :  { %9882 = vst [vmem:[#allocation222_spill] sm:$0xff] %v6904_v31  ;;  %v6923_v37 = vmul.f32 0.01, %v9890_v58  ;;  %v9892_v31 = vld [vmem:[#allocation105_spill] sm:$0xff]  ;;  %v6933_v8 = vmul.f32 0.01, %v9893_v55 }
 0x402   :  { %9884 = vst [vmem:[#allocation223_spill] sm:$0xff] %v6907_v49  ;;  %v6929_v49 = vsel %vm2210_vm13, %v5847_v10, %v9892_v31  ;;  %v9900_v10 = vld [vmem:[#allocation69_spill] sm:$0xff]  ;;  %v9902_v58 = vld [vmem:[#allocation72_spill] sm:$0xff]  ;;  %vm2226_vm13 = vcmp.ge.f32.partialorder %v5943_v15, 0.0 }
 0x403   :  { %9887 = vst [vmem:[#allocation101_spill] sm:$0xff] %v6917_v30  ;;  %v9897_v30 = vld [vmem:[#allocation66_spill] sm:$0xff]  ;;  %v6949_v31 = vmul.f32 0.01, %v9900_v10  ;;  %v6952_v55 = vmul.f32 0.01, %v9902_v58 }
 0x404   :  { %9889 = vst [vmem:[#allocation224_spill] sm:$0xff] %v6920_v25  ;;  %v6939_v42 = vmul.f32 0.01, %v9897_v30  ;;  %v9899_v25 = vld [vmem:[#allocation111_spill] sm:$0xff]  ;;  %v9909_v30 = vld [vmem:[#allocation94_spill] sm:$0xff] }
 0x405   :  { %9891 = vst [vmem:[#allocation225_spill] sm:$0xff] %v6923_v37  ;;  %v6945_v37 = vsel %vm2211_vm14, %v5853_v43, %v9899_v25  ;;  %v9907_v43 = vld [vmem:[#allocation79_spill] sm:$0xff]  ;;  %v6968_v10 = vmul.f32 0.01, %v9909_v30  ;;  %vm2227_vm14 = vcmp.ge.f32.partialorder %v5949_v0, 0.0 }
 0x406   :  { %9894 = vst [vmem:[#allocation105_spill] sm:$0xff] %v6933_v8  ;;  %v9904_v8 = vld [vmem:[#allocation76_spill] sm:$0xff]  ;;  %v6965_v25 = vmul.f32 0.01, %v9907_v43 }
 0x407   :  { %9896 = vst [vmem:[#allocation226_spill] sm:$0xff] %v6936_v26  ;;  %v6955_v61 = vmul.f32 0.01, %v9904_v8  ;;  %v9906_v26 = vld [vmem:[#allocation113_spill] sm:$0xff] }
 0x408   :  { %9898 = vst [vmem:[#allocation227_spill] sm:$0xff] %v6939_v42  ;;  %v6961_v42 = vsel %vm2212_vm15, %v5859_v27, %v9906_v26  ;;  %v9914_v27 = vld [vmem:[#allocation117_spill] sm:$0xff]  ;;  %vm2228_vm15 = vcmp.ge.f32.partialorder %v5955_v44, 0.0 }
 0x409   :  { %9901 = vst [vmem:[#allocation111_spill] sm:$0xff] %v6949_v31  ;;  %v9911_v31 = vld [vmem:[#allocation108_spill] sm:$0xff]  ;;  %v6981_v26 = vmul.f32 0.01, %v9914_v27  ;;  %v9916_v8 = vld [vmem:[#allocation125_spill] sm:$0xff] }
 0x40a   :  { %9903 = vst [vmem:[#allocation228_spill] sm:$0xff] %v6952_v55  ;;  %v6971_v58 = vmul.f32 0.01, %v9911_v31  ;;  %v9913_v55 = vld [vmem:[#allocation115_spill] sm:$0xff]  ;;  %v6984_v43 = vmul.f32 0.01, %v9916_v8 }
 0x40b   :  { %9905 = vst [vmem:[#allocation229_spill] sm:$0xff] %v6955_v61  ;;  %v6977_v61 = vsel %vm2213_vm0, %v5865_v29, %v9913_v55  ;;  %v9921_v29 = vld [vmem:[#allocation52_spill] sm:$0xff]  ;;  %v7003_v8 = vmul.f32 0.01, %v6555_v48  ;;  %vm2229_vm0 = vcmp.ge.f32.partialorder %v5961_v1, 0.0 }
 0x40c   :  { %9908 = vst [vmem:[#allocation113_spill] sm:$0xff] %v6965_v25  ;;  %v9918_v25 = vld [vmem:[#allocation40_spill] sm:$0xff]  ;;  %v6997_v55 = vmul.f32 0.01, %v9921_v29 }
 0x40d   :  { %9910 = vst [vmem:[#allocation230_spill] sm:$0xff] %v6968_v10  ;;  %v6987_v30 = vmul.f32 0.01, %v9918_v25  ;;  %v9920_v10 = vld [vmem:[#allocation119_spill] sm:$0xff]  ;;  %v9923_v31 = vld [vmem:[#allocation64_spill] sm:$0xff]  ;;  %v9967_v25 = vld [vmem:[#allocation141_spill] sm:$0xff] }
 0x40e   :  { %9912 = vst [vmem:[#allocation231_spill] sm:$0xff] %v6971_v58  ;;  %v6993_v58 = vsel %vm2214_vm1, %v5871_v23, %v9920_v10  ;;  %v7000_v27 = vmul.f32 0.01, %v9923_v31  ;;  %v7013_v23 = vmul.f32 0.01, %v6570_v3  ;;  %v9962_v3 = vld [vmem:[#allocation139_spill] sm:$0xff] }
 0x40f   :  { %9915 = vst [vmem:[#allocation115_spill] sm:$0xff] %v6981_v26  ;;  %v7016_v10 = vmul.f32 0.01, %v6585_v20  ;;  %v7117_v48 = vmul.f32 0.01, %v9962_v3  ;;  %v9964_v31 = vld [vmem:[#allocation55_spill] sm:$0xff] }
 0x410   :  { %9917 = vst [vmem:[#allocation232_spill] sm:$0xff] %v6984_v43  ;;  %v9926_v43 = vld [vmem:[#allocation121_spill] sm:$0xff]  ;;  %v7123_v29 = vsel %vm2223_vm10, %v5925_v52, %v9964_v31  ;;  %v9972_v52 = vld [vmem:[#allocation143_spill] sm:$0xff]  ;;  %v10008_v3 = vld [vmem:[#allocation16_spill] sm:$0xff] }
 0x411   :  { %9919 = vst [vmem:[#allocation233_spill] sm:$0xff] %v6987_v30  ;;  %v7009_v30 = vsel %vm2215_vm2, %v5877_v35, %v9926_v43  ;;  %v7029_v35 = vmul.f32 0.01, %v6615_v5  ;;  %v7032_v43 = vmul.f32 0.01, %v6630_v9  ;;  %vm2231_vm2 = vcmp.ge.f32.partialorder %v5973_v63, 0.0 }
 0x412   :  { %9922 = vst [vmem:[#allocation119_spill] sm:$0xff] %v6997_v55  ;;  %v7019_v55 = vmul.f32 0.01, %v6600_v59  ;;  %v9935_v59 = vld [vmem:[#allocation5_spill] sm:$0xff]  ;;  %v7143_v31 = vmul.f32 0.01, %v9972_v52 }
 0x413   :  { %9924 = vst [vmem:[#allocation234_spill] sm:$0xff] %v7000_v27  ;;  %v9930_v27 = vld [vmem:[#allocation123_spill] sm:$0xff]  ;;  %vm2230_vm1 = vcmp.ge.f32.partialorder %v9935_v59, 0.0  ;;  %v9956_v9 = vld [vmem:[#allocation49_spill] sm:$0xff]  ;;  %v9994_v52 = vld [vmem:[#allocation70_spill] sm:$0xff] }
 0x414   :  { %9925 = vst [vmem:[#allocation235_spill] sm:$0xff] %v7003_v8  ;;  %v7025_v8 = vsel %vm2216_vm3, %v5883_v16, %v9930_v27  ;;  %v7045_v16 = vmul.f32 0.01, %v6662_v57  ;;  %v7048_v27 = vmul.f32 0.01, %v6678_v60  ;;  %vm2232_vm3 = vcmp.ge.f32.partialorder %v5979_v2, 0.0 }
 0x415   :  { %9927 = vst [vmem:[#allocation121_spill] sm:$0xff] %v7013_v23  ;;  %v7035_v23 = vmul.f32 0.01, %v6646_v41  ;;  %v9954_v57 = vld [vmem:[#allocation136_spill] sm:$0xff]  ;;  %v9958_v5 = vld [vmem:[#allocation137_spill] sm:$0xff] }
 0x416   :  { %9928 = vst [vmem:[#allocation236_spill] sm:$0xff] %v7016_v10  ;;  %v9934_v10 = vld [vmem:[#allocation127_spill] sm:$0xff]  ;;  %v7101_v41 = vmul.f32 0.01, %v9954_v57  ;;  %v10019_v57 = vld [vmem:[#allocation22_spill] sm:$0xff] }
 0x417   :  { %9929 = vst [vmem:[#allocation237_spill] sm:$0xff] %v7019_v55  ;;  %v7041_v55 = vsel %vm2217_vm4, %v5889_v56, %v9934_v10  ;;  %v7061_v56 = vmul.f32 0.01, %v6710_v7  ;;  %v7064_v10 = vmul.f32 0.01, %v6726_v53  ;;  %v9952_v53 = vld [vmem:[#allocation135_spill] sm:$0xff] }
 0x418   :  { %9931 = vst [vmem:[#allocation123_spill] sm:$0xff] %v7029_v35  ;;  %v7051_v35 = vmul.f32 0.01, %v6694_v46  ;;  %v9946_v46 = vld [vmem:[#allocation133_spill] sm:$0xff]  ;;  %v7098_v60 = vmul.f32 0.01, %v9952_v53 }
 0x419   :  { %9932 = vst [vmem:[#allocation238_spill] sm:$0xff] %v7032_v43  ;;  %v9939_v43 = vld [vmem:[#allocation34_spill] sm:$0xff]  ;;  %v7080_v7 = vmul.f32 0.01, %v9946_v46  ;;  %v10020_v53 = vld [vmem:[#allocation24_spill] sm:$0xff] }
 0x41a   :  { %9933 = vst [vmem:[#allocation239_spill] sm:$0xff] %v7035_v23  ;;  %v7057_v23 = vsel %vm2218_vm5, %v5895_v19, %v9939_v43  ;;  %v9944_v19 = vld [vmem:[#allocation80_spill] sm:$0xff]  ;;  %vm2234_vm5 = vcmp.ge.f32.partialorder %v5991_v6, 0.0 }
 0x41b   :  { %9936 = vst [vmem:[#allocation127_spill] sm:$0xff] %v7045_v16  ;;  %v7067_v16 = vmul.f32 0.01, %v6742_v13  ;;  %v7077_v43 = vmul.f32 0.01, %v9944_v19  ;;  %v10030_v46 = vld [vmem:[#allocation28_spill] sm:$0xff] }
 0x41c   :  { %9937 = vst [vmem:[#allocation5_spill] sm:$0xff] %v7048_v27  ;;  %v9943_v27 = vld [vmem:[#allocation37_spill] sm:$0xff]  ;;  %v10031_v19 = vld [vmem:[#allocation30_spill] sm:$0xff] }
 0x41d   :  { %9938 = vst [vmem:[#allocation240_spill] sm:$0xff] %v7051_v35  ;;  %v7073_v35 = vsel %vm2219_vm6, %v5901_v38, %v9943_v27  ;;  %v9950_v27 = vld [vmem:[#allocation134_spill] sm:$0xff]  ;;  %vm2235_vm6 = vcmp.ge.f32.partialorder %v5997_v54, 0.0 }
 0x41e   :  { %9940 = vst [vmem:[#allocation34_spill] sm:$0xff] %v7061_v56  ;;  %v9948_v56 = vld [vmem:[#allocation43_spill] sm:$0xff]  ;;  %v7095_v13 = vmul.f32 0.01, %v9950_v27  ;;  %v10027_v27 = vld [vmem:[#allocation82_spill] sm:$0xff] }
 0x41f   :  { %9941 = vst [vmem:[#allocation241_spill] sm:$0xff] %v7064_v10  ;;  %v7086_v10 = vsel %vm2220_vm7, %v5907_v18, %v9948_v56  ;;  %v7107_v18 = vsel %vm2222_vm9, %v5919_v51, %v9956_v9  ;;  %v9957_v56 = vld [vmem:[#allocation6_spill] sm:$0xff]  ;;  %v9965_v51 = vld [vmem:[#allocation140_spill] sm:$0xff]  ;;  %vm2238_vm9 = vcmp.ge.f32.partialorder %v6015_v12, 0.0 }
 0x420   :  { %9942 = vst [vmem:[#allocation242_spill] sm:$0xff] %v7067_v16  ;;  %v9949_v16 = vld [vmem:[#allocation46_spill] sm:$0xff]  ;;  %vm2233_vm4 = vcmp.ge.f32.partialorder %v9957_v56, 0.0  ;;  %v7127_v9 = vmul.f32 0.01, %v9965_v51  ;;  %v10005_v51 = vld [vmem:[#allocation73_spill] sm:$0xff] }
 0x421   :  { %9945 = vst [vmem:[#allocation37_spill] sm:$0xff] %v7077_v43  ;;  %v7092_v38 = vsel %vm2221_vm8, %v5913_v22, %v9949_v16  ;;  %v7111_v22 = vmul.f32 0.01, %v9958_v5  ;;  %v9960_v16 = vld [vmem:[#allocation138_spill] sm:$0xff]  ;;  %v9979_v43 = vld [vmem:[#allocation7_spill] sm:$0xff]  ;;  %vm2237_vm8 = vcmp.ge.f32.partialorder %v6009_v14, 0.0 }
 0x422   :  { %9947 = vst [vmem:[#allocation243_spill] sm:$0xff] %v7080_v7  ;;  %v7114_v20 = vmul.f32 0.01, %v9960_v16  ;;  %vm2236_vm7 = vcmp.ge.f32.partialorder %v9979_v43, 0.0  ;;  %v10009_v16 = vld [vmem:[#allocation18_spill] sm:$0xff] }
 0x423   :  { %9951 = vst [vmem:[#allocation43_spill] sm:$0xff] %v7095_v13  ;;  %v10016_v5 = vld [vmem:[#allocation78_spill] sm:$0xff] }
 0x424   :  { %9953 = vst [vmem:[#allocation46_spill] sm:$0xff] %v7098_v60  ;;  %v9974_v60 = vld [vmem:[#allocation144_spill] sm:$0xff] }
 0x425   :  { %9955 = vst [vmem:[#allocation244_spill] sm:$0xff] %v7101_v41  ;;  %v7130_v41 = vmul.f32 0.01, %v9967_v25  ;;  %v7146_v13 = vmul.f32 0.01, %v9974_v60  ;;  %v9986_v60 = vld [vmem:[#allocation67_spill] sm:$0xff] }
 0x426   :  { %9959 = vst [vmem:[#allocation49_spill] sm:$0xff] %v7111_v22  ;;  %v9969_v22 = vld [vmem:[#allocation142_spill] sm:$0xff]  ;;  %v9998_v25 = vld [vmem:[#allocation12_spill] sm:$0xff] }
 0x427   :  { %9961 = vst [vmem:[#allocation6_spill] sm:$0xff] %v7114_v20  ;;  %v7133_v26 = vmul.f32 0.01, %v9969_v22  ;;  %v9971_v20 = vld [vmem:[#allocation58_spill] sm:$0xff] }
 0x428   :  { %9963 = vst [vmem:[#allocation245_spill] sm:$0xff] %v7117_v48  ;;  %v7139_v48 = vsel %vm2224_vm11, %v5931_v33, %v9971_v20  ;;  %v9980_v33 = vld [vmem:[#allocation146_spill] sm:$0xff] }
 0x429   :  { %9966 = vst [vmem:[#allocation55_spill] sm:$0xff] %v7127_v9  ;;  %v9976_v9 = vld [vmem:[#allocation145_spill] sm:$0xff]  ;;  %v7161_v20 = vmul.f32 0.01, %v9980_v33  ;;  %v9997_v22 = vld [vmem:[#allocation10_spill] sm:$0xff] }
 0x42a   :  { %9968 = vst [vmem:[#allocation246_spill] sm:$0xff] %v7130_v41  ;;  %v7149_v7 = vmul.f32 0.01, %v9976_v9  ;;  %v9978_v41 = vld [vmem:[#allocation61_spill] sm:$0xff]  ;;  %v9984_v9 = vld [vmem:[#allocation148_spill] sm:$0xff] }
 0x42b   :  { %9970 = vst [vmem:[#allocation247_spill] sm:$0xff] %v7133_v26  ;;  %v7155_v26 = vsel %vm2225_vm12, %v5937_v11, %v9978_v41  ;;  %v7173_v11 = vsel %vm2226_vm13, %v5943_v15, %v9986_v60  ;;  %v9987_v41 = vld [vmem:[#allocation8_spill] sm:$0xff]  ;;  %v9988_v33 = vld [vmem:[#allocation149_spill] sm:$0xff]  ;;  %v7191_v15 = vsel %vm2227_vm14, %v5949_v0, %v9994_v52  ;;  %v7209_v0 = vsel %vm2228_vm15, %v5955_v44, %v10005_v51  ;;  %v10007_v52 = vld [vmem:[#allocation14_spill] sm:$0xff] }
 0x42c   :  { %9973 = vst [vmem:[#allocation58_spill] sm:$0xff] %v7143_v31  ;;  %v9982_v31 = vld [vmem:[#allocation147_spill] sm:$0xff]  ;;  %vm2239_vm10 = vcmp.ge.f32.partialorder %v9987_v41, 0.0  ;;  %v9996_v60 = vld [vmem:[#allocation9_spill] sm:$0xff]  ;;  %vm2245_vm14 = vcmp.ge.f32.partialorder %v10007_v52, 0.0  ;;  %v7227_v44 = vsel %vm2229_vm0, %v5961_v1, %v10016_v5  ;;  %v10018_v51 = vld [vmem:[#allocation20_spill] sm:$0xff]  ;;  %v7245_v1 = vsel %vm2230_vm1, %v9935_v59, %v10027_v27 }
 0x42d   :  { %9975 = vst [vmem:[#allocation248_spill] sm:$0xff] %v7146_v13  ;;  %v7164_v13 = vmul.f32 0.01, %v9982_v31  ;;  %v9990_v31 = vld [vmem:[#allocation150_spill] sm:$0xff]  ;;  %vm2242_vm13 = vcmp.ge.f32.partialorder %v9996_v60, 0.0  ;;  %vm2248_vm15 = vcmp.ge.f32.partialorder %v10018_v51, 0.0 }
 0x42e   :  { %9977 = vst [vmem:[#allocation249_spill] sm:$0xff] %v7149_v7  ;;  %v7167_v7 = vmul.f32 0.01, %v9984_v9  ;;  %v9992_v9 = vld [vmem:[#allocation151_spill] sm:$0xff]  ;;  %v10029_v5 = vld [vmem:[#allocation26_spill] sm:$0xff]  ;;  %v10040_v27 = vld [vmem:[#allocation32_spill] sm:$0xff] }
 0x42f   :  { %9981 = vst [vmem:[#allocation61_spill] sm:$0xff] %v7161_v20  ;;  %v7179_v20 = vmul.f32 0.01, %v9988_v33  ;;  %v9999_v33 = vld [vmem:[#allocation152_spill] sm:$0xff]  ;;  %vm2251_vm0 = vcmp.ge.f32.partialorder %v10029_v5, 0.0  ;;  %vm2254_vm1 = vcmp.ge.f32.partialorder %v10040_v27, 0.0 }
 0x430   :  { %9983 = vst [vmem:[#allocation7_spill] sm:$0xff] %v7164_v13  ;;  %v7182_v13 = vmul.f32 0.01, %v9990_v31  ;;  %v10001_v31 = vld [vmem:[#allocation153_spill] sm:$0xff] }
 0x431   :  { %9985 = vst [vmem:[#allocation250_spill] sm:$0xff] %v7167_v7  ;;  %v7185_v7 = vmul.f32 0.01, %v9992_v9  ;;  %v10003_v9 = vld [vmem:[#allocation154_spill] sm:$0xff] }
 0x432   :  { %9989 = vst [vmem:[#allocation67_spill] sm:$0xff] %v7179_v20  ;;  %v7197_v20 = vmul.f32 0.01, %v9999_v33  ;;  %v10010_v33 = vld [vmem:[#allocation155_spill] sm:$0xff] }
 0x433   :  { %9991 = vst [vmem:[#allocation8_spill] sm:$0xff] %v7182_v13  ;;  %v7200_v13 = vmul.f32 0.01, %v10001_v31  ;;  %v10012_v31 = vld [vmem:[#allocation156_spill] sm:$0xff] }
 0x434   :  { %9993 = vst [vmem:[#allocation251_spill] sm:$0xff] %v7185_v7  ;;  %v7203_v7 = vmul.f32 0.01, %v10003_v9  ;;  %v10014_v9 = vld [vmem:[#allocation157_spill] sm:$0xff] }
 0x435   :  { %9995 = vst [vmem:[#allocation70_spill] sm:$0xff] %v7191_v15  ;;  %v10049_v15 = vld [vmem:[#allocation90_spill] sm:$0xff] }
 0x436   :  { %10000 = vst [vmem:[#allocation9_spill] sm:$0xff] %v7197_v20  ;;  %v7215_v20 = vmul.f32 0.01, %v10010_v33  ;;  %v10021_v33 = vld [vmem:[#allocation158_spill] sm:$0xff] }
 0x437   :  { %10002 = vst [vmem:[#allocation10_spill] sm:$0xff] %v7200_v13  ;;  %v7218_v13 = vmul.f32 0.01, %v10012_v31  ;;  %v10023_v31 = vld [vmem:[#allocation159_spill] sm:$0xff] }
 0x438   :  { %10004 = vst [vmem:[#allocation12_spill] sm:$0xff] %v7203_v7  ;;  %v7221_v7 = vmul.f32 0.01, %v10014_v9  ;;  %v10025_v9 = vld [vmem:[#allocation160_spill] sm:$0xff] }
 0x439   :  { %10006 = vst [vmem:[#allocation73_spill] sm:$0xff] %v7209_v0  ;;  %v10053_v0 = vld [vmem:[#allocation47_spill] sm:$0xff] }
 0x43a   :  { %10011 = vst [vmem:[#allocation14_spill] sm:$0xff] %v7215_v20  ;;  %v7233_v20 = vmul.f32 0.01, %v10021_v33  ;;  %v10032_v33 = vld [vmem:[#allocation161_spill] sm:$0xff]  ;;  %vm2259_vm12 = vcmp.ge.f32.partialorder %v10053_v0, 0.0 }
 0x43b   :  { %10013 = vst [vmem:[#allocation16_spill] sm:$0xff] %v7218_v13  ;;  %v7236_v13 = vmul.f32 0.01, %v10023_v31  ;;  %v10034_v31 = vld [vmem:[#allocation162_spill] sm:$0xff] }
 0x43c   :  { %10015 = vst [vmem:[#allocation18_spill] sm:$0xff] %v7221_v7  ;;  %v7239_v7 = vmul.f32 0.01, %v10025_v9  ;;  %v10036_v9 = vld [vmem:[#allocation163_spill] sm:$0xff] }
 0x43d   :  { %10017 = vst [vmem:[#allocation78_spill] sm:$0xff] %v7227_v44  ;;  %v10038_v44 = vld [vmem:[#allocation85_spill] sm:$0xff] }
 0x43e   :  { %10022 = vst [vmem:[#allocation20_spill] sm:$0xff] %v7233_v20  ;;  %v7251_v20 = vmul.f32 0.01, %v10032_v33  ;;  %v7263_v59 = vsel %vm2231_vm2, %v5973_v63, %v10038_v44  ;;  %v10043_v33 = vld [vmem:[#allocation164_spill] sm:$0xff]  ;;  %v7281_v63 = vsel %vm2232_vm3, %v5979_v2, %v10049_v15  ;;  %v10051_v44 = vld [vmem:[#allocation41_spill] sm:$0xff]  ;;  %v10056_v2 = vld [vmem:[#allocation50_spill] sm:$0xff] }
 0x43f   :  { %10024 = vst [vmem:[#allocation22_spill] sm:$0xff] %v7236_v13  ;;  %v7254_v13 = vmul.f32 0.01, %v10034_v31  ;;  %v10045_v31 = vld [vmem:[#allocation165_spill] sm:$0xff] }
 0x440   :  { %10026 = vst [vmem:[#allocation24_spill] sm:$0xff] %v7239_v7  ;;  %v7257_v7 = vmul.f32 0.01, %v10036_v9  ;;  %v10047_v9 = vld [vmem:[#allocation166_spill] sm:$0xff]  ;;  %v10057_v15 = vld [vmem:[#allocation53_spill] sm:$0xff] }
 0x441   :  { %10028 = vst [vmem:[#allocation82_spill] sm:$0xff] %v7245_v1  ;;  %v10041_v1 = vld [vmem:[#allocation35_spill] sm:$0xff] }
 0x442   :  { %10033 = vst [vmem:[#allocation26_spill] sm:$0xff] %v7251_v20  ;;  %v7269_v20 = vmul.f32 0.01, %v10043_v33  ;;  %v10054_v33 = vld [vmem:[#allocation167_spill] sm:$0xff] }
 0x443   :  { %10035 = vst [vmem:[#allocation28_spill] sm:$0xff] %v7254_v13  ;;  %v7272_v13 = vmul.f32 0.01, %v10045_v31  ;;  %v10058_v31 = vld [vmem:[#allocation56_spill] sm:$0xff] }
 0x444   :  { %10037 = vst [vmem:[#allocation30_spill] sm:$0xff] %v7257_v7  ;;  %v7275_v7 = vmul.f32 0.01, %v10047_v9  ;;  %v3586_v9 = vpack.c.bf16 %v6896_v34, %v6880_v24  ;;  %v3591_v34 = vpack.c.bf16 %v6929_v49, %v6913_v28  ;;  %v10067_v24 = vld [vmem:[#allocation65_spill] sm:$0xff]  ;;  %v3596_v49 = vpack.c.bf16 %v6961_v42, %v6945_v37  ;;  %v10073_v28 = vld [vmem:[#allocation68_spill] sm:$0xff] }
 0x445   :  { %10039 = vst [vmem:[#allocation85_spill] sm:$0xff] %v7263_v59  ;;  %v10063_v59 = vld [vmem:[#allocation93_spill] sm:$0xff]  ;;  %v3601_v42 = vpack.c.bf16 %v6993_v58, %v6977_v61  ;;  %v3606_v58 = vpack.c.bf16 %v7025_v8, %v7009_v30  ;;  %v3611_v8 = vpack.c.bf16 %v7057_v23, %v7041_v55  ;;  %v3616_v23 = vpack.c.bf16 %v7086_v10, %v7073_v35 }
 0x446   :  { %10044 = vst [vmem:[#allocation32_spill] sm:$0xff] %v7269_v20  ;;  %v7287_v20 = vmul.f32 0.01, %v10054_v33  ;;  %v10061_v33 = vld [vmem:[#allocation169_spill] sm:$0xff]  ;;  %v3621_v10 = vpack.c.bf16 %v7107_v18, %v7092_v38  ;;  %v3626_v18 = vpack.c.bf16 %v7139_v48, %v7123_v29  ;;  %v3631_v29 = vpack.c.bf16 %v7173_v11, %v7155_v26  ;;  %v10134_v26 = vld [vmem:[#allocation38_spill] sm:$0xff] }
 0x447   :  { %10046 = vst [vmem:[#allocation35_spill] sm:$0xff] %v7272_v13  ;;  %v3576_v13 = vpack.c.bf16 %v6832_v21, %v6816_v4  ;;  %v7308_v4 = vsel %vm2233_vm4, %v9957_v56, %v10063_v59  ;;  %v10068_v21 = vld [vmem:[#allocation170_spill] sm:$0xff]  ;;  %vm2266_vm4 = vcmp.ge.f32.partialorder %v10073_v28, 0.0  ;;  %v10074_v59 = vld [vmem:[#allocation71_spill] sm:$0xff]  ;;  %v10081_v37 = vld [vmem:[#allocation77_spill] sm:$0xff] }
 0x448   :  { %10048 = vst [vmem:[#allocation252_spill] sm:$0xff] %v7275_v7  ;;  %v3581_v7 = vpack.c.bf16 %v6864_v47, %v6848_v62  ;;  %v10065_v47 = vld [vmem:[#allocation59_spill] sm:$0xff]  ;;  %v10066_v62 = vld [vmem:[#allocation62_spill] sm:$0xff] }
 0x449   :  { %10050 = vst [vmem:[#allocation90_spill] sm:$0xff] %v7281_v63  ;;  %v10059_v63 = vld [vmem:[#allocation168_spill] sm:$0xff]  ;;  %vm2263_vm3 = vcmp.ge.f32.partialorder %v10065_v47, 0.0 }
 0x44a   :  { %10055 = vst [vmem:[#allocation41_spill] sm:$0xff] %v7287_v20  ;;  %v7299_v0 = vmul.f32 0.01, %v10059_v63  ;;  %v7302_v20 = vmul.f32 0.01, %v10061_v33  ;;  %v10070_v33 = vld [vmem:[#allocation171_spill] sm:$0xff] }
 0x44b   :  { %10064 = vst [vmem:[#allocation56_spill] sm:$0xff] %v7308_v4  ;;  %v10072_v63 = vld [vmem:[#allocation96_spill] sm:$0xff] }
 0x44c   :  { %10060 = vst [vmem:[#allocation50_spill] sm:$0xff] %v7299_v0  ;;  %v7316_v0 = vmul.f32 0.01, %v10068_v21  ;;  %v7325_v56 = vsel %vm2234_vm5, %v5991_v6, %v10072_v63  ;;  %v10078_v21 = vld [vmem:[#allocation173_spill] sm:$0xff]  ;;  %v10080_v6 = vld [vmem:[#allocation102_spill] sm:$0xff]  ;;  %vm2269_vm5 = vcmp.ge.f32.partialorder %v10081_v37, 0.0 }
 0x44d   :  { %10062 = vst [vmem:[#allocation53_spill] sm:$0xff] %v7302_v20  ;;  %v7319_v20 = vmul.f32 0.01, %v10070_v33  ;;  %v7339_v4 = vmul.f32 0.01, %v10078_v21  ;;  %v10082_v63 = vld [vmem:[#allocation81_spill] sm:$0xff] }
 0x44e   :  { %10069 = vst [vmem:[#allocation93_spill] sm:$0xff] %v7316_v0  ;;  %v10075_v0 = vld [vmem:[#allocation74_spill] sm:$0xff]  ;;  %vm2270_vm2 = vcmp.ge.f32.partialorder %v10082_v63, 0.0 }
 0x44f   :  { %10071 = vst [vmem:[#allocation59_spill] sm:$0xff] %v7319_v20  ;;  %v10076_v20 = vld [vmem:[#allocation172_spill] sm:$0xff] }
 0x450   :  { %3577 = vst [vmem:[%s8685_s2] sm:$0xff] %v3576_v13   ;;  %v7336_v33 = vmul.f32 0.01, %v10076_v20  ;;  %v7345_v13 = vsel %vm2235_vm6, %v5997_v54, %v10080_v6  ;;  %v10085_v54 = vld [vmem:[#allocation107_spill] sm:$0xff]  ;;  %v10086_v6 = vld [vmem:[#allocation112_spill] sm:$0xff]  ;;  %vm10092_vm6 = vcmp.ge.f32.partialorder %v6033_v39, 0.0 }
 0x451   :  { %10079 = vst [vmem:[#allocation65_spill] sm:$0xff] %v7339_v4  ;;  %v10084_v4 = vld [vmem:[#allocation104_spill] sm:$0xff]  ;;  %v7371_v61 = vsel %vm2238_vm9, %v6015_v12, %v10086_v6  ;;  %v10089_v12 = vld [vmem:[#allocation175_spill] sm:$0xff]  ;;  %vm10090_vm9 = vcmp.ge.f32.partialorder %v6027_v45, 0.0 }
 0x452   :  { %10077 = vst [vmem:[#allocation62_spill] sm:$0xff] %v7336_v33  ;;  %v10083_v33 = vld [vmem:[#allocation84_spill] sm:$0xff]  ;;  %v7359_v21 = vsel %vm2236_vm7, %v9979_v43, %v10084_v4  ;;  %v10087_v43 = vld [vmem:[#allocation86_spill] sm:$0xff]  ;;  %vm2273_vm7 = vcmp.ge.f32.partialorder %v9828_v40, 0.0  ;;  %v10127_v20 = vld [vmem:[#allocation27_spill] sm:$0xff] }
 0x453   :  { %3998 = vst [vmem:[%s8685_s2 + $0x8] sm:$0xff] %v3581_v7   ;;  %vm2271_vm11 = vcmp.ge.f32.partialorder %v10083_v33, 0.0  ;;  %v7365_v7 = vsel %vm2237_vm8, %v6009_v14, %v10085_v54  ;;  %v10088_v14 = vld [vmem:[#allocation174_spill] sm:$0xff]  ;;  %v10091_v54 = vld [vmem:[#allocation176_spill] sm:$0xff]  ;;  %vm2276_vm8 = vcmp.ge.f32.partialorder %v9837_v50, 0.0 }
 0x454   :  { %3999 = vst [vmem:[%s8685_s2 + $0x10] sm:$0xff] %v3586_v9   ;;  %v7385_v4 = vsel %vm2239_vm10, %v9987_v41, %v10088_v14  ;;  %v7391_v9 = vsel %vm10090_vm9, %v6027_v45, %v10089_v12  ;;  %v7397_v30 = vsel %vm10092_vm6, %v6033_v39, %v10091_v54  ;;  %v10093_v41 = vld [vmem:[#allocation100_spill] sm:$0xff]  ;;  %v10094_v45 = vld [vmem:[#allocation177_spill] sm:$0xff]  ;;  %v10095_v39 = vld [vmem:[#allocation178_spill] sm:$0xff]  ;;  %vm10096_vm6 = vcmp.ge.f32.partialorder %v9997_v22, 0.0 }
 0x455   :  { %4000 = vst [vmem:[%s8685_s2 + $0x18] sm:$0xff] %v3591_v34   ;;  %v7411_v6 = vsel %vm2242_vm13, %v9996_v60, %v10094_v45  ;;  %v7417_v34 = vsel %vm10096_vm6, %v9997_v22, %v10095_v39  ;;  %v10097_v14 = vld [vmem:[#allocation179_spill] sm:$0xff]  ;;  %vm10098_vm10 = vcmp.ge.f32.partialorder %v9998_v25, 0.0  ;;  %vm2279_vm9 = vcmp.ge.f32.partialorder %v9843_v17, 0.0  ;;  %v10100_v12 = vld [vmem:[#allocation109_spill] sm:$0xff]  ;;  %v10101_v22 = vld [vmem:[#allocation180_spill] sm:$0xff] }
 0x456   :  { %v7423_v55 = vsel %vm10098_vm10, %v9998_v25, %v10097_v14  ;;  %4001 = vst [vmem:[%s8685_s2 + $0x20] sm:$0xff] %v3596_v49   ;;  %v10099_v60 = vld [vmem:[#allocation103_spill] sm:$0xff]  ;;  %v7437_v54 = vsel %vm2245_vm14, %v10007_v52, %v10101_v22  ;;  %v10102_v25 = vld [vmem:[#allocation181_spill] sm:$0xff]  ;;  %vm10103_vm10 = vcmp.ge.f32.partialorder %v10008_v3, 0.0  ;;  %v10104_v45 = vld [vmem:[#allocation182_spill] sm:$0xff]  ;;  %vm10105_vm13 = vcmp.ge.f32.partialorder %v10009_v16, 0.0 }
 0x457   :  { %v7443_v49 = vsel %vm10103_vm10, %v10008_v3, %v10102_v25  ;;  %v7449_v35 = vsel %vm10105_vm13, %v10009_v16, %v10104_v45  ;;  %4002 = vst [vmem:[%s8685_s2 + $0x28] sm:$0xff] %v3601_v42   ;;  %v10106_v52 = vld [vmem:[#allocation11_spill] sm:$0xff]  ;;  %v10107_v39 = vld [vmem:[#allocation13_spill] sm:$0xff]  ;;  %v10110_v16 = vld [vmem:[#allocation184_spill] sm:$0xff]  ;;  %vm10111_vm13 = vcmp.ge.f32.partialorder %v10019_v57, 0.0  ;;  %vm10113_vm14 = vcmp.ge.f32.partialorder %v10020_v53, 0.0 }
 0x458   :  { %vm2282_vm6 = vcmp.ge.f32.partialorder %v10107_v39, 0.0  ;;  %v10108_v14 = vld [vmem:[#allocation15_spill] sm:$0xff]  ;;  %v7469_v42 = vsel %vm10111_vm13, %v10019_v57, %v10110_v16  ;;  %v10112_v25 = vld [vmem:[#allocation185_spill] sm:$0xff]  ;;  %4003 = vst [vmem:[%s8685_s2 + $0x30] sm:$0xff] %v3606_v58   ;;  %v10117_v57 = vld [vmem:[#allocation186_spill] sm:$0xff]  ;;  %vm10143_vm13 = vcmp.ge.f32.partialorder %v10051_v44, 0.0 }
 0x459   :  { %v10109_v3 = vld [vmem:[#allocation183_spill] sm:$0xff]  ;;  %v7475_v38 = vsel %vm10113_vm14, %v10020_v53, %v10112_v25  ;;  %v7489_v16 = vsel %vm2251_vm0, %v10029_v5, %v10117_v57  ;;  %vm10120_vm14 = vcmp.ge.f32.partialorder %v10030_v46, 0.0  ;;  %v10122_v25 = vld [vmem:[#allocation188_spill] sm:$0xff]  ;;  %4004 = vst [vmem:[%s8685_s2 + $0x38] sm:$0xff] %v3611_v8   ;;  %v10126_v57 = vld [vmem:[#allocation25_spill] sm:$0xff]  ;;  %vm10135_vm0 = vcmp.ge.f32.partialorder %v10134_v26, 0.0 }
 0x45a   :  { %v7463_v22 = vsel %vm2248_vm15, %v10018_v51, %v10109_v3  ;;  %v10114_v51 = vld [vmem:[#allocation17_spill] sm:$0xff]  ;;  %v10115_v45 = vld [vmem:[#allocation19_spill] sm:$0xff]  ;;  %10118 = vst [vmem:[#allocation96_spill] sm:$0xff] %v7489_v16  ;;  %vm10123_vm15 = vcmp.ge.f32.partialorder %v10031_v19, 0.0  ;;  %v10153_v16 = vld [vmem:[#allocation82_spill] sm:$0xff] }
 0x45b   :  { %vm2285_vm10 = vcmp.ge.f32.partialorder %v10115_v45, 0.0  ;;  %v10116_v3 = vld [vmem:[#allocation21_spill] sm:$0xff]  ;;  %v10119_v53 = vld [vmem:[#allocation187_spill] sm:$0xff]  ;;  %v7501_v48 = vsel %vm10123_vm15, %v10031_v19, %v10122_v25  ;;  %v10130_v19 = vld [vmem:[#allocation190_spill] sm:$0xff]  ;;  %vm10131_vm15 = vcmp.ge.f32.partialorder %v10041_v1, 0.0  ;;  %4005 = vst [vmem:[%s8685_s2 + $0x40] sm:$0xff] %v3616_v23  }
 0x45c   :  { %v7495_v58 = vsel %vm10120_vm14, %v10030_v46, %v10119_v53  ;;  %10124 = vst [vmem:[#allocation71_spill] sm:$0xff] %v7501_v48  ;;  %v10125_v5 = vld [vmem:[#allocation23_spill] sm:$0xff]  ;;  %v10128_v46 = vld [vmem:[#allocation189_spill] sm:$0xff]  ;;  %v7521_v8 = vsel %vm10131_vm15, %v10041_v1, %v10130_v19  ;;  %v10137_v48 = vld [vmem:[#allocation70_spill] sm:$0xff]  ;;  %vm10158_vm14 = vcmp.ge.f32.partialorder %v10056_v2, 0.0 }
 0x45d   :  { %10121 = vst [vmem:[#allocation68_spill] sm:$0xff] %v7495_v58  ;;  %v7515_v53 = vsel %vm2254_vm1, %v10040_v27, %v10128_v46  ;;  %v10133_v25 = vld [vmem:[#allocation191_spill] sm:$0xff]  ;;  %v10138_v58 = vld [vmem:[#allocation73_spill] sm:$0xff]  ;;  %v10142_v1 = vld [vmem:[#allocation192_spill] sm:$0xff] }
 0x45e   :  { %10129 = vst [vmem:[#allocation74_spill] sm:$0xff] %v7515_v53  ;;  %v7527_v11 = vsel %vm10135_vm0, %v10134_v26, %v10133_v25  ;;  %v3636_v27 = vpack.c.bf16 %v10138_v58, %v10137_v48  ;;  %v10139_v46 = vld [vmem:[#allocation29_spill] sm:$0xff]  ;;  %v7541_v19 = vsel %vm10143_vm13, %v10051_v44, %v10142_v1  ;;  %v10146_v26 = vld [vmem:[#allocation44_spill] sm:$0xff]  ;;  %v10150_v58 = vld [vmem:[#allocation47_spill] sm:$0xff]  ;;  %vm10163_vm13 = vcmp.ge.f32.partialorder %v10058_v31, 0.0 }
 0x45f   :  { %10132 = vst [vmem:[#allocation102_spill] sm:$0xff] %v7521_v8  ;;  %vm2290_vm1 = vcmp.ge.f32.partialorder %v10139_v46, 0.0  ;;  %v10145_v25 = vld [vmem:[#allocation193_spill] sm:$0xff]  ;;  %vm10147_vm0 = vcmp.ge.f32.partialorder %v10146_v26, 0.0  ;;  %v10152_v8 = vld [vmem:[#allocation78_spill] sm:$0xff]  ;;  %v10154_v1 = vld [vmem:[#allocation36_spill] sm:$0xff] }
 0x460   :  { %10136 = vst [vmem:[#allocation77_spill] sm:$0xff] %v7527_v11  ;;  %v7547_v23 = vsel %vm10147_vm0, %v10146_v26, %v10145_v25  ;;  %v10149_v11 = vld [vmem:[#allocation194_spill] sm:$0xff]  ;;  %v3641_v44 = vpack.c.bf16 %v10153_v16, %v10152_v8  ;;  %v10157_v25 = vld [vmem:[#allocation195_spill] sm:$0xff]  ;;  %v10165_v8 = vld [vmem:[#allocation85_spill] sm:$0xff] }
 0x461   :  { %10144 = vst [vmem:[#allocation81_spill] sm:$0xff] %v7541_v19  ;;  %v7553_v48 = vsel %vm2259_vm12, %v10150_v58, %v10149_v11  ;;  %v10155_v19 = vld [vmem:[#allocation39_spill] sm:$0xff]  ;;  %v10156_v53 = vld [vmem:[#allocation42_spill] sm:$0xff]  ;;  %v7567_v26 = vsel %vm10158_vm14, %v10056_v2, %v10157_v25  ;;  %v10160_v11 = vld [vmem:[#allocation196_spill] sm:$0xff]  ;;  %vm10161_vm12 = vcmp.ge.f32.partialorder %v10057_v15, 0.0  ;;  %vm10175_vm14 = vcmp.ge.f32.partialorder %v10067_v24, 0.0 }
 0x462   :  { %10148 = vst [vmem:[#allocation84_spill] sm:$0xff] %v7547_v23  ;;  %vm2294_vm15 = vcmp.ge.f32.partialorder %v10155_v19, 0.0  ;;  %v10162_v58 = vld [vmem:[#allocation197_spill] sm:$0xff]  ;;  %v10169_v23 = vld [vmem:[#allocation51_spill] sm:$0xff] }
 0x463   :  { %10151 = vst [vmem:[#allocation104_spill] sm:$0xff] %v7553_v48  ;;  %v7579_v16 = vsel %vm10163_vm13, %v10058_v31, %v10162_v58  ;;  %v10166_v48 = vld [vmem:[#allocation90_spill] sm:$0xff]  ;;  %v10167_v25 = vld [vmem:[#allocation45_spill] sm:$0xff]  ;;  %v10172_v31 = vld [vmem:[#allocation199_spill] sm:$0xff]  ;;  %vm10173_vm13 = vcmp.ge.f32.partialorder %v10066_v62, 0.0 }
 0x464   :  { %4006 = vst [vmem:[%s8685_s2 + $0x48] sm:$0xff] %v3621_v10   ;;  %v7573_v10 = vsel %vm10161_vm12, %v10057_v15, %v10160_v11  ;;  %v3646_v2 = vpack.c.bf16 %v10166_v48, %v10165_v8  ;;  %v10170_v15 = vld [vmem:[#allocation198_spill] sm:$0xff]  ;;  %v10174_v58 = vld [vmem:[#allocation200_spill] sm:$0xff] }
 0x465   :  { %10159 = vst [vmem:[#allocation107_spill] sm:$0xff] %v7567_v26  ;;  %v10168_v26 = vld [vmem:[#allocation48_spill] sm:$0xff]  ;;  %v7593_v11 = vsel %vm2263_vm3, %v10065_v47, %v10170_v15  ;;  %v7605_v48 = vsel %vm10175_vm14, %v10067_v24, %v10174_v58  ;;  %v10177_v15 = vld [vmem:[#allocation54_spill] sm:$0xff]  ;;  %vm10183_vm14 = vcmp.ge.f32.partialorder %v10074_v59, 0.0  ;;  %v10184_v58 = vld [vmem:[#allocation203_spill] sm:$0xff]  ;;  %vm10185_vm3 = vcmp.ge.f32.partialorder %v10075_v0, 0.0 }
 0x466   :  { %10164 = vst [vmem:[#allocation112_spill] sm:$0xff] %v7579_v16  ;;  %vm2297_vm0 = vcmp.ge.f32.partialorder %v10168_v26, 0.0  ;;  %v10176_v8 = vld [vmem:[#allocation56_spill] sm:$0xff]  ;;  %v10182_v24 = vld [vmem:[#allocation202_spill] sm:$0xff] }
 0x467   :  { %4007 = vst [vmem:[%s8685_s2 + $0x50] sm:$0xff] %v3626_v18   ;;  %v7599_v18 = vsel %vm10173_vm13, %v10066_v62, %v10172_v31  ;;  %v3651_v47 = vpack.c.bf16 %v7325_v56, %v10176_v8  ;;  %v10179_v16 = vld [vmem:[#allocation60_spill] sm:$0xff]  ;;  %v10180_v62 = vld [vmem:[#allocation201_spill] sm:$0xff]  ;;  %v7631_v56 = vsel %vm10185_vm3, %v10075_v0, %v10184_v58  ;;  %v10186_v8 = vld [vmem:[#allocation63_spill] sm:$0xff]  ;;  %vm10206_vm3 = vcmp.ge.f32.partialorder %v9835_v36, 0.0 }
 0x468   :  { %10171 = vst [vmem:[#allocation86_spill] sm:$0xff] %v7593_v11  ;;  %v10178_v11 = vld [vmem:[#allocation57_spill] sm:$0xff]  ;;  %v7619_v31 = vsel %vm2266_vm4, %v10073_v28, %v10180_v62  ;;  %v3656_v28 = vpack.c.bf16 %v7359_v21, %v7345_v13  ;;  %vm2302_vm4 = vcmp.ge.f32.partialorder %v10186_v8, 0.0  ;;  %v10187_v62 = vld [vmem:[#allocation66_spill] sm:$0xff]  ;;  %v3661_v13 = vpack.c.bf16 %v7371_v61, %v7365_v7 }
 0x469   :  { %4008 = vst [vmem:[%s8685_s2 + $0x58] sm:$0xff] %v3631_v29   ;;  %vm2300_vm12 = vcmp.ge.f32.partialorder %v10178_v11, 0.0  ;;  %v7625_v29 = vsel %vm10183_vm14, %v10074_v59, %v10182_v24  ;;  %vm2303_vm13 = vcmp.ge.f32.partialorder %v10187_v62, 0.0  ;;  %v10189_v59 = vld [vmem:[#allocation204_spill] sm:$0xff]  ;;  %v10191_v0 = vld [vmem:[#allocation205_spill] sm:$0xff]  ;;  %v10192_v58 = vld [vmem:[#allocation206_spill] sm:$0xff]  ;;  %v3666_v61 = vpack.c.bf16 %v7391_v9, %v7385_v4 }
 0x46a   :  { %10181 = vst [vmem:[#allocation174_spill] sm:$0xff] %v7619_v31  ;;  %v10188_v31 = vld [vmem:[#allocation69_spill] sm:$0xff]  ;;  %v7645_v24 = vsel %vm2269_vm5, %v10081_v37, %v10189_v59  ;;  %v7657_v21 = vsel %vm2271_vm11, %v10083_v33, %v10192_v58  ;;  %v10193_v37 = vld [vmem:[#allocation72_spill] sm:$0xff]  ;;  %vm10197_vm14 = vcmp.ge.f32.partialorder %v10087_v43, 0.0  ;;  %vm10201_vm11 = vcmp.ge.f32.partialorder %v9833_v32, 0.0 }
 0x46b   :  { %4009 = vst [vmem:[%s8685_s2 + $0x60] sm:$0xff] %v3636_v27   ;;  %v7651_v27 = vsel %vm2270_vm2, %v10082_v63, %v10191_v0  ;;  %vm2305_vm5 = vcmp.ge.f32.partialorder %v10193_v37, 0.0  ;;  %v10194_v59 = vld [vmem:[#allocation76_spill] sm:$0xff]  ;;  %v10196_v63 = vld [vmem:[#allocation207_spill] sm:$0xff]  ;;  %v10199_v33 = vld [vmem:[#allocation89_spill] sm:$0xff]  ;;  %vm10215_vm2 = vcmp.ge.f32.partialorder %v10099_v60, 0.0 }
 0x46c   :  { %10190 = vst [vmem:[#allocation175_spill] sm:$0xff] %v7645_v24  ;;  %v10195_v24 = vld [vmem:[#allocation79_spill] sm:$0xff]  ;;  %v7671_v0 = vsel %vm10197_vm14, %v10087_v43, %v10196_v63  ;;  %v10200_v58 = vld [vmem:[#allocation92_spill] sm:$0xff]  ;;  %v10202_v43 = vld [vmem:[#allocation94_spill] sm:$0xff] }
 0x46d   :  { %4010 = vst [vmem:[%s8685_s2 + $0x68] sm:$0xff] %v3641_v44   ;;  %v7677_v44 = vsel %vm2273_vm7, %v9828_v40, %v10199_v33  ;;  %v7683_v7 = vsel %vm10201_vm11, %v9833_v32, %v10200_v58  ;;  %vm2308_vm14 = vcmp.ge.f32.partialorder %v10202_v43, 0.0  ;;  %v10203_v63 = vld [vmem:[#allocation80_spill] sm:$0xff]  ;;  %v10205_v40 = vld [vmem:[#allocation95_spill] sm:$0xff]  ;;  %v10208_v32 = vld [vmem:[#allocation98_spill] sm:$0xff]  ;;  %vm10210_vm11 = vcmp.ge.f32.partialorder %v10093_v41, 0.0 }
 0x46e   :  { %10198 = vst [vmem:[#allocation176_spill] sm:$0xff] %v7671_v0  ;;  %v10204_v0 = vld [vmem:[#allocation133_spill] sm:$0xff]  ;;  %v7697_v33 = vsel %vm10206_vm3, %v9835_v36, %v10205_v40  ;;  %v10209_v58 = vld [vmem:[#allocation208_spill] sm:$0xff]  ;;  %v3671_v36 = vpack.c.bf16 %v7411_v6, %v7397_v30  ;;  %v10212_v40 = vld [vmem:[#allocation134_spill] sm:$0xff]  ;;  %v3676_v6 = vpack.c.bf16 %v7423_v55, %v7417_v34  ;;  %vm10224_vm7 = vcmp.ge.f32.partialorder %v10106_v52, 0.0 }
 0x46f   :  { %4011 = vst [vmem:[%s8685_s2 + $0x70] sm:$0xff] %v3646_v2   ;;  %v7703_v2 = vsel %vm2276_vm8, %v9837_v50, %v10208_v32  ;;  %v7709_v4 = vsel %vm10210_vm11, %v10093_v41, %v10209_v58  ;;  %v10211_v9 = vld [vmem:[#allocation108_spill] sm:$0xff]  ;;  %v10214_v50 = vld [vmem:[#allocation209_spill] sm:$0xff]  ;;  %v10217_v41 = vld [vmem:[#allocation106_spill] sm:$0xff]  ;;  %vm10219_vm11 = vcmp.ge.f32.partialorder %v10100_v12, 0.0  ;;  %v3681_v55 = vpack.c.bf16 %v7443_v49, %v7437_v54 }
 0x470   :  { %10207 = vst [vmem:[#allocation100_spill] sm:$0xff] %v7697_v33  ;;  %vm2309_vm3 = vcmp.ge.f32.partialorder %v10211_v9, 0.0  ;;  %v10213_v33 = vld [vmem:[#allocation135_spill] sm:$0xff]  ;;  %v7723_v32 = vsel %vm10215_vm2, %v10099_v60, %v10214_v50  ;;  %v10218_v58 = vld [vmem:[#allocation210_spill] sm:$0xff]  ;;  %v10220_v60 = vld [vmem:[#allocation117_spill] sm:$0xff]  ;;  %v3686_v49 = vpack.c.bf16 %v7463_v22, %v7449_v35  ;;  %v3691_v22 = vpack.c.bf16 %v7475_v38, %v7469_v42 }
 0x471   :  { %4012 = vst [vmem:[%s8685_s2 + $0x78] sm:$0xff] %v3651_v47   ;;  %v7729_v47 = vsel %vm2279_vm9, %v9843_v17, %v10217_v41  ;;  %v7735_v30 = vsel %vm10219_vm11, %v10100_v12, %v10218_v58  ;;  %vm2310_vm2 = vcmp.ge.f32.partialorder %v10220_v60, 0.0  ;;  %v10221_v50 = vld [vmem:[#allocation136_spill] sm:$0xff]  ;;  %v10223_v17 = vld [vmem:[#allocation211_spill] sm:$0xff]  ;;  %v10227_v58 = vld [vmem:[#allocation213_spill] sm:$0xff]  ;;  %vm10228_vm11 = vcmp.ge.f32.partialorder %v10108_v14, 0.0 }
 0x472   :  { %10216 = vst [vmem:[#allocation177_spill] sm:$0xff] %v7723_v32  ;;  %vm2335_vm8 = vcmp.ge.f32.partialorder %v10221_v50, 0.0  ;;  %v10222_v32 = vld [vmem:[#allocation137_spill] sm:$0xff]  ;;  %v7749_v41 = vsel %vm10224_vm7, %v10106_v52, %v10223_v17  ;;  %v10226_v12 = vld [vmem:[#allocation212_spill] sm:$0xff]  ;;  %v7761_v34 = vsel %vm10228_vm11, %v10108_v14, %v10227_v58  ;;  %v10229_v52 = vld [vmem:[#allocation138_spill] sm:$0xff]  ;;  %vm10235_vm11 = vcmp.ge.f32.partialorder %v10116_v3, 0.0 }
 0x473   :  { %4013 = vst [vmem:[%s8685_s2 + $0x80] sm:$0xff] %v3656_v28   ;;  %v7755_v28 = vsel %vm2282_vm6, %v10107_v39, %v10226_v12  ;;  %v10230_v17 = vld [vmem:[#allocation139_spill] sm:$0xff]  ;;  %vm10232_vm6 = vcmp.ge.f32.partialorder %v10114_v51, 0.0  ;;  %v10238_v58 = vld [vmem:[#allocation216_spill] sm:$0xff]  ;;  %vm10245_vm7 = vcmp.ge.f32.partialorder %v10127_v20, 0.0 }
 0x474   :  { %10225 = vst [vmem:[#allocation178_spill] sm:$0xff] %v7749_v41  ;;  %v10231_v41 = vld [vmem:[#allocation214_spill] sm:$0xff]  ;;  %v10233_v12 = vld [vmem:[#allocation215_spill] sm:$0xff]  ;;  %v10258_v38 = vld [vmem:[#allocation96_spill] sm:$0xff] }
 0x475   :  { %4014 = vst [vmem:[%s8685_s2 + $0x88] sm:$0xff] %v3661_v13   ;;  %v7774_v39 = vsel %vm10232_vm6, %v10114_v51, %v10231_v41  ;;  %v7780_v14 = vsel %vm2285_vm10, %v10115_v45, %v10233_v12  ;;  %v10234_v13 = vld [vmem:[#allocation83_spill] sm:$0xff]  ;;  %v10236_v51 = vld [vmem:[#allocation140_spill] sm:$0xff]  ;;  %v10237_v41 = vld [vmem:[#allocation141_spill] sm:$0xff]  ;;  %vm10239_vm10 = vcmp.ge.f32.partialorder %v10125_v5, 0.0 }
 0x476   :  { %v7786_v54 = vsel %vm10235_vm11, %v10116_v3, %v10234_v13  ;;  %4015 = vst [vmem:[%s8685_s2 + $0x90] sm:$0xff] %v3666_v61   ;;  %vm2339_vm6 = vcmp.ge.f32.partialorder %v10236_v51, 0.0  ;;  %v7799_v45 = vsel %vm10239_vm10, %v10125_v5, %v10238_v58  ;;  %v10241_v12 = vld [vmem:[#allocation217_spill] sm:$0xff]  ;;  %vm10242_vm11 = vcmp.ge.f32.partialorder %v10126_v57, 0.0  ;;  %v10244_v61 = vld [vmem:[#allocation87_spill] sm:$0xff]  ;;  %v10247_v5 = vld [vmem:[#allocation142_spill] sm:$0xff] }
 0x477   :  { %10240 = vst [vmem:[#allocation179_spill] sm:$0xff] %v7799_v45  ;;  %v7805_v3 = vsel %vm10242_vm11, %v10126_v57, %v10241_v12  ;;  %v7811_v35 = vsel %vm10245_vm7, %v10127_v20, %v10244_v61  ;;  %vm2341_vm10 = vcmp.ge.f32.partialorder %v10247_v5, 0.0  ;;  %v10248_v13 = vld [vmem:[#allocation143_spill] sm:$0xff]  ;;  %v10249_v58 = vld [vmem:[#allocation218_spill] sm:$0xff]  ;;  %v10262_v45 = vld [vmem:[#allocation220_spill] sm:$0xff] }
 0x478   :  { %10243 = vst [vmem:[#allocation103_spill] sm:$0xff] %v7805_v3  ;;  %v7824_v57 = vsel %vm2290_vm1, %v10139_v46, %v10249_v58  ;;  %v10251_v12 = vld [vmem:[#allocation219_spill] sm:$0xff]  ;;  %v10259_v3 = vld [vmem:[#allocation68_spill] sm:$0xff] }
 0x479   :  { %10246 = vst [vmem:[#allocation109_spill] sm:$0xff] %v7811_v35  ;;  %v10252_v20 = vld [vmem:[#allocation31_spill] sm:$0xff]  ;;  %v10255_v35 = vld [vmem:[#allocation33_spill] sm:$0xff]  ;;  %v3696_v46 = vpack.c.bf16 %v10259_v3, %v10258_v38  ;;  %v10260_v58 = vld [vmem:[#allocation144_spill] sm:$0xff] }
 0x47a   :  { %4016 = vst [vmem:[%s8685_s2 + $0x98] sm:$0xff] %v3671_v36   ;;  %vm10253_vm7 = vcmp.ge.f32.partialorder %v10252_v20, 0.0  ;;  %v10254_v36 = vld [vmem:[#allocation91_spill] sm:$0xff]  ;;  %vm10256_vm11 = vcmp.ge.f32.partialorder %v10255_v35, 0.0  ;;  %vm2343_vm1 = vcmp.ge.f32.partialorder %v10260_v58, 0.0  ;;  %v10270_v38 = vld [vmem:[#allocation74_spill] sm:$0xff] }
 0x47b   :  { %10250 = vst [vmem:[#allocation180_spill] sm:$0xff] %v7824_v57  ;;  %v7830_v61 = vsel %vm10253_vm7, %v10252_v20, %v10251_v12  ;;  %v7836_v42 = vsel %vm10256_vm11, %v10255_v35, %v10254_v36  ;;  %v10261_v57 = vld [vmem:[#allocation145_spill] sm:$0xff]  ;;  %vm10263_vm7 = vcmp.ge.f32.partialorder %v10154_v1, 0.0  ;;  %vm10267_vm11 = vcmp.ge.f32.partialorder %v10156_v53, 0.0  ;;  %v10269_v36 = vld [vmem:[#allocation71_spill] sm:$0xff] }
 0x47c   :  { %10257 = vst [vmem:[#allocation181_spill] sm:$0xff] %v7836_v42  ;;  %v7849_v12 = vsel %vm10263_vm7, %v10154_v1, %v10262_v45  ;;  %v10265_v20 = vld [vmem:[#allocation221_spill] sm:$0xff]  ;;  %v3701_v1 = vpack.c.bf16 %v10270_v38, %v10269_v36  ;;  %v10271_v45 = vld [vmem:[#allocation146_spill] sm:$0xff] }
 0x47d   :  { %4017 = vst [vmem:[%s8685_s2 + $0xa0] sm:$0xff] %v3676_v6   ;;  %v7855_v35 = vsel %vm2294_vm15, %v10155_v19, %v10265_v20  ;;  %v10266_v6 = vld [vmem:[#allocation97_spill] sm:$0xff]  ;;  %vm2345_vm7 = vcmp.ge.f32.partialorder %v10271_v45, 0.0  ;;  %v10273_v42 = vld [vmem:[#allocation222_spill] sm:$0xff]  ;;  %vm10274_vm15 = vcmp.ge.f32.partialorder %v10167_v25, 0.0  ;;  %v10276_v20 = vld [vmem:[#allocation223_spill] sm:$0xff] }
 0x47e   :  { %10264 = vst [vmem:[#allocation182_spill] sm:$0xff] %v7849_v12  ;;  %v7861_v3 = vsel %vm10267_vm11, %v10156_v53, %v10266_v6  ;;  %v10272_v12 = vld [vmem:[#allocation147_spill] sm:$0xff]  ;;  %v7874_v19 = vsel %vm10274_vm15, %v10167_v25, %v10273_v42  ;;  %v7880_v53 = vsel %vm2297_vm0, %v10168_v26, %v10276_v20  ;;  %vm10278_vm11 = vcmp.ge.f32.partialorder %v10169_v23, 0.0  ;;  %v10280_v36 = vld [vmem:[#allocation102_spill] sm:$0xff]  ;;  %v10281_v38 = vld [vmem:[#allocation77_spill] sm:$0xff] }
 0x47f   :  { %10268 = vst [vmem:[#allocation11_spill] sm:$0xff] %v7861_v3  ;;  %v3706_v25 = vpack.c.bf16 %v10281_v38, %v10280_v36  ;;  %v10282_v42 = vld [vmem:[#allocation148_spill] sm:$0xff]  ;;  %vm10285_vm0 = vcmp.ge.f32.partialorder %v10177_v15, 0.0  ;;  %v10287_v20 = vld [vmem:[#allocation225_spill] sm:$0xff] }
 0x480   :  { %4018 = vst [vmem:[%s8685_s2 + $0xa8] sm:$0xff] %v3681_v55   ;;  %v10277_v55 = vld [vmem:[#allocation101_spill] sm:$0xff]  ;;  %vm2347_vm15 = vcmp.ge.f32.partialorder %v10282_v42, 0.0  ;;  %v10284_v3 = vld [vmem:[#allocation224_spill] sm:$0xff] }
 0x481   :  { %10275 = vst [vmem:[#allocation13_spill] sm:$0xff] %v7874_v19  ;;  %v7886_v6 = vsel %vm10278_vm11, %v10169_v23, %v10277_v55  ;;  %v10283_v19 = vld [vmem:[#allocation149_spill] sm:$0xff]  ;;  %v7899_v26 = vsel %vm10285_vm0, %v10177_v15, %v10284_v3  ;;  %v7905_v23 = vsel %vm2300_vm12, %v10178_v11, %v10287_v20  ;;  %vm10289_vm11 = vcmp.ge.f32.partialorder %v10179_v16, 0.0  ;;  %v10292_v38 = vld [vmem:[#allocation84_spill] sm:$0xff]  ;;  %v10293_v3 = vld [vmem:[#allocation150_spill] sm:$0xff] }
 0x482   :  { %10279 = vst [vmem:[#allocation15_spill] sm:$0xff] %v7886_v6  ;;  %v10291_v36 = vld [vmem:[#allocation81_spill] sm:$0xff]  ;;  %vm2349_vm0 = vcmp.ge.f32.partialorder %v10293_v3, 0.0  ;;  %v10295_v6 = vld [vmem:[#allocation226_spill] sm:$0xff]  ;;  %v10297_v20 = vld [vmem:[#allocation227_spill] sm:$0xff]  ;;  %vm10299_vm12 = vcmp.ge.f32.partialorder %v10188_v31, 0.0 }
 0x483   :  { %4019 = vst [vmem:[%s8685_s2 + $0xb0] sm:$0xff] %v3686_v49   ;;  %v10288_v49 = vld [vmem:[#allocation105_spill] sm:$0xff]  ;;  %v3711_v15 = vpack.c.bf16 %v10292_v38, %v10291_v36  ;;  %v7924_v11 = vsel %vm2302_vm4, %v10186_v8, %v10295_v6  ;;  %v10300_v36 = vld [vmem:[#allocation104_spill] sm:$0xff]  ;;  %v10301_v38 = vld [vmem:[#allocation107_spill] sm:$0xff] }
 0x484   :  { %10286 = vst [vmem:[#allocation183_spill] sm:$0xff] %v7899_v26  ;;  %v7911_v55 = vsel %vm10289_vm11, %v10179_v16, %v10288_v49  ;;  %v10294_v26 = vld [vmem:[#allocation151_spill] sm:$0xff]  ;;  %v7930_v16 = vsel %vm2303_vm13, %v10187_v62, %v10297_v20  ;;  %v3716_v8 = vpack.c.bf16 %v10301_v38, %v10300_v36  ;;  %v10302_v6 = vld [vmem:[#allocation152_spill] sm:$0xff]  ;;  %v10306_v20 = vld [vmem:[#allocation229_spill] sm:$0xff]  ;;  %vm10307_vm13 = vcmp.ge.f32.partialorder %v10194_v59, 0.0 }
 0x485   :  { %10290 = vst [vmem:[#allocation184_spill] sm:$0xff] %v7911_v55  ;;  %vm2350_vm9 = vcmp.ge.f32.partialorder %v10294_v26, 0.0  ;;  %vm2351_vm4 = vcmp.ge.f32.partialorder %v10302_v6, 0.0  ;;  %v10304_v55 = vld [vmem:[#allocation228_spill] sm:$0xff]  ;;  %v10312_v38 = vld [vmem:[#allocation155_spill] sm:$0xff] }
 0x486   :  { %4020 = vst [vmem:[%s8685_s2 + $0xb8] sm:$0xff] %v3691_v22   ;;  %v10298_v22 = vld [vmem:[#allocation111_spill] sm:$0xff]  ;;  %v7949_v62 = vsel %vm2305_vm5, %v10193_v37, %v10304_v55  ;;  %v10310_v36 = vld [vmem:[#allocation112_spill] sm:$0xff]  ;;  %v10311_v55 = vld [vmem:[#allocation154_spill] sm:$0xff] }
 0x487   :  { %10296 = vst [vmem:[#allocation185_spill] sm:$0xff] %v7924_v11  ;;  %v7936_v49 = vsel %vm10299_vm12, %v10188_v31, %v10298_v22  ;;  %v10303_v11 = vld [vmem:[#allocation153_spill] sm:$0xff]  ;;  %v7955_v31 = vsel %vm10307_vm13, %v10194_v59, %v10306_v20  ;;  %vm10309_vm12 = vcmp.ge.f32.partialorder %v10195_v24, 0.0  ;;  %v3721_v37 = vpack.c.bf16 %v10310_v36, %v7573_v10 }
 0x488   :  { %4021 = vst [vmem:[%s8685_s2 + $0xc0] sm:$0xff] %v3696_v46   ;;  %v10308_v46 = vld [vmem:[#allocation113_spill] sm:$0xff]  ;;  %vm2353_vm5 = vcmp.ge.f32.partialorder %v10311_v55, 0.0  ;;  %vm10316_vm13 = vcmp.ge.f32.partialorder %v10203_v63, 0.0 }
 0x489   :  { %10305 = vst [vmem:[#allocation17_spill] sm:$0xff] %v7949_v62  ;;  %v7961_v22 = vsel %vm10309_vm12, %v10195_v24, %v10308_v46  ;;  %v10313_v62 = vld [vmem:[#allocation230_spill] sm:$0xff]  ;;  %v10315_v20 = vld [vmem:[#allocation37_spill] sm:$0xff]  ;;  %vm10319_vm12 = vcmp.ge.f32.partialorder %v10204_v0, 0.0 }
 0x48a   :  { %4022 = vst [vmem:[%s8685_s2 + $0xc8] sm:$0xff] %v3701_v1   ;;  %v7974_v59 = vsel %vm2308_vm14, %v10202_v43, %v10313_v62  ;;  %v7980_v24 = vsel %vm10316_vm13, %v10203_v63, %v10315_v20  ;;  %v10318_v1 = vld [vmem:[#allocation243_spill] sm:$0xff]  ;;  %v10320_v46 = vld [vmem:[#allocation86_spill] sm:$0xff]  ;;  %v10321_v62 = vld [vmem:[#allocation156_spill] sm:$0xff]  ;;  %vm10326_vm13 = vcmp.ge.f32.partialorder %v10212_v40, 0.0 }
 0x48b   :  { %10314 = vst [vmem:[#allocation19_spill] sm:$0xff] %v7974_v59  ;;  %v7986_v10 = vsel %vm10319_vm12, %v10204_v0, %v10318_v1  ;;  %v3726_v43 = vpack.c.bf16 %v7599_v18, %v10320_v46  ;;  %vm2355_vm14 = vcmp.ge.f32.partialorder %v10321_v62, 0.0  ;;  %v10322_v36 = vld [vmem:[#allocation157_spill] sm:$0xff]  ;;  %v10323_v59 = vld [vmem:[#allocation231_spill] sm:$0xff]  ;;  %vm10328_vm12 = vcmp.ge.f32.partialorder %v10213_v33, 0.0  ;;  %v10329_v1 = vld [vmem:[#allocation174_spill] sm:$0xff] }
 0x48c   :  { %10317 = vst [vmem:[#allocation21_spill] sm:$0xff] %v7980_v24  ;;  %v7999_v63 = vsel %vm2309_vm3, %v10211_v9, %v10323_v59  ;;  %v10325_v20 = vld [vmem:[#allocation43_spill] sm:$0xff]  ;;  %v3731_v9 = vpack.c.bf16 %v10329_v1, %v7605_v48  ;;  %v10330_v59 = vld [vmem:[#allocation158_spill] sm:$0xff]  ;;  %v10351_v24 = vld [vmem:[#allocation164_spill] sm:$0xff] }
 0x48d   :  { %4023 = vst [vmem:[%s8685_s2 + $0xd0] sm:$0xff] %v3706_v25   ;;  %v8005_v0 = vsel %vm10326_vm13, %v10212_v40, %v10325_v20  ;;  %v10327_v25 = vld [vmem:[#allocation46_spill] sm:$0xff]  ;;  %vm2357_vm3 = vcmp.ge.f32.partialorder %v10330_v59, 0.0  ;;  %v10331_v46 = vld [vmem:[#allocation159_spill] sm:$0xff]  ;;  %v10333_v20 = vld [vmem:[#allocation244_spill] sm:$0xff]  ;;  %vm10336_vm13 = vcmp.ge.f32.partialorder %v10222_v32, 0.0 }
 0x48e   :  { %10324 = vst [vmem:[#allocation186_spill] sm:$0xff] %v7999_v63  ;;  %v8011_v18 = vsel %vm10328_vm12, %v10213_v33, %v10327_v25  ;;  %vm2358_vm11 = vcmp.ge.f32.partialorder %v10331_v46, 0.0  ;;  %v10332_v63 = vld [vmem:[#allocation115_spill] sm:$0xff]  ;;  %v8030_v33 = vsel %vm2335_vm8, %v10221_v50, %v10333_v20  ;;  %v10338_v25 = vld [vmem:[#allocation161_spill] sm:$0xff]  ;;  %v10339_v1 = vld [vmem:[#allocation6_spill] sm:$0xff]  ;;  %vm10340_vm8 = vcmp.ge.f32.partialorder %v10229_v52, 0.0 }
 0x48f   :  { %4024 = vst [vmem:[%s8685_s2 + $0xd8] sm:$0xff] %v3711_v15   ;;  %v8024_v40 = vsel %vm2310_vm2, %v10220_v60, %v10332_v63  ;;  %v10335_v15 = vld [vmem:[#allocation49_spill] sm:$0xff]  ;;  %v3736_v60 = vpack.c.bf16 %v7631_v56, %v7625_v29  ;;  %v10337_v63 = vld [vmem:[#allocation160_spill] sm:$0xff]  ;;  %v8049_v50 = vsel %vm10340_vm8, %v10229_v52, %v10339_v1  ;;  %v10344_v29 = vld [vmem:[#allocation175_spill] sm:$0xff]  ;;  %vm2363_vm8 = vcmp.ge.f32.partialorder %v10351_v24, 0.0 }
 0x490   :  { %10334 = vst [vmem:[#allocation187_spill] sm:$0xff] %v8030_v33  ;;  %v8036_v48 = vsel %vm10336_vm13, %v10222_v32, %v10335_v15  ;;  %vm2359_vm2 = vcmp.ge.f32.partialorder %v10337_v63, 0.0  ;;  %v10342_v20 = vld [vmem:[#allocation245_spill] sm:$0xff]  ;;  %vm10343_vm13 = vcmp.ge.f32.partialorder %v10230_v17, 0.0  ;;  %v3741_v56 = vpack.c.bf16 %v7651_v27, %v10344_v29  ;;  %v10345_v15 = vld [vmem:[#allocation162_spill] sm:$0xff]  ;;  %v10346_v52 = vld [vmem:[#allocation163_spill] sm:$0xff] }
 0x491   :  { %4025 = vst [vmem:[%s8685_s2 + $0xe0] sm:$0xff] %v3716_v8   ;;  %v8055_v32 = vsel %vm10343_vm13, %v10230_v17, %v10342_v20  ;;  %vm2361_vm12 = vcmp.ge.f32.partialorder %v10345_v15, 0.0  ;;  %v10347_v1 = vld [vmem:[#allocation55_spill] sm:$0xff]  ;;  %v10348_v20 = vld [vmem:[#allocation246_spill] sm:$0xff]  ;;  %vm10349_vm13 = vcmp.ge.f32.partialorder %v10237_v41, 0.0  ;;  %v10350_v27 = vld [vmem:[#allocation176_spill] sm:$0xff] }
 0x492   :  { %10341 = vst [vmem:[#allocation188_spill] sm:$0xff] %v8049_v50  ;;  %v8070_v17 = vsel %vm2339_vm6, %v10236_v51, %v10347_v1  ;;  %v3746_v29 = vpack.c.bf16 %v10350_v27, %v7657_v21  ;;  %v10352_v51 = vld [vmem:[#allocation165_spill] sm:$0xff]  ;;  %v10353_v1 = vld [vmem:[#allocation247_spill] sm:$0xff]  ;;  %v3751_v21 = vpack.c.bf16 %v7683_v7, %v7677_v44  ;;  %v10357_v8 = vld [vmem:[#allocation166_spill] sm:$0xff] }
 0x493   :  { %4026 = vst [vmem:[%s8685_s2 + $0xe8] sm:$0xff] %v3721_v37   ;;  %v8076_v37 = vsel %vm10349_vm13, %v10237_v41, %v10348_v20  ;;  %v8091_v41 = vsel %vm2341_vm10, %v10247_v5, %v10353_v1  ;;  %v10355_v20 = vld [vmem:[#allocation58_spill] sm:$0xff]  ;;  %vm10356_vm13 = vcmp.ge.f32.partialorder %v10248_v13, 0.0  ;;  %vm2365_vm6 = vcmp.ge.f32.partialorder %v10357_v8, 0.0  ;;  %v10358_v5 = vld [vmem:[#allocation167_spill] sm:$0xff]  ;;  %v10359_v1 = vld [vmem:[#allocation248_spill] sm:$0xff] }
 0x494   :  { %4027 = vst [vmem:[%s8685_s2 + $0xf0] sm:$0xff] %v3726_v43   ;;  %v8097_v43 = vsel %vm10356_vm13, %v10248_v13, %v10355_v20  ;;  %v8112_v13 = vsel %vm2343_vm1, %v10260_v58, %v10359_v1  ;;  %v10360_v20 = vld [vmem:[#allocation249_spill] sm:$0xff]  ;;  %vm10361_vm13 = vcmp.ge.f32.partialorder %v10261_v57, 0.0  ;;  %v10362_v44 = vld [vmem:[#allocation100_spill] sm:$0xff]  ;;  %v10369_v50 = vld [vmem:[#allocation170_spill] sm:$0xff] }
 0x495   :  { %10354 = vst [vmem:[#allocation23_spill] sm:$0xff] %v8091_v41  ;;  %v3756_v7 = vpack.c.bf16 %v7703_v2, %v10362_v44  ;;  %v10363_v33 = vld [vmem:[#allocation168_spill] sm:$0xff]  ;;  %v10364_v58 = vld [vmem:[#allocation169_spill] sm:$0xff]  ;;  %vm2369_vm1 = vcmp.ge.f32.partialorder %v10369_v50, 0.0 }
 0x496   :  { %4028 = vst [vmem:[%s8685_s2 + $0xf8] sm:$0xff] %v3731_v9   ;;  %v8118_v9 = vsel %vm10361_vm13, %v10261_v57, %v10360_v20  ;;  %vm2367_vm10 = vcmp.ge.f32.partialorder %v10363_v33, 0.0  ;;  %v10365_v1 = vld [vmem:[#allocation61_spill] sm:$0xff]  ;;  %v10366_v20 = vld [vmem:[#allocation7_spill] sm:$0xff]  ;;  %vm10367_vm13 = vcmp.ge.f32.partialorder %v10272_v12, 0.0  ;;  %v10376_v27 = vld [vmem:[#allocation172_spill] sm:$0xff] }
 0x497   :  { %4029 = vst [vmem:[%s8685_s2 + $0x100] sm:$0xff] %v3736_v60   ;;  %v8133_v57 = vsel %vm2345_vm7, %v10271_v45, %v10365_v1  ;;  %v8139_v60 = vsel %vm10367_vm13, %v10272_v12, %v10366_v20  ;;  %v10368_v2 = vld [vmem:[#allocation177_spill] sm:$0xff]  ;;  %v10370_v45 = vld [vmem:[#allocation171_spill] sm:$0xff]  ;;  %v10371_v1 = vld [vmem:[#allocation250_spill] sm:$0xff]  ;;  %vm10374_vm13 = vcmp.ge.f32.partialorder %v10283_v19, 0.0  ;;  %vm2371_vm7 = vcmp.ge.f32.partialorder %v10376_v27, 0.0 }
 0x498   :  { %4030 = vst [vmem:[%s8685_s2 + $0x108] sm:$0xff] %v3741_v56   ;;  %v3761_v44 = vpack.c.bf16 %v10368_v2, %v7709_v4  ;;  %v8154_v12 = vsel %vm2347_vm15, %v10282_v42, %v10371_v1  ;;  %v10373_v20 = vld [vmem:[#allocation67_spill] sm:$0xff]  ;;  %v3766_v4 = vpack.c.bf16 %v7735_v30, %v7729_v47  ;;  %v10377_v42 = vld [vmem:[#allocation173_spill] sm:$0xff]  ;;  %v10378_v1 = vld [vmem:[#allocation8_spill] sm:$0xff] }
 0x499   :  { %10372 = vst [vmem:[#allocation25_spill] sm:$0xff] %v8154_v12  ;;  %v8160_v56 = vsel %vm10374_vm13, %v10283_v19, %v10373_v20  ;;  %vm2372_vm15 = vcmp.ge.f32.partialorder %v10377_v42, 0.0  ;;  %v8175_v19 = vsel %vm2349_vm0, %v10293_v3, %v10378_v1  ;;  %v10380_v20 = vld [vmem:[#allocation251_spill] sm:$0xff]  ;;  %v10382_v47 = vld [vmem:[#allocation178_spill] sm:$0xff]  ;;  %v10383_v41 = vld [vmem:[#allocation125_spill] sm:$0xff] }
 0x49a   :  { %10375 = vst [vmem:[#allocation27_spill] sm:$0xff] %v8160_v56  ;;  %v3771_v30 = vpack.c.bf16 %v7755_v28, %v10382_v47  ;;  %vm2311_vm13 = vcmp.ge.f32.partialorder %v10383_v41, 0.0  ;;  %v10384_v3 = vld [vmem:[#allocation40_spill] sm:$0xff]  ;;  %v10385_v1 = vld [vmem:[#allocation9_spill] sm:$0xff]  ;;  %v3776_v28 = vpack.c.bf16 %v7774_v39, %v7761_v34  ;;  %v3781_v34 = vpack.c.bf16 %v7786_v54, %v7780_v14  ;;  %v10395_v47 = vld [vmem:[#allocation75_spill] sm:$0xff] }
 0x49b   :  { %4031 = vst [vmem:[%s8685_s2 + $0x110] sm:$0xff] %v3746_v29   ;;  %v8181_v29 = vsel %vm2350_vm9, %v10294_v26, %v10380_v20  ;;  %v8196_v26 = vsel %vm2351_vm4, %v10302_v6, %v10385_v1  ;;  %v10387_v20 = vld [vmem:[#allocation10_spill] sm:$0xff]  ;;  %vm10388_vm9 = vcmp.ge.f32.partialorder %v10303_v11, 0.0  ;;  %v10389_v2 = vld [vmem:[#allocation52_spill] sm:$0xff]  ;;  %vm2315_vm4 = vcmp.ge.f32.partialorder %v10395_v47, 0.0  ;;  %v10402_v14 = vld [vmem:[#allocation179_spill] sm:$0xff] }
 0x49c   :  { %10379 = vst [vmem:[#allocation189_spill] sm:$0xff] %v8175_v19  ;;  %vm2313_vm0 = vcmp.ge.f32.partialorder %v10389_v2, 0.0  ;;  %v10390_v6 = vld [vmem:[#allocation64_spill] sm:$0xff]  ;;  %v10403_v54 = vld [vmem:[#allocation103_spill] sm:$0xff] }
 0x49d   :  { %10381 = vst [vmem:[#allocation190_spill] sm:$0xff] %v8181_v29  ;;  %v10391_v1 = vld [vmem:[#allocation12_spill] sm:$0xff]  ;;  %v3786_v39 = vpack.c.bf16 %v10403_v54, %v10402_v14  ;;  %v10404_v56 = vld [vmem:[#allocation99_spill] sm:$0xff]  ;;  %v10409_v14 = vld [vmem:[#allocation109_spill] sm:$0xff] }
 0x49e   :  { %4032 = vst [vmem:[%s8685_s2 + $0x118] sm:$0xff] %v3751_v21   ;;  %v8202_v21 = vsel %vm10388_vm9, %v10303_v11, %v10387_v20  ;;  %v8217_v11 = vsel %vm2353_vm5, %v10311_v55, %v10391_v1  ;;  %v10393_v20 = vld [vmem:[#allocation14_spill] sm:$0xff]  ;;  %vm10394_vm9 = vcmp.ge.f32.partialorder %v10312_v38, 0.0  ;;  %v10396_v55 = vld [vmem:[#allocation88_spill] sm:$0xff]  ;;  %vm2317_vm5 = vcmp.ge.f32.partialorder %v10404_v56, 0.0 }
 0x49f   :  { %10386 = vst [vmem:[#allocation191_spill] sm:$0xff] %v8196_v26  ;;  %v10397_v1 = vld [vmem:[#allocation16_spill] sm:$0xff]  ;;  %v10411_v29 = vld [vmem:[#allocation114_spill] sm:$0xff] }
 0x4a0   :  { %4033 = vst [vmem:[%s8685_s2 + $0x120] sm:$0xff] %v3756_v7   ;;  %v8223_v7 = vsel %vm10394_vm9, %v10312_v38, %v10393_v20  ;;  %v8238_v38 = vsel %vm2355_vm14, %v10321_v62, %v10397_v1  ;;  %v10399_v20 = vld [vmem:[#allocation18_spill] sm:$0xff]  ;;  %vm10400_vm9 = vcmp.ge.f32.partialorder %v10322_v36, 0.0  ;;  %v10406_v1 = vld [vmem:[#allocation20_spill] sm:$0xff] }
 0x4a1   :  { %10392 = vst [vmem:[#allocation38_spill] sm:$0xff] %v8217_v11  ;;  %v10405_v62 = vld [vmem:[#allocation110_spill] sm:$0xff]  ;;  %v10410_v54 = vld [vmem:[#allocation180_spill] sm:$0xff] }
 0x4a2   :  { %4034 = vst [vmem:[%s8685_s2 + $0x128] sm:$0xff] %v3761_v44   ;;  %v8244_v44 = vsel %vm10400_vm9, %v10322_v36, %v10399_v20  ;;  %vm2318_vm14 = vcmp.ge.f32.partialorder %v10405_v62, 0.0  ;;  %v8259_v36 = vsel %vm2357_vm3, %v10330_v59, %v10406_v1  ;;  %v10408_v20 = vld [vmem:[#allocation22_spill] sm:$0xff]  ;;  %v3791_v12 = vpack.c.bf16 %v10410_v54, %v10409_v14  ;;  %v10412_v59 = vld [vmem:[#allocation116_spill] sm:$0xff]  ;;  %v10417_v14 = vld [vmem:[#allocation181_spill] sm:$0xff] }
 0x4a3   :  { %10398 = vst [vmem:[#allocation70_spill] sm:$0xff] %v8238_v38  ;;  %vm2319_vm9 = vcmp.ge.f32.partialorder %v10411_v29, 0.0  ;;  %v10413_v1 = vld [vmem:[#allocation24_spill] sm:$0xff]  ;;  %v3796_v54 = vpack.c.bf16 %v10417_v14, %v7830_v61  ;;  %v10418_v26 = vld [vmem:[#allocation118_spill] sm:$0xff] }
 0x4a4   :  { %10401 = vst [vmem:[#allocation73_spill] sm:$0xff] %v8244_v44  ;;  %vm2321_vm3 = vcmp.ge.f32.partialorder %v10418_v26, 0.0  ;;  %v10424_v61 = vld [vmem:[#allocation182_spill] sm:$0xff] }
 0x4a5   :  { %4035 = vst [vmem:[%s8685_s2 + $0x130] sm:$0xff] %v3766_v4   ;;  %v8265_v4 = vsel %vm2358_vm11, %v10331_v46, %v10408_v20  ;;  %v8280_v46 = vsel %vm2359_vm2, %v10337_v63, %v10413_v1  ;;  %v10415_v20 = vld [vmem:[#allocation26_spill] sm:$0xff]  ;;  %vm10416_vm11 = vcmp.ge.f32.partialorder %v10338_v25, 0.0  ;;  %v10419_v63 = vld [vmem:[#allocation120_spill] sm:$0xff]  ;;  %v3801_v14 = vpack.c.bf16 %v7855_v35, %v10424_v61  ;;  %v10430_v35 = vld [vmem:[#allocation11_spill] sm:$0xff] }
 0x4a6   :  { %10407 = vst [vmem:[#allocation29_spill] sm:$0xff] %v8259_v36  ;;  %v10420_v1 = vld [vmem:[#allocation28_spill] sm:$0xff]  ;;  %v10425_v11 = vld [vmem:[#allocation122_spill] sm:$0xff]  ;;  %v10431_v61 = vld [vmem:[#allocation13_spill] sm:$0xff] }
 0x4a7   :  { %4036 = vst [vmem:[%s8685_s2 + $0x138] sm:$0xff] %v3771_v30   ;;  %v8286_v30 = vsel %vm10416_vm11, %v10338_v25, %v10415_v20  ;;  %v8301_v25 = vsel %vm2361_vm12, %v10345_v15, %v10420_v1  ;;  %v10422_v20 = vld [vmem:[#allocation30_spill] sm:$0xff]  ;;  %vm10423_vm11 = vcmp.ge.f32.partialorder %v10346_v52, 0.0  ;;  %vm2323_vm2 = vcmp.ge.f32.partialorder %v10425_v11, 0.0  ;;  %v10426_v15 = vld [vmem:[#allocation124_spill] sm:$0xff]  ;;  %v10438_v36 = vld [vmem:[#allocation129_spill] sm:$0xff] }
 0x4a8   :  { %10414 = vst [vmem:[#allocation192_spill] sm:$0xff] %v8280_v46  ;;  %v10427_v1 = vld [vmem:[#allocation32_spill] sm:$0xff]  ;;  %v3806_v19 = vpack.c.bf16 %v10431_v61, %v10430_v35  ;;  %v10432_v44 = vld [vmem:[#allocation126_spill] sm:$0xff]  ;;  %v10437_v35 = vld [vmem:[#allocation15_spill] sm:$0xff] }
 0x4a9   :  { %4037 = vst [vmem:[%s8685_s2 + $0x140] sm:$0xff] %v3776_v28   ;;  %v8307_v28 = vsel %vm10423_vm11, %v10346_v52, %v10422_v20  ;;  %v8322_v52 = vsel %vm2363_vm8, %v10351_v24, %v10427_v1  ;;  %v10428_v20 = vld [vmem:[#allocation35_spill] sm:$0xff]  ;;  %vm10429_vm11 = vcmp.ge.f32.partialorder %v10352_v51, 0.0  ;;  %vm2325_vm12 = vcmp.ge.f32.partialorder %v10432_v44, 0.0  ;;  %v10433_v24 = vld [vmem:[#allocation128_spill] sm:$0xff] }
 0x4aa   :  { %10421 = vst [vmem:[#allocation193_spill] sm:$0xff] %v8301_v25  ;;  %v10434_v1 = vld [vmem:[#allocation252_spill] sm:$0xff]  ;;  %v3811_v61 = vpack.c.bf16 %v10437_v35, %v7880_v53  ;;  %vm2327_vm8 = vcmp.ge.f32.partialorder %v10438_v36, 0.0  ;;  %v10443_v53 = vld [vmem:[#allocation183_spill] sm:$0xff]  ;;  %v10450_v25 = vld [vmem:[#allocation62_spill] sm:$0xff] }
 0x4ab   :  { %4038 = vst [vmem:[%s8685_s2 + $0x148] sm:$0xff] %v3781_v34   ;;  %v8328_v34 = vsel %vm10429_vm11, %v10352_v51, %v10428_v20  ;;  %v8343_v51 = vsel %vm2365_vm6, %v10357_v8, %v10434_v1  ;;  %v10435_v20 = vld [vmem:[#allocation41_spill] sm:$0xff]  ;;  %vm10436_vm11 = vcmp.ge.f32.partialorder %v10358_v5, 0.0  ;;  %v10439_v8 = vld [vmem:[#allocation130_spill] sm:$0xff]  ;;  %v3816_v35 = vpack.c.bf16 %v7905_v23, %v10443_v53  ;;  %v10444_v46 = vld [vmem:[#allocation131_spill] sm:$0xff] }
 0x4ac   :  { %4039 = vst [vmem:[%s8685_s2 + $0x150] sm:$0xff] %v3786_v39   ;;  %v8349_v39 = vsel %vm10436_vm11, %v10358_v5, %v10435_v20  ;;  %v10440_v1 = vld [vmem:[#allocation50_spill] sm:$0xff]  ;;  %v10441_v20 = vld [vmem:[#allocation53_spill] sm:$0xff]  ;;  %vm10442_vm11 = vcmp.ge.f32.partialorder %v10364_v58, 0.0  ;;  %vm2329_vm6 = vcmp.ge.f32.partialorder %v10444_v46, 0.0  ;;  %v10448_v23 = vld [vmem:[#allocation184_spill] sm:$0xff]  ;;  %v3976_v38 = vpack.c.bf16 %v8328_v34, %v8322_v52 }
 0x4ad   :  { %4040 = vst [vmem:[%s8685_s2 + $0x158] sm:$0xff] %v3791_v12   ;;  %v8364_v5 = vsel %vm2367_vm10, %v10363_v33, %v10440_v1  ;;  %v8370_v12 = vsel %vm10442_vm11, %v10364_v58, %v10441_v20  ;;  %v10445_v33 = vld [vmem:[#allocation93_spill] sm:$0xff]  ;;  %v10446_v58 = vld [vmem:[#allocation59_spill] sm:$0xff]  ;;  %vm10447_vm10 = vcmp.ge.f32.partialorder %v10370_v45, 0.0 }
 0x4ae   :  { %4041 = vst [vmem:[%s8685_s2 + $0x160] sm:$0xff] %v3796_v54   ;;  %v8384_v1 = vsel %vm2369_vm1, %v10369_v50, %v10445_v33  ;;  %v8390_v20 = vsel %vm10447_vm10, %v10370_v45, %v10446_v58  ;;  %v10449_v54 = vld [vmem:[#allocation185_spill] sm:$0xff]  ;;  %v8403_v50 = vsel %vm2371_vm7, %v10376_v27, %v10450_v25  ;;  %v3981_v58 = vpack.c.bf16 %v8349_v39, %v8343_v51 }
 0x4af   :  { %4042 = vst [vmem:[%s8685_s2 + $0x168] sm:$0xff] %v3801_v14   ;;  %v3821_v53 = vpack.c.bf16 %v10449_v54, %v10448_v23  ;;  %v10451_v33 = vld [vmem:[#allocation65_spill] sm:$0xff]  ;;  %v3826_v14 = vpack.c.bf16 %v7936_v49, %v7930_v16  ;;  %v10452_v23 = vld [vmem:[#allocation232_spill] sm:$0xff]  ;;  %vm10454_vm1 = vcmp.ge.f32.partialorder %v10384_v3, 0.0  ;;  %v3986_v49 = vpack.c.bf16 %v8370_v12, %v8364_v5  ;;  %v10456_v54 = vld [vmem:[#allocation119_spill] sm:$0xff] }
 0x4b0   :  { %v8409_v45 = vsel %vm2372_vm15, %v10377_v42, %v10451_v33  ;;  %4043 = vst [vmem:[%s8685_s2 + $0x170] sm:$0xff] %v3806_v19   ;;  %v2651_v27 = vsel %vm2311_vm13, %v10383_v41, %v10452_v23  ;;  %v10453_v25 = vld [vmem:[#allocation233_spill] sm:$0xff]  ;;  %v2653_v41 = vsel %vm2313_vm0, %v10389_v2, %v10456_v54  ;;  %v10457_v33 = vld [vmem:[#allocation234_spill] sm:$0xff]  ;;  %vm10458_vm7 = vcmp.ge.f32.partialorder %v10390_v6, 0.0 }
 0x4b1   :  { %v2652_v42 = vsel %vm10454_vm1, %v10384_v3, %v10453_v25  ;;  %4044 = vst [vmem:[%s8685_s2 + $0x178] sm:$0xff] %v3811_v61   ;;  %v10455_v19 = vld [vmem:[#allocation17_spill] sm:$0xff]  ;;  %v2654_v3 = vsel %vm10458_vm7, %v10390_v6, %v10457_v33  ;;  %v10459_v61 = vld [vmem:[#allocation19_spill] sm:$0xff]  ;;  %v3991_v23 = vpack.c.bf16 %v8390_v20, %v8384_v1  ;;  %vm10462_vm15 = vcmp.ge.f32.partialorder %v10396_v55, 0.0 }
 0x4b2   :  { %v3831_v16 = vpack.c.bf16 %v7955_v31, %v10455_v19  ;;  %4045 = vst [vmem:[%s8685_s2 + $0x180] sm:$0xff] %v3816_v35   ;;  %v3836_v31 = vpack.c.bf16 %v10459_v61, %v7961_v22  ;;  %v10460_v25 = vld [vmem:[#allocation235_spill] sm:$0xff]  ;;  %v10461_v19 = vld [vmem:[#allocation121_spill] sm:$0xff]  ;;  %v10463_v35 = vld [vmem:[#allocation186_spill] sm:$0xff]  ;;  %v3996_v54 = vpack.c.bf16 %v8409_v45, %v8403_v50  ;;  %v2498_v33 = vmul.f32 0.01, %v10439_v8 }
 0x4b3   :  { %v2655_v2 = vsel %vm2315_vm4, %v10395_v47, %v10460_v25  ;;  %v2656_v6 = vsel %vm10462_vm15, %v10396_v55, %v10461_v19  ;;  %4046 = vst [vmem:[%s8685_s2 + $0x188] sm:$0xff] %v3821_v53   ;;  %v3841_v22 = vpack.c.bf16 %v8024_v40, %v10463_v35  ;;  %v10464_v61 = vld [vmem:[#allocation236_spill] sm:$0xff]  ;;  %v10465_v25 = vld [vmem:[#allocation237_spill] sm:$0xff]  ;;  %v3846_v40 = vpack.c.bf16 %v2652_v42, %v2651_v27  ;;  %v10466_v50 = vld [vmem:[#allocation123_spill] sm:$0xff] }
 0x4b4   :  { %v2657_v47 = vsel %vm2317_vm5, %v10404_v56, %v10464_v61  ;;  %v2658_v55 = vsel %vm2318_vm14, %v10405_v62, %v10465_v25  ;;  %4047 = vst [vmem:[%s8685_s2 + $0x190] sm:$0xff] %v3826_v14   ;;  %v2499_v53 = vmul.f32 0.01, %v10444_v46  ;;  %v2659_v45 = vsel %vm2319_vm9, %v10411_v29, %v10466_v50  ;;  %v10467_v19 = vld [vmem:[#allocation238_spill] sm:$0xff]  ;;  %v10469_v35 = vld [vmem:[#allocation132_spill] sm:$0xff]  ;;  %v10470_v27 = vld [vmem:[#allocation239_spill] sm:$0xff] }
 0x4b5   :  { %vm10468_vm13 = vcmp.ge.f32.partialorder %v10412_v59, 0.0  ;;  %4048 = vst [vmem:[%s8685_s2 + $0x198] sm:$0xff] %v3831_v16   ;;  %v3851_v62 = vpack.c.bf16 %v2654_v3, %v2653_v41  ;;  %v2500_v14 = vmul.f32 0.01, %v10469_v35  ;;  %v2661_v42 = vsel %vm2321_vm3, %v10418_v26, %v10470_v27  ;;  %v10471_v61 = vld [vmem:[#allocation127_spill] sm:$0xff]  ;;  %v10473_v16 = vld [vmem:[#allocation5_spill] sm:$0xff] }
 0x4b6   :  { %v2660_v56 = vsel %vm10468_vm13, %v10412_v59, %v10467_v19  ;;  %vm10472_vm0 = vcmp.ge.f32.partialorder %v10419_v63, 0.0  ;;  %4049 = vst [vmem:[%s8685_s2 + $0x1a0] sm:$0xff] %v3836_v31   ;;  %v3856_v59 = vpack.c.bf16 %v2656_v6, %v2655_v2  ;;  %vm2330_vm4 = vcmp.ge.f32.partialorder %v10469_v35, 0.0  ;;  %v10474_v3 = vld [vmem:[#allocation240_spill] sm:$0xff]  ;;  %v10476_v25 = vld [vmem:[#allocation34_spill] sm:$0xff]  ;;  %v10477_v2 = vld [vmem:[#allocation241_spill] sm:$0xff] }
 0x4b7   :  { %v2662_v29 = vsel %vm10472_vm0, %v10419_v63, %v10471_v61  ;;  %v2663_v41 = vsel %vm2323_vm2, %v10425_v11, %v10473_v16  ;;  %vm10475_vm5 = vcmp.ge.f32.partialorder %v10426_v15, 0.0  ;;  %4050 = vst [vmem:[%s8685_s2 + $0x1a8] sm:$0xff] %v3841_v22   ;;  %v3861_v63 = vpack.c.bf16 %v2658_v55, %v2657_v47  ;;  %v10479_v6 = vld [vmem:[#allocation242_spill] sm:$0xff] }
 0x4b8   :  { %v2664_v26 = vsel %vm10475_vm5, %v10426_v15, %v10474_v3  ;;  %v2665_v31 = vsel %vm2325_vm12, %v10432_v44, %v10476_v25  ;;  %vm10478_vm14 = vcmp.ge.f32.partialorder %v10433_v24, 0.0  ;;  %4051 = vst [vmem:[%s8685_s2 + $0x1b0] sm:$0xff] %v3846_v40   ;;  %v3866_v15 = vpack.c.bf16 %v2660_v56, %v2659_v45  ;;  %v10481_v40 = vld [vmem:[#allocation21_spill] sm:$0xff]  ;;  %v10484_v45 = vld [vmem:[#allocation187_spill] sm:$0xff]  ;;  %v10504_v61 = vld [vmem:[#allocation70_spill] sm:$0xff] }
 0x4b9   :  { %v2666_v11 = vsel %vm10478_vm14, %v10433_v24, %v10477_v2  ;;  %v2667_v22 = vsel %vm2327_vm8, %v10438_v36, %v10479_v6  ;;  %vm10480_vm9 = vcmp.ge.f32.partialorder %v10439_v8, 0.0  ;;  %4052 = vst [vmem:[%s8685_s2 + $0x1b8] sm:$0xff] %v3851_v62   ;;  %v3871_v44 = vpack.c.bf16 %v2662_v29, %v2661_v42  ;;  %v10503_v42 = vld [vmem:[#allocation73_spill] sm:$0xff] }
 0x4ba   :  { %v2668_v47 = vsel %vm10480_vm9, %v10439_v8, %v2498_v33  ;;  %v2669_v24 = vsel %vm2329_vm6, %v10444_v46, %v2499_v53  ;;  %v2670_v55 = vsel %vm2330_vm4, %v10469_v35, %v2500_v14  ;;  %4053 = vst [vmem:[%s8685_s2 + $0x1c0] sm:$0xff] %v3856_v59   ;;  %v3876_v36 = vpack.c.bf16 %v2664_v26, %v2663_v41  ;;  %v10496_v35 = vld [vmem:[#allocation190_spill] sm:$0xff]  ;;  %v10510_v41 = vld [vmem:[#allocation193_spill] sm:$0xff] }
 0x4bb   :  { %4054 = vst [vmem:[%s8685_s2 + $0x1c8] sm:$0xff] %v3861_v63   ;;  %v3881_v8 = vpack.c.bf16 %v2666_v11, %v2665_v31  ;;  %v3886_v33 = vpack.c.bf16 %v2668_v47, %v2667_v22  ;;  %v3891_v46 = vpack.c.bf16 %v2670_v55, %v2669_v24  ;;  %v10482_v53 = vpack.c.bf16 %v7986_v10, %v10481_v40  ;;  %v10486_v10 = vld [vmem:[#allocation188_spill] sm:$0xff]  ;;  %v10501_v14 = vld [vmem:[#allocation38_spill] sm:$0xff] }
 0x4bc   :  { %4055 = vst [vmem:[%s8685_s2 + $0x1d0] sm:$0xff] %v3866_v15   ;;  %v10483_v50 = vpack.c.bf16 %v8011_v18, %v8005_v0  ;;  %v10485_v19 = vpack.c.bf16 %v8036_v48, %v10484_v45  ;;  %v10487_v56 = vpack.c.bf16 %v8055_v32, %v10486_v10  ;;  %v10488_v0 = vpack.c.bf16 %v8076_v37, %v8070_v17  ;;  %v10489_v18 = vld [vmem:[#allocation23_spill] sm:$0xff] }
 0x4bd   :  { %4056 = vst [vmem:[%s8685_s2 + $0x1d8] sm:$0xff] %v3871_v44   ;;  %v10490_v48 = vpack.c.bf16 %v8097_v43, %v10489_v18  ;;  %v10491_v32 = vpack.c.bf16 %v8118_v9, %v8112_v13  ;;  %v10492_v17 = vpack.c.bf16 %v8139_v60, %v8133_v57  ;;  %v10493_v37 = vld [vmem:[#allocation27_spill] sm:$0xff]  ;;  %v10494_v43 = vld [vmem:[#allocation25_spill] sm:$0xff]  ;;  %v10502_v27 = vpack.c.bf16 %v8223_v7, %v10501_v14  ;;  %v10508_v7 = vld [vmem:[#allocation192_spill] sm:$0xff] }
 0x4be   :  { %4057 = vst [vmem:[%s8685_s2 + $0x1e0] sm:$0xff] %v3876_v36   ;;  %v10495_v62 = vpack.c.bf16 %v10493_v37, %v10494_v43  ;;  %v10497_v13 = vld [vmem:[#allocation189_spill] sm:$0xff]  ;;  %v10499_v57 = vld [vmem:[#allocation191_spill] sm:$0xff]  ;;  %v10505_v29 = vpack.c.bf16 %v10503_v42, %v10504_v61  ;;  %v10509_v16 = vpack.c.bf16 %v8286_v30, %v10508_v7  ;;  %v10511_v3 = vpack.c.bf16 %v8307_v28, %v10510_v41 }
 0x4bf   :  { %4058 = vst [vmem:[%s8685_s2 + $0x1e8] sm:$0xff] %v3881_v8   ;;  %v10498_v9 = vpack.c.bf16 %v10496_v35, %v10497_v13  ;;  %v10500_v60 = vpack.c.bf16 %v8202_v21, %v10499_v57  ;;  %v10506_v21 = vld [vmem:[#allocation29_spill] sm:$0xff] }
 0x4c0   :  { %4059 = vst [vmem:[%s8685_s2 + $0x1f0] sm:$0xff] %v3886_v33   ;;  %v10507_v59 = vpack.c.bf16 %v8265_v4, %v10506_v21 }
 0x4c1   :  { %4060 = vst [vmem:[%s8685_s2 + $0x1f8] sm:$0xff] %v3891_v46  }
 0x4c2   :  { %4061 = vst [vmem:[%s8685_s2 + $0x200] sm:$0xff] %v10482_v53  }
 0x4c3   :  { %4062 = vst [vmem:[%s8685_s2 + $0x208] sm:$0xff] %v10483_v50  }
 0x4c4   :  { %4063 = vst [vmem:[%s8685_s2 + $0x210] sm:$0xff] %v10485_v19  }
 0x4c5   :  { %4064 = vst [vmem:[%s8685_s2 + $0x218] sm:$0xff] %v10487_v56  }
 0x4c6   :  { %4065 = vst [vmem:[%s8685_s2 + $0x220] sm:$0xff] %v10488_v0  }
 0x4c7   :  { %4066 = vst [vmem:[%s8685_s2 + $0x228] sm:$0xff] %v10490_v48  }
 0x4c8   :  { %4067 = vst [vmem:[%s8685_s2 + $0x230] sm:$0xff] %v10491_v32  }
 0x4c9   :  { %4068 = vst [vmem:[%s8685_s2 + $0x238] sm:$0xff] %v10492_v17  }
 0x4ca   :  { %4069 = vst [vmem:[%s8685_s2 + $0x240] sm:$0xff] %v10495_v62  }
 0x4cb   :  { %4070 = vst [vmem:[%s8685_s2 + $0x248] sm:$0xff] %v10498_v9  }
 0x4cc   :  { %4071 = vst [vmem:[%s8685_s2 + $0x250] sm:$0xff] %v10500_v60  }
 0x4cd   :  { %4072 = vst [vmem:[%s8685_s2 + $0x258] sm:$0xff] %v10502_v27  }
 0x4ce   :  { %4073 = vst [vmem:[%s8685_s2 + $0x260] sm:$0xff] %v10505_v29  }
 0x4cf   :  { %4074 = vst [vmem:[%s8685_s2 + $0x268] sm:$0xff] %v10507_v59  }
 0x4d0   :  { %4075 = vst [vmem:[%s8685_s2 + $0x270] sm:$0xff] %v10509_v16  }
 0x4d1   :  { %4076 = vst [vmem:[%s8685_s2 + $0x278] sm:$0xff] %v10511_v3  }
 0x4d2   :  { %4077 = vst [vmem:[%s8685_s2 + $0x280] sm:$0xff] %v3976_v38  }
 0x4d3   :  { %4078 = vst [vmem:[%s8685_s2 + $0x288] sm:$0xff] %v3981_v58  }
 0x4d4   :  { %4079 = vst [vmem:[%s8685_s2 + $0x290] sm:$0xff] %v3986_v49  }
 0x4d5   :  { %4080 = vst [vmem:[%s8685_s2 + $0x298] sm:$0xff] %v3991_v23  }
 0x4d6   :  { %4081 = vst [vmem:[%s8685_s2 + $0x2a0] sm:$0xff] %v3996_v54  }
 0x4d7   :  { %3057 = vsyncpa [#allocation3], 1 }

// kernel: encoder_mnist_forward.5
= control target key start
LH: loop header
LB: loop body
LE: loop exit
PB: predicated region body
PF: predicated region fallthrough
CT: control target
= control target key end

     0   :  { %vm498_vm0 = vcmask 261120   ;;  %s2885_s1 = inlined_call_operand.vmem [shape: bf16[288,128], index: 1, kind: input, shape index: {}]   ;;  %s2886_s0 = inlined_call_operand.vmem [shape: bf16[288,288], index: 0, kind: input, shape index: {}]   ;;  %s2887_s2 = inlined_call_operand.vmem [shape: bf16[288,128], index: 2, kind: output, shape index: {}]  }
   0x1   :  { %v1607_v0 = vld [vmem:[%s2885_s1 + $0x38] sm:$0xff]  ;;  %v1769_v2 = vld [vmem:[%s2885_s1 + $0x88] sm:$0xff]  ;;  %v1606_v3 = vld [vmem:[%s2885_s1 + $0x30] sm:$0xff] }
   0x2   :  { %v1615_v1 = vld [vmem:[%s2885_s1 + $0x78] sm:$0xff]  ;;  %553 = vmatpush.bf16.msra.mxu0 %v1607_v0  ;;  %1725 = vmatpush.bf16.msra.mxu3 %v1607_v0  ;;  %v1614_v4 = vld [vmem:[%s2885_s1 + $0x70] sm:$0xff]  ;;  %v1781_v5 = vld [vmem:[%s2885_s1 + $0x80] sm:$0xff] }
   0x3   :  { %652 = vmatpush.bf16.msra.mxu1 %v1615_v1  ;;  %757 = vmatpush.bf16.msra.mxu2 %v1769_v2  ;;  %v1250_v6 = vld [vmem:[%s2886_s0 + $0x8] sm:$0xf]  ;;  %v1548_v7 = vld [vmem:[%s2886_s0 + $0x10] sm:$0xf0]  ;;  %v1604_v11 = vld [vmem:[%s2885_s1 + $0x20] sm:$0xff] }
   0x4   :  { %v1251_v8 = vor.u32 %v1548_v7, %v1250_v6  ;;  %v1605_v9 = vld [vmem:[%s2885_s1 + $0x28] sm:$0xff]  ;;  %v1612_v12 = vld [vmem:[%s2885_s1 + $0x60] sm:$0xff]  ;;  %v1603_v13 = vld [vmem:[%s2885_s1 + $0x18] sm:$0xff] }
   0x5   :  { %v1613_v10 = vld [vmem:[%s2885_s1 + $0x68] sm:$0xff]  ;;  %v1611_v14 = vld [vmem:[%s2885_s1 + $0x58] sm:$0xff]  ;;  %v1602_v15 = vld [vmem:[%s2885_s1 + $0x10] sm:$0xff] }
   0x6   :  { %554 = vmatpush.bf16.msra.mxu0 %v1606_v3  ;;  %1726 = vmatpush.bf16.msra.mxu3 %v1606_v3  ;;  %v1610_v16 = vld [vmem:[%s2885_s1 + $0x50] sm:$0xff]  ;;  %v1262_v17 = vld [vmem:[%s2886_s0 + $0x20] sm:$0xf]  ;;  %v1551_v18 = vld [vmem:[%s2886_s0 + $0x28] sm:$0xf0] }
   0x7   :  { %653 = vmatpush.bf16.msra.mxu1 %v1614_v4  ;;  %758 = vmatpush.bf16.msra.mxu2 %v1781_v5  ;;  %v1263_v19 = vor.u32 %v1551_v18, %v1262_v17  ;;  %v1601_v20 = vld [vmem:[%s2885_s1 + $0x8] sm:$0xff]  ;;  %v1600_v22 = vld [vmem:[%s2885_s1] sm:$0xff]  ;;  %v1410_v26 = vld [vmem:[%s2886_s0 + $0x150] sm:$0xf] }
   0x8   :  { %v1609_v21 = vld [vmem:[%s2885_s1 + $0x48] sm:$0xff]  ;;  %v1608_v23 = vld [vmem:[%s2885_s1 + $0x40] sm:$0xff]  ;;  %v1589_v27 = vld [vmem:[%s2886_s0 + $0x158] sm:$0xf0] }
   0x9   :  { %v1242_v24 = vld [vmem:[%s2886_s0] sm:$0xf]  ;;  %v1547_v25 = vld [vmem:[%s2886_s0 + $0x8] sm:$0xf0]  ;;  %v1546_v28 = vld [vmem:[%s2886_s0 + $0x4] sm:$0xf]  ;;  %v1411_v31 = vor.u32 %v1589_v27, %v1410_v26 }
   0xa   :  { %1528 = vmatmul.msk.bf16.vlgmr.msra.gmra.mxu2 %vm498_vm0, %v1251_v8  ;;  %555 = vmatpush.bf16.msra.mxu0 %v1605_v9  ;;  %v1244_v29 = vld [vmem:[%s2886_s0 + $0xc] sm:$0xf0]  ;;  %v1243_v30 = vor.u32 %v1547_v25, %v1242_v24  ;;  %v1274_v33 = vld [vmem:[%s2886_s0 + $0x38] sm:$0xf]  ;;  %v1554_v34 = vld [vmem:[%s2886_s0 + $0x40] sm:$0xf0] }
   0xb   :  { %1727 = vmatpush.bf16.msra.mxu3 %v1605_v9  ;;  %654 = vmatpush.bf16.msra.mxu1 %v1613_v10  ;;  %v1247_v32 = vor.u32 %v1546_v28, %v1244_v29  ;;  %v1275_v35 = vor.u32 %v1554_v34, %v1274_v33  ;;  %v1254_v36 = vld [vmem:[%s2886_s0 + $0x18] sm:$0xf]  ;;  %v1550_v37 = vld [vmem:[%s2886_s0 + $0x20] sm:$0xf0]  ;;  %v1422_v38 = vld [vmem:[%s2886_s0 + $0x168] sm:$0xf] }
   0xc   :  { %v1592_v39 = vld [vmem:[%s2886_s0 + $0x170] sm:$0xf0]  ;;  %v1549_v40 = vld [vmem:[%s2886_s0 + $0x1c] sm:$0xf]  ;;  %v1256_v41 = vld [vmem:[%s2886_s0 + $0x24] sm:$0xf0]  ;;  %v1255_v42 = vor.u32 %v1550_v37, %v1254_v36 }
   0xd   :  { %v1423_v43 = vor.u32 %v1592_v39, %v1422_v38  ;;  %v1259_v44 = vor.u32 %v1549_v40, %v1256_v41  ;;  %v1286_v45 = vld [vmem:[%s2886_s0 + $0x50] sm:$0xf]  ;;  %v1557_v46 = vld [vmem:[%s2886_s0 + $0x58] sm:$0xf0]  ;;  %v1434_v50 = vld [vmem:[%s2886_s0 + $0x180] sm:$0xf] }
   0xe   :  { %556 = vmatpush.bf16.msra.mxu0 %v1604_v11  ;;  %v1287_v47 = vor.u32 %v1557_v46, %v1286_v45  ;;  %v1266_v48 = vld [vmem:[%s2886_s0 + $0x30] sm:$0xf]  ;;  %v1553_v49 = vld [vmem:[%s2886_s0 + $0x38] sm:$0xf0]  ;;  %v1595_v51 = vld [vmem:[%s2886_s0 + $0x188] sm:$0xf0] }
   0xf   :  { %1728 = vmatpush.bf16.msra.mxu3 %v1604_v11  ;;  %655 = vmatpush.bf16.msra.mxu1 %v1612_v12  ;;  %v1552_v52 = vld [vmem:[%s2886_s0 + $0x34] sm:$0xf]  ;;  %v1268_v53 = vld [vmem:[%s2886_s0 + $0x3c] sm:$0xf0]  ;;  %v1267_v54 = vor.u32 %v1553_v49, %v1266_v48  ;;  %v1435_v55 = vor.u32 %v1595_v51, %v1434_v50  ;;  %v1298_v57 = vld [vmem:[%s2886_s0 + $0x68] sm:$0xf] }
  0x10   :  { %v1271_v56 = vor.u32 %v1552_v52, %v1268_v53  ;;  %v1560_v58 = vld [vmem:[%s2886_s0 + $0x70] sm:$0xf0]  ;;  %v1278_v60 = vld [vmem:[%s2886_s0 + $0x48] sm:$0xf]  ;;  %v1446_v62 = vld [vmem:[%s2886_s0 + $0x198] sm:$0xf] }
  0x11   :  { %v1299_v59 = vor.u32 %v1560_v58, %v1298_v57  ;;  %v1556_v61 = vld [vmem:[%s2886_s0 + $0x50] sm:$0xf0]  ;;  %v1598_v63 = vld [vmem:[%s2886_s0 + $0x1a0] sm:$0xf0]  ;;  %v1555_v0 = vld [vmem:[%s2886_s0 + $0x4c] sm:$0xf] }
  0x12   :  { %557 = vmatpush.bf16.msra.mxu0 %v1603_v13  ;;  %v1447_v3 = vor.u32 %v1598_v63, %v1446_v62  ;;  %v1563_v6 = vld [vmem:[%s2886_s0 + $0x88] sm:$0xf0]  ;;  %v1290_v8 = vld [vmem:[%s2886_s0 + $0x60] sm:$0xf]  ;;  %v1292_v11 = vld [vmem:[%s2886_s0 + $0x6c] sm:$0xf0] }
  0x13   :  { %1729 = vmatpush.bf16.msra.mxu3 %v1603_v13  ;;  %656 = vmatpush.bf16.msra.mxu1 %v1611_v14  ;;  %v1559_v9 = vld [vmem:[%s2886_s0 + $0x68] sm:$0xf0]  ;;  %v1412_v13 = vld [vmem:[%s2886_s0 + $0x15c] sm:$0xf0]  ;;  %v1322_v17 = vld [vmem:[%s2886_s0 + $0x98] sm:$0xf] }
  0x14   :  { %v1566_v18 = vld [vmem:[%s2886_s0 + $0xa0] sm:$0xf0]  ;;  %v1591_v24 = vld [vmem:[%s2886_s0 + $0x16c] sm:$0xf]  ;;  %v1424_v25 = vld [vmem:[%s2886_s0 + $0x174] sm:$0xf0] }
  0x15   :  { %v1427_v28 = vor.u32 %v1591_v24, %v1424_v25  ;;  %v1334_v29 = vld [vmem:[%s2886_s0 + $0xb0] sm:$0xf]  ;;  %v1565_v33 = vld [vmem:[%s2886_s0 + $0x98] sm:$0xf0]  ;;  %v1564_v34 = vld [vmem:[%s2886_s0 + $0x94] sm:$0xf] }
  0x16   :  { %558 = vmatpush.bf16.msra.mxu0 %v1602_v15  ;;  %v1594_v36 = vld [vmem:[%s2886_s0 + $0x184] sm:$0xf]  ;;  %v1436_v37 = vld [vmem:[%s2886_s0 + $0x18c] sm:$0xf0]  ;;  %v1346_v41 = vld [vmem:[%s2886_s0 + $0xc8] sm:$0xf] }
  0x17   :  { %1730 = vmatpush.bf16.msra.mxu3 %v1602_v15  ;;  %657 = vmatpush.bf16.msra.mxu1 %v1610_v16  ;;  %v1439_v40 = vor.u32 %v1594_v36, %v1436_v37  ;;  %v1568_v45 = vld [vmem:[%s2886_s0 + $0xb0] sm:$0xf0]  ;;  %v1567_v46 = vld [vmem:[%s2886_s0 + $0xac] sm:$0xf]  ;;  %v1597_v48 = vld [vmem:[%s2886_s0 + $0x19c] sm:$0xf] }
  0x18   :  { %v1448_v49 = vld [vmem:[%s2886_s0 + $0x1a4] sm:$0xf0]  ;;  %v1338_v58 = vld [vmem:[%s2886_s0 + $0xc0] sm:$0xf]  ;;  %v1430_v62 = vld [vmem:[%s2886_s0 + $0x170] sm:$0xf] }
  0x19   :  { %v1451_v53 = vor.u32 %v1597_v48, %v1448_v49  ;;  %v1593_v63 = vld [vmem:[%s2886_s0 + $0x178] sm:$0xf0] }
  0x1a   :  { %1529 = vmatmul.msk.bf16.gmra.mxu2 %vm498_vm0, %v1263_v19  ;;  %559 = vmatpush.bf16.msra.mxu0 %v1601_v20  ;;  %v1323_v19 = vor.u32 %v1566_v18, %v1322_v17  ;;  %v1350_v17 = vld [vmem:[%s2886_s0 + $0xd8] sm:$0xf]  ;;  %v1574_v18 = vld [vmem:[%s2886_s0 + $0xe0] sm:$0xf0] }
  0x1b   :  { %1731 = vmatpush.bf16.msra.mxu3 %v1601_v20  ;;  %658 = vmatpush.bf16.msra.mxu1 %v1609_v21  ;;  %v1302_v20 = vld [vmem:[%s2886_s0 + $0x78] sm:$0xf]  ;;  %v1351_v25 = vor.u32 %v1574_v18, %v1350_v17  ;;  %v1587_v17 = vld [vmem:[%s2886_s0 + $0x148] sm:$0xf0] }
  0x1e   :  { %560 = vmatpush.bf16.msra.mxu0 %v1600_v22 }
  0x1f   :  { %1732 = vmatpush.bf16.msra.mxu3 %v1600_v22  ;;  %659 = vmatpush.bf16.msra.mxu1 %v1608_v23  ;;  %v1561_v22 = vld [vmem:[%s2886_s0 + $0x7c] sm:$0xf] }
  0x21   :  { %561 = vmatmul.bf16.vlgmr.msra.gmra.mxu0 %v1243_v30  ;;  %v1569_v30 = vld [vmem:[%s2886_s0 + $0xb8] sm:$0xf0] }
  0x22   :  { %631 = vmatmul.bf16.vlgmr.msra.gmra.mxu3 %v1411_v31  ;;  %660 = vmatmul.bf16.vlgmr.msra.gmra.mxu1 %v1247_v32  ;;  %v1335_v31 = vor.u32 %v1569_v30, %v1334_v29  ;;  %v1314_v32 = vld [vmem:[%s2886_s0 + $0x90] sm:$0xf] }
  0x23   :  { %1733 = vmatpush.bf16.msrb.mxu3 %v1615_v1  ;;  %v1280_v1 = vld [vmem:[%s2886_s0 + $0x54] sm:$0xf0]  ;;  %v1315_v38 = vor.u32 %v1565_v33, %v1314_v32  ;;  %v1382_v32 = vld [vmem:[%s2886_s0 + $0x110] sm:$0xf]  ;;  %v1581_v33 = vld [vmem:[%s2886_s0 + $0x118] sm:$0xf0] }
  0x24   :  { %v1383_v37 = vor.u32 %v1581_v33, %v1382_v32 }
  0x27   :  { %1734 = vmatpush.bf16.msrb.mxu3 %v1614_v4  ;;  %v1283_v4 = vor.u32 %v1555_v0, %v1280_v1 }
  0x2a   :  { %1530 = vmatmul.msk.bf16.gmra.mxu2 %vm498_vm0, %v1275_v35  ;;  %v1316_v35 = vld [vmem:[%s2886_s0 + $0x9c] sm:$0xf0] }
  0x2b   :  { %1735 = vmatpush.bf16.msrb.mxu3 %v1613_v10  ;;  %v1558_v10 = vld [vmem:[%s2886_s0 + $0x64] sm:$0xf]  ;;  %v1319_v39 = vor.u32 %v1564_v34, %v1316_v35 }
  0x2c   :  { %v1295_v15 = vor.u32 %v1558_v10, %v1292_v11 }
  0x2f   :  { %1736 = vmatpush.bf16.msrb.mxu3 %v1612_v12  ;;  %v1588_v12 = vld [vmem:[%s2886_s0 + $0x154] sm:$0xf] }
  0x31   :  { %566 = vmatmul.bf16.gmra.mxu0 %v1255_v42  ;;  %v1572_v42 = vld [vmem:[%s2886_s0 + $0xd0] sm:$0xf0] }
  0x32   :  { %636 = vmatmul.bf16.gmra.mxu3 %v1423_v43  ;;  %665 = vmatmul.bf16.gmra.mxu1 %v1259_v44  ;;  %v1347_v43 = vor.u32 %v1572_v42, %v1346_v41  ;;  %v1326_v44 = vld [vmem:[%s2886_s0 + $0xa8] sm:$0xf]  ;;  %v1362_v41 = vld [vmem:[%s2886_s0 + $0xf0] sm:$0xf]  ;;  %v1577_v42 = vld [vmem:[%s2886_s0 + $0xf8] sm:$0xf0] }
  0x33   :  { %1737 = vmatpush.bf16.msrb.mxu3 %v1611_v14  ;;  %v1291_v14 = vor.u32 %v1559_v9, %v1290_v8  ;;  %v1327_v51 = vor.u32 %v1568_v45, %v1326_v44  ;;  %v1370_v8 = vld [vmem:[%s2886_s0 + $0xf8] sm:$0xf]  ;;  %v1578_v9 = vld [vmem:[%s2886_s0 + $0x100] sm:$0xf0]  ;;  %v1364_v44 = vld [vmem:[%s2886_s0 + $0xfc] sm:$0xf0]  ;;  %v1363_v49 = vor.u32 %v1577_v42, %v1362_v41 }
  0x34   :  { %v1454_v45 = vld [vmem:[%s2886_s0 + $0x1a0] sm:$0xf]  ;;  %v1418_v41 = vld [vmem:[%s2886_s0 + $0x158] sm:$0xf]  ;;  %v1590_v42 = vld [vmem:[%s2886_s0 + $0x160] sm:$0xf0] }
  0x37   :  { %1738 = vmatpush.bf16.msrb.mxu3 %v1610_v16  ;;  %v1415_v16 = vor.u32 %v1588_v12, %v1412_v13  ;;  %v1371_v13 = vor.u32 %v1578_v9, %v1370_v8 }
  0x3a   :  { %1531 = vmatmul.msk.bf16.gmra.mxu2 %vm498_vm0, %v1287_v47  ;;  %v1328_v47 = vld [vmem:[%s2886_s0 + $0xb4] sm:$0xf0] }
  0x3b   :  { %1739 = vmatpush.bf16.msrb.mxu3 %v1609_v21  ;;  %v1562_v21 = vld [vmem:[%s2886_s0 + $0x80] sm:$0xf0]  ;;  %v1331_v52 = vor.u32 %v1567_v46, %v1328_v47  ;;  %v1599_v46 = vld [vmem:[%s2886_s0 + $0x1a8] sm:$0xf0] }
  0x3c   :  { %v1303_v26 = vor.u32 %v1562_v21, %v1302_v20  ;;  %v1352_v20 = vld [vmem:[%s2886_s0 + $0xe4] sm:$0xf0] }
  0x3d   :  { %v1442_v21 = vld [vmem:[%s2886_s0 + $0x188] sm:$0xf] }
  0x3f   :  { %1740 = vmatpush.bf16.msrb.mxu3 %v1608_v23  ;;  %v1304_v23 = vld [vmem:[%s2886_s0 + $0x84] sm:$0xf0] }
  0x40   :  { %v1307_v27 = vor.u32 %v1561_v22, %v1304_v23  ;;  %v1596_v22 = vld [vmem:[%s2886_s0 + $0x190] sm:$0xf0] }
  0x41   :  { %571 = vmatmul.bf16.gmra.mxu0 %v1267_v54  ;;  %v1358_v54 = vld [vmem:[%s2886_s0 + $0xe0] sm:$0xf] }
  0x42   :  { %641 = vmatmul.bf16.gmra.mxu3 %v1435_v55  ;;  %670 = vmatmul.bf16.gmra.mxu1 %v1271_v56  ;;  %v1575_v55 = vld [vmem:[%s2886_s0 + $0xe8] sm:$0xf0] }
  0x43   :  { %1741 = vmatpush.bf16.msra.mxu3 %v1769_v2  ;;  %v1279_v2 = vor.u32 %v1556_v61, %v1278_v60  ;;  %v1359_v57 = vor.u32 %v1575_v55, %v1358_v54  ;;  %v1570_v60 = vld [vmem:[%s2886_s0 + $0xc4] sm:$0xf]  ;;  %v1340_v61 = vld [vmem:[%s2886_s0 + $0xcc] sm:$0xf0] }
  0x47   :  { %1742 = vmatpush.bf16.msra.mxu3 %v1781_v5  ;;  %v1310_v5 = vld [vmem:[%s2886_s0 + $0x80] sm:$0xf] }
  0x48   :  { %v1311_v7 = vor.u32 %v1563_v6, %v1310_v5 }
  0x4a   :  { %1532 = vmatmul.msk.bf16.gmra.mxu2 %vm498_vm0, %v1299_v59  ;;  %v1571_v59 = vld [vmem:[%s2886_s0 + $0xc8] sm:$0xf0] }
  0x4b   :  { %v1339_v1 = vor.u32 %v1571_v59, %v1338_v58 }
  0x51   :  { %576 = vmatmul.bf16.gmra.mxu0 %v1279_v2 }
  0x52   :  { %646 = vmatmul.bf16.gmra.mxu3 %v1447_v3  ;;  %675 = vmatmul.bf16.gmra.mxu1 %v1283_v4  ;;  %v1343_v3 = vor.u32 %v1570_v60, %v1340_v61  ;;  %v1431_v4 = vor.u32 %v1593_v63, %v1430_v62 }
  0x5a   :  { %1533 = vmatmul.msk.bf16.gmra.mxu2 %vm498_vm0, %v1311_v7 }
  0x61   :  { %581 = vmatmul.bf16.gmra.mxu0 %v1291_v14 }
  0x62   :  { %680 = vmatmul.bf16.gmra.mxu1 %v1295_v15  ;;  %730 = vmatmul.bf16.vlgmr.msrb.gmra.mxu3 %v1415_v16 }
  0x6a   :  { %1534 = vmatmul.msk.bf16.gmra.mxu2 %vm498_vm0, %v1323_v19  ;;  %v1573_v19 = vld [vmem:[%s2886_s0 + $0xdc] sm:$0xf] }
  0x71   :  { %586 = vmatmul.bf16.gmra.mxu0 %v1303_v26 }
  0x72   :  { %685 = vmatmul.bf16.gmra.mxu1 %v1307_v27  ;;  %735 = vmatmul.bf16.gmra.mxu3 %v1427_v28  ;;  %v1355_v27 = vor.u32 %v1573_v19, %v1352_v20  ;;  %v1443_v28 = vor.u32 %v1596_v22, %v1442_v21 }
  0x7a   :  { %1535 = vmatmul.msk.bf16.gmra.mxu2 %vm498_vm0, %v1335_v31 }
  0x81   :  { %591 = vmatmul.bf16.gmra.mxu0 %v1315_v38 }
  0x82   :  { %690 = vmatmul.bf16.gmra.mxu1 %v1319_v39  ;;  %740 = vmatmul.bf16.gmra.mxu3 %v1439_v40 }
  0x8a   :  { %1536 = vmatmul.msk.bf16.gmra.mxu2 %vm498_vm0, %v1347_v43  ;;  %v1576_v43 = vld [vmem:[%s2886_s0 + $0xf4] sm:$0xf] }
  0x8d   :  { %v760_v50 = vpop.f32.mrf.mxu2 }
  0x91   :  { %596 = vmatmul.bf16.gmra.mxu0 %v1327_v51  ;;  %v1367_v51 = vor.u32 %v1576_v43, %v1364_v44 }
  0x92   :  { %695 = vmatmul.bf16.gmra.mxu1 %v1331_v52  ;;  %745 = vmatmul.bf16.gmra.mxu3 %v1451_v53  ;;  %v1455_v52 = vor.u32 %v1599_v46, %v1454_v45 }
  0x95   :  { %v762_v56 = vpop.f32.mrf.mxu2 }
  0x9a   :  { %1537 = vmatmul.msk.bf16.gmra.mxu2 %vm498_vm0, %v1359_v57  ;;  %v1584_v57 = vld [vmem:[%s2886_s0 + $0x130] sm:$0xf0] }
  0x9d   :  { %v765_v0 = vpop.f32.mrf.mxu2 }
  0x9e   :  { %v562_v2 = vpop.f32.mrf.mxu0 }
  0x9f   :  { %v661_v5 = vpop.f32.mrf.mxu1 }
  0xa0   :  { %v662_v6 = vadd.f32 %v661_v5, %v562_v2  ;;  %v1580_v2 = vld [vmem:[%s2886_s0 + $0x110] sm:$0xf0] }
  0xa1   :  { %601 = vmatmul.bf16.gmra.mxu0 %v1339_v1  ;;  %v1374_v1 = vld [vmem:[%s2886_s0 + $0x108] sm:$0xf] }
  0xa2   :  { %v2054_v7 = vadd.f32 %v760_v50, %v662_v6  ;;  %700 = vmatmul.bf16.gmra.mxu1 %v1343_v3  ;;  %1543 = vmatmul.msk.bf16.vlgmr.msra.gmra.mxu3 %vm498_vm0, %v1431_v4  ;;  %v1579_v3 = vld [vmem:[%s2886_s0 + $0x10c] sm:$0xf]  ;;  %v1376_v4 = vld [vmem:[%s2886_s0 + $0x114] sm:$0xf0]  ;;  %v1375_v8 = vor.u32 %v1580_v2, %v1374_v1 }
  0xa5   :  { %v2063_v10 = vpop.f32.mrf.mxu3  ;;  %v767_v11 = vpop.f32.mrf.mxu2 }
  0xa6   :  { %v564_v12 = vpop.f32.mrf.mxu0 }
  0xa7   :  { %v663_v14 = vpop.f32.mrf.mxu1 }
  0xa8   :  { %v664_v15 = vadd.f32 %v663_v14, %v564_v12 }
  0xaa   :  { %v2065_v16 = vadd.f32 %v762_v56, %v664_v15  ;;  %1538 = vmatmul.msk.bf16.gmra.mxu2 %vm498_vm0, %v1371_v13  ;;  %v1394_v56 = vld [vmem:[%s2886_s0 + $0x128] sm:$0xf]  ;;  %v1406_v15 = vld [vmem:[%s2886_s0 + $0x140] sm:$0xf] }
  0xab   :  { %v1395_v61 = vor.u32 %v1584_v57, %v1394_v56  ;;  %v1407_v21 = vor.u32 %v1587_v17, %v1406_v15 }
  0xad   :  { %v2086_v23 = vpop.f32.mrf.mxu3  ;;  %v770_v24 = vpop.f32.mrf.mxu2 }
  0xae   :  { %v567_v26 = vpop.f32.mrf.mxu0 }
  0xaf   :  { %v666_v29 = vpop.f32.mrf.mxu1 }
  0xb0   :  { %v667_v30 = vadd.f32 %v666_v29, %v567_v26  ;;  %v1386_v26 = vld [vmem:[%s2886_s0 + $0x120] sm:$0xf]  ;;  %v1388_v29 = vld [vmem:[%s2886_s0 + $0x12c] sm:$0xf0] }
  0xb1   :  { %606 = vmatmul.bf16.gmra.mxu0 %v1351_v25 }
  0xb2   :  { %v2088_v31 = vadd.f32 %v765_v0, %v667_v30  ;;  %705 = vmatmul.bf16.gmra.mxu1 %v1355_v27  ;;  %1544 = vmatmul.msk.bf16.gmra.mxu3 %vm498_vm0, %v1443_v28  ;;  %v1583_v27 = vld [vmem:[%s2886_s0 + $0x128] sm:$0xf0]  ;;  %v1582_v28 = vld [vmem:[%s2886_s0 + $0x124] sm:$0xf] }
  0xb3   :  { %v1387_v33 = vor.u32 %v1583_v27, %v1386_v26 }
  0xb5   :  { %v2097_v34 = vpop.f32.mrf.mxu3  ;;  %v772_v35 = vpop.f32.mrf.mxu2 }
  0xb6   :  { %v569_v36 = vpop.f32.mrf.mxu0 }
  0xb7   :  { %v668_v38 = vpop.f32.mrf.mxu1 }
  0xb8   :  { %v669_v39 = vadd.f32 %v668_v38, %v569_v36  ;;  %v1391_v36 = vor.u32 %v1582_v28, %v1388_v29 }
  0xba   :  { %v2099_v40 = vadd.f32 %v767_v11, %v669_v39  ;;  %1539 = vmatmul.msk.bf16.gmra.mxu2 %vm498_vm0, %v1383_v37  ;;  %v1379_v11 = vor.u32 %v1579_v3, %v1376_v4 }
  0xbd   :  { %v2120_v47 = vpop.f32.mrf.mxu3  ;;  %v775_v48 = vpop.f32.mrf.mxu2 }
  0xbe   :  { %v572_v50 = vpop.f32.mrf.mxu0 }
  0xbf   :  { %v671_v53 = vpop.f32.mrf.mxu1 }
  0xc0   :  { %v672_v54 = vadd.f32 %v671_v53, %v572_v50  ;;  %v1586_v53 = vld [vmem:[%s2886_s0 + $0x140] sm:$0xf0] }
  0xc1   :  { %611 = vmatmul.bf16.gmra.mxu0 %v1363_v49 }
  0xc2   :  { %v2122_v55 = vadd.f32 %v770_v24, %v672_v54  ;;  %710 = vmatmul.bf16.gmra.mxu1 %v1367_v51  ;;  %1545 = vmatmul.msk.bf16.gmra.mxu3 %vm498_vm0, %v1455_v52  ;;  %v1398_v52 = vld [vmem:[%s2886_s0 + $0x138] sm:$0xf]  ;;  %v1400_v54 = vld [vmem:[%s2886_s0 + $0x144] sm:$0xf0] }
  0xc5   :  { %v2131_v58 = vpop.f32.mrf.mxu3  ;;  %v777_v59 = vpop.f32.mrf.mxu2 }
  0xc6   :  { %v574_v60 = vpop.f32.mrf.mxu0 }
  0xc7   :  { %v673_v62 = vpop.f32.mrf.mxu1 }
  0xc8   :  { %v674_v63 = vadd.f32 %v673_v62, %v574_v60 }
  0xca   :  { %v2133_v0 = vadd.f32 %v772_v35, %v674_v63  ;;  %1540 = vmatmul.msk.bf16.gmra.mxu2 %vm498_vm0, %v1395_v61 }
  0xcd   :  { %v2148_v5 = vpop.f32.mrf.mxu3  ;;  %v780_v6 = vpop.f32.mrf.mxu2 }
  0xce   :  { %v577_v9 = vpop.f32.mrf.mxu0 }
  0xcf   :  { %v676_v12 = vpop.f32.mrf.mxu1 }
  0xd0   :  { %v677_v13 = vadd.f32 %v676_v12, %v577_v9 }
  0xd1   :  { %616 = vmatmul.bf16.gmra.mxu0 %v1375_v8 }
  0xd2   :  { %v2150_v14 = vadd.f32 %v775_v48, %v677_v13  ;;  %715 = vmatmul.bf16.gmra.mxu1 %v1379_v11  ;;  %v1419_v48 = vor.u32 %v1590_v42, %v1418_v41 }
  0xd4   :  { %2892 = vst [vmem:[#allocation2_spill] sm:$0xff] %v2150_v14 }
  0xd5   :  { %v2158_v18 = vpop.f32.mrf.mxu3  ;;  %v782_v19 = vpop.f32.mrf.mxu2 }
  0xd6   :  { %v579_v20 = vpop.f32.mrf.mxu0 }
  0xd7   :  { %v678_v22 = vpop.f32.mrf.mxu1 }
  0xd8   :  { %v679_v24 = vadd.f32 %v678_v22, %v579_v20 }
  0xda   :  { %v2160_v25 = vadd.f32 %v777_v59, %v679_v24  ;;  %1541 = vmatmul.msk.bf16.gmra.mxu2 %vm498_vm0, %v1407_v21  ;;  %v1399_v59 = vor.u32 %v1586_v53, %v1398_v52 }
  0xdc   :  { %2893 = vst [vmem:[#allocation3_spill] sm:$0xff] %v2160_v25 }
  0xdd   :  { %v2175_v30 = vpop.f32.mrf.mxu3  ;;  %v785_v32 = vpop.f32.mrf.mxu2 }
  0xde   :  { %v582_v35 = vpop.f32.mrf.mxu0 }
  0xdf   :  { %v681_v37 = vpop.f32.mrf.mxu1 }
  0xe0   :  { %v682_v38 = vadd.f32 %v681_v37, %v582_v35 }
  0xe1   :  { %621 = vmatmul.bf16.gmra.mxu0 %v1387_v33 }
  0xe2   :  { %v2177_v39 = vadd.f32 %v780_v6, %v682_v38  ;;  %720 = vmatmul.bf16.gmra.mxu1 %v1391_v36 }
  0xe4   :  { %2894 = vst [vmem:[#allocation4_spill] sm:$0xff] %v2177_v39 }
  0xe5   :  { %v731_v43 = vpop.f32.mrf.mxu3  ;;  %v787_v44 = vpop.f32.mrf.mxu2 }
  0xe6   :  { %v2186_v45 = vadd.f32 %v731_v43, %v2063_v10  ;;  %v584_v46 = vpop.f32.mrf.mxu0  ;;  %v1585_v10 = vld [vmem:[%s2886_s0 + $0x13c] sm:$0xf] }
  0xe7   :  { %v683_v49 = vpop.f32.mrf.mxu1  ;;  %v1403_v62 = vor.u32 %v1585_v10, %v1400_v54 }
  0xe8   :  { %v684_v50 = vadd.f32 %v683_v49, %v584_v46 }
  0xea   :  { %v2188_v51 = vadd.f32 %v782_v19, %v684_v50  ;;  %1542 = vmatmul.msk.bf16.gmra.mxu2 %vm498_vm0, %v1419_v48 }
  0xec   :  { %2895 = vst [vmem:[#allocation5_spill] sm:$0xff] %v2188_v51 }
  0xed   :  { %v733_v56 = vpop.f32.mrf.mxu3  ;;  %v790_v57 = vpop.f32.mrf.mxu2 }
  0xee   :  { %v2204_v60 = vadd.f32 %v733_v56, %v2086_v23  ;;  %v587_v61 = vpop.f32.mrf.mxu0 }
  0xef   :  { %v686_v63 = vpop.f32.mrf.mxu1 }
  0xf0   :  { %v687_v1 = vadd.f32 %v686_v63, %v587_v61 }
  0xf1   :  { %626 = vmatmul.bf16.gmra.mxu0 %v1399_v59 }
  0xf2   :  { %v2206_v2 = vadd.f32 %v785_v32, %v687_v1  ;;  %725 = vmatmul.bf16.gmra.mxu1 %v1403_v62 }
  0xf5   :  { %v736_v3 = vpop.f32.mrf.mxu3  ;;  %v792_v4 = vpop.f32.mrf.mxu2 }
  0xf6   :  { %v2209_v6 = vadd.f32 %v736_v3, %v2097_v34  ;;  %v589_v8 = vpop.f32.mrf.mxu0 }
  0xf7   :  { %v688_v9 = vpop.f32.mrf.mxu1 }
  0xf8   :  { %v689_v11 = vadd.f32 %v688_v9, %v589_v8  ;;  %v893_v8 = vmul.f32 %v2065_v16, %v2065_v16 }
  0xfa   :  { %v2211_v12 = vadd.f32 %v787_v44, %v689_v11 }
  0xfd   :  { %v738_v23 = vpop.f32.mrf.mxu3  ;;  %v795_v13 = vpop.f32.mrf.mxu2 }
  0xfe   :  { %v2214_v15 = vadd.f32 %v738_v23, %v2120_v47  ;;  %v592_v17 = vpop.f32.mrf.mxu0  ;;  %v892_v23 = vmul.f32 %v2054_v7, %v2054_v7 }
  0xff   :  { %v691_v19 = vpop.f32.mrf.mxu1 }
 0x100   :  { %v692_v20 = vadd.f32 %v691_v19, %v592_v17  ;;  %v850_v19 = vadd.f32 %v2065_v16, %v2054_v7 }
 0x102   :  { %v2216_v21 = vadd.f32 %v790_v57, %v692_v20  ;;  %v928_v20 = vadd.f32 %v893_v8, %v892_v23  ;;  %v899_v23 = vmul.f32 %v2160_v25, %v2160_v25 }
 0x105   :  { %v741_v22 = vpop.f32.mrf.mxu3  ;;  %v797_v24 = vpop.f32.mrf.mxu2 }
 0x106   :  { %v2219_v34 = vadd.f32 %v741_v22, %v2131_v58  ;;  %v594_v26 = vpop.f32.mrf.mxu0  ;;  %v895_v22 = vmul.f32 %v2099_v40, %v2099_v40 }
 0x107   :  { %v693_v27 = vpop.f32.mrf.mxu1 }
 0x108   :  { %v694_v28 = vadd.f32 %v693_v27, %v594_v26  ;;  %v851_v26 = vadd.f32 %v850_v19, %v2088_v31 }
 0x10a   :  { %v2221_v29 = vadd.f32 %v792_v4, %v694_v28  ;;  %v896_v28 = vmul.f32 %v2122_v55, %v2122_v55 }
 0x10d   :  { %v800_v32 = vpop.f32.mrf.mxu2  ;;  %v2241_v57 = vpop.f32.mrf.mxu3 }
 0x10e   :  { %v597_v33 = vpop.f32.mrf.mxu0 }
 0x10f   :  { %v696_v35 = vpop.f32.mrf.mxu1 }
 0x110   :  { %v697_v47 = vadd.f32 %v696_v35, %v597_v33  ;;  %v897_v35 = vmul.f32 %v2133_v0, %v2133_v0 }
 0x112   :  { %v2223_v36 = vadd.f32 %v795_v13, %v697_v47  ;;  %v894_v13 = vmul.f32 %v2088_v31, %v2088_v31 }
 0x114   :  { %v929_v27 = vadd.f32 %v928_v20, %v894_v13  ;;  %v900_v20 = vmul.f32 %v2177_v39, %v2177_v39 }
 0x115   :  { %v2225_v37 = vpop.f32.mrf.mxu2  ;;  %v2253_v3 = vpop.f32.mrf.mxu3 }
 0x116   :  { %v599_v38 = vpop.f32.mrf.mxu0  ;;  %v930_v33 = vadd.f32 %v929_v27, %v895_v22 }
 0x117   :  { %v698_v41 = vpop.f32.mrf.mxu1 }
 0x118   :  { %v699_v42 = vadd.f32 %v698_v41, %v599_v38 }
 0x11a   :  { %v2227_v43 = vadd.f32 %v797_v24, %v699_v42  ;;  %v931_v42 = vadd.f32 %v930_v33, %v896_v28  ;;  %v901_v28 = vmul.f32 %v2188_v51, %v2188_v51 }
 0x11c   :  { %v932_v8 = vadd.f32 %v931_v42, %v897_v35  ;;  %v902_v42 = vmul.f32 %v2206_v2, %v2206_v2 }
 0x11d   :  { %v2229_v58 = vpop.f32.mrf.mxu2  ;;  %v2273_v24 = vpop.f32.mrf.mxu3 }
 0x11e   :  { %v602_v44 = vpop.f32.mrf.mxu0 }
 0x11f   :  { %v701_v46 = vpop.f32.mrf.mxu1 }
 0x120   :  { %v702_v48 = vadd.f32 %v701_v46, %v602_v44  ;;  %v898_v44 = vmul.f32 %v2150_v14, %v2150_v14 }
 0x122   :  { %v2231_v49 = vadd.f32 %v800_v32, %v702_v48  ;;  %v852_v32 = vadd.f32 %v851_v26, %v2099_v40  ;;  %v933_v19 = vadd.f32 %v932_v8, %v898_v44 }
 0x124   :  { %v853_v38 = vadd.f32 %v852_v32, %v2122_v55  ;;  %v934_v27 = vadd.f32 %v933_v19, %v899_v23 }
 0x125   :  { %v2233_v50 = vpop.f32.mrf.mxu2  ;;  %v2292_v22 = vpop.f32.mrf.mxu3 }
 0x126   :  { %v604_v52 = vpop.f32.mrf.mxu0  ;;  %v854_v48 = vadd.f32 %v853_v38, %v2133_v0  ;;  %v935_v38 = vadd.f32 %v934_v27, %v900_v20  ;;  %v905_v20 = vmul.f32 %v2221_v29, %v2221_v29 }
 0x127   :  { %v703_v53 = vpop.f32.mrf.mxu1 }
 0x128   :  { %v855_v13 = vadd.f32 %v854_v48, %v2150_v14  ;;  %v936_v8 = vadd.f32 %v935_v38, %v901_v28  ;;  %v704_v27 = vadd.f32 %v703_v53, %v604_v52  ;;  %v907_v52 = vmul.f32 %v2227_v43, %v2227_v43 }
 0x12a   :  { %v856_v26 = vadd.f32 %v855_v13, %v2160_v25  ;;  %v903_v13 = vmul.f32 %v2211_v12, %v2211_v12  ;;  %v937_v19 = vadd.f32 %v936_v8, %v902_v42  ;;  %v904_v25 = vmul.f32 %v2216_v21, %v2216_v21 }
 0x12b   :  { %v906_v42 = vmul.f32 %v2223_v36, %v2223_v36  ;;  %v2324_v53 = vadd.f32 %v2225_v37, %v704_v27 }
 0x12c   :  { %v857_v33 = vadd.f32 %v856_v26, %v2177_v39  ;;  %v938_v39 = vadd.f32 %v937_v19, %v903_v13 }
 0x12d   :  { %v2235_v10 = vpop.f32.mrf.mxu2  ;;  %v2311_v14 = vpop.f32.mrf.mxu3  ;;  %v909_v37 = vmul.f32 %v2324_v53, %v2324_v53 }
 0x12e   :  { %v2237_v54 = vpop.f32.mrf.mxu0  ;;  %v858_v48 = vadd.f32 %v857_v33, %v2188_v51  ;;  %v939_v51 = vadd.f32 %v938_v39, %v904_v25 }
 0x12f   :  { %v2239_v56 = vpop.f32.mrf.mxu1 }
 0x130   :  { %v859_v23 = vadd.f32 %v858_v48, %v2206_v2  ;;  %v707_v48 = vadd.f32 %v2239_v56, %v2237_v54 }
 0x132   :  { %v860_v26 = vadd.f32 %v859_v23, %v2211_v12  ;;  %v940_v23 = vadd.f32 %v939_v51, %v905_v20  ;;  %v2332_v54 = vadd.f32 %v2229_v58, %v707_v48 }
 0x134   :  { %v861_v28 = vadd.f32 %v860_v26, %v2216_v21  ;;  %v941_v39 = vadd.f32 %v940_v23, %v906_v42  ;;  %v908_v26 = vmul.f32 %v2231_v49, %v2231_v49 }
 0x135   :  { %v2243_v59 = vpop.f32.mrf.mxu2 }
 0x136   :  { %v2245_v61 = vpop.f32.mrf.mxu0  ;;  %v862_v13 = vadd.f32 %v861_v28, %v2221_v29  ;;  %v942_v20 = vadd.f32 %v941_v39, %v907_v52 }
 0x137   :  { %v2247_v62 = vpop.f32.mrf.mxu1 }
 0x138   :  { %v709_v19 = vadd.f32 %v2247_v62, %v2245_v61  ;;  %v863_v25 = vadd.f32 %v862_v13, %v2223_v36  ;;  %v943_v42 = vadd.f32 %v942_v20, %v908_v26 }
 0x13a   :  { %v864_v56 = vadd.f32 %v863_v25, %v2227_v43  ;;  %v2340_v61 = vadd.f32 %v2233_v50, %v709_v19  ;;  %v944_v52 = vadd.f32 %v943_v42, %v909_v37 }
 0x13c   :  { %v865_v27 = vadd.f32 %v864_v56, %v2231_v49  ;;  %v911_v19 = vmul.f32 %v2340_v61, %v2340_v61 }
 0x13d   :  { %v2249_v63 = vpop.f32.mrf.mxu2 }
 0x13e   :  { %v2251_v1 = vpop.f32.mrf.mxu0  ;;  %v866_v50 = vadd.f32 %v865_v27, %v2324_v53 }
 0x13f   :  { %v2255_v4 = vpop.f32.mrf.mxu1 }
 0x140   :  { %v712_v51 = vadd.f32 %v2255_v4, %v2251_v1  ;;  %v910_v1 = vmul.f32 %v2332_v54, %v2332_v54  ;;  %v2347_v4 = vpop.f32.mrf.mxu3 }
 0x142   :  { %v2350_v48 = vadd.f32 %v2235_v10, %v712_v51  ;;  %v945_v39 = vadd.f32 %v944_v52, %v910_v1 }
 0x144   :  { %v912_v26 = vmul.f32 %v2350_v48, %v2350_v48 }
 0x145   :  { %v2259_v9 = vpop.f32.mrf.mxu2 }
 0x146   :  { %v2261_v11 = vpop.f32.mrf.mxu0 }
 0x147   :  { %v2267_v17 = vpop.f32.mrf.mxu1 }
 0x148   :  { %v714_v28 = vadd.f32 %v2267_v17, %v2261_v11  ;;  %v867_v11 = vadd.f32 %v866_v50, %v2332_v54  ;;  %v842_v1 = vpop.f32.mrf.mxu3 }
 0x14a   :  { %v2357_v17 = vadd.f32 %v2243_v59, %v714_v28  ;;  %v868_v10 = vadd.f32 %v867_v11, %v2340_v61 }
 0x14c   :  { %v869_v56 = vadd.f32 %v868_v10, %v2350_v48  ;;  %v913_v20 = vmul.f32 %v2357_v17, %v2357_v17 }
 0x14d   :  { %v2281_v47 = vpop.f32.mrf.mxu2 }
 0x14e   :  { %v617_v41 = vpop.f32.mrf.mxu0  ;;  %v870_v42 = vadd.f32 %v869_v56, %v2357_v17 }
 0x14f   :  { %v716_v46 = vpop.f32.mrf.mxu1 }
 0x150   :  { %v717_v23 = vadd.f32 %v716_v46, %v617_v41  ;;  %v946_v46 = vadd.f32 %v945_v39, %v911_v19 }
 0x152   :  { %v2363_v51 = vadd.f32 %v2249_v63, %v717_v23  ;;  %v947_v37 = vadd.f32 %v946_v46, %v912_v26 }
 0x154   :  { %v914_v63 = vmul.f32 %v2363_v51, %v2363_v51  ;;  %v948_v50 = vadd.f32 %v947_v37, %v913_v20  ;;  %v871_v23 = vadd.f32 %v870_v42, %v2363_v51 }
 0x155   :  { %v2297_v32 = vpop.f32.mrf.mxu2 }
 0x156   :  { %v619_v35 = vpop.f32.mrf.mxu0 }
 0x157   :  { %v718_v44 = vpop.f32.mrf.mxu1 }
 0x158   :  { %v719_v25 = vadd.f32 %v718_v44, %v619_v35 }
 0x15a   :  { %v2369_v59 = vadd.f32 %v2259_v9, %v719_v25 }
 0x15c   :  { %v915_v9 = vmul.f32 %v2369_v59, %v2369_v59  ;;  %v872_v52 = vadd.f32 %v871_v23, %v2369_v59  ;;  %v2409_v23 = vadd.f32 %v2292_v22, %v2209_v6  ;;  %v744_v6 = vadd.f32 %v2241_v57, %v2148_v5 }
 0x15d   :  { %v2313_v33 = vpop.f32.mrf.mxu2 }
 0x15e   :  { %v622_v38 = vpop.f32.mrf.mxu0  ;;  %v922_v22 = vmul.f32 %v2409_v23, %v2409_v23 }
 0x15f   :  { %v721_v8 = vpop.f32.mrf.mxu1 }
 0x160   :  { %v722_v41 = vadd.f32 %v721_v8, %v622_v38 }
 0x162   :  { %v2375_v38 = vadd.f32 %v2281_v47, %v722_v41 }
 0x164   :  { %v916_v19 = vmul.f32 %v2375_v38, %v2375_v38  ;;  %v873_v25 = vadd.f32 %v872_v52, %v2375_v38 }
 0x165   :  { %v827_v62 = vpop.f32.mrf.mxu2 }
 0x166   :  { %v624_v58 = vpop.f32.mrf.mxu0 }
 0x167   :  { %v723_v13 = vpop.f32.mrf.mxu1 }
 0x168   :  { %v724_v35 = vadd.f32 %v723_v13, %v624_v58  ;;  %v949_v13 = vadd.f32 %v948_v50, %v914_v63 }
 0x16a   :  { %v2381_v58 = vadd.f32 %v2297_v32, %v724_v35  ;;  %v950_v11 = vadd.f32 %v949_v13, %v915_v9  ;;  %v2416_v9 = vadd.f32 %v2311_v14, %v2214_v15  ;;  %v747_v15 = vadd.f32 %v2253_v3, %v2158_v18 }
 0x16c   :  { %v917_v39 = vmul.f32 %v2381_v58, %v2381_v58  ;;  %v951_v41 = vadd.f32 %v950_v11, %v916_v19  ;;  %v874_v32 = vadd.f32 %v873_v25, %v2381_v58  ;;  %v2427_v19 = vadd.f32 %v2347_v4, %v2219_v34 }
 0x16d   :  { %v830_v27 = vpop.f32.mrf.mxu2  ;;  %v923_v25 = vmul.f32 %v2416_v9, %v2416_v9 }
 0x16e   :  { %v627_v44 = vpop.f32.mrf.mxu0  ;;  %v952_v35 = vadd.f32 %v951_v41, %v917_v39  ;;  %v2434_v39 = vadd.f32 %v842_v1, %v744_v6  ;;  %v924_v34 = vmul.f32 %v2427_v19, %v2427_v19 }
 0x16f   :  { %v726_v28 = vpop.f32.mrf.mxu1 }
 0x170   :  { %v727_v8 = vadd.f32 %v726_v28, %v627_v44  ;;  %v845_v28 = vpop.f32.mrf.mxu3  ;;  %v925_v3 = vmul.f32 %v2434_v39, %v2434_v39 }
 0x171   :  { %v2441_v4 = vadd.f32 %v845_v28, %v747_v15 }
 0x172   :  { %v2387_v47 = vadd.f32 %v2313_v33, %v727_v8  ;;  %v2396_v33 = vadd.f32 %v830_v27, %v2186_v45 }
 0x174   :  { %v918_v46 = vmul.f32 %v2387_v47, %v2387_v47  ;;  %v875_v44 = vadd.f32 %v874_v32, %v2387_v47  ;;  %v920_v45 = vmul.f32 %v2396_v33, %v2396_v33 }
 0x175   :  { %v832_v20 = vpop.f32.mrf.mxu2 }
 0x176   :  { %v629_v26 = vpop.f32.mrf.mxu0  ;;  %v953_v42 = vadd.f32 %v952_v35, %v918_v46  ;;  %v2402_v63 = vadd.f32 %v832_v20, %v2204_v60 }
 0x177   :  { %v728_v10 = vpop.f32.mrf.mxu1 }
 0x178   :  { %v729_v56 = vadd.f32 %v728_v10, %v629_v26  ;;  %v921_v60 = vmul.f32 %v2402_v63, %v2402_v63  ;;  %v749_v26 = vadd.f32 %v2273_v24, %v2175_v30  ;;  %v847_v10 = vpop.f32.mrf.mxu3  ;;  %v926_v30 = vmul.f32 %v2441_v4, %v2441_v4 }
 0x17a   :  { %v2399_v37 = vadd.f32 %v827_v62, %v729_v56  ;;  %v2446_v1 = vadd.f32 %v847_v10, %v749_v26 }
 0x17c   :  { %v876_v8 = vadd.f32 %v875_v44, %v2399_v37  ;;  %v919_v50 = vmul.f32 %v2399_v37, %v2399_v37  ;;  %v927_v20 = vmul.f32 %v2446_v1, %v2446_v1 }
 0x17e   :  { %v877_v62 = vadd.f32 %v876_v8, %v2396_v33  ;;  %v954_v27 = vadd.f32 %v953_v42, %v919_v50 }
 0x180   :  { %v878_v13 = vadd.f32 %v877_v62, %v2402_v63  ;;  %v955_v52 = vadd.f32 %v954_v27, %v920_v45 }
 0x182   :  { %v879_v11 = vadd.f32 %v878_v13, %v2409_v23  ;;  %v956_v14 = vadd.f32 %v955_v52, %v921_v60 }
 0x184   :  { %v880_v5 = vadd.f32 %v879_v11, %v2416_v9  ;;  %v957_v57 = vadd.f32 %v956_v14, %v922_v22 }
 0x186   :  { %v881_v41 = vadd.f32 %v880_v5, %v2427_v19  ;;  %v958_v18 = vadd.f32 %v957_v57, %v923_v25 }
 0x188   :  { %v882_v32 = vadd.f32 %v881_v41, %v2434_v39  ;;  %v959_v46 = vadd.f32 %v958_v18, %v924_v34 }
 0x18a   :  { %v883_v24 = vadd.f32 %v882_v32, %v2441_v4  ;;  %v960_v56 = vadd.f32 %v959_v46, %v925_v3 }
 0x18c   :  { %v884_v35 = vadd.f32 %v883_v24, %v2446_v1  ;;  %v961_v44 = vadd.f32 %v960_v56, %v926_v30 }
 0x18e   :  { %v885_v28 = vrot.slane %v884_v35, 4  ;;  %v962_v42 = vadd.f32 %v961_v44, %v927_v20 }
 0x190   :  { %v886_v8 = vadd.f32 %v885_v28, %v884_v35  ;;  %v963_v50 = vrot.slane %v962_v42, 4 }
 0x192   :  { %v887_v45 = vrot.slane %v886_v8, 2  ;;  %v964_v62 = vadd.f32 %v963_v50, %v962_v42 }
 0x194   :  { %v888_v27 = vadd.f32 %v887_v45, %v886_v8  ;;  %v965_v60 = vrot.slane %v964_v62, 2 }
 0x196   :  { %v889_v13 = vrot.slane %v888_v27, 1  ;;  %v966_v52 = vadd.f32 %v965_v60, %v964_v62 }
 0x198   :  { %v890_v6 = vadd.f32 %v889_v13, %v888_v27  ;;  %v967_v22 = vrot.slane %v966_v52, 1  ;;  %v2896_v13 = vld [vmem:[#allocation2_spill] sm:$0xff] }
 0x19a   :  { %v2455_v11 = vmul.f32 0.0034722222, %v890_v6  ;;  %v968_v14 = vadd.f32 %v967_v22, %v966_v52 }
 0x19c   :  { %v969_v15 = vmul.f32 0.0034722222, %v968_v14  ;;  %v970_v25 = vmul.f32 %v2455_v11, %v2455_v11  ;;  %v997_v26 = vsub.f32 %v2375_v38, %v2455_v11  ;;  %v998_v10 = vsub.f32 %v2381_v58, %v2455_v11 }
 0x19d   :  { %v999_v34 = vsub.f32 %v2387_v47, %v2455_v11  ;;  %v1000_v41 = vsub.f32 %v2399_v37, %v2455_v11  ;;  %v1001_v18 = vsub.f32 %v2396_v33, %v2455_v11  ;;  %v1002_v3 = vsub.f32 %v2402_v63, %v2455_v11 }
 0x19e   :  { %v971_v5 = vsub.f32 %v969_v15, %v970_v25  ;;  %v1004_v32 = vsub.f32 %v2416_v9, %v2455_v11  ;;  %v1005_v46 = vsub.f32 %v2427_v19, %v2455_v11  ;;  %v1006_v30 = vsub.f32 %v2434_v39, %v2455_v11 }
 0x19f   :  { %v1007_v24 = vsub.f32 %v2441_v4, %v2455_v11  ;;  %v1008_v56 = vsub.f32 %v2446_v1, %v2455_v11  ;;  %v973_v42 = vsub.f32 %v2054_v7, %v2455_v11  ;;  %v974_v8 = vsub.f32 %v2065_v16, %v2455_v11  ;;  %v2897_v7 = vld [vmem:[#allocation3_spill] sm:$0xff]  ;;  %v2898_v16 = vld [vmem:[#allocation4_spill] sm:$0xff] }
 0x1a0   :  { %v972_v57 = vmax.f32 %v971_v5, 0.0  ;;  %v975_v50 = vsub.f32 %v2088_v31, %v2455_v11  ;;  %v976_v45 = vsub.f32 %v2099_v40, %v2455_v11  ;;  %v977_v62 = vsub.f32 %v2122_v55, %v2455_v11  ;;  %v2899_v31 = vld [vmem:[#allocation5_spill] sm:$0xff] }
 0x1a1   :  { %v978_v27 = vsub.f32 %v2133_v0, %v2455_v11  ;;  %v979_v52 = vsub.f32 %v2896_v13, %v2455_v11  ;;  %v980_v6 = vsub.f32 %v2897_v7, %v2455_v11  ;;  %v981_v22 = vsub.f32 %v2898_v16, %v2455_v11 }
 0x1a2   :  { %v1009_v20 = vadd.f32 1e-05, %v972_v57  ;;  %v982_v14 = vsub.f32 %v2899_v31, %v2455_v11  ;;  %v983_v40 = vsub.f32 %v2206_v2, %v2455_v11  ;;  %v984_v55 = vsub.f32 %v2211_v12, %v2455_v11 }
 0x1a3   :  { %v985_v15 = vsub.f32 %v2216_v21, %v2455_v11  ;;  %v986_v25 = vsub.f32 %v2221_v29, %v2455_v11  ;;  %v987_v5 = vsub.f32 %v2223_v36, %v2455_v11  ;;  %v988_v57 = vsub.f32 %v2227_v43, %v2455_v11 }
 0x1a4   :  { %1743 = vrsqrt.f32 %v1009_v20  ;;  %v989_v2 = vsub.f32 %v2231_v49, %v2455_v11  ;;  %v990_v12 = vsub.f32 %v2324_v53, %v2455_v11  ;;  %vm1016_vm2 = vweird.f32 %v1009_v20 }
 0x1a5   :  { %v991_v21 = vsub.f32 %v2332_v54, %v2455_v11  ;;  %v992_v29 = vsub.f32 %v2340_v61, %v2455_v11  ;;  %v993_v36 = vsub.f32 %v2350_v48, %v2455_v11  ;;  %v994_v43 = vsub.f32 %v2357_v17, %v2455_v11 }
 0x1a6   :  { %v995_v49 = vsub.f32 %v2363_v51, %v2455_v11  ;;  %v996_v53 = vsub.f32 %v2369_v59, %v2455_v11 }
 0x1aa   :  { %v1744_v35 = vpop.eup %1743 }
 0x1ab   :  { %v1011_v44 = vmul.f32 %v1744_v35, %v1009_v20  ;;  %vm1017_vm1 = vweird.f32 %v1744_v35  ;;  %v1003_v20 = vsub.f32 %v2409_v23, %v2455_v11 }
 0x1ac   :  { %vm1018_vm3 = vmor %vm1016_vm2, %vm1017_vm1 }
 0x1ad   :  { %v1012_v28 = vmul.f32 %v1744_v35, %v1011_v44 }
 0x1af   :  { %v1013_v60 = vmul.f32 0.5, %v1012_v28 }
 0x1b1   :  { %v1014_v0 = vsub.f32 1.5, %v1013_v60 }
 0x1b3   :  { %v1015_v44 = vmul.f32 %v1744_v35, %v1014_v0 }
 0x1b5   :  { %v1019_v54 = vsel %vm1018_vm3, %v1744_v35, %v1015_v44 }
 0x1b6   :  { %v2531_v28 = vmul.f32 %v1019_v54, %v973_v42  ;;  %v2533_v61 = vmul.f32 %v1019_v54, %v974_v8  ;;  %v2535_v60 = vmul.f32 %v1019_v54, %v975_v50  ;;  %v2537_v48 = vmul.f32 %v1019_v54, %v976_v45 }
 0x1b7   :  { %v2539_v17 = vmul.f32 %v1019_v54, %v977_v62  ;;  %v2541_v13 = vmul.f32 %v1019_v54, %v978_v27  ;;  %v2543_v51 = vmul.f32 %v1019_v54, %v979_v52  ;;  %v2545_v7 = vmul.f32 %v1019_v54, %v980_v6 }
 0x1b8   :  { %v2547_v59 = vmul.f32 %v1019_v54, %v981_v22  ;;  %v2549_v23 = vmul.f32 %v1019_v54, %v982_v14  ;;  %v2551_v35 = vmul.f32 %v1019_v54, %v983_v40  ;;  %v2553_v42 = vmul.f32 %v1019_v54, %v984_v55 }
 0x1b9   :  { %v2555_v8 = vmul.f32 %v1019_v54, %v985_v15  ;;  %v2557_v50 = vmul.f32 %v1019_v54, %v986_v25  ;;  %v2559_v45 = vmul.f32 %v1019_v54, %v987_v5  ;;  %v2561_v62 = vmul.f32 %v1019_v54, %v988_v57 }
 0x1ba   :  { %v2563_v27 = vmul.f32 %v1019_v54, %v989_v2  ;;  %v2565_v52 = vmul.f32 %v1019_v54, %v990_v12  ;;  %v2567_v6 = vmul.f32 %v1019_v54, %v991_v21  ;;  %v2569_v16 = vmul.f32 %v1019_v54, %v992_v29 }
 0x1bb   :  { %v2571_v22 = vmul.f32 %v1019_v54, %v993_v36  ;;  %v2573_v31 = vmul.f32 %v1019_v54, %v994_v43  ;;  %v2575_v14 = vmul.f32 %v1019_v54, %v995_v49  ;;  %v2577_v40 = vmul.f32 %v1019_v54, %v996_v53 }
 0x1bc   :  { %v2582_v55 = vmul.f32 %v1019_v54, %v997_v26  ;;  %v2587_v0 = vmul.f32 %v1019_v54, %v998_v10  ;;  %v2592_v15 = vmul.f32 %v1019_v54, %v999_v34  ;;  %v2597_v25 = vmul.f32 %v1019_v54, %v1000_v41 }
 0x1bd   :  { %v2602_v38 = vmul.f32 %v1019_v54, %v1001_v18  ;;  %v2607_v58 = vmul.f32 %v1019_v54, %v1002_v3  ;;  %v2609_v26 = vmul.f32 %v1019_v54, %v1003_v20  ;;  %v2614_v47 = vmul.f32 %v1019_v54, %v1004_v32 }
 0x1be   :  { %v2619_v37 = vmul.f32 %v1019_v54, %v1005_v46  ;;  %v2624_v33 = vmul.f32 %v1019_v54, %v1006_v30  ;;  %v2629_v63 = vmul.f32 %v1019_v54, %v1007_v24  ;;  %v2634_v9 = vmul.f32 %v1019_v54, %v1008_v56 }
 0x1bf   :  { %vm1056_vm4 = vcmp.ge.f32.partialorder %v2531_v28, 0.0  ;;  %vm1057_vm5 = vcmp.ge.f32.partialorder %v2533_v61, 0.0  ;;  %vm1058_vm6 = vcmp.ge.f32.partialorder %v2535_v60, 0.0  ;;  %vm1059_vm7 = vcmp.ge.f32.partialorder %v2537_v48, 0.0 }
 0x1c0   :  { %vm1060_vm8 = vcmp.ge.f32.partialorder %v2539_v17, 0.0  ;;  %vm1061_vm9 = vcmp.ge.f32.partialorder %v2541_v13, 0.0  ;;  %vm1062_vm10 = vcmp.ge.f32.partialorder %v2543_v51, 0.0  ;;  %vm1063_vm11 = vcmp.ge.f32.partialorder %v2545_v7, 0.0 }
 0x1c1   :  { %vm1064_vm12 = vcmp.ge.f32.partialorder %v2547_v59, 0.0  ;;  %v1092_v19 = vmul.f32 0.01, %v2531_v28  ;;  %v1093_v39 = vmul.f32 0.01, %v2533_v61  ;;  %vm1067_vm15 = vcmp.ge.f32.partialorder %v2553_v42, 0.0 }
 0x1c2   :  { %v1094_v4 = vmul.f32 0.01, %v2535_v60  ;;  %vm1068_vm0 = vcmp.ge.f32.partialorder %v2555_v8, 0.0  ;;  %v1095_v1 = vmul.f32 0.01, %v2537_v48  ;;  %vm1073_vm14 = vcmp.ge.f32.partialorder %v2565_v52, 0.0 }
 0x1c3   :  { %v1096_v11 = vmul.f32 0.01, %v2539_v17  ;;  %v1097_v10 = vmul.f32 0.01, %v2541_v13  ;;  %v1098_v34 = vmul.f32 0.01, %v2543_v51  ;;  %v2666_v3 = vsel %vm1056_vm4, %v2531_v28, %v1092_v19 }
 0x1c4   :  { %v1099_v41 = vmul.f32 0.01, %v2545_v7  ;;  %v1100_v18 = vmul.f32 0.01, %v2547_v59  ;;  %vm1077_vm13 = vcmp.ge.f32.partialorder %v2573_v31, 0.0  ;;  %v2678_v24 = vsel %vm1057_vm5, %v2533_v61, %v1093_v39 }
 0x1c5   :  { %v1101_v32 = vmul.f32 0.01, %v2549_v23  ;;  %v1102_v46 = vmul.f32 0.01, %v2551_v35  ;;  %v1103_v30 = vmul.f32 0.01, %v2553_v42  ;;  %v2690_v2 = vsel %vm1058_vm6, %v2535_v60, %v1094_v4 }
 0x1c6   :  { %2900 = vst [vmem:[#allocation2_spill] sm:$0xff] %v2678_v24  ;;  %vm1081_vm3 = vcmp.ge.f32.partialorder %v2587_v0, 0.0  ;;  %v1104_v56 = vmul.f32 0.01, %v2555_v8  ;;  %v1105_v5 = vmul.f32 0.01, %v2557_v50  ;;  %v2702_v29 = vsel %vm1059_vm7, %v2537_v48, %v1095_v1 }
 0x1c7   :  { %v1106_v57 = vmul.f32 0.01, %v2559_v45  ;;  %2901 = vst [vmem:[#allocation3_spill] sm:$0xff] %v2690_v2  ;;  %vm1085_vm2 = vcmp.ge.f32.partialorder %v2607_v58, 0.0  ;;  %v1107_v12 = vmul.f32 0.01, %v2561_v62  ;;  %v2714_v53 = vsel %vm1060_vm8, %v2539_v17, %v1096_v11 }
 0x1c8   :  { %v1108_v44 = vmul.f32 0.01, %v2563_v27  ;;  %v1109_v21 = vmul.f32 0.01, %v2565_v52  ;;  %2902 = vst [vmem:[#allocation4_spill] sm:$0xff] %v2702_v29  ;;  %vm1087_vm5 = vcmp.ge.f32.partialorder %v2614_v47, 0.0  ;;  %v1133_v61 = vsel %vm1061_vm9, %v2541_v13, %v1097_v10 }
 0x1c9   :  { %vm1088_vm4 = vcmp.ge.f32.partialorder %v2619_v37, 0.0  ;;  %vm1089_vm1 = vcmp.ge.f32.partialorder %v2624_v33, 0.0  ;;  %v1110_v36 = vmul.f32 0.01, %v2567_v6  ;;  %v1111_v43 = vmul.f32 0.01, %v2569_v16 }
 0x1ca   :  { %v1112_v49 = vmul.f32 0.01, %v2571_v22  ;;  %2903 = vst [vmem:[#allocation5_spill] sm:$0xff] %v2714_v53  ;;  %vm1090_vm7 = vcmp.ge.f32.partialorder %v2629_v63, 0.0  ;;  %vm1091_vm6 = vcmp.ge.f32.partialorder %v2634_v9, 0.0  ;;  %v1134_v19 = vsel %vm1062_vm10, %v2543_v51, %v1098_v34 }
 0x1cb   :  { %v1113_v20 = vmul.f32 0.01, %v2573_v31  ;;  %v1114_v54 = vmul.f32 0.01, %v2575_v14  ;;  %v1115_v28 = vmul.f32 0.01, %v2577_v40  ;;  %v1135_v13 = vsel %vm1063_vm11, %v2545_v7, %v1099_v41 }
 0x1cc   :  { %v1116_v60 = vmul.f32 0.01, %v2582_v55  ;;  %v1117_v48 = vmul.f32 0.01, %v2587_v0  ;;  %v1118_v17 = vmul.f32 0.01, %v2592_v15  ;;  %v1136_v51 = vsel %vm1064_vm12, %v2547_v59, %v1100_v18 }
 0x1cd   :  { %v1119_v39 = vmul.f32 0.01, %v2597_v25  ;;  %v1120_v4 = vmul.f32 0.01, %v2602_v38  ;;  %v1121_v1 = vmul.f32 0.01, %v2607_v58  ;;  %v1139_v24 = vsel %vm1067_vm15, %v2553_v42, %v1103_v30 }
 0x1ce   :  { %v1122_v11 = vmul.f32 0.01, %v2609_v26  ;;  %v1123_v10 = vmul.f32 0.01, %v2614_v47  ;;  %v1124_v53 = vmul.f32 0.01, %v2619_v37  ;;  %v1140_v59 = vsel %vm1068_vm0, %v2555_v8, %v1104_v56 }
 0x1cf   :  { %v1125_v34 = vmul.f32 0.01, %v2624_v33  ;;  %v1126_v29 = vmul.f32 0.01, %v2629_v63  ;;  %v1127_v2 = vmul.f32 0.01, %v2634_v9  ;;  %v1145_v8 = vsel %vm1073_vm14, %v2565_v52, %v1109_v21 }
 0x1d0   :  { %vm2904_vm8 = vcmp.ge.f32.partialorder %v2549_v23, 0.0  ;;  %vm2905_vm9 = vcmp.ge.f32.partialorder %v2551_v35, 0.0  ;;  %vm2906_vm10 = vcmp.ge.f32.partialorder %v2557_v50, 0.0  ;;  %vm2907_vm11 = vcmp.ge.f32.partialorder %v2559_v45, 0.0  ;;  %v2922_v30 = vld [vmem:[#allocation4_spill] sm:$0xff] }
 0x1d1   :  { %v1137_v7 = vsel %vm2904_vm8, %v2549_v23, %v1101_v32  ;;  %v1138_v41 = vsel %vm2905_vm9, %v2551_v35, %v1102_v46  ;;  %v1141_v18 = vsel %vm2906_vm10, %v2557_v50, %v1105_v5  ;;  %v1142_v23 = vsel %vm2907_vm11, %v2559_v45, %v1106_v57  ;;  %v2920_v32 = vld [vmem:[#allocation2_spill] sm:$0xff]  ;;  %v2923_v5 = vld [vmem:[#allocation5_spill] sm:$0xff] }
 0x1d2   :  { %vm2908_vm12 = vcmp.ge.f32.partialorder %v2561_v62, 0.0  ;;  %vm2909_vm8 = vcmp.ge.f32.partialorder %v2563_v27, 0.0  ;;  %vm2910_vm15 = vcmp.ge.f32.partialorder %v2567_v6, 0.0  ;;  %vm2911_vm0 = vcmp.ge.f32.partialorder %v2569_v16, 0.0 }
 0x1d3   :  { %v1143_v35 = vsel %vm2908_vm12, %v2561_v62, %v1107_v12  ;;  %v1144_v42 = vsel %vm2909_vm8, %v2563_v27, %v1108_v44  ;;  %v1146_v50 = vsel %vm2910_vm15, %v2567_v6, %v1110_v36  ;;  %v1147_v45 = vsel %vm2911_vm0, %v2569_v16, %v1111_v43 }
 0x1d4   :  { %vm2912_vm9 = vcmp.ge.f32.partialorder %v2571_v22, 0.0  ;;  %v1149_v27 = vsel %vm1077_vm13, %v2573_v31, %v1113_v20  ;;  %vm2913_vm10 = vcmp.ge.f32.partialorder %v2575_v14, 0.0  ;;  %vm2914_vm14 = vcmp.ge.f32.partialorder %v2577_v40, 0.0 }
 0x1d5   :  { %v1148_v62 = vsel %vm2912_vm9, %v2571_v22, %v1112_v49  ;;  %v1150_v52 = vsel %vm2913_vm10, %v2575_v14, %v1114_v54  ;;  %v1151_v6 = vsel %vm2914_vm14, %v2577_v40, %v1115_v28  ;;  %vm2915_vm11 = vcmp.ge.f32.partialorder %v2582_v55, 0.0 }
 0x1d6   :  { %v1152_v16 = vsel %vm2915_vm11, %v2582_v55, %v1116_v60  ;;  %v1153_v22 = vsel %vm1081_vm3, %v2587_v0, %v1117_v48  ;;  %vm2916_vm12 = vcmp.ge.f32.partialorder %v2592_v15, 0.0  ;;  %vm2917_vm13 = vcmp.ge.f32.partialorder %v2597_v25, 0.0 }
 0x1d7   :  { %v1154_v31 = vsel %vm2916_vm12, %v2592_v15, %v1118_v17  ;;  %v1155_v14 = vsel %vm2917_vm13, %v2597_v25, %v1119_v39  ;;  %vm2918_vm8 = vcmp.ge.f32.partialorder %v2602_v38, 0.0  ;;  %v1157_v55 = vsel %vm1085_vm2, %v2607_v58, %v1121_v1 }
 0x1d8   :  { %v1156_v40 = vsel %vm2918_vm8, %v2602_v38, %v1120_v4  ;;  %vm2919_vm15 = vcmp.ge.f32.partialorder %v2609_v26, 0.0  ;;  %v1159_v15 = vsel %vm1087_vm5, %v2614_v47, %v1123_v10  ;;  %v1160_v25 = vsel %vm1088_vm4, %v2619_v37, %v1124_v53  ;;  %v2921_v47 = vld [vmem:[#allocation3_spill] sm:$0xff] }
 0x1d9   :  { %v1158_v0 = vsel %vm2919_vm15, %v2609_v26, %v1122_v11  ;;  %v1161_v38 = vsel %vm1089_vm1, %v2624_v33, %v1125_v34  ;;  %v1162_v58 = vsel %vm1090_vm7, %v2629_v63, %v1126_v29  ;;  %v1163_v26 = vsel %vm1091_vm6, %v2634_v9, %v1127_v2 }
 0x1da   :  { %v1621_v46 = vpack.c.bf16 %v2920_v32, %v2666_v3  ;;  %v1626_v56 = vpack.c.bf16 %v2922_v30, %v2921_v47  ;;  %v1631_v37 = vpack.c.bf16 %v1133_v61, %v2923_v5  ;;  %v1636_v57 = vpack.c.bf16 %v1135_v13, %v1134_v19 }
 0x1db   :  { %v1641_v12 = vpack.c.bf16 %v1137_v7, %v1136_v51  ;;  %v1646_v44 = vpack.c.bf16 %v1139_v24, %v1138_v41  ;;  %v1651_v33 = vpack.c.bf16 %v1141_v18, %v1140_v59  ;;  %v1656_v63 = vpack.c.bf16 %v1143_v35, %v1142_v23 }
 0x1dc   :  { %1622 = vst [vmem:[%s2887_s2] sm:$0xff] %v1621_v46   ;;  %v1661_v21 = vpack.c.bf16 %v1145_v8, %v1144_v42  ;;  %v1666_v29 = vpack.c.bf16 %v1147_v45, %v1146_v50  ;;  %v1671_v9 = vpack.c.bf16 %v1149_v27, %v1148_v62  ;;  %v1676_v3 = vpack.c.bf16 %v1151_v6, %v1150_v52 }
 0x1dd   :  { %1708 = vst [vmem:[%s2887_s2 + $0x8] sm:$0xff] %v1626_v56   ;;  %v1681_v2 = vpack.c.bf16 %v1153_v22, %v1152_v16  ;;  %v1686_v36 = vpack.c.bf16 %v1155_v14, %v1154_v31  ;;  %v1691_v24 = vpack.c.bf16 %v1157_v55, %v1156_v40  ;;  %v1696_v43 = vpack.c.bf16 %v1159_v15, %v1158_v0 }
 0x1de   :  { %1709 = vst [vmem:[%s2887_s2 + $0x10] sm:$0xff] %v1631_v37   ;;  %v1701_v49 = vpack.c.bf16 %v1161_v38, %v1160_v25  ;;  %v1706_v53 = vpack.c.bf16 %v1163_v26, %v1162_v58 }
 0x1df   :  { %1710 = vst [vmem:[%s2887_s2 + $0x18] sm:$0xff] %v1636_v57  }
 0x1e0   :  { %1711 = vst [vmem:[%s2887_s2 + $0x20] sm:$0xff] %v1641_v12  }
 0x1e1   :  { %1712 = vst [vmem:[%s2887_s2 + $0x28] sm:$0xff] %v1646_v44  }
 0x1e2   :  { %1713 = vst [vmem:[%s2887_s2 + $0x30] sm:$0xff] %v1651_v33  }
 0x1e3   :  { %1714 = vst [vmem:[%s2887_s2 + $0x38] sm:$0xff] %v1656_v63  }
 0x1e4   :  { %1715 = vst [vmem:[%s2887_s2 + $0x40] sm:$0xff] %v1661_v21  }
 0x1e5   :  { %1716 = vst [vmem:[%s2887_s2 + $0x48] sm:$0xff] %v1666_v29  }
 0x1e6   :  { %1717 = vst [vmem:[%s2887_s2 + $0x50] sm:$0xff] %v1671_v9  }
 0x1e7   :  { %1718 = vst [vmem:[%s2887_s2 + $0x58] sm:$0xff] %v1676_v3  }
 0x1e8   :  { %1719 = vst [vmem:[%s2887_s2 + $0x60] sm:$0xff] %v1681_v2  }
 0x1e9   :  { %1720 = vst [vmem:[%s2887_s2 + $0x68] sm:$0xff] %v1686_v36  }
 0x1ea   :  { %1721 = vst [vmem:[%s2887_s2 + $0x70] sm:$0xff] %v1691_v24  }
 0x1eb   :  { %1722 = vst [vmem:[%s2887_s2 + $0x78] sm:$0xff] %v1696_v43  }
 0x1ec   :  { %1723 = vst [vmem:[%s2887_s2 + $0x80] sm:$0xff] %v1701_v49  }
 0x1ed   :  { %1724 = vst [vmem:[%s2887_s2 + $0x88] sm:$0xff] %v1706_v53  }

// kernel: encoder_mnist_forward.6
= control target key start
LH: loop header
LB: loop body
LE: loop exit
PB: predicated region body
PF: predicated region fallthrough
CT: control target
= control target key end

     0   :  { %vm424_vm0 = vcmask 523264   ;;  %s1326_s1 = inlined_call_operand.vmem [shape: bf16[576,128], index: 1, kind: input, shape index: {}]   ;;  %s1327_s0 = inlined_call_operand.vmem [shape: bf16[64,576], index: 0, kind: input, shape index: {}]   ;;  %s1328_s2 = inlined_call_operand.vmem [shape: bf16[64,128], index: 2, kind: output, shape index: {}]  }
   0x1   :  { %v947_v0 = vld [vmem:[%s1326_s1 + $0x38] sm:$0xff]  ;;  %v946_v1 = vld [vmem:[%s1326_s1 + $0x30] sm:$0xff]  ;;  %v945_v4 = vld [vmem:[%s1326_s1 + $0x28] sm:$0xff] }
   0x2   :  { %999 = vmatpush.bf16.msra.mxu1 %v947_v0  ;;  %1000 = vmatpush.bf16.msra.mxu2 %v947_v0  ;;  %v971_v2 = vld [vmem:[%s1326_s1 + $0xf8] sm:$0xff]  ;;  %v970_v3 = vld [vmem:[%s1326_s1 + $0xf0] sm:$0xff]  ;;  %v969_v5 = vld [vmem:[%s1326_s1 + $0xe8] sm:$0xff] }
   0x3   :  { %437 = vmatpush.bf16.msra.mxu0 %v947_v0  ;;  %524 = vmatpush.bf16.msra.mxu3 %v971_v2  ;;  %v944_v6 = vld [vmem:[%s1326_s1 + $0x20] sm:$0xff]  ;;  %v943_v8 = vld [vmem:[%s1326_s1 + $0x18] sm:$0xff]  ;;  %v942_v10 = vld [vmem:[%s1326_s1 + $0x10] sm:$0xff] }
   0x4   :  { %v968_v7 = vld [vmem:[%s1326_s1 + $0xe0] sm:$0xff]  ;;  %v967_v9 = vld [vmem:[%s1326_s1 + $0xd8] sm:$0xff]  ;;  %v966_v11 = vld [vmem:[%s1326_s1 + $0xd0] sm:$0xff] }
   0x5   :  { %v941_v12 = vld [vmem:[%s1326_s1 + $0x8] sm:$0xff]  ;;  %v940_v14 = vld [vmem:[%s1326_s1] sm:$0xff]  ;;  %v927_v16 = vld [vmem:[%s1327_s0 + $0x38] sm:$0xf0] }
   0x6   :  { %1001 = vmatpush.bf16.msra.mxu1 %v946_v1  ;;  %1002 = vmatpush.bf16.msra.mxu2 %v946_v1  ;;  %v965_v13 = vld [vmem:[%s1326_s1 + $0xc8] sm:$0xff]  ;;  %v754_v17 = vld [vmem:[%s1327_s0 + $0x78] sm:$0xf]  ;;  %v694_v21 = vld [vmem:[%s1327_s0] sm:$0xf] }
   0x7   :  { %438 = vmatpush.bf16.msra.mxu0 %v946_v1  ;;  %525 = vmatpush.bf16.msra.mxu3 %v970_v3  ;;  %v714_v15 = vld [vmem:[%s1327_s0 + $0x28] sm:$0xf]  ;;  %v937_v18 = vld [vmem:[%s1327_s0 + $0x88] sm:$0xf0]  ;;  %v963_v19 = vld [vmem:[%s1326_s1 + $0xb8] sm:$0xff] }
   0x8   :  { %v955_v20 = vld [vmem:[%s1326_s1 + $0x78] sm:$0xff]  ;;  %v964_v22 = vld [vmem:[%s1326_s1 + $0xc0] sm:$0xff]  ;;  %v715_v23 = vor.u32 %v927_v16, %v714_v15  ;;  %v755_v24 = vor.u32 %v937_v18, %v754_v17  ;;  %v922_v25 = vld [vmem:[%s1327_s0 + $0x10] sm:$0xf0] }
   0x9   :  { %v921_v26 = vld [vmem:[%s1327_s0 + $0xc] sm:$0xf]  ;;  %v704_v27 = vld [vmem:[%s1327_s0 + $0x1c] sm:$0xf0]  ;;  %v975_v28 = vld [vmem:[%s1326_s1 + $0x118] sm:$0xff]  ;;  %v695_v31 = vor.u32 %v922_v25, %v694_v21 }
   0xa   :  { %1003 = vmatpush.bf16.msra.mxu1 %v945_v4  ;;  %1004 = vmatpush.bf16.msra.mxu2 %v945_v4  ;;  %v962_v29 = vld [vmem:[%s1326_s1 + $0xb0] sm:$0xff]  ;;  %v707_v32 = vor.u32 %v921_v26, %v704_v27  ;;  %v961_v34 = vld [vmem:[%s1326_s1 + $0xa8] sm:$0xff]  ;;  %v960_v37 = vld [vmem:[%s1326_s1 + $0xa0] sm:$0xff] }
   0xb   :  { %439 = vmatpush.bf16.msra.mxu0 %v945_v4  ;;  %526 = vmatpush.bf16.msra.mxu3 %v969_v5  ;;  %v954_v30 = vld [vmem:[%s1326_s1 + $0x70] sm:$0xff]  ;;  %v953_v35 = vld [vmem:[%s1326_s1 + $0x68] sm:$0xff]  ;;  %v952_v38 = vld [vmem:[%s1326_s1 + $0x60] sm:$0xff] }
   0xc   :  { %v974_v33 = vld [vmem:[%s1326_s1 + $0x110] sm:$0xff]  ;;  %v973_v36 = vld [vmem:[%s1326_s1 + $0x108] sm:$0xff]  ;;  %v932_v40 = vld [vmem:[%s1327_s0 + $0x60] sm:$0xf0] }
   0xd   :  { %v734_v39 = vld [vmem:[%s1327_s0 + $0x50] sm:$0xf]  ;;  %v972_v41 = vld [vmem:[%s1326_s1 + $0x100] sm:$0xff]  ;;  %v959_v42 = vld [vmem:[%s1326_s1 + $0x98] sm:$0xff] }
   0xe   :  { %1005 = vmatpush.bf16.msra.mxu1 %v944_v6  ;;  %1006 = vmatpush.bf16.msra.mxu2 %v944_v6  ;;  %v951_v43 = vld [vmem:[%s1326_s1 + $0x58] sm:$0xff]  ;;  %v710_v44 = vld [vmem:[%s1327_s0 + $0x10] sm:$0xf]  ;;  %v735_v45 = vor.u32 %v932_v40, %v734_v39  ;;  %v924_v46 = vld [vmem:[%s1327_s0 + $0x20] sm:$0xf0] }
   0xf   :  { %440 = vmatpush.bf16.msra.mxu0 %v944_v6  ;;  %527 = vmatpush.bf16.msra.mxu3 %v968_v7  ;;  %v926_v47 = vld [vmem:[%s1327_s0 + $0x34] sm:$0xf]  ;;  %v724_v48 = vld [vmem:[%s1327_s0 + $0x44] sm:$0xf0]  ;;  %v711_v51 = vor.u32 %v924_v46, %v710_v44  ;;  %v956_v55 = vld [vmem:[%s1326_s1 + $0x80] sm:$0xff] }
  0x10   :  { %v958_v49 = vld [vmem:[%s1326_s1 + $0x90] sm:$0xff]  ;;  %v727_v52 = vor.u32 %v926_v47, %v724_v48  ;;  %v957_v53 = vld [vmem:[%s1326_s1 + $0x88] sm:$0xff]  ;;  %v948_v56 = vld [vmem:[%s1326_s1 + $0x40] sm:$0xff] }
  0x11   :  { %v950_v50 = vld [vmem:[%s1326_s1 + $0x50] sm:$0xff]  ;;  %v949_v54 = vld [vmem:[%s1326_s1 + $0x48] sm:$0xff]  ;;  %v923_v58 = vld [vmem:[%s1327_s0 + $0x18] sm:$0xf0] }
  0x12   :  { %1007 = vmatpush.bf16.msra.mxu1 %v943_v8  ;;  %1008 = vmatpush.bf16.msra.mxu2 %v943_v8  ;;  %v702_v57 = vld [vmem:[%s1327_s0 + $0x8] sm:$0xf]  ;;  %v920_v60 = vld [vmem:[%s1327_s0 + $0x4] sm:$0xf]  ;;  %v696_v61 = vld [vmem:[%s1327_s0 + $0x14] sm:$0xf0] }
  0x13   :  { %441 = vmatpush.bf16.msra.mxu0 %v943_v8  ;;  %528 = vmatpush.bf16.msra.mxu3 %v967_v9  ;;  %v703_v59 = vor.u32 %v923_v58, %v702_v57  ;;  %v730_v62 = vld [vmem:[%s1327_s0 + $0x38] sm:$0xf]  ;;  %v699_v63 = vor.u32 %v920_v60, %v696_v61  ;;  %v929_v0 = vld [vmem:[%s1327_s0 + $0x48] sm:$0xf0]  ;;  %v931_v1 = vld [vmem:[%s1327_s0 + $0x5c] sm:$0xf] }
  0x14   :  { %v744_v2 = vld [vmem:[%s1327_s0 + $0x6c] sm:$0xf0]  ;;  %v731_v3 = vor.u32 %v929_v0, %v730_v62  ;;  %v928_v6 = vld [vmem:[%s1327_s0 + $0x40] sm:$0xf0]  ;;  %v925_v8 = vld [vmem:[%s1327_s0 + $0x2c] sm:$0xf] }
  0x15   :  { %v747_v4 = vor.u32 %v931_v1, %v744_v2  ;;  %v722_v5 = vld [vmem:[%s1327_s0 + $0x30] sm:$0xf]  ;;  %v716_v9 = vld [vmem:[%s1327_s0 + $0x3c] sm:$0xf0]  ;;  %v742_v17 = vld [vmem:[%s1327_s0 + $0x58] sm:$0xf] }
  0x16   :  { %1009 = vmatpush.bf16.msra.mxu1 %v942_v10  ;;  %1010 = vmatpush.bf16.msra.mxu2 %v942_v10  ;;  %v723_v7 = vor.u32 %v928_v6, %v722_v5  ;;  %v933_v18 = vld [vmem:[%s1327_s0 + $0x68] sm:$0xf0]  ;;  %v736_v21 = vld [vmem:[%s1327_s0 + $0x64] sm:$0xf0]  ;;  %v762_v26 = vld [vmem:[%s1327_s0 + $0x80] sm:$0xf] }
  0x17   :  { %442 = vmatpush.bf16.msra.mxu0 %v942_v10  ;;  %529 = vmatpush.bf16.msra.mxu3 %v966_v11  ;;  %v750_v10 = vld [vmem:[%s1327_s0 + $0x60] sm:$0xf]  ;;  %v719_v11 = vor.u32 %v925_v8, %v716_v9  ;;  %v938_v27 = vld [vmem:[%s1327_s0 + $0x90] sm:$0xf0] }
  0x1a   :  { %1011 = vmatpush.bf16.msra.mxu1 %v941_v12  ;;  %1012 = vmatpush.bf16.msra.mxu2 %v941_v12 }
  0x1b   :  { %443 = vmatpush.bf16.msra.mxu0 %v941_v12  ;;  %530 = vmatpush.bf16.msra.mxu3 %v965_v13  ;;  %v934_v12 = vld [vmem:[%s1327_s0 + $0x70] sm:$0xf0]  ;;  %v936_v13 = vld [vmem:[%s1327_s0 + $0x84] sm:$0xf] }
  0x1c   :  { %v751_v15 = vor.u32 %v934_v12, %v750_v10 }
  0x1e   :  { %1013 = vmatpush.bf16.msra.mxu1 %v940_v14  ;;  %1014 = vmatpush.bf16.msra.mxu2 %v940_v14 }
  0x1f   :  { %444 = vmatpush.bf16.msra.mxu0 %v940_v14  ;;  %531 = vmatpush.bf16.msra.mxu3 %v964_v22  ;;  %v764_v14 = vld [vmem:[%s1327_s0 + $0x94] sm:$0xf0] }
  0x20   :  { %v767_v16 = vor.u32 %v936_v13, %v764_v14 }
  0x21   :  { %450 = vmatmul.bf16.vlgmr.msra.gmra.mxu1 %v715_v23  ;;  %460 = vmatmul.bf16.vlgmr.msra.gmra.mxu2 %v755_v24  ;;  %v770_v23 = vld [vmem:[%s1327_s0 + $0x88] sm:$0xf]  ;;  %v939_v24 = vld [vmem:[%s1327_s0 + $0x98] sm:$0xf0] }
  0x22   :  { %495 = vmatpush.bf16.msrb.mxu2 %v963_v19  ;;  %466 = vmatpush.bf16.msrb.mxu1 %v955_v20  ;;  %v743_v19 = vor.u32 %v933_v18, %v742_v17  ;;  %v930_v20 = vld [vmem:[%s1327_s0 + $0x54] sm:$0xf]  ;;  %v771_v25 = vor.u32 %v939_v24, %v770_v23 }
  0x23   :  { %557 = vmatpush.bf16.msrb.mxu0 %v975_v28  ;;  %532 = vmatmul.bf16.vlgmr.msra.gmra.mxu3 %v707_v32  ;;  %v739_v22 = vor.u32 %v930_v20, %v736_v21  ;;  %v763_v28 = vor.u32 %v938_v27, %v762_v26 }
  0x24   :  { %445 = vmatmul.bf16.vlgmr.msra.gmra.mxu0 %v695_v31 }
  0x26   :  { %496 = vmatpush.bf16.msrb.mxu2 %v962_v29  ;;  %467 = vmatpush.bf16.msrb.mxu1 %v954_v30  ;;  %v935_v29 = vld [vmem:[%s1327_s0 + $0x7c] sm:$0xf]  ;;  %v756_v30 = vld [vmem:[%s1327_s0 + $0x8c] sm:$0xf0] }
  0x27   :  { %558 = vmatpush.bf16.msrb.mxu0 %v974_v33  ;;  %v759_v31 = vor.u32 %v935_v29, %v756_v30 }
  0x2a   :  { %497 = vmatpush.bf16.msrb.mxu2 %v961_v34  ;;  %468 = vmatpush.bf16.msrb.mxu1 %v953_v35 }
  0x2b   :  { %559 = vmatpush.bf16.msrb.mxu0 %v973_v36 }
  0x2e   :  { %498 = vmatpush.bf16.msrb.mxu2 %v960_v37  ;;  %469 = vmatpush.bf16.msrb.mxu1 %v952_v38 }
  0x2f   :  { %560 = vmatpush.bf16.msrb.mxu0 %v972_v41 }
  0x31   :  { %455 = vmatmul.bf16.gmra.mxu1 %v735_v45 }
  0x32   :  { %499 = vmatpush.bf16.msrb.mxu2 %v959_v42  ;;  %470 = vmatpush.bf16.msrb.mxu1 %v951_v43 }
  0x33   :  { %537 = vmatmul.bf16.gmra.mxu3 %v727_v52 }
  0x34   :  { %916 = vmatmul.msk.bf16.vlgmr.msrb.gmra.mxu0 %vm424_vm0, %v711_v51 }
  0x36   :  { %500 = vmatpush.bf16.msrb.mxu2 %v958_v49  ;;  %471 = vmatpush.bf16.msrb.mxu1 %v950_v50 }
  0x3a   :  { %501 = vmatpush.bf16.msrb.mxu2 %v957_v53  ;;  %472 = vmatpush.bf16.msrb.mxu1 %v949_v54 }
  0x3e   :  { %502 = vmatpush.bf16.msrb.mxu2 %v956_v55  ;;  %473 = vmatpush.bf16.msrb.mxu1 %v948_v56 }
  0x41   :  { %503 = vmatmul.bf16.vlgmr.msrb.gmra.mxu2 %v703_v59  ;;  %474 = vmatmul.bf16.vlgmr.msrb.gmra.mxu1 %v699_v63 }
  0x43   :  { %542 = vmatmul.bf16.gmra.mxu3 %v747_v4 }
  0x44   :  { %917 = vmatmul.msk.bf16.gmra.mxu0 %vm424_vm0, %v731_v3 }
  0x51   :  { %508 = vmatmul.bf16.gmra.mxu2 %v723_v7  ;;  %479 = vmatmul.bf16.gmra.mxu1 %v719_v11 }
  0x53   :  { %547 = vmatmul.bf16.gmra.mxu3 %v767_v16 }
  0x54   :  { %918 = vmatmul.msk.bf16.gmra.mxu0 %vm424_vm0, %v751_v15 }
  0x61   :  { %513 = vmatmul.bf16.gmra.mxu2 %v743_v19  ;;  %484 = vmatmul.bf16.gmra.mxu1 %v739_v22 }
  0x64   :  { %919 = vmatmul.msk.bf16.gmra.mxu0 %vm424_vm0, %v771_v25 }
  0x71   :  { %518 = vmatmul.bf16.gmra.mxu2 %v763_v28  ;;  %489 = vmatmul.bf16.gmra.mxu1 %v759_v31 }
  0x9e   :  { %v451_v32 = vpop.f32.mrf.mxu1 }
  0xa1   :  { %v446_v33 = vpop.f32.mrf.mxu0 }
  0xa4   :  { %v1264_v37 = vpop.f32.mrf.mxu2 }
  0xa6   :  { %v453_v34 = vpop.f32.mrf.mxu1  ;;  %v533_v38 = vpop.f32.mrf.mxu3 }
  0xa9   :  { %v448_v35 = vpop.f32.mrf.mxu0 }
  0xac   :  { %v1266_v41 = vpop.f32.mrf.mxu2 }
  0xae   :  { %v456_v36 = vpop.f32.mrf.mxu1  ;;  %v535_v43 = vpop.f32.mrf.mxu3 }
  0xb1   :  { %v562_v40 = vpop.f32.mrf.mxu0 }
  0xb6   :  { %v458_v39 = vpop.f32.mrf.mxu1  ;;  %v538_v48 = vpop.f32.mrf.mxu3 }
  0xb9   :  { %v564_v45 = vpop.f32.mrf.mxu0 }
  0xbe   :  { %v475_v42 = vpop.f32.mrf.mxu1  ;;  %v540_v59 = vpop.f32.mrf.mxu3 }
  0xbf   :  { %v476_v51 = vadd.f32 %v475_v42, %v446_v33 }
  0xc1   :  { %v567_v50 = vpop.f32.mrf.mxu0 }
  0xc4   :  { %v504_v44 = vpop.f32.mrf.mxu2 }
  0xc5   :  { %v505_v55 = vadd.f32 %v504_v44, %v476_v51 }
  0xc6   :  { %v477_v46 = vpop.f32.mrf.mxu1  ;;  %v543_v11 = vpop.f32.mrf.mxu3 }
  0xc7   :  { %v478_v49 = vadd.f32 %v477_v46, %v448_v35  ;;  %v534_v60 = vadd.f32 %v533_v38, %v505_v55 }
  0xc9   :  { %v569_v62 = vpop.f32.mrf.mxu0  ;;  %v1270_v2 = vadd.f32 %v562_v40, %v534_v60 }
  0xcb   :  { %v596_v7 = vmul.f32 %v1270_v2, %v1270_v2 }
  0xcc   :  { %v506_v47 = vpop.f32.mrf.mxu2 }
  0xcd   :  { %v507_v52 = vadd.f32 %v506_v47, %v478_v49 }
  0xce   :  { %v480_v53 = vpop.f32.mrf.mxu1  ;;  %v545_v27 = vpop.f32.mrf.mxu3 }
  0xcf   :  { %v481_v54 = vadd.f32 %v480_v53, %v451_v32  ;;  %v536_v57 = vadd.f32 %v535_v43, %v507_v52 }
  0xd1   :  { %v1268_v63 = vadd.f32 %v564_v45, %v536_v57  ;;  %v572_v16 = vpop.f32.mrf.mxu0 }
  0xd3   :  { %v597_v5 = vmul.f32 %v1268_v63, %v1268_v63  ;;  %v582_v8 = vadd.f32 %v1268_v63, %v1270_v2 }
  0xd4   :  { %v509_v56 = vpop.f32.mrf.mxu2 }
  0xd5   :  { %v510_v58 = vadd.f32 %v509_v56, %v481_v54  ;;  %v604_v12 = vadd.f32 %v597_v5, %v596_v7 }
  0xd6   :  { %v482_v0 = vpop.f32.mrf.mxu1  ;;  %v548_v42 = vpop.f32.mrf.mxu3 }
  0xd7   :  { %v539_v61 = vadd.f32 %v538_v48, %v510_v58  ;;  %v483_v1 = vadd.f32 %v482_v0, %v453_v34 }
  0xd9   :  { %v1272_v3 = vadd.f32 %v567_v50, %v539_v61  ;;  %v574_v31 = vpop.f32.mrf.mxu0 }
  0xdb   :  { %v598_v9 = vmul.f32 %v1272_v3, %v1272_v3  ;;  %v583_v13 = vadd.f32 %v582_v8, %v1272_v3 }
  0xdc   :  { %v511_v4 = vpop.f32.mrf.mxu2 }
  0xdd   :  { %v512_v6 = vadd.f32 %v511_v4, %v483_v1  ;;  %v605_v18 = vadd.f32 %v604_v12, %v598_v9 }
  0xde   :  { %v485_v15 = vpop.f32.mrf.mxu1  ;;  %v550_v56 = vpop.f32.mrf.mxu3 }
  0xdf   :  { %v541_v10 = vadd.f32 %v540_v59, %v512_v6  ;;  %v486_v17 = vadd.f32 %v485_v15, %v456_v36 }
  0xe1   :  { %v1283_v14 = vadd.f32 %v569_v62, %v541_v10  ;;  %v577_v45 = vpop.f32.mrf.mxu0 }
  0xe3   :  { %v584_v19 = vadd.f32 %v583_v13, %v1283_v14  ;;  %v599_v20 = vmul.f32 %v1283_v14, %v1283_v14 }
  0xe4   :  { %v514_v21 = vpop.f32.mrf.mxu2 }
  0xe5   :  { %v606_v22 = vadd.f32 %v605_v18, %v599_v20  ;;  %v515_v23 = vadd.f32 %v514_v21, %v486_v17 }
  0xe6   :  { %v487_v26 = vpop.f32.mrf.mxu1 }
  0xe7   :  { %v544_v24 = vadd.f32 %v543_v11, %v515_v23  ;;  %v488_v28 = vadd.f32 %v487_v26, %v458_v39 }
  0xe9   :  { %v1288_v25 = vadd.f32 %v572_v16, %v544_v24  ;;  %v579_v58 = vpop.f32.mrf.mxu0 }
  0xeb   :  { %v585_v29 = vadd.f32 %v584_v19, %v1288_v25  ;;  %v600_v30 = vmul.f32 %v1288_v25, %v1288_v25 }
  0xec   :  { %v516_v32 = vpop.f32.mrf.mxu2 }
  0xed   :  { %v607_v33 = vadd.f32 %v606_v22, %v600_v30  ;;  %v517_v34 = vadd.f32 %v516_v32, %v488_v28 }
  0xee   :  { %v490_v36 = vpop.f32.mrf.mxu1 }
  0xef   :  { %v546_v35 = vadd.f32 %v545_v27, %v517_v34  ;;  %v491_v38 = vadd.f32 %v490_v36, %v1264_v37 }
  0xf1   :  { %v1294_v40 = vadd.f32 %v574_v31, %v546_v35 }
  0xf3   :  { %v601_v39 = vmul.f32 %v1294_v40, %v1294_v40  ;;  %v586_v47 = vadd.f32 %v585_v29, %v1294_v40 }
  0xf4   :  { %v519_v43 = vpop.f32.mrf.mxu2 }
  0xf5   :  { %v520_v44 = vadd.f32 %v519_v43, %v491_v38  ;;  %v608_v51 = vadd.f32 %v607_v33, %v601_v39 }
  0xf6   :  { %v492_v49 = vpop.f32.mrf.mxu1 }
  0xf7   :  { %v549_v46 = vadd.f32 %v548_v42, %v520_v44  ;;  %v493_v50 = vadd.f32 %v492_v49, %v1266_v41 }
  0xf9   :  { %v578_v48 = vadd.f32 %v577_v45, %v549_v46 }
  0xfb   :  { %v587_v52 = vadd.f32 %v586_v47, %v578_v48  ;;  %v602_v53 = vmul.f32 %v578_v48, %v578_v48 }
  0xfc   :  { %v521_v37 = vpop.f32.mrf.mxu2 }
  0xfd   :  { %v609_v54 = vadd.f32 %v608_v51, %v602_v53  ;;  %v522_v55 = vadd.f32 %v521_v37, %v493_v50 }
  0xff   :  { %v551_v57 = vadd.f32 %v550_v56, %v522_v55 }
 0x101   :  { %v580_v59 = vadd.f32 %v579_v58, %v551_v57 }
 0x103   :  { %v588_v60 = vadd.f32 %v587_v52, %v580_v59  ;;  %v603_v61 = vmul.f32 %v580_v59, %v580_v59 }
 0x105   :  { %v589_v62 = vrot.slane %v588_v60, 4  ;;  %v610_v0 = vadd.f32 %v609_v54, %v603_v61 }
 0x107   :  { %v590_v1 = vadd.f32 %v589_v62, %v588_v60  ;;  %v611_v4 = vrot.slane %v610_v0, 4 }
 0x109   :  { %v591_v5 = vrot.slane %v590_v1, 2  ;;  %v612_v6 = vadd.f32 %v611_v4, %v610_v0 }
 0x10b   :  { %v592_v7 = vadd.f32 %v591_v5, %v590_v1  ;;  %v613_v41 = vrot.slane %v612_v6, 2 }
 0x10d   :  { %v593_v8 = vrot.slane %v592_v7, 1  ;;  %v614_v9 = vadd.f32 %v613_v41, %v612_v6 }
 0x10f   :  { %v594_v10 = vadd.f32 %v593_v8, %v592_v7  ;;  %v615_v11 = vrot.slane %v614_v9, 1 }
 0x111   :  { %v595_v12 = vmul.f32 0.02, %v594_v10  ;;  %v616_v13 = vadd.f32 %v615_v11, %v614_v9 }
 0x113   :  { %v617_v15 = vmul.f32 0.02, %v616_v13  ;;  %v618_v16 = vmul.f32 %v595_v12, %v595_v12  ;;  %v623_v17 = vsub.f32 %v1272_v3, %v595_v12  ;;  %v624_v18 = vsub.f32 %v1283_v14, %v595_v12 }
 0x114   :  { %v625_v19 = vsub.f32 %v1288_v25, %v595_v12  ;;  %v627_v21 = vsub.f32 %v578_v48, %v595_v12  ;;  %v621_v31 = vsub.f32 %v1270_v2, %v595_v12  ;;  %v622_v3 = vsub.f32 %v1268_v63, %v595_v12 }
 0x115   :  { %v619_v20 = vsub.f32 %v617_v15, %v618_v16  ;;  %v626_v14 = vsub.f32 %v1294_v40, %v595_v12  ;;  %v628_v25 = vsub.f32 %v580_v59, %v595_v12 }
 0x117   :  { %v620_v22 = vmax.f32 %v619_v20, 0.0 }
 0x119   :  { %v629_v23 = vadd.f32 1e-05, %v620_v22 }
 0x11b   :  { %1015 = vrsqrt.f32 %v629_v23  ;;  %vm636_vm2 = vweird.f32 %v629_v23 }
 0x121   :  { %v1016_v24 = vpop.eup %1015 }
 0x122   :  { %v631_v26 = vmul.f32 %v1016_v24, %v629_v23  ;;  %vm637_vm1 = vweird.f32 %v1016_v24 }
 0x123   :  { %vm638_vm3 = vmor %vm636_vm2, %vm637_vm1 }
 0x124   :  { %v632_v27 = vmul.f32 %v1016_v24, %v631_v26 }
 0x126   :  { %v633_v28 = vmul.f32 0.5, %v632_v27 }
 0x128   :  { %v634_v29 = vsub.f32 1.5, %v633_v28 }
 0x12a   :  { %v635_v30 = vmul.f32 %v1016_v24, %v634_v29 }
 0x12c   :  { %v639_v32 = vsel %vm638_vm3, %v1016_v24, %v635_v30 }
 0x12d   :  { %v640_v33 = vmul.f32 %v639_v32, %v621_v31  ;;  %v641_v34 = vmul.f32 %v639_v32, %v622_v3  ;;  %v642_v35 = vmul.f32 %v639_v32, %v623_v17  ;;  %v643_v36 = vmul.f32 %v639_v32, %v624_v18 }
 0x12e   :  { %v644_v38 = vmul.f32 %v639_v32, %v625_v19  ;;  %v645_v42 = vmul.f32 %v639_v32, %v626_v14  ;;  %v646_v43 = vmul.f32 %v639_v32, %v627_v21  ;;  %v647_v44 = vmul.f32 %v639_v32, %v628_v25 }
 0x12f   :  { %vm648_vm4 = vcmp.ge.f32.partialorder %v640_v33, 0.0  ;;  %vm649_vm5 = vcmp.ge.f32.partialorder %v641_v34, 0.0  ;;  %vm650_vm6 = vcmp.ge.f32.partialorder %v642_v35, 0.0  ;;  %vm651_vm7 = vcmp.ge.f32.partialorder %v643_v36, 0.0 }
 0x130   :  { %vm652_vm8 = vcmp.ge.f32.partialorder %v644_v38, 0.0  ;;  %vm653_vm9 = vcmp.ge.f32.partialorder %v645_v42, 0.0  ;;  %vm654_vm10 = vcmp.ge.f32.partialorder %v646_v43, 0.0  ;;  %vm655_vm11 = vcmp.ge.f32.partialorder %v647_v44, 0.0 }
 0x131   :  { %v656_v63 = vmul.f32 0.01, %v640_v33  ;;  %v657_v2 = vmul.f32 0.01, %v641_v34  ;;  %v658_v40 = vmul.f32 0.01, %v642_v35 }
 0x132   :  { %v659_v45 = vmul.f32 0.01, %v643_v36  ;;  %v660_v39 = vmul.f32 0.01, %v644_v38  ;;  %v661_v46 = vmul.f32 0.01, %v645_v42 }
 0x133   :  { %v662_v47 = vmul.f32 0.01, %v646_v43  ;;  %v663_v48 = vmul.f32 0.01, %v647_v44  ;;  %v664_v49 = vsel %vm648_vm4, %v640_v33, %v656_v63  ;;  %v665_v50 = vsel %vm649_vm5, %v641_v34, %v657_v2 }
 0x134   :  { %v666_v51 = vsel %vm650_vm6, %v642_v35, %v658_v40  ;;  %v667_v52 = vsel %vm651_vm7, %v643_v36, %v659_v45  ;;  %v668_v53 = vsel %vm652_vm8, %v644_v38, %v660_v39  ;;  %v669_v37 = vsel %vm653_vm9, %v645_v42, %v661_v46 }
 0x135   :  { %v670_v54 = vsel %vm654_vm10, %v646_v43, %v662_v47  ;;  %v671_v55 = vsel %vm655_vm11, %v647_v44, %v663_v48  ;;  %v979_v56 = vpack.c.bf16 %v665_v50, %v664_v49  ;;  %v984_v57 = vpack.c.bf16 %v667_v52, %v666_v51 }
 0x136   :  { %v989_v58 = vpack.c.bf16 %v669_v37, %v668_v53  ;;  %v994_v59 = vpack.c.bf16 %v671_v55, %v670_v54 }
 0x137   :  { %980 = vst [vmem:[%s1328_s2] sm:$0xff] %v979_v56  }
 0x138   :  { %996 = vst [vmem:[%s1328_s2 + $0x8] sm:$0xff] %v984_v57  }
 0x139   :  { %997 = vst [vmem:[%s1328_s2 + $0x10] sm:$0xff] %v989_v58  }
 0x13a   :  { %998 = vst [vmem:[%s1328_s2 + $0x18] sm:$0xff] %v994_v59  }

// kernel: encoder_mnist_forward.7
= control target key start
LH: loop header
LB: loop body
LE: loop exit
PB: predicated region body
PF: predicated region fallthrough
CT: control target
= control target key end

     0   :  { %s4031_s1 = inlined_call_operand.vmem [shape: bf16[3200,128], index: 1, kind: input, shape index: {}]   ;;  %s4032_s0 = inlined_call_operand.vmem [shape: bf16[16,3200], index: 0, kind: input, shape index: {}]   ;;  %s4033_s2 = inlined_call_operand.vmem [shape: f32[1,128], index: 2, kind: input, shape index: {}]   ;;  %s4034_s3 = inlined_call_operand.vmem [shape: f32[16,128], index: 3, kind: output, shape index: {}]  }
   0x1   :  { %v3058_v0 = vld [vmem:[%s4031_s1 + $0x38] sm:$0xff]  ;;  %v3057_v4 = vld [vmem:[%s4031_s1 + $0x30] sm:$0xff]  ;;  %v3056_v8 = vld [vmem:[%s4031_s1 + $0x28] sm:$0xff] }
   0x2   :  { %v3074_v1 = vld [vmem:[%s4031_s1 + $0xb8] sm:$0xff]  ;;  %1770 = vmatpush.bf16.msra.mxu0 %v3058_v0  ;;  %v3073_v5 = vld [vmem:[%s4031_s1 + $0xb0] sm:$0xff]  ;;  %v3072_v9 = vld [vmem:[%s4031_s1 + $0xa8] sm:$0xff] }
   0x3   :  { %v3066_v2 = vld [vmem:[%s4031_s1 + $0x78] sm:$0xff]  ;;  %1798 = vmatpush.bf16.msra.mxu2 %v3074_v1  ;;  %v3065_v6 = vld [vmem:[%s4031_s1 + $0x70] sm:$0xff]  ;;  %v3064_v10 = vld [vmem:[%s4031_s1 + $0x68] sm:$0xff] }
   0x4   :  { %v3082_v3 = vld [vmem:[%s4031_s1 + $0xf8] sm:$0xff]  ;;  %1784 = vmatpush.bf16.msra.mxu1 %v3066_v2  ;;  %v3081_v7 = vld [vmem:[%s4031_s1 + $0xf0] sm:$0xff]  ;;  %v3080_v11 = vld [vmem:[%s4031_s1 + $0xe8] sm:$0xff] }
   0x5   :  { %1812 = vmatpush.bf16.msra.mxu3 %v3082_v3  ;;  %v3055_v12 = vld [vmem:[%s4031_s1 + $0x20] sm:$0xff]  ;;  %v3054_v16 = vld [vmem:[%s4031_s1 + $0x18] sm:$0xff]  ;;  %v3053_v20 = vld [vmem:[%s4031_s1 + $0x10] sm:$0xff] }
   0x6   :  { %1771 = vmatpush.bf16.msra.mxu0 %v3057_v4  ;;  %v3071_v13 = vld [vmem:[%s4031_s1 + $0xa0] sm:$0xff]  ;;  %v3070_v17 = vld [vmem:[%s4031_s1 + $0x98] sm:$0xff]  ;;  %v3069_v21 = vld [vmem:[%s4031_s1 + $0x90] sm:$0xff] }
   0x7   :  { %1799 = vmatpush.bf16.msra.mxu2 %v3073_v5  ;;  %v3063_v14 = vld [vmem:[%s4031_s1 + $0x60] sm:$0xff]  ;;  %v3062_v18 = vld [vmem:[%s4031_s1 + $0x58] sm:$0xff]  ;;  %v3061_v22 = vld [vmem:[%s4031_s1 + $0x50] sm:$0xff] }
   0x8   :  { %1785 = vmatpush.bf16.msra.mxu1 %v3065_v6  ;;  %v3079_v15 = vld [vmem:[%s4031_s1 + $0xe0] sm:$0xff]  ;;  %v3078_v19 = vld [vmem:[%s4031_s1 + $0xd8] sm:$0xff]  ;;  %v3077_v23 = vld [vmem:[%s4031_s1 + $0xd0] sm:$0xff] }
   0x9   :  { %1813 = vmatpush.bf16.msra.mxu3 %v3081_v7  ;;  %v3052_v24 = vld [vmem:[%s4031_s1 + $0x8] sm:$0xff]  ;;  %v3051_v28 = vld [vmem:[%s4031_s1] sm:$0xff]  ;;  %v3090_v30 = vld [vmem:[%s4031_s1 + $0x138] sm:$0xff] }
   0xa   :  { %1772 = vmatpush.bf16.msra.mxu0 %v3056_v8  ;;  %v3068_v25 = vld [vmem:[%s4031_s1 + $0x88] sm:$0xff]  ;;  %v3067_v29 = vld [vmem:[%s4031_s1 + $0x80] sm:$0xff]  ;;  %v3106_v31 = vld [vmem:[%s4031_s1 + $0x1b8] sm:$0xff] }
   0xb   :  { %1800 = vmatpush.bf16.msra.mxu2 %v3072_v9  ;;  %v3060_v26 = vld [vmem:[%s4031_s1 + $0x48] sm:$0xff]  ;;  %v3059_v32 = vld [vmem:[%s4031_s1 + $0x40] sm:$0xff]  ;;  %v3098_v38 = vld [vmem:[%s4031_s1 + $0x178] sm:$0xff] }
   0xc   :  { %1786 = vmatpush.bf16.msra.mxu1 %v3064_v10  ;;  %v3076_v27 = vld [vmem:[%s4031_s1 + $0xc8] sm:$0xff]  ;;  %v3075_v33 = vld [vmem:[%s4031_s1 + $0xc0] sm:$0xff]  ;;  %v3114_v39 = vld [vmem:[%s4031_s1 + $0x1f8] sm:$0xff] }
   0xd   :  { %1814 = vmatpush.bf16.msra.mxu3 %v3080_v11  ;;  %v2128_v34 = vld [vmem:[%s4032_s0] sm:$0xf]  ;;  %v3038_v35 = vld [vmem:[%s4032_s0 + $0x60] sm:$0xf0]  ;;  %v2136_v36 = vld [vmem:[%s4032_s0 + $0x8] sm:$0xf] }
   0xe   :  { %1773 = vmatpush.bf16.msra.mxu0 %v3055_v12  ;;  %v3039_v37 = vld [vmem:[%s4032_s0 + $0x68] sm:$0xf0]  ;;  %v3026_v40 = vld [vmem:[%s4032_s0 + $0x4] sm:$0xf]  ;;  %v2130_v41 = vld [vmem:[%s4032_s0 + $0x64] sm:$0xf0]  ;;  %v2129_v44 = vor.u32 %v3038_v35, %v2128_v34 }
   0xf   :  { %1801 = vmatpush.bf16.msra.mxu2 %v3071_v13  ;;  %v3027_v42 = vld [vmem:[%s4032_s0 + $0xc] sm:$0xf]  ;;  %v2138_v43 = vld [vmem:[%s4032_s0 + $0x6c] sm:$0xf0]  ;;  %v2137_v45 = vor.u32 %v3039_v37, %v2136_v36  ;;  %v2133_v48 = vor.u32 %v3026_v40, %v2130_v41  ;;  %v3087_v56 = vld [vmem:[%s4031_s1 + $0x120] sm:$0xff] }
  0x10   :  { %1787 = vmatpush.bf16.msra.mxu1 %v3063_v14  ;;  %v3089_v46 = vld [vmem:[%s4031_s1 + $0x130] sm:$0xff]  ;;  %v2141_v49 = vor.u32 %v3027_v42, %v2138_v43  ;;  %v3088_v52 = vld [vmem:[%s4031_s1 + $0x128] sm:$0xff]  ;;  %v3103_v57 = vld [vmem:[%s4031_s1 + $0x1a0] sm:$0xff] }
  0x11   :  { %1815 = vmatpush.bf16.msra.mxu3 %v3079_v15  ;;  %v3105_v47 = vld [vmem:[%s4031_s1 + $0x1b0] sm:$0xff]  ;;  %v3104_v53 = vld [vmem:[%s4031_s1 + $0x1a8] sm:$0xff]  ;;  %v3095_v58 = vld [vmem:[%s4031_s1 + $0x160] sm:$0xff] }
  0x12   :  { %1774 = vmatpush.bf16.msra.mxu0 %v3054_v16  ;;  %v3097_v50 = vld [vmem:[%s4031_s1 + $0x170] sm:$0xff]  ;;  %v3096_v54 = vld [vmem:[%s4031_s1 + $0x168] sm:$0xff]  ;;  %v3111_v59 = vld [vmem:[%s4031_s1 + $0x1e0] sm:$0xff] }
  0x13   :  { %1802 = vmatpush.bf16.msra.mxu2 %v3070_v17  ;;  %v3113_v51 = vld [vmem:[%s4031_s1 + $0x1f0] sm:$0xff]  ;;  %v3112_v55 = vld [vmem:[%s4031_s1 + $0x1e8] sm:$0xff]  ;;  %v3086_v60 = vld [vmem:[%s4031_s1 + $0x118] sm:$0xff] }
  0x14   :  { %1788 = vmatpush.bf16.msra.mxu1 %v3062_v18  ;;  %v3102_v61 = vld [vmem:[%s4031_s1 + $0x198] sm:$0xff]  ;;  %v3085_v0 = vld [vmem:[%s4031_s1 + $0x110] sm:$0xff]  ;;  %v3084_v4 = vld [vmem:[%s4031_s1 + $0x108] sm:$0xff] }
  0x15   :  { %1816 = vmatpush.bf16.msra.mxu3 %v3078_v19  ;;  %v3094_v62 = vld [vmem:[%s4031_s1 + $0x158] sm:$0xff]  ;;  %v3101_v1 = vld [vmem:[%s4031_s1 + $0x190] sm:$0xff]  ;;  %v3100_v5 = vld [vmem:[%s4031_s1 + $0x188] sm:$0xff] }
  0x16   :  { %1775 = vmatpush.bf16.msra.mxu0 %v3053_v20  ;;  %v3110_v63 = vld [vmem:[%s4031_s1 + $0x1d8] sm:$0xff]  ;;  %v3093_v2 = vld [vmem:[%s4031_s1 + $0x150] sm:$0xff]  ;;  %v3092_v6 = vld [vmem:[%s4031_s1 + $0x148] sm:$0xff] }
  0x17   :  { %1803 = vmatpush.bf16.msra.mxu2 %v3069_v21  ;;  %v3109_v3 = vld [vmem:[%s4031_s1 + $0x1d0] sm:$0xff]  ;;  %v3108_v7 = vld [vmem:[%s4031_s1 + $0x1c8] sm:$0xff]  ;;  %v3083_v8 = vld [vmem:[%s4031_s1 + $0x100] sm:$0xff] }
  0x18   :  { %1789 = vmatpush.bf16.msra.mxu1 %v3061_v22  ;;  %v3099_v9 = vld [vmem:[%s4031_s1 + $0x180] sm:$0xff]  ;;  %v3122_v10 = vld [vmem:[%s4031_s1 + $0x238] sm:$0xff]  ;;  %v2144_v12 = vld [vmem:[%s4032_s0 + $0x10] sm:$0xf] }
  0x19   :  { %1817 = vmatpush.bf16.msra.mxu3 %v3077_v23  ;;  %v3138_v11 = vld [vmem:[%s4031_s1 + $0x2b8] sm:$0xff]  ;;  %v3040_v13 = vld [vmem:[%s4032_s0 + $0x70] sm:$0xf0]  ;;  %v3091_v16 = vld [vmem:[%s4031_s1 + $0x140] sm:$0xff] }
  0x1a   :  { %1776 = vmatpush.bf16.msra.mxu0 %v3052_v24  ;;  %v2152_v14 = vld [vmem:[%s4032_s0 + $0x18] sm:$0xf]  ;;  %v3041_v15 = vld [vmem:[%s4032_s0 + $0x78] sm:$0xf0]  ;;  %v3107_v17 = vld [vmem:[%s4031_s1 + $0x1c0] sm:$0xff]  ;;  %v2145_v22 = vor.u32 %v3040_v13, %v2144_v12 }
  0x1b   :  { %1804 = vmatpush.bf16.msra.mxu2 %v3068_v25  ;;  %v3028_v18 = vld [vmem:[%s4032_s0 + $0x14] sm:$0xf]  ;;  %v2146_v19 = vld [vmem:[%s4032_s0 + $0x74] sm:$0xf0]  ;;  %v3029_v20 = vld [vmem:[%s4032_s0 + $0x1c] sm:$0xf]  ;;  %v2153_v23 = vor.u32 %v3041_v15, %v2152_v14 }
  0x1c   :  { %1790 = vmatpush.bf16.msra.mxu1 %v3060_v26  ;;  %v2154_v21 = vld [vmem:[%s4032_s0 + $0x7c] sm:$0xf0]  ;;  %v3130_v24 = vld [vmem:[%s4031_s1 + $0x278] sm:$0xff]  ;;  %v2149_v26 = vor.u32 %v3028_v18, %v2146_v19  ;;  %v3128_v34 = vld [vmem:[%s4031_s1 + $0x268] sm:$0xff] }
  0x1d   :  { %1818 = vmatpush.bf16.msra.mxu3 %v3076_v27  ;;  %v3146_v25 = vld [vmem:[%s4031_s1 + $0x2f8] sm:$0xff]  ;;  %v2157_v27 = vor.u32 %v3029_v20, %v2154_v21  ;;  %v3144_v35 = vld [vmem:[%s4031_s1 + $0x2e8] sm:$0xff]  ;;  %v3119_v36 = vld [vmem:[%s4031_s1 + $0x220] sm:$0xff] }
  0x1e   :  { %1777 = vmatpush.bf16.msra.mxu0 %v3051_v28  ;;  %v3121_v28 = vld [vmem:[%s4031_s1 + $0x230] sm:$0xff]  ;;  %v3135_v37 = vld [vmem:[%s4031_s1 + $0x2a0] sm:$0xff]  ;;  %v3118_v40 = vld [vmem:[%s4031_s1 + $0x218] sm:$0xff] }
  0x1f   :  { %1805 = vmatpush.bf16.msra.mxu2 %v3067_v29  ;;  %v3137_v29 = vld [vmem:[%s4031_s1 + $0x2b0] sm:$0xff]  ;;  %v3134_v41 = vld [vmem:[%s4031_s1 + $0x298] sm:$0xff]  ;;  %v3152_v12 = vld [vmem:[%s4031_s1 + $0x328] sm:$0xff] }
  0x20   :  { %1791 = vmatpush.bf16.msra.mxu1 %v3059_v32  ;;  %v3120_v32 = vld [vmem:[%s4031_s1 + $0x228] sm:$0xff]  ;;  %v3126_v42 = vld [vmem:[%s4031_s1 + $0x258] sm:$0xff]  ;;  %v3159_v18 = vld [vmem:[%s4031_s1 + $0x360] sm:$0xff] }
  0x21   :  { %1819 = vmatpush.bf16.msra.mxu3 %v3075_v33  ;;  %1778 = vmatmul.bf16.vlgmr.msra.gmra.mxu0 %v2129_v44  ;;  %v3136_v33 = vld [vmem:[%s4031_s1 + $0x2a8] sm:$0xff]  ;;  %v3142_v43 = vld [vmem:[%s4031_s1 + $0x2d8] sm:$0xff]  ;;  %v3117_v44 = vld [vmem:[%s4031_s1 + $0x210] sm:$0xff] }
  0x22   :  { %1826 = vmatpush.bf16.msrb.mxu0 %v3090_v30  ;;  %1806 = vmatmul.bf16.vlgmr.msra.gmra.mxu2 %v2137_v45  ;;  %v3129_v30 = vld [vmem:[%s4031_s1 + $0x270] sm:$0xff]  ;;  %v3168_v13 = vld [vmem:[%s4031_s1 + $0x3a8] sm:$0xff]  ;;  %v3175_v19 = vld [vmem:[%s4031_s1 + $0x3e0] sm:$0xff] }
  0x23   :  { %1854 = vmatpush.bf16.msrb.mxu2 %v3106_v31  ;;  %1792 = vmatmul.bf16.vlgmr.msra.gmra.mxu1 %v2133_v48  ;;  %v3145_v31 = vld [vmem:[%s4031_s1 + $0x2f0] sm:$0xff]  ;;  %v3116_v48 = vld [vmem:[%s4031_s1 + $0x208] sm:$0xff]  ;;  %v3150_v20 = vld [vmem:[%s4031_s1 + $0x318] sm:$0xff] }
  0x24   :  { %1840 = vmatpush.bf16.msrb.mxu1 %v3098_v38  ;;  %1820 = vmatmul.bf16.vlgmr.msra.gmra.mxu3 %v2141_v49  ;;  %v3127_v38 = vld [vmem:[%s4031_s1 + $0x260] sm:$0xff]  ;;  %v3133_v45 = vld [vmem:[%s4031_s1 + $0x290] sm:$0xff]  ;;  %v3132_v49 = vld [vmem:[%s4031_s1 + $0x288] sm:$0xff] }
  0x25   :  { %1868 = vmatpush.bf16.msrb.mxu3 %v3114_v39  ;;  %v3143_v39 = vld [vmem:[%s4031_s1 + $0x2e0] sm:$0xff]  ;;  %v3160_v14 = vld [vmem:[%s4031_s1 + $0x368] sm:$0xff]  ;;  %v3166_v21 = vld [vmem:[%s4031_s1 + $0x398] sm:$0xff] }
  0x26   :  { %1827 = vmatpush.bf16.msrb.mxu0 %v3089_v46  ;;  %v3125_v46 = vld [vmem:[%s4031_s1 + $0x250] sm:$0xff]  ;;  %v3176_v15 = vld [vmem:[%s4031_s1 + $0x3e8] sm:$0xff] }
  0x27   :  { %1855 = vmatpush.bf16.msrb.mxu2 %v3105_v47  ;;  %v3141_v47 = vld [vmem:[%s4031_s1 + $0x2d0] sm:$0xff] }
  0x28   :  { %1841 = vmatpush.bf16.msrb.mxu1 %v3097_v50  ;;  %v3124_v50 = vld [vmem:[%s4031_s1 + $0x248] sm:$0xff] }
  0x29   :  { %1869 = vmatpush.bf16.msrb.mxu3 %v3113_v51  ;;  %v3140_v51 = vld [vmem:[%s4031_s1 + $0x2c8] sm:$0xff] }
  0x2a   :  { %1828 = vmatpush.bf16.msrb.mxu0 %v3088_v52  ;;  %v3115_v52 = vld [vmem:[%s4031_s1 + $0x200] sm:$0xff] }
  0x2b   :  { %1856 = vmatpush.bf16.msrb.mxu2 %v3104_v53  ;;  %v3131_v53 = vld [vmem:[%s4031_s1 + $0x280] sm:$0xff] }
  0x2c   :  { %1842 = vmatpush.bf16.msrb.mxu1 %v3096_v54  ;;  %v3154_v54 = vld [vmem:[%s4031_s1 + $0x338] sm:$0xff] }
  0x2d   :  { %1870 = vmatpush.bf16.msrb.mxu3 %v3112_v55  ;;  %v3170_v55 = vld [vmem:[%s4031_s1 + $0x3b8] sm:$0xff] }
  0x2e   :  { %1829 = vmatpush.bf16.msrb.mxu0 %v3087_v56  ;;  %v2160_v56 = vld [vmem:[%s4032_s0 + $0x20] sm:$0xf] }
  0x2f   :  { %1857 = vmatpush.bf16.msrb.mxu2 %v3103_v57  ;;  %v3042_v57 = vld [vmem:[%s4032_s0 + $0x80] sm:$0xf0] }
  0x30   :  { %1843 = vmatpush.bf16.msrb.mxu1 %v3095_v58  ;;  %v2168_v58 = vld [vmem:[%s4032_s0 + $0x28] sm:$0xf] }
  0x31   :  { %1871 = vmatpush.bf16.msrb.mxu3 %v3111_v59  ;;  %v3043_v59 = vld [vmem:[%s4032_s0 + $0x88] sm:$0xf0] }
  0x32   :  { %1830 = vmatpush.bf16.msrb.mxu0 %v3086_v60  ;;  %v3123_v60 = vld [vmem:[%s4031_s1 + $0x240] sm:$0xff] }
  0x33   :  { %1858 = vmatpush.bf16.msrb.mxu2 %v3102_v61  ;;  %v3139_v61 = vld [vmem:[%s4031_s1 + $0x2c0] sm:$0xff] }
  0x34   :  { %1844 = vmatpush.bf16.msrb.mxu1 %v3094_v62  ;;  %v3030_v62 = vld [vmem:[%s4032_s0 + $0x24] sm:$0xf] }
  0x35   :  { %1872 = vmatpush.bf16.msrb.mxu3 %v3110_v63  ;;  %v2162_v63 = vld [vmem:[%s4032_s0 + $0x84] sm:$0xf0] }
  0x36   :  { %1831 = vmatpush.bf16.msrb.mxu0 %v3085_v0  ;;  %v3031_v0 = vld [vmem:[%s4032_s0 + $0x2c] sm:$0xf] }
  0x37   :  { %1859 = vmatpush.bf16.msrb.mxu2 %v3101_v1  ;;  %v2170_v1 = vld [vmem:[%s4032_s0 + $0x8c] sm:$0xf0] }
  0x38   :  { %1845 = vmatpush.bf16.msrb.mxu1 %v3093_v2  ;;  %v2161_v2 = vor.u32 %v3042_v57, %v2160_v56  ;;  %v3184_v56 = vld [vmem:[%s4031_s1 + $0x428] sm:$0xff] }
  0x39   :  { %1873 = vmatpush.bf16.msrb.mxu3 %v3109_v3  ;;  %v2169_v3 = vor.u32 %v3043_v59, %v2168_v58  ;;  %v3200_v57 = vld [vmem:[%s4031_s1 + $0x4a8] sm:$0xff] }
  0x3a   :  { %1832 = vmatpush.bf16.msrb.mxu0 %v3084_v4  ;;  %v3162_v4 = vld [vmem:[%s4031_s1 + $0x378] sm:$0xff]  ;;  %v3192_v58 = vld [vmem:[%s4031_s1 + $0x468] sm:$0xff] }
  0x3b   :  { %1860 = vmatpush.bf16.msrb.mxu2 %v3100_v5  ;;  %v3178_v5 = vld [vmem:[%s4031_s1 + $0x3f8] sm:$0xff]  ;;  %v3208_v59 = vld [vmem:[%s4031_s1 + $0x4e8] sm:$0xff] }
  0x3c   :  { %1846 = vmatpush.bf16.msrb.mxu1 %v3092_v6  ;;  %v2165_v6 = vor.u32 %v3030_v62, %v2162_v63  ;;  %v3191_v62 = vld [vmem:[%s4031_s1 + $0x460] sm:$0xff] }
  0x3d   :  { %1874 = vmatpush.bf16.msrb.mxu3 %v3108_v7  ;;  %v2173_v7 = vor.u32 %v3031_v0, %v2170_v1  ;;  %v3207_v63 = vld [vmem:[%s4031_s1 + $0x4e0] sm:$0xff]  ;;  %v3182_v0 = vld [vmem:[%s4031_s1 + $0x418] sm:$0xff] }
  0x3e   :  { %1833 = vmatpush.bf16.msrb.mxu0 %v3083_v8  ;;  %v3153_v8 = vld [vmem:[%s4031_s1 + $0x330] sm:$0xff]  ;;  %v3198_v1 = vld [vmem:[%s4031_s1 + $0x498] sm:$0xff] }
  0x3f   :  { %1861 = vmatpush.bf16.msrb.mxu2 %v3099_v9  ;;  %v3169_v9 = vld [vmem:[%s4031_s1 + $0x3b0] sm:$0xff] }
  0x40   :  { %1847 = vmatpush.bf16.msrb.mxu1 %v3091_v16  ;;  %v3151_v16 = vld [vmem:[%s4031_s1 + $0x320] sm:$0xff] }
  0x41   :  { %1875 = vmatpush.bf16.msrb.mxu3 %v3107_v17  ;;  %1834 = vmatmul.bf16.vlgmr.msrb.gmra.mxu0 %v2145_v22  ;;  %v3167_v17 = vld [vmem:[%s4031_s1 + $0x3a0] sm:$0xff]  ;;  %v3158_v22 = vld [vmem:[%s4031_s1 + $0x358] sm:$0xff] }
  0x42   :  { %1882 = vmatpush.bf16.msra.mxu0 %v3122_v10  ;;  %1862 = vmatmul.bf16.vlgmr.msrb.gmra.mxu2 %v2153_v23  ;;  %v3161_v10 = vld [vmem:[%s4031_s1 + $0x370] sm:$0xff]  ;;  %v3174_v23 = vld [vmem:[%s4031_s1 + $0x3d8] sm:$0xff] }
  0x43   :  { %1910 = vmatpush.bf16.msra.mxu2 %v3138_v11  ;;  %1848 = vmatmul.bf16.vlgmr.msrb.gmra.mxu1 %v2149_v26  ;;  %v3177_v11 = vld [vmem:[%s4031_s1 + $0x3f0] sm:$0xff] }
  0x44   :  { %1896 = vmatpush.bf16.msra.mxu1 %v3130_v24  ;;  %1876 = vmatmul.bf16.vlgmr.msrb.gmra.mxu3 %v2157_v27  ;;  %v3149_v24 = vld [vmem:[%s4031_s1 + $0x310] sm:$0xff] }
  0x45   :  { %1924 = vmatpush.bf16.msra.mxu3 %v3146_v25  ;;  %v3165_v25 = vld [vmem:[%s4031_s1 + $0x390] sm:$0xff] }
  0x46   :  { %1883 = vmatpush.bf16.msra.mxu0 %v3121_v28  ;;  %v3157_v26 = vld [vmem:[%s4031_s1 + $0x350] sm:$0xff]  ;;  %v3148_v28 = vld [vmem:[%s4031_s1 + $0x308] sm:$0xff] }
  0x47   :  { %1911 = vmatpush.bf16.msra.mxu2 %v3137_v29  ;;  %v3173_v27 = vld [vmem:[%s4031_s1 + $0x3d0] sm:$0xff]  ;;  %v3164_v29 = vld [vmem:[%s4031_s1 + $0x388] sm:$0xff] }
  0x48   :  { %1897 = vmatpush.bf16.msra.mxu1 %v3129_v30  ;;  %v3156_v30 = vld [vmem:[%s4031_s1 + $0x348] sm:$0xff] }
  0x49   :  { %1925 = vmatpush.bf16.msra.mxu3 %v3145_v31  ;;  %v3172_v31 = vld [vmem:[%s4031_s1 + $0x3c8] sm:$0xff] }
  0x4a   :  { %1884 = vmatpush.bf16.msra.mxu0 %v3120_v32  ;;  %v3147_v32 = vld [vmem:[%s4031_s1 + $0x300] sm:$0xff] }
  0x4b   :  { %1912 = vmatpush.bf16.msra.mxu2 %v3136_v33  ;;  %v3163_v33 = vld [vmem:[%s4031_s1 + $0x380] sm:$0xff] }
  0x4c   :  { %1898 = vmatpush.bf16.msra.mxu1 %v3128_v34  ;;  %v3186_v34 = vld [vmem:[%s4031_s1 + $0x438] sm:$0xff] }
  0x4d   :  { %1926 = vmatpush.bf16.msra.mxu3 %v3144_v35  ;;  %v3202_v35 = vld [vmem:[%s4031_s1 + $0x4b8] sm:$0xff] }
  0x4e   :  { %1885 = vmatpush.bf16.msra.mxu0 %v3119_v36  ;;  %v2176_v36 = vld [vmem:[%s4032_s0 + $0x30] sm:$0xf] }
  0x4f   :  { %1913 = vmatpush.bf16.msra.mxu2 %v3135_v37  ;;  %v3044_v37 = vld [vmem:[%s4032_s0 + $0x90] sm:$0xf0] }
  0x50   :  { %1899 = vmatpush.bf16.msra.mxu1 %v3127_v38  ;;  %v2184_v38 = vld [vmem:[%s4032_s0 + $0x38] sm:$0xf] }
  0x51   :  { %1927 = vmatpush.bf16.msra.mxu3 %v3143_v39  ;;  %v3045_v39 = vld [vmem:[%s4032_s0 + $0x98] sm:$0xf0] }
  0x52   :  { %1886 = vmatpush.bf16.msra.mxu0 %v3118_v40  ;;  %v3155_v40 = vld [vmem:[%s4031_s1 + $0x340] sm:$0xff] }
  0x53   :  { %1914 = vmatpush.bf16.msra.mxu2 %v3134_v41  ;;  %v3171_v41 = vld [vmem:[%s4031_s1 + $0x3c0] sm:$0xff] }
  0x54   :  { %1900 = vmatpush.bf16.msra.mxu1 %v3126_v42  ;;  %v3032_v42 = vld [vmem:[%s4032_s0 + $0x34] sm:$0xf] }
  0x55   :  { %1928 = vmatpush.bf16.msra.mxu3 %v3142_v43  ;;  %v2178_v43 = vld [vmem:[%s4032_s0 + $0x94] sm:$0xf0] }
  0x56   :  { %1887 = vmatpush.bf16.msra.mxu0 %v3117_v44  ;;  %v3033_v44 = vld [vmem:[%s4032_s0 + $0x3c] sm:$0xf] }
  0x57   :  { %1915 = vmatpush.bf16.msra.mxu2 %v3133_v45  ;;  %v2186_v45 = vld [vmem:[%s4032_s0 + $0x9c] sm:$0xf0] }
  0x58   :  { %1901 = vmatpush.bf16.msra.mxu1 %v3125_v46  ;;  %v2177_v46 = vor.u32 %v3044_v37, %v2176_v36  ;;  %v3216_v36 = vld [vmem:[%s4031_s1 + $0x528] sm:$0xff] }
  0x59   :  { %1929 = vmatpush.bf16.msra.mxu3 %v3141_v47  ;;  %v2185_v47 = vor.u32 %v3045_v39, %v2184_v38  ;;  %v3232_v37 = vld [vmem:[%s4031_s1 + $0x5a8] sm:$0xff] }
  0x5a   :  { %1888 = vmatpush.bf16.msra.mxu0 %v3116_v48  ;;  %v3194_v48 = vld [vmem:[%s4031_s1 + $0x478] sm:$0xff]  ;;  %v3224_v38 = vld [vmem:[%s4031_s1 + $0x568] sm:$0xff] }
  0x5b   :  { %1916 = vmatpush.bf16.msra.mxu2 %v3132_v49  ;;  %v3210_v49 = vld [vmem:[%s4031_s1 + $0x4f8] sm:$0xff]  ;;  %v3240_v39 = vld [vmem:[%s4031_s1 + $0x5e8] sm:$0xff] }
  0x5c   :  { %1902 = vmatpush.bf16.msra.mxu1 %v3124_v50  ;;  %v2181_v50 = vor.u32 %v3032_v42, %v2178_v43  ;;  %v3223_v42 = vld [vmem:[%s4031_s1 + $0x560] sm:$0xff] }
  0x5d   :  { %1930 = vmatpush.bf16.msra.mxu3 %v3140_v51  ;;  %v2189_v51 = vor.u32 %v3033_v44, %v2186_v45  ;;  %v3239_v43 = vld [vmem:[%s4031_s1 + $0x5e0] sm:$0xff]  ;;  %v3214_v44 = vld [vmem:[%s4031_s1 + $0x518] sm:$0xff] }
  0x5e   :  { %1889 = vmatpush.bf16.msra.mxu0 %v3115_v52  ;;  %v3185_v52 = vld [vmem:[%s4031_s1 + $0x430] sm:$0xff]  ;;  %v3230_v45 = vld [vmem:[%s4031_s1 + $0x598] sm:$0xff] }
  0x5f   :  { %1917 = vmatpush.bf16.msra.mxu2 %v3131_v53  ;;  %v3201_v53 = vld [vmem:[%s4031_s1 + $0x4b0] sm:$0xff] }
  0x60   :  { %1903 = vmatpush.bf16.msra.mxu1 %v3123_v60  ;;  %v3183_v60 = vld [vmem:[%s4031_s1 + $0x420] sm:$0xff] }
  0x61   :  { %1931 = vmatpush.bf16.msra.mxu3 %v3139_v61  ;;  %1890 = vmatmul.bf16.vlgmr.msra.gmra.mxu0 %v2161_v2  ;;  %v3199_v61 = vld [vmem:[%s4031_s1 + $0x4a0] sm:$0xff]  ;;  %v3190_v2 = vld [vmem:[%s4031_s1 + $0x458] sm:$0xff] }
  0x62   :  { %1938 = vmatpush.bf16.msrb.mxu0 %v3154_v54  ;;  %1918 = vmatmul.bf16.vlgmr.msra.gmra.mxu2 %v2169_v3  ;;  %v3193_v54 = vld [vmem:[%s4031_s1 + $0x470] sm:$0xff]  ;;  %v3206_v3 = vld [vmem:[%s4031_s1 + $0x4d8] sm:$0xff] }
  0x63   :  { %1966 = vmatpush.bf16.msrb.mxu2 %v3170_v55  ;;  %1904 = vmatmul.bf16.vlgmr.msra.gmra.mxu1 %v2165_v6  ;;  %v3209_v55 = vld [vmem:[%s4031_s1 + $0x4f0] sm:$0xff] }
  0x64   :  { %1952 = vmatpush.bf16.msrb.mxu1 %v3162_v4  ;;  %1932 = vmatmul.bf16.vlgmr.msra.gmra.mxu3 %v2173_v7  ;;  %v3181_v4 = vld [vmem:[%s4031_s1 + $0x410] sm:$0xff] }
  0x65   :  { %1980 = vmatpush.bf16.msrb.mxu3 %v3178_v5  ;;  %v3197_v5 = vld [vmem:[%s4031_s1 + $0x490] sm:$0xff] }
  0x66   :  { %1939 = vmatpush.bf16.msrb.mxu0 %v3153_v8  ;;  %v3189_v6 = vld [vmem:[%s4031_s1 + $0x450] sm:$0xff]  ;;  %v3180_v8 = vld [vmem:[%s4031_s1 + $0x408] sm:$0xff] }
  0x67   :  { %1967 = vmatpush.bf16.msrb.mxu2 %v3169_v9  ;;  %v3205_v7 = vld [vmem:[%s4031_s1 + $0x4d0] sm:$0xff]  ;;  %v3196_v9 = vld [vmem:[%s4031_s1 + $0x488] sm:$0xff] }
  0x68   :  { %1953 = vmatpush.bf16.msrb.mxu1 %v3161_v10  ;;  %v3188_v10 = vld [vmem:[%s4031_s1 + $0x448] sm:$0xff] }
  0x69   :  { %1981 = vmatpush.bf16.msrb.mxu3 %v3177_v11  ;;  %v3204_v11 = vld [vmem:[%s4031_s1 + $0x4c8] sm:$0xff] }
  0x6a   :  { %1940 = vmatpush.bf16.msrb.mxu0 %v3152_v12  ;;  %v3179_v12 = vld [vmem:[%s4031_s1 + $0x400] sm:$0xff] }
  0x6b   :  { %1968 = vmatpush.bf16.msrb.mxu2 %v3168_v13  ;;  %v3195_v13 = vld [vmem:[%s4031_s1 + $0x480] sm:$0xff] }
  0x6c   :  { %1954 = vmatpush.bf16.msrb.mxu1 %v3160_v14  ;;  %v3218_v14 = vld [vmem:[%s4031_s1 + $0x538] sm:$0xff] }
  0x6d   :  { %1982 = vmatpush.bf16.msrb.mxu3 %v3176_v15  ;;  %v3234_v15 = vld [vmem:[%s4031_s1 + $0x5b8] sm:$0xff] }
  0x6e   :  { %1941 = vmatpush.bf16.msrb.mxu0 %v3151_v16  ;;  %v2192_v16 = vld [vmem:[%s4032_s0 + $0x40] sm:$0xf] }
  0x6f   :  { %1969 = vmatpush.bf16.msrb.mxu2 %v3167_v17  ;;  %v3046_v17 = vld [vmem:[%s4032_s0 + $0xa0] sm:$0xf0] }
  0x70   :  { %1955 = vmatpush.bf16.msrb.mxu1 %v3159_v18  ;;  %v2200_v18 = vld [vmem:[%s4032_s0 + $0x48] sm:$0xf] }
  0x71   :  { %1983 = vmatpush.bf16.msrb.mxu3 %v3175_v19  ;;  %v3047_v19 = vld [vmem:[%s4032_s0 + $0xa8] sm:$0xf0] }
  0x72   :  { %1942 = vmatpush.bf16.msrb.mxu0 %v3150_v20  ;;  %v3187_v20 = vld [vmem:[%s4031_s1 + $0x440] sm:$0xff] }
  0x73   :  { %1970 = vmatpush.bf16.msrb.mxu2 %v3166_v21  ;;  %v3203_v21 = vld [vmem:[%s4031_s1 + $0x4c0] sm:$0xff] }
  0x74   :  { %1956 = vmatpush.bf16.msrb.mxu1 %v3158_v22  ;;  %v3034_v22 = vld [vmem:[%s4032_s0 + $0x44] sm:$0xf] }
  0x75   :  { %1984 = vmatpush.bf16.msrb.mxu3 %v3174_v23  ;;  %v2194_v23 = vld [vmem:[%s4032_s0 + $0xa4] sm:$0xf0] }
  0x76   :  { %1943 = vmatpush.bf16.msrb.mxu0 %v3149_v24  ;;  %v3035_v24 = vld [vmem:[%s4032_s0 + $0x4c] sm:$0xf] }
  0x77   :  { %1971 = vmatpush.bf16.msrb.mxu2 %v3165_v25  ;;  %v2202_v25 = vld [vmem:[%s4032_s0 + $0xac] sm:$0xf0] }
  0x78   :  { %1957 = vmatpush.bf16.msrb.mxu1 %v3157_v26  ;;  %v2193_v26 = vor.u32 %v3046_v17, %v2192_v16  ;;  %v2224_v16 = vld [vmem:[%s4032_s0 + $0x60] sm:$0xf]  ;;  %v3050_v17 = vld [vmem:[%s4032_s0 + $0xc0] sm:$0xf0] }
  0x79   :  { %1985 = vmatpush.bf16.msrb.mxu3 %v3173_v27  ;;  %v2201_v27 = vor.u32 %v3047_v19, %v2200_v18  ;;  %v2225_v18 = vor.u32 %v3050_v17, %v2224_v16 }
  0x7a   :  { %1944 = vmatpush.bf16.msrb.mxu0 %v3148_v28  ;;  %v3226_v28 = vld [vmem:[%s4031_s1 + $0x578] sm:$0xff] }
  0x7b   :  { %1972 = vmatpush.bf16.msrb.mxu2 %v3164_v29  ;;  %v3242_v29 = vld [vmem:[%s4031_s1 + $0x5f8] sm:$0xff] }
  0x7c   :  { %1958 = vmatpush.bf16.msrb.mxu1 %v3156_v30  ;;  %v2197_v30 = vor.u32 %v3034_v22, %v2194_v23 }
  0x7d   :  { %1986 = vmatpush.bf16.msrb.mxu3 %v3172_v31  ;;  %v2205_v31 = vor.u32 %v3035_v24, %v2202_v25 }
  0x7e   :  { %1945 = vmatpush.bf16.msrb.mxu0 %v3147_v32  ;;  %v3217_v32 = vld [vmem:[%s4031_s1 + $0x530] sm:$0xff] }
  0x7f   :  { %1973 = vmatpush.bf16.msrb.mxu2 %v3163_v33  ;;  %v3233_v33 = vld [vmem:[%s4031_s1 + $0x5b0] sm:$0xff] }
  0x80   :  { %1959 = vmatpush.bf16.msrb.mxu1 %v3155_v40  ;;  %v3215_v40 = vld [vmem:[%s4031_s1 + $0x520] sm:$0xff] }
  0x81   :  { %1987 = vmatpush.bf16.msrb.mxu3 %v3171_v41  ;;  %1946 = vmatmul.bf16.vlgmr.msrb.gmra.mxu0 %v2177_v46  ;;  %v3231_v41 = vld [vmem:[%s4031_s1 + $0x5a0] sm:$0xff]  ;;  %v3222_v46 = vld [vmem:[%s4031_s1 + $0x558] sm:$0xff] }
  0x82   :  { %1994 = vmatpush.bf16.msra.mxu0 %v3186_v34  ;;  %1974 = vmatmul.bf16.vlgmr.msrb.gmra.mxu2 %v2185_v47  ;;  %v3225_v34 = vld [vmem:[%s4031_s1 + $0x570] sm:$0xff]  ;;  %v3238_v47 = vld [vmem:[%s4031_s1 + $0x5d8] sm:$0xff] }
  0x83   :  { %2022 = vmatpush.bf16.msra.mxu2 %v3202_v35  ;;  %1960 = vmatmul.bf16.vlgmr.msrb.gmra.mxu1 %v2181_v50  ;;  %v3241_v35 = vld [vmem:[%s4031_s1 + $0x5f0] sm:$0xff] }
  0x84   :  { %2008 = vmatpush.bf16.msra.mxu1 %v3194_v48  ;;  %1988 = vmatmul.bf16.vlgmr.msrb.gmra.mxu3 %v2189_v51  ;;  %v3213_v48 = vld [vmem:[%s4031_s1 + $0x510] sm:$0xff] }
  0x85   :  { %2036 = vmatpush.bf16.msra.mxu3 %v3210_v49  ;;  %v3229_v49 = vld [vmem:[%s4031_s1 + $0x590] sm:$0xff] }
  0x86   :  { %1995 = vmatpush.bf16.msra.mxu0 %v3185_v52  ;;  %v3221_v50 = vld [vmem:[%s4031_s1 + $0x550] sm:$0xff]  ;;  %v3212_v52 = vld [vmem:[%s4031_s1 + $0x508] sm:$0xff] }
  0x87   :  { %2023 = vmatpush.bf16.msra.mxu2 %v3201_v53  ;;  %v3237_v51 = vld [vmem:[%s4031_s1 + $0x5d0] sm:$0xff]  ;;  %v3228_v53 = vld [vmem:[%s4031_s1 + $0x588] sm:$0xff] }
  0x88   :  { %2009 = vmatpush.bf16.msra.mxu1 %v3193_v54  ;;  %v3220_v54 = vld [vmem:[%s4031_s1 + $0x548] sm:$0xff] }
  0x89   :  { %2037 = vmatpush.bf16.msra.mxu3 %v3209_v55  ;;  %v3236_v55 = vld [vmem:[%s4031_s1 + $0x5c8] sm:$0xff] }
  0x8a   :  { %1996 = vmatpush.bf16.msra.mxu0 %v3184_v56  ;;  %v3211_v56 = vld [vmem:[%s4031_s1 + $0x500] sm:$0xff] }
  0x8b   :  { %2024 = vmatpush.bf16.msra.mxu2 %v3200_v57  ;;  %v3227_v57 = vld [vmem:[%s4031_s1 + $0x580] sm:$0xff] }
  0x8c   :  { %2010 = vmatpush.bf16.msra.mxu1 %v3192_v58  ;;  %v3250_v58 = vld [vmem:[%s4031_s1 + $0x638] sm:$0xff] }
  0x8d   :  { %2038 = vmatpush.bf16.msra.mxu3 %v3208_v59  ;;  %v2208_v59 = vld [vmem:[%s4032_s0 + $0x50] sm:$0xf] }
  0x8e   :  { %1997 = vmatpush.bf16.msra.mxu0 %v3183_v60  ;;  %v3048_v60 = vld [vmem:[%s4032_s0 + $0xb0] sm:$0xf0] }
  0x8f   :  { %2025 = vmatpush.bf16.msra.mxu2 %v3199_v61  ;;  %v2216_v61 = vld [vmem:[%s4032_s0 + $0x58] sm:$0xf] }
  0x90   :  { %2011 = vmatpush.bf16.msra.mxu1 %v3191_v62  ;;  %v3049_v62 = vld [vmem:[%s4032_s0 + $0xb8] sm:$0xf0] }
  0x91   :  { %2039 = vmatpush.bf16.msra.mxu3 %v3207_v63  ;;  %v3219_v63 = vld [vmem:[%s4031_s1 + $0x540] sm:$0xff] }
  0x92   :  { %1998 = vmatpush.bf16.msra.mxu0 %v3182_v0  ;;  %v3235_v0 = vld [vmem:[%s4031_s1 + $0x5c0] sm:$0xff] }
  0x93   :  { %2026 = vmatpush.bf16.msra.mxu2 %v3198_v1  ;;  %v3036_v1 = vld [vmem:[%s4032_s0 + $0x54] sm:$0xf] }
  0x94   :  { %2012 = vmatpush.bf16.msra.mxu1 %v3190_v2  ;;  %v2210_v2 = vld [vmem:[%s4032_s0 + $0xb4] sm:$0xf0] }
  0x95   :  { %2040 = vmatpush.bf16.msra.mxu3 %v3206_v3  ;;  %v3037_v3 = vld [vmem:[%s4032_s0 + $0x5c] sm:$0xf] }
  0x96   :  { %1999 = vmatpush.bf16.msra.mxu0 %v3181_v4  ;;  %v2218_v4 = vld [vmem:[%s4032_s0 + $0xbc] sm:$0xf0] }
  0x97   :  { %2027 = vmatpush.bf16.msra.mxu2 %v3197_v5  ;;  %v2209_v5 = vor.u32 %v3048_v60, %v2208_v59 }
  0x98   :  { %2013 = vmatpush.bf16.msra.mxu1 %v3189_v6  ;;  %v2217_v6 = vor.u32 %v3049_v62, %v2216_v61 }
  0x99   :  { %2041 = vmatpush.bf16.msra.mxu3 %v3205_v7  ;;  %v2213_v7 = vor.u32 %v3036_v1, %v2210_v2 }
  0x9a   :  { %2000 = vmatpush.bf16.msra.mxu0 %v3180_v8  ;;  %v2221_v8 = vor.u32 %v3037_v3, %v2218_v4 }
  0x9b   :  { %2028 = vmatpush.bf16.msra.mxu2 %v3196_v9  ;;  %v3249_v9 = vld [vmem:[%s4031_s1 + $0x630] sm:$0xff] }
  0x9c   :  { %2014 = vmatpush.bf16.msra.mxu1 %v3188_v10  ;;  %v3248_v10 = vld [vmem:[%s4031_s1 + $0x628] sm:$0xff] }
  0x9d   :  { %2042 = vmatpush.bf16.msra.mxu3 %v3204_v11  ;;  %v3247_v11 = vld [vmem:[%s4031_s1 + $0x620] sm:$0xff] }
  0x9e   :  { %2001 = vmatpush.bf16.msra.mxu0 %v3179_v12  ;;  %v3246_v12 = vld [vmem:[%s4031_s1 + $0x618] sm:$0xff]  ;;  %v1779_v19 = vpop.f32.mrf.mxu0 }
  0x9f   :  { %2029 = vmatpush.bf16.msra.mxu2 %v3195_v13  ;;  %v3245_v13 = vld [vmem:[%s4031_s1 + $0x610] sm:$0xff] }
  0xa0   :  { %2015 = vmatpush.bf16.msra.mxu1 %v3187_v20  ;;  %v1793_v20 = vpop.f32.mrf.mxu1 }
  0xa1   :  { %2043 = vmatpush.bf16.msra.mxu3 %v3203_v21  ;;  %2002 = vmatmul.bf16.vlgmr.msra.gmra.mxu0 %v2193_v26 }
  0xa2   :  { %2050 = vmatpush.bf16.msrb.mxu0 %v3218_v14  ;;  %2030 = vmatmul.bf16.vlgmr.msra.gmra.mxu2 %v2201_v27  ;;  %v3244_v14 = vld [vmem:[%s4031_s1 + $0x608] sm:$0xff] }
  0xa3   :  { %2078 = vmatpush.bf16.msrb.mxu2 %v3234_v15  ;;  %2016 = vmatmul.bf16.vlgmr.msra.gmra.mxu1 %v2197_v30  ;;  %v3243_v15 = vld [vmem:[%s4031_s1 + $0x600] sm:$0xff] }
  0xa4   :  { %2064 = vmatpush.bf16.msrb.mxu1 %v3226_v28  ;;  %2044 = vmatmul.bf16.vlgmr.msra.gmra.mxu3 %v2205_v31  ;;  %v3251_v30 = vld [vmem:[%s4033_s2] ss:$0 sm:$0xff] }
  0xa5   :  { %2092 = vmatpush.bf16.msrb.mxu3 %v3242_v29  ;;  %v1807_v21 = vpop.f32.mrf.mxu2 }
  0xa6   :  { %2051 = vmatpush.bf16.msrb.mxu0 %v3217_v32  ;;  %v1781_v22 = vpop.f32.mrf.mxu0 }
  0xa7   :  { %2079 = vmatpush.bf16.msrb.mxu2 %v3233_v33  ;;  %v1821_v23 = vpop.f32.mrf.mxu3  ;;  %v1780_v33 = vadd.f32 %v3251_v30, %v1779_v19 }
  0xa8   :  { %2065 = vmatpush.bf16.msrb.mxu1 %v3225_v34  ;;  %v1795_v24 = vpop.f32.mrf.mxu1 }
  0xa9   :  { %2093 = vmatpush.bf16.msrb.mxu3 %v3241_v35  ;;  %v1794_v35 = vadd.f32 %v1793_v20, %v1780_v33 }
  0xaa   :  { %2052 = vmatpush.bf16.msrb.mxu0 %v3216_v36 }
  0xab   :  { %2080 = vmatpush.bf16.msrb.mxu2 %v3232_v37 }
  0xac   :  { %2066 = vmatpush.bf16.msrb.mxu1 %v3224_v38  ;;  %v1808_v38 = vadd.f32 %v1807_v21, %v1794_v35 }
  0xad   :  { %2094 = vmatpush.bf16.msrb.mxu3 %v3240_v39  ;;  %v1809_v25 = vpop.f32.mrf.mxu2 }
  0xae   :  { %2053 = vmatpush.bf16.msrb.mxu0 %v3215_v40 }
  0xaf   :  { %2081 = vmatpush.bf16.msrb.mxu2 %v3231_v41  ;;  %v1823_v27 = vpop.f32.mrf.mxu3  ;;  %v1782_v41 = vadd.f32 %v3251_v30, %v1781_v22 }
  0xb0   :  { %2067 = vmatpush.bf16.msrb.mxu1 %v3223_v42  ;;  %v1822_v42 = vadd.f32 %v1821_v23, %v1808_v38 }
  0xb1   :  { %2095 = vmatpush.bf16.msrb.mxu3 %v3239_v43 }
  0xb2   :  { %2054 = vmatpush.bf16.msrb.mxu0 %v3214_v44 }
  0xb3   :  { %2082 = vmatpush.bf16.msrb.mxu2 %v3230_v45  ;;  %v1796_v45 = vadd.f32 %v1795_v24, %v1782_v41 }
  0xb4   :  { %2068 = vmatpush.bf16.msrb.mxu1 %v3222_v46 }
  0xb5   :  { %2096 = vmatpush.bf16.msrb.mxu3 %v3238_v47 }
  0xb6   :  { %2055 = vmatpush.bf16.msrb.mxu0 %v3213_v48  ;;  %v1810_v48 = vadd.f32 %v1809_v25, %v1796_v45 }
  0xb7   :  { %2083 = vmatpush.bf16.msrb.mxu2 %v3229_v49 }
  0xb8   :  { %2069 = vmatpush.bf16.msrb.mxu1 %v3221_v50 }
  0xb9   :  { %2097 = vmatpush.bf16.msrb.mxu3 %v3237_v51 }
  0xba   :  { %2056 = vmatpush.bf16.msrb.mxu0 %v3212_v52 }
  0xbb   :  { %2084 = vmatpush.bf16.msrb.mxu2 %v3228_v53  ;;  %v1824_v53 = vadd.f32 %v1823_v27, %v1810_v48 }
  0xbc   :  { %2070 = vmatpush.bf16.msrb.mxu1 %v3220_v54 }
  0xbd   :  { %2098 = vmatpush.bf16.msrb.mxu3 %v3236_v55 }
  0xbe   :  { %2057 = vmatpush.bf16.msrb.mxu0 %v3211_v56  ;;  %v1835_v26 = vpop.f32.mrf.mxu0 }
  0xbf   :  { %2085 = vmatpush.bf16.msrb.mxu2 %v3227_v57  ;;  %v1836_v46 = vadd.f32 %v1835_v26, %v1822_v42 }
  0xc0   :  { %2071 = vmatpush.bf16.msrb.mxu1 %v3219_v63  ;;  %v1849_v28 = vpop.f32.mrf.mxu1 }
  0xc1   :  { %2099 = vmatpush.bf16.msrb.mxu3 %v3235_v0  ;;  %2058 = vmatmul.bf16.vlgmr.msrb.gmra.mxu0 %v2209_v5  ;;  %v1850_v49 = vadd.f32 %v1849_v28, %v1836_v46 }
  0xc2   :  { %2106 = vmatpush.bf16.msra.mxu0 %v3250_v58  ;;  %2086 = vmatmul.bf16.vlgmr.msrb.gmra.mxu2 %v2217_v6 }
  0xc3   :  { %2072 = vmatmul.bf16.vlgmr.msrb.gmra.mxu1 %v2213_v7 }
  0xc4   :  { %2100 = vmatmul.bf16.vlgmr.msrb.gmra.mxu3 %v2221_v8 }
  0xc5   :  { %v1863_v29 = vpop.f32.mrf.mxu2 }
  0xc6   :  { %2107 = vmatpush.bf16.msra.mxu0 %v3249_v9  ;;  %v1837_v31 = vpop.f32.mrf.mxu0  ;;  %v1864_v54 = vadd.f32 %v1863_v29, %v1850_v49 }
  0xc7   :  { %v1877_v32 = vpop.f32.mrf.mxu3  ;;  %v1838_v55 = vadd.f32 %v1837_v31, %v1824_v53 }
  0xc8   :  { %v1851_v34 = vpop.f32.mrf.mxu1  ;;  %v1878_v57 = vadd.f32 %v1877_v32, %v1864_v54 }
  0xc9   :  { %v1852_v59 = vadd.f32 %v1851_v34, %v1838_v55 }
  0xca   :  { %2108 = vmatpush.bf16.msra.mxu0 %v3248_v10 }
  0xcd   :  { %v1865_v36 = vpop.f32.mrf.mxu2 }
  0xce   :  { %2109 = vmatpush.bf16.msra.mxu0 %v3247_v11  ;;  %v1866_v62 = vadd.f32 %v1865_v36, %v1852_v59 }
  0xcf   :  { %v1879_v39 = vpop.f32.mrf.mxu3 }
  0xd0   :  { %v1880_v2 = vadd.f32 %v1879_v39, %v1866_v62 }
  0xd2   :  { %2110 = vmatpush.bf16.msra.mxu0 %v3246_v12 }
  0xd6   :  { %2111 = vmatpush.bf16.msra.mxu0 %v3245_v13 }
  0xda   :  { %2112 = vmatpush.bf16.msra.mxu0 %v3244_v14 }
  0xde   :  { %2113 = vmatpush.bf16.msra.mxu0 %v3243_v15  ;;  %v1891_v37 = vpop.f32.mrf.mxu0 }
  0xdf   :  { %v1892_v60 = vadd.f32 %v1891_v37, %v1878_v57 }
  0xe0   :  { %v1905_v40 = vpop.f32.mrf.mxu1 }
  0xe1   :  { %2114 = vmatmul.bf16.vlgmr.msra.gmra.mxu0 %v2225_v18  ;;  %v1906_v0 = vadd.f32 %v1905_v40, %v1892_v60 }
  0xe5   :  { %v1919_v43 = vpop.f32.mrf.mxu2 }
  0xe6   :  { %v1893_v44 = vpop.f32.mrf.mxu0  ;;  %v1920_v3 = vadd.f32 %v1919_v43, %v1906_v0 }
  0xe7   :  { %v1933_v47 = vpop.f32.mrf.mxu3  ;;  %v1894_v4 = vadd.f32 %v1893_v44, %v1880_v2 }
  0xe8   :  { %v1907_v50 = vpop.f32.mrf.mxu1  ;;  %v1934_v6 = vadd.f32 %v1933_v47, %v1920_v3 }
  0xe9   :  { %v1908_v9 = vadd.f32 %v1907_v50, %v1894_v4 }
  0xed   :  { %v1921_v51 = vpop.f32.mrf.mxu2 }
  0xee   :  { %v1922_v11 = vadd.f32 %v1921_v51, %v1908_v9 }
  0xef   :  { %v1935_v56 = vpop.f32.mrf.mxu3 }
  0xf0   :  { %v1936_v15 = vadd.f32 %v1935_v56, %v1922_v11 }
  0xfe   :  { %v1947_v52 = vpop.f32.mrf.mxu0 }
  0xff   :  { %v1948_v10 = vadd.f32 %v1947_v52, %v1934_v6 }
 0x100   :  { %v1961_v58 = vpop.f32.mrf.mxu1 }
 0x101   :  { %v1962_v13 = vadd.f32 %v1961_v58, %v1948_v10 }
 0x105   :  { %v1975_v61 = vpop.f32.mrf.mxu2 }
 0x106   :  { %v1949_v63 = vpop.f32.mrf.mxu0  ;;  %v1976_v16 = vadd.f32 %v1975_v61, %v1962_v13 }
 0x107   :  { %v1989_v1 = vpop.f32.mrf.mxu3  ;;  %v1950_v18 = vadd.f32 %v1949_v63, %v1936_v15 }
 0x108   :  { %v1963_v5 = vpop.f32.mrf.mxu1  ;;  %v1990_v20 = vadd.f32 %v1989_v1, %v1976_v16 }
 0x109   :  { %v1964_v22 = vadd.f32 %v1963_v5, %v1950_v18 }
 0x10d   :  { %v1977_v7 = vpop.f32.mrf.mxu2 }
 0x10e   :  { %v1978_v24 = vadd.f32 %v1977_v7, %v1964_v22 }
 0x10f   :  { %v1991_v12 = vpop.f32.mrf.mxu3 }
 0x110   :  { %v1992_v29 = vadd.f32 %v1991_v12, %v1978_v24 }
 0x11e   :  { %v2003_v8 = vpop.f32.mrf.mxu0 }
 0x11f   :  { %v2004_v23 = vadd.f32 %v2003_v8, %v1990_v20 }
 0x120   :  { %v2017_v14 = vpop.f32.mrf.mxu1 }
 0x121   :  { %v2018_v26 = vadd.f32 %v2017_v14, %v2004_v23 }
 0x125   :  { %v2031_v17 = vpop.f32.mrf.mxu2 }
 0x126   :  { %v2005_v19 = vpop.f32.mrf.mxu0  ;;  %v2032_v30 = vadd.f32 %v2031_v17, %v2018_v26 }
 0x127   :  { %v2045_v21 = vpop.f32.mrf.mxu3  ;;  %v2006_v31 = vadd.f32 %v2005_v19, %v1992_v29 }
 0x128   :  { %v2019_v25 = vpop.f32.mrf.mxu1  ;;  %v2046_v33 = vadd.f32 %v2045_v21, %v2032_v30 }
 0x129   :  { %v2020_v35 = vadd.f32 %v2019_v25, %v2006_v31 }
 0x12d   :  { %v2033_v27 = vpop.f32.mrf.mxu2 }
 0x12e   :  { %v2034_v38 = vadd.f32 %v2033_v27, %v2020_v35 }
 0x12f   :  { %v2047_v32 = vpop.f32.mrf.mxu3 }
 0x130   :  { %v2048_v42 = vadd.f32 %v2047_v32, %v2034_v38 }
 0x13e   :  { %v2059_v28 = vpop.f32.mrf.mxu0 }
 0x13f   :  { %v2060_v36 = vadd.f32 %v2059_v28, %v2046_v33 }
 0x140   :  { %v2073_v34 = vpop.f32.mrf.mxu1 }
 0x141   :  { %v2074_v40 = vadd.f32 %v2073_v34, %v2060_v36 }
 0x145   :  { %v2087_v37 = vpop.f32.mrf.mxu2 }
 0x146   :  { %v2061_v39 = vpop.f32.mrf.mxu0  ;;  %v2088_v43 = vadd.f32 %v2087_v37, %v2074_v40 }
 0x147   :  { %v2101_v41 = vpop.f32.mrf.mxu3  ;;  %v2062_v44 = vadd.f32 %v2061_v39, %v2048_v42 }
 0x148   :  { %v2075_v45 = vpop.f32.mrf.mxu1  ;;  %v2102_v46 = vadd.f32 %v2101_v41, %v2088_v43 }
 0x149   :  { %v2076_v49 = vadd.f32 %v2075_v45, %v2062_v44 }
 0x14d   :  { %v2089_v47 = vpop.f32.mrf.mxu2 }
 0x14e   :  { %v2090_v51 = vadd.f32 %v2089_v47, %v2076_v49 }
 0x14f   :  { %v2103_v52 = vpop.f32.mrf.mxu3 }
 0x150   :  { %v2104_v53 = vadd.f32 %v2103_v52, %v2090_v51 }
 0x15e   :  { %v2115_v48 = vpop.f32.mrf.mxu0 }
 0x15f   :  { %v2116_v50 = vadd.f32 %v2115_v48, %v2102_v46 }
 0x161   :  { %2120 = vst [vmem:[%s4034_s3] sm:$0xff] %v2116_v50 }
 0x166   :  { %v2117_v54 = vpop.f32.mrf.mxu0 }
 0x167   :  { %v2118_v55 = vadd.f32 %v2117_v54, %v2104_v53 }
 0x169   :  { %2121 = vst [vmem:[%s4034_s3 + $0x8] sm:$0xff] %v2118_v55 }

</bundles_post_ra>
